<compile_context>
chip_gen: v7x
topology: tpu7x:2x2x1
jax: 0.10.0
libtpu: 0.0.40
codegen_flags: <defaults>
</compile_context>

<pallas_src>
import functools

import numpy as np
import jax
import jax.numpy as jnp
from jax import lax
from jax.experimental import pallas as pl
from jax.experimental.pallas import tpu as pltpu

HF = 30                 # history_frame (CNN fc expects 32*7 = 224 inputs)
F_IN = 6                # input feature dim
WFLAT = HF * F_IN       # 180 : flattened window width (lane axis)
H = 128                 # GRU hidden size
NG = 3 * H              # stacked gate width [r|z|n]
CNN_OUT = 128           # lane-dense CNN feature width (12 real lanes + zeros)

# Scoped-VMEM budget: well above the 16/32 MiB defaults, <= v7x's 64 MiB
# physical.  On v5e/v6e (128 MiB physical) raise toward ~100 MiB when sweeping
# larger tm/tb.
_VMEM_LIMIT_BYTES = 48 * 1024 * 1024
_SCRATCH_BUDGET_BYTES = 24 * 1024 * 1024   # cap for the per-block GRU scratch


def _round_up(x, m):
    return (x + m - 1) // m * m


# ---------------------------------------------------------------------------
# Pallas kernel #1: SimpleCNN as three lane-dense matmuls (bf16 MXU operands)
# ---------------------------------------------------------------------------
def _cnn_kernel(xf_ref, a1_ref, b1_ref, a2_ref, b2_ref, a3_ref, b3_ref, out_ref,
                *, mm_dtype):
    def mm(a, w_ref):
        # bf16 (or f32) operands on the MXU, always f32 accumulation.
        return jnp.dot(a.astype(mm_dtype), w_ref[...],
                       preferred_element_type=jnp.float32)

    # conv1 + bias + relu for all 30 window positions in one matmul.
    # Output lanes [0,256) hold even positions, [256,512) odd positions.
    y1 = jnp.maximum(mm(xf_ref[...], a1_ref) + b1_ref[...], 0.0)   # (tm, 512)
    # pool1 (kernel 2, stride 2): max of the two 128-aligned halves.
    p1 = jnp.maximum(y1[:, :256], y1[:, 256:])                     # (tm, 256)

    # conv2 + bias + relu (positions 0..13; position 14 is dropped by pool2).
    y2 = jnp.maximum(mm(p1, a2_ref) + b2_ref[...], 0.0)            # (tm, 512)
    p2 = jnp.maximum(y2[:, :256], y2[:, 256:])                     # (tm, 256)

    # fc (224 used lanes -> 12), zero-padded to a lane-dense 128-wide output.
    out_ref[...] = mm(p2, a3_ref) + b3_ref[...]


def cnn_forward(xf, a1, b1, a2, b2, a3, b3, *, tm):
    m_pad = xf.shape[0]
    assert m_pad % tm == 0 and tm % 8 == 0
    kernel = functools.partial(_cnn_kernel, mm_dtype=a1.dtype)
    # NOTE: the constant-index weight specs are double-buffered by default
    # (~1 MB extra VMEM in bf16); acceptable under the 48 MiB budget.
    return pl.pallas_call(
        kernel,
        out_shape=jax.ShapeDtypeStruct((m_pad, CNN_OUT), jnp.float32),
        grid=(m_pad // tm,),
        in_specs=[
            pl.BlockSpec((tm, WFLAT), lambda i: (i, 0)),
            pl.BlockSpec((WFLAT, 512), lambda i: (0, 0)),
            pl.BlockSpec((1, 512), lambda i: (0, 0)),
            pl.BlockSpec((256, 512), lambda i: (0, 0)),
            pl.BlockSpec((1, 512), lambda i: (0, 0)),
            pl.BlockSpec((256, CNN_OUT), lambda i: (0, 0)),
            pl.BlockSpec((1, CNN_OUT), lambda i: (0, 0)),
        ],
        out_specs=pl.BlockSpec((tm, CNN_OUT), lambda i: (i, 0)),
        compiler_params=pltpu.CompilerParams(
            dimension_semantics=("parallel",),
            vmem_limit_bytes=_VMEM_LIMIT_BYTES),
    )(xf, a1, b1, a2, b2, a3, b3)


# ---------------------------------------------------------------------------
# Pallas kernel #2: SimpleGRU (5-layer GRU + fc1/relu + fc2), batch-tiled grid
# ---------------------------------------------------------------------------
def _gru_kernel(x_ref, wih_ref, whh_ref, bih_ref, bhhn_ref,
                wf1_ref, bf1_ref, wf2_ref, bf2_ref,
                out_ref, seq_ref, gx_ref, *, T, tb, mm_dtype):
    f32 = jnp.float32

    def mm(a, w_ref):
        # bf16 (or f32) operands on the MXU, f32 accumulation.  The weight is
        # read from its Ref view right at the dot (no long-lived temporary).
        return jnp.dot(a.astype(mm_dtype), w_ref[...],
                       preferred_element_type=f32)

    def run_layer(wih_v, bih_v, whh_v, bhhn_v, in_ref):
        # Hoisted input projection for the whole sequence: one big matmul,
        # completely off the serial critical path.  bhh[r|z] is already folded
        # into bih host-side, so the recurrent matmul below is bias-free.
        gx_ref[...] = mm(in_ref[...], wih_v) + bih_v[...]           # (T*tb, 3H)
        bhh_n = jnp.broadcast_to(bhhn_v[...], (tb, H))              # hoisted

        def step(t, h):
            row = pl.multiple_of(t * tb, tb)
            gx = gx_ref[pl.ds(row, tb), :]                          # (tb, 3H) f32
            gh = mm(h, whh_v)                                       # (tb, 3H)
            r = jax.nn.sigmoid(gx[:, 0:H] + gh[:, 0:H])
            z = jax.nn.sigmoid(gx[:, H:2 * H] + gh[:, H:2 * H])
            n = jnp.tanh(gx[:, 2 * H:] + r * (gh[:, 2 * H:] + bhh_n))
            h_new = (1.0 - z) * n + z * h
            seq_ref[pl.ds(row, tb), :] = h_new
            return h_new

        lax.fori_loop(0, T, step, jnp.zeros((tb, H), f32), unroll=2)

    # layer 0 reads the lane-dense (zero-padded 128-wide) CNN feature block
    run_layer(wih_ref.at[0], bih_ref.at[0], whh_ref.at[0], bhhn_ref.at[0], x_ref)
    # layers 1..4 read/overwrite the sequence scratch in place
    for l in range(1, 5):
        run_layer(wih_ref.at[l], bih_ref.at[l], whh_ref.at[l], bhhn_ref.at[l],
                  seq_ref)

    # output head, batched over the whole (T*tb, 128) slab: two matmuls, one store
    a = jnp.maximum(mm(seq_ref[...], wf1_ref) + bf1_ref[...], 0.0)
    out_ref[...] = mm(a, wf2_ref) + bf2_ref[...]


def gru_forward(x_g, gp, *, T, tb):
    G = x_g.shape[0]
    mm_dtype = gp["wih"].dtype
    kernel = functools.partial(_gru_kernel, T=T, tb=tb, mm_dtype=mm_dtype)
    return pl.pallas_call(
        kernel,
        out_shape=jax.ShapeDtypeStruct((G, T * tb, 2), jnp.float32),
        grid=(G,),
        in_specs=[
            pl.BlockSpec((None, T * tb, CNN_OUT), lambda i: (i, 0, 0)),
            pl.BlockSpec((5, H, NG), lambda i: (0, 0, 0)),
            pl.BlockSpec((5, H, NG), lambda i: (0, 0, 0)),
            pl.BlockSpec((5, 1, NG), lambda i: (0, 0, 0)),
            pl.BlockSpec((5, 1, H), lambda i: (0, 0, 0)),
            pl.BlockSpec((H, H), lambda i: (0, 0)),
            pl.BlockSpec((1, H), lambda i: (0, 0)),
            pl.BlockSpec((H, 2), lambda i: (0, 0)),
            pl.BlockSpec((1, 2), lambda i: (0, 0)),
        ],
        out_specs=pl.BlockSpec((None, T * tb, 2), lambda i: (i, 0, 0)),
        scratch_shapes=[pltpu.VMEM((T * tb, H), jnp.float32),     # sequence
                        pltpu.VMEM((T * tb, NG), jnp.float32)],   # hoisted gx
        compiler_params=pltpu.CompilerParams(
            dimension_semantics=("parallel",),
            vmem_limit_bytes=_VMEM_LIMIT_BYTES),
    )(x_g, gp["wih"], gp["whh"], gp["bih"], gp["bhhn"],
      gp["wf1"], gp["bf1"], gp["wf2"], gp["bf2"])


# ---------------------------------------------------------------------------
# Glue: prepare_data, parameter init, kernel-layout weight construction
# ---------------------------------------------------------------------------
def make_windows(x, hf):
    # Equivalent of CNNtoGRU.prepare_data: (B, n, F) -> (B, n, hf, F)
    B, n, F = x.shape
    first = jnp.repeat(x[:, :1, :], hf - 1, axis=1)
    padded = jnp.concatenate([first, x], axis=1)          # (B, n + hf - 1, F)
    idx = jnp.arange(n)[:, None] + jnp.arange(hf)[None, :]
    return padded[:, idx, :]


def init_params(key):
    ks = jax.random.split(key, 32)

    def nrm(k, shape):
        return (0.1 * jax.random.normal(k, shape)).astype(jnp.float32)

    p = {}
    p["conv1_w"] = nrm(ks[0], (16, 6, 1, 3))
    p["conv1_b"] = nrm(ks[1], (16,))
    p["conv2_w"] = nrm(ks[2], (32, 16, 1, 3))
    p["conv2_b"] = nrm(ks[3], (32,))
    p["cnn_fc_w"] = nrm(ks[4], (12, 224))
    p["cnn_fc_b"] = nrm(ks[5], (12,))
    p["gru_w_ih"], p["gru_w_hh"], p["gru_b_ih"], p["gru_b_hh"] = [], [], [], []
    kk = 6
    for l in range(5):
        in_sz = 12 if l == 0 else H
        p["gru_w_ih"].append(nrm(ks[kk], (NG, in_sz))); kk += 1
        p["gru_w_hh"].append(nrm(ks[kk], (NG, H)));     kk += 1
        p["gru_b_ih"].append(nrm(ks[kk], (NG,)));       kk += 1
        p["gru_b_hh"].append(nrm(ks[kk], (NG,)));       kk += 1
    p["gru_fc1_w"] = nrm(ks[kk], (H, H));   kk += 1
    p["gru_fc1_b"] = nrm(ks[kk], (H,));     kk += 1
    p["gru_fc2_w"] = nrm(ks[kk], (2, H));   kk += 1
    p["gru_fc2_b"] = nrm(ks[kk], (2,))
    return p


def _build_cnn_mats(p, mm_dtype):
    """Host-side block-banded weight matrices for the 3-matmul CNN kernel."""
    c1w = np.asarray(p["conv1_w"])   # (16, 6, 1, 3)   OIHW
    c1b = np.asarray(p["conv1_b"])   # (16,)
    c2w = np.asarray(p["conv2_w"])   # (32, 16, 1, 3)
    c2b = np.asarray(p["conv2_b"])   # (32,)
    fcw = np.asarray(p["cnn_fc_w"])  # (12, 224)  flatten index = o*7 + u
    fcb = np.asarray(p["cnn_fc_b"])  # (12,)

    # conv1: (180 -> 512). Output column layout: even window positions (w=2v)
    # at lane 16v+o in [0,256), odd positions at 256+16v+o.  Pool1 is then a
    # 128-aligned halves max; pooled layout = v*16+o (lanes 0..239).
    A1 = np.zeros((WFLAT, 512), np.float32)
    B1 = np.zeros((1, 512), np.float32)

    def col1(w, o):
        return (0 if w % 2 == 0 else 256) + (w // 2) * 16 + o

    for w in range(HF):
        for o in range(16):
            c_ = col1(w, o)
            B1[0, c_] = c1b[o]
            for k in range(3):
                wi = w + k - 1
                if 0 <= wi < HF:
                    for c in range(F_IN):
                        A1[wi * F_IN + c, c_] = c1w[o, c, 0, k]

    # conv2: (256 -> 512). Input rows v*16+i (v=0..14).  Only output positions
    # 0..13 are emitted (MaxPool2d drops position 14): even at 32u+o, odd at
    # 256+32u+o.  Pooled conv2 layout = u*32+o (lanes 0..223).
    A2 = np.zeros((256, 512), np.float32)
    B2 = np.zeros((1, 512), np.float32)

    def col2(v, o):
        return (0 if v % 2 == 0 else 256) + (v // 2) * 32 + o

    for v in range(14):
        for o in range(32):
            c_ = col2(v, o)
            B2[0, c_] = c2b[o]
            for k in range(3):
                vi = v + k - 1
                if 0 <= vi < 15:
                    for i in range(16):
                        A2[vi * 16 + i, c_] = c2w[o, i, 0, k]

    # fc: pooled layout u*32+o <-> PyTorch flatten index o*7+u.
    # Zero-padded to a lane-dense 128-wide output (lanes 12..127 are zero).
    A3 = np.zeros((256, CNN_OUT), np.float32)
    for u in range(7):
        for o in range(32):
            A3[u * 32 + o, :12] = fcw[:, o * 7 + u]
    B3 = np.zeros((1, CNN_OUT), np.float32)
    B3[0, :12] = fcb

    return (jnp.asarray(A1, mm_dtype), jnp.asarray(B1, jnp.float32),
            jnp.asarray(A2, mm_dtype), jnp.asarray(B2, jnp.float32),
            jnp.asarray(A3, mm_dtype), jnp.asarray(B3, jnp.float32))


def _build_gru_params(p, mm_dtype):
    """All 5 layers stacked (layer-0 Wih zero-padded to 128 input rows).

    bhh[r|z] is folded into the hoisted input bias; only bhh_n stays separate
    (it lives inside r*(...) per the GRU definition).
    """
    wih = np.zeros((5, H, NG), np.float32)
    whh = np.zeros((5, H, NG), np.float32)
    bih = np.zeros((5, 1, NG), np.float32)
    bhhn = np.zeros((5, 1, H), np.float32)
    for l in range(5):
        w_ih = np.asarray(p["gru_w_ih"][l])            # (NG, in_sz)
        in_sz = w_ih.shape[1]
        wih[l, :in_sz, :] = w_ih.T
        whh[l] = np.asarray(p["gru_w_hh"][l]).T
        b_ih = np.asarray(p["gru_b_ih"][l])
        b_hh = np.asarray(p["gru_b_hh"][l])
        bih[l, 0, :] = b_ih
        bih[l, 0, :2 * H] += b_hh[:2 * H]              # fold bhh_r, bhh_z
        bhhn[l, 0, :] = b_hh[2 * H:]
    return {
        "wih": jnp.asarray(wih, mm_dtype),
        "whh": jnp.asarray(whh, mm_dtype),
        "bih": jnp.asarray(bih, jnp.float32),
        "bhhn": jnp.asarray(bhhn, jnp.float32),
        "wf1": jnp.asarray(np.asarray(p["gru_fc1_w"]).T, mm_dtype),
        "bf1": jnp.asarray(np.asarray(p["gru_fc1_b"]).reshape(1, H), jnp.float32),
        "wf2": jnp.asarray(np.asarray(p["gru_fc2_w"]).T, mm_dtype),
        "bf2": jnp.asarray(np.asarray(p["gru_fc2_b"]).reshape(1, 2), jnp.float32),
    }


def prepare_kernel_params(params, mm_dtype=jnp.bfloat16):
    """Build kernel-layout weights ONCE (call next to init / checkpoint load)."""
    return {"cnn": _build_cnn_mats(params, mm_dtype),
            "gru": _build_gru_params(params, mm_dtype)}


def cnn_to_gru_forward(x, kparams, *, tm=512, tb=64):
    """Full CNNtoGRU forward.

    tm: CNN row tile (sweep 256-1024).  tb: requested GRU batch tile; it is
    rounded to a multiple of 8 and automatically capped so the per-block
    sequence scratch stays under _SCRATCH_BUDGET_BYTES.
    """
    B, n, F = x.shape
    assert F == F_IN
    T = n

    # ---- CNN: rows m = t*B + b (time-major so the output feeds the GRU directly)
    win = make_windows(x, HF)                                   # (B, n, 30, 6)
    xf = win.reshape(B, n, WFLAT)                               # (B, n, 180)
    xf = jnp.transpose(xf, (1, 0, 2)).reshape(B * n, WFLAT)     # (M, 180)
    M = B * n
    tm_eff = max(8, min(tm, _round_up(M, 8)))
    m_pad = _round_up(M, tm_eff)
    xf = jnp.pad(xf, ((0, m_pad - M), (0, 0)))

    cnn_out = cnn_forward(xf, *kparams["cnn"], tm=tm_eff)       # (m_pad, 128)
    cnn_out = cnn_out[:M].reshape(T, B, CNN_OUT)                # time-major

    # ---- GRU: batch-tiled grid; each block is a time-major (T*tb, .) slab.
    # Cap tb so seq + gx scratch (f32) fits the per-block VMEM budget.
    bytes_per_row = (NG + H) * 4
    rows_budget = max(1, _SCRATCH_BUDGET_BYTES // (bytes_per_row * max(T, 1)))
    tb_cap = max(8, (rows_budget // 8) * 8)
    tb_eff = max(8, min(_round_up(min(tb, max(B, 1)), 8), tb_cap))
    b_pad = _round_up(B, tb_eff)
    G = b_pad // tb_eff
    # NOTE(v7x): with 2 TensorCores, prefer tb such that G stays a multiple of 2.

    g_in = jnp.pad(cnn_out, ((0, 0), (0, b_pad - B), (0, 0)))   # (T, b_pad, 128)
    g_in = g_in.reshape(T, G, tb_eff, CNN_OUT).transpose(1, 0, 2, 3)
    g_in = g_in.reshape(G, T * tb_eff, CNN_OUT)

    out = gru_forward(g_in, kparams["gru"], T=T, tb=tb_eff)     # (G, T*tb, 2)
    out = out.reshape(G, T, tb_eff, 2).transpose(1, 0, 2, 3).reshape(T, b_pad, 2)
    out = out[:, :B, :]
    return jnp.transpose(out, (1, 0, 2))                        # (B, n, 2)


# ---------------------------------------------------------------------------
# Pure-JAX reference (mirrors PyTorch semantics) for a correctness check
# ---------------------------------------------------------------------------
def reference_forward(x, p):
    B, n, F = x.shape
    win = make_windows(x, HF)                              # (B, n, 30, 6)
    x4 = jnp.transpose(win, (0, 3, 1, 2))                  # (B, 6, n, 30) NCHW

    def conv(inp, w, b):
        y = lax.conv_general_dilated(inp, w, (1, 1), ((0, 0), (1, 1)),
                                     dimension_numbers=("NCHW", "OIHW", "NCHW"))
        return y + b[None, :, None, None]

    y = jnp.maximum(conv(x4, p["conv1_w"], p["conv1_b"]), 0.0)       # (B,16,n,30)
    y = y.reshape(B, 16, n, 15, 2).max(-1)                           # (B,16,n,15)
    y = jnp.maximum(conv(y, p["conv2_w"], p["conv2_b"]), 0.0)        # (B,32,n,15)
    y = y[..., :14].reshape(B, 32, n, 7, 2).max(-1)                  # (B,32,n,7)
    y = jnp.transpose(y, (0, 2, 1, 3)).reshape(B, n, 224)
    cnn_out = y @ p["cnn_fc_w"].T + p["cnn_fc_b"]                    # (B,n,12)

    h_in = cnn_out
    for l in range(5):
        wih, whh = p["gru_w_ih"][l], p["gru_w_hh"][l]
        bih, bhh = p["gru_b_ih"][l], p["gru_b_hh"][l]

        def step(h, x_t):
            gx = x_t @ wih.T + bih
            gh = h @ whh.T + bhh
            r = jax.nn.sigmoid(gx[:, :H] + gh[:, :H])
            z = jax.nn.sigmoid(gx[:, H:2 * H] + gh[:, H:2 * H])
            nn_ = jnp.tanh(gx[:, 2 * H:] + r * gh[:, 2 * H:])
            h_new = (1.0 - z) * nn_ + z * h
            return h_new, h_new

        _, ys = lax.scan(step, jnp.zeros((B, H), jnp.float32),
                         jnp.transpose(h_in, (1, 0, 2)))
        h_in = jnp.transpose(ys, (1, 0, 2))                          # (B, n, 128)

    a = jnp.maximum(h_in @ p["gru_fc1_w"].T + p["gru_fc1_b"], 0.0)
    return a @ p["gru_fc2_w"].T + p["gru_fc2_b"]                     # (B, n, 2)


if __name__ == "__main__":
    with jax.default_matmul_precision("highest"):
        key = jax.random.PRNGKey(0)
        pkey, xkey = jax.random.split(key)
        params = init_params(pkey)

        B, n = 2, 8
        x = jax.random.normal(xkey, (B, n, F_IN), dtype=jnp.float32)

        ref = reference_forward(x, params)

        # f32-matmul mode: tight validation of the banded-conv / GRU mapping.
        kp_f32 = prepare_kernel_params(params, mm_dtype=jnp.float32)
        out_f32 = jax.block_until_ready(cnn_to_gru_forward(x, kp_f32))
        assert out_f32.shape == (B, n, 2), out_f32.shape
        np.testing.assert_allclose(np.asarray(out_f32), np.asarray(ref),
                                   rtol=5e-2, atol=5e-3)

        # bf16-matmul mode (default fast path): looser tolerance for bf16
        # operand rounding compounded over the serial GRU chain.
        kp_bf16 = prepare_kernel_params(params, mm_dtype=jnp.bfloat16)
        out_bf16 = jax.block_until_ready(cnn_to_gru_forward(x, kp_bf16))
        assert out_bf16.shape == (B, n, 2), out_bf16.shape
        np.testing.assert_allclose(np.asarray(out_bf16), np.asarray(ref),
                                   rtol=5e-2, atol=2e-2)

        print("KERNEL_OK")
</pallas_src>

<mosaic_0001>
module attributes {stable_mosaic.version = 11 : i64} {
  func.func @_cnn_kernel(%arg0: i32, %arg1: memref<16x180xf32, #tpu.memory_space<vmem>>, %arg2: memref<180x512xf32, #tpu.memory_space<vmem>>, %arg3: memref<1x512xf32, #tpu.memory_space<vmem>>, %arg4: memref<256x512xf32, #tpu.memory_space<vmem>>, %arg5: memref<1x512xf32, #tpu.memory_space<vmem>>, %arg6: memref<256x128xf32, #tpu.memory_space<vmem>>, %arg7: memref<1x128xf32, #tpu.memory_space<vmem>>, %arg8: memref<16x128xf32, #tpu.memory_space<vmem>>) attributes {dimension_semantics = [#tpu.dimension_semantics<parallel>], iteration_bounds = array<i64: 1>, scalar_prefetch = 0 : i64, scratch_operands = 0 : i64, tpu.core_type = #tpu.core_type<tc>, window_params = [{transform_indices = @transform_0, window_bounds = array<i64: 16, 180>}, {pipeline_mode = #tpu.pipeline_mode<synchronous>, transform_indices = @transform_1, window_bounds = array<i64: 180, 512>}, {pipeline_mode = #tpu.pipeline_mode<synchronous>, transform_indices = @transform_2, window_bounds = array<i64: 1, 512>}, {pipeline_mode = #tpu.pipeline_mode<synchronous>, transform_indices = @transform_3, window_bounds = array<i64: 256, 512>}, {pipeline_mode = #tpu.pipeline_mode<synchronous>, transform_indices = @transform_4, window_bounds = array<i64: 1, 512>}, {pipeline_mode = #tpu.pipeline_mode<synchronous>, transform_indices = @transform_5, window_bounds = array<i64: 256, 128>}, {pipeline_mode = #tpu.pipeline_mode<synchronous>, transform_indices = @transform_6, window_bounds = array<i64: 1, 128>}, {transform_indices = @transform_7, window_bounds = array<i64: 16, 128>}]} {
    %c0 = arith.constant 0 : index
    %c0_0 = arith.constant 0 : index
    %0 = vector.load %arg1[%c0, %c0_0] : memref<16x180xf32, #tpu.memory_space<vmem>>, vector<16x180xf32>
    %c0_1 = arith.constant 0 : index
    %c0_2 = arith.constant 0 : index
    %1 = vector.load %arg2[%c0_1, %c0_2] : memref<180x512xf32, #tpu.memory_space<vmem>>, vector<180x512xf32>
    %cst = arith.constant dense<0.000000e+00> : vector<16x512xf32>
    %2 = tpu.matmul %0, %1, %cst {dimension_numbers = #tpu.dot_dimension_numbers<[1], [0], [0], [1], [0, 0, 1, 1], [], []>, precision = #tpu.contract_precision<fp32>} : vector<16x180xf32>, vector<180x512xf32>, vector<16x512xf32> -> vector<16x512xf32>
    %c0_3 = arith.constant 0 : index
    %c0_4 = arith.constant 0 : index
    %3 = vector.load %arg3[%c0_3, %c0_4] : memref<1x512xf32, #tpu.memory_space<vmem>>, vector<1x512xf32>
    %4 = vector.broadcast %3 : vector<1x512xf32> to vector<16x512xf32>
    %5 = arith.addf %2, %4 : vector<16x512xf32>
    %cst_5 = arith.constant 0.000000e+00 : f32
    %6 = vector.broadcast %cst_5 : f32 to vector<16x512xf32>
    %7 = arith.maximumf %5, %6 : vector<16x512xf32>
    %8 = vector.extract_strided_slice %7 {offsets = [0, 0], sizes = [16, 256], strides = [1, 1]} : vector<16x512xf32> to vector<16x256xf32>
    %9 = vector.extract_strided_slice %7 {offsets = [0, 256], sizes = [16, 256], strides = [1, 1]} : vector<16x512xf32> to vector<16x256xf32>
    %10 = arith.maximumf %8, %9 : vector<16x256xf32>
    %c0_6 = arith.constant 0 : index
    %c0_7 = arith.constant 0 : index
    %11 = vector.load %arg4[%c0_6, %c0_7] : memref<256x512xf32, #tpu.memory_space<vmem>>, vector<256x512xf32>
    %cst_8 = arith.constant dense<0.000000e+00> : vector<16x512xf32>
    %12 = tpu.matmul %10, %11, %cst_8 {dimension_numbers = #tpu.dot_dimension_numbers<[1], [0], [0], [1], [0, 0, 1, 1], [], []>, precision = #tpu.contract_precision<fp32>} : vector<16x256xf32>, vector<256x512xf32>, vector<16x512xf32> -> vector<16x512xf32>
    %c0_9 = arith.constant 0 : index
    %c0_10 = arith.constant 0 : index
    %13 = vector.load %arg5[%c0_9, %c0_10] : memref<1x512xf32, #tpu.memory_space<vmem>>, vector<1x512xf32>
    %14 = vector.broadcast %13 : vector<1x512xf32> to vector<16x512xf32>
    %15 = arith.addf %12, %14 : vector<16x512xf32>
    %cst_11 = arith.constant 0.000000e+00 : f32
    %16 = vector.broadcast %cst_11 : f32 to vector<16x512xf32>
    %17 = arith.maximumf %15, %16 : vector<16x512xf32>
    %18 = vector.extract_strided_slice %17 {offsets = [0, 0], sizes = [16, 256], strides = [1, 1]} : vector<16x512xf32> to vector<16x256xf32>
    %19 = vector.extract_strided_slice %17 {offsets = [0, 256], sizes = [16, 256], strides = [1, 1]} : vector<16x512xf32> to vector<16x256xf32>
    %20 = arith.maximumf %18, %19 : vector<16x256xf32>
    %c0_12 = arith.constant 0 : index
    %c0_13 = arith.constant 0 : index
    %21 = vector.load %arg6[%c0_12, %c0_13] : memref<256x128xf32, #tpu.memory_space<vmem>>, vector<256x128xf32>
    %cst_14 = arith.constant dense<0.000000e+00> : vector<16x128xf32>
    %22 = tpu.matmul %20, %21, %cst_14 {dimension_numbers = #tpu.dot_dimension_numbers<[1], [0], [0], [1], [0, 0, 1, 1], [], []>, precision = #tpu.contract_precision<fp32>} : vector<16x256xf32>, vector<256x128xf32>, vector<16x128xf32> -> vector<16x128xf32>
    %c0_15 = arith.constant 0 : index
    %c0_16 = arith.constant 0 : index
    %23 = vector.load %arg7[%c0_15, %c0_16] : memref<1x128xf32, #tpu.memory_space<vmem>>, vector<1x128xf32>
    %24 = vector.broadcast %23 : vector<1x128xf32> to vector<16x128xf32>
    %25 = arith.addf %22, %24 : vector<16x128xf32>
    %c0_17 = arith.constant 0 : index
    %c0_18 = arith.constant 0 : index
    %26 = vector.load %arg8[%c0_17, %c0_18] : memref<16x128xf32, #tpu.memory_space<vmem>>, vector<16x128xf32>
    tpu.vector_store %arg8[%c0_17, %c0_18], %25 {strides = array<i32>} : memref<16x128xf32, #tpu.memory_space<vmem>>, vector<16x128xf32>,
    return
  }
  func.func @transform_0(%arg0: i32) -> (i32, i32) {
    %c0_i32 = arith.constant 0 : i32
    %c0_i32_0 = arith.constant 0 : i32
    return %arg0, %c0_i32 : i32, i32
  }
  func.func @transform_1(%arg0: i32) -> (i32, i32) {
    %c0_i32 = arith.constant 0 : i32
    %c0_i32_0 = arith.constant 0 : i32
    %c0_i32_1 = arith.constant 0 : i32
    return %c0_i32, %c0_i32_0 : i32, i32
  }
  func.func @transform_2(%arg0: i32) -> (i32, i32) {
    %c0_i32 = arith.constant 0 : i32
    %c0_i32_0 = arith.constant 0 : i32
    %c0_i32_1 = arith.constant 0 : i32
    return %c0_i32, %c0_i32_0 : i32, i32
  }
  func.func @transform_3(%arg0: i32) -> (i32, i32) {
    %c0_i32 = arith.constant 0 : i32
    %c0_i32_0 = arith.constant 0 : i32
    %c0_i32_1 = arith.constant 0 : i32
    return %c0_i32, %c0_i32_0 : i32, i32
  }
  func.func @transform_4(%arg0: i32) -> (i32, i32) {
    %c0_i32 = arith.constant 0 : i32
    %c0_i32_0 = arith.constant 0 : i32
    %c0_i32_1 = arith.constant 0 : i32
    return %c0_i32, %c0_i32_0 : i32, i32
  }
  func.func @transform_5(%arg0: i32) -> (i32, i32) {
    %c0_i32 = arith.constant 0 : i32
    %c0_i32_0 = arith.constant 0 : i32
    %c0_i32_1 = arith.constant 0 : i32
    return %c0_i32, %c0_i32_0 : i32, i32
  }
  func.func @transform_6(%arg0: i32) -> (i32, i32) {
    %c0_i32 = arith.constant 0 : i32
    %c0_i32_0 = arith.constant 0 : i32
    %c0_i32_1 = arith.constant 0 : i32
    return %c0_i32, %c0_i32_0 : i32, i32
  }
  func.func @transform_7(%arg0: i32) -> (i32, i32) {
    %c0_i32 = arith.constant 0 : i32
    %c0_i32_0 = arith.constant 0 : i32
    return %arg0, %c0_i32 : i32, i32
  }
}

</mosaic_0001>

<bundles_post_ra>
// kernel: tpu_custom_call.1
= control target key start
LH: loop header
LB: loop body
LE: loop exit
PB: predicated region body
PF: predicated region fallthrough
CT: control target
= control target key end

     0   :  { %12 = vsyncpa [#allocation3], 0  ;;  %s13085_s0 = inlined_call_operand.hbm [shape: f32[16,180], index: 0, kind: input, shape index: {}]   ;;  %s13086_s1 = inlined_call_operand.hbm [shape: f32[180,512], index: 1, kind: input, shape index: {}]   ;;  %s13087_s2 = inlined_call_operand.vmem [shape: f32[1,512], index: 2, kind: input, shape index: {}]   ;;  %s13088_s3 = inlined_call_operand.hbm [shape: f32[256,512], index: 3, kind: input, shape index: {}]   ;;  %s13089_s4 = inlined_call_operand.vmem [shape: f32[1,512], index: 4, kind: input, shape index: {}]   ;;  %s13090_s5 = inlined_call_operand.hbm [shape: f32[256,128], index: 5, kind: input, shape index: {}]   ;;  %s13091_s6 = inlined_call_operand.vmem [shape: f32[1,128], index: 6, kind: input, shape index: {}]   ;;  %s13092_s7 = inlined_call_operand.hbm [shape: f32[16,128], index: 7, kind: output, shape index: {}]  }
   0x1   :  { %13 = vsyncpa [#allocation6], 0 }
   0x2   :  { %14 = vsyncpa [#allocation9], 0 }
   0x3   :  { %15 = vsyncpa [#allocation4], 0  ;;  %s8230_s24 = smov [#allocation5]   ;;  %s8112_s28 = scalar_lea.hbm %s13086_s1, 11776 }
   0x4   :  { %s33_s25 = sshll.u32 %s8230_s24, 4  ;;  %p8113_p0 = scmp.ne.s32.totalorder %s13086_s1, %s8112_s28  ;;  %s34_s25 = int_to_ptr.vmem [resolvable:$true] %s33_s25 }
   0x5   :  { %p8116_p1 = scmp.lt.u32.totalorder %s8112_s28, %s13086_s1 }
   0x7   :  { %p8118_p2 = pnand %p8116_p1, %p8113_p0 }
   0x9   :  { %8121 = shalt.err (!%p8118_p2)
}
   0xa   :  { %s8122_s10 = scalar_lea.vmem %s34_s25, 11776  ;;  %p8127_p4 = scmp.lt.s32.totalorder %s34_s25, %s34_s25 }
   0xb   :  { %p8123_p3 = scmp.ne.s32.totalorder %s34_s25, %s8122_s10  ;;  %p8128_p5 = scmp.lt.s32.totalorder %s8122_s10, %s8122_s10 }
   0xd   :  { %p8129_p6 = por %p8128_p5, %p8127_p4 }
   0xf   :  { %p8130_p7 = pnand %p8129_p6, %p8123_p3 }
  0x11   :  { %8133 = shalt.err (!%p8130_p7)
}
  0x12   :  { %s8231_s11 = smov 512   ;;  %s8232_s12 = smov 32  }
  0x13   :  { %39 = dma.hbm_to_vmem [thread:$0]  %s13086_s1, 11776, %s34_s25, [#allocation6], %s8231_s11, %s8231_s11, %s8232_s12  }
  0x14   :  { %s8233_s15 = smov [#allocation2]   ;;  %s8134_s19 = scalar_lea.hbm %s13085_s0, 512 }
  0x15   :  { %s21_s16 = sshll.u32 %s8233_s15, 4  ;;  %p8135_p8 = scmp.ne.s32.totalorder %s13085_s0, %s8134_s19  ;;  %s22_s16 = int_to_ptr.vmem [resolvable:$true] %s21_s16 }
  0x16   :  { %p8138_p9 = scmp.lt.u32.totalorder %s8134_s19, %s13085_s0 }
  0x18   :  { %p8140_p10 = pnand %p8138_p9, %p8135_p8 }
  0x1a   :  { %8143 = shalt.err (!%p8140_p10)
}
  0x1b   :  { %s8144_s24 = scalar_lea.vmem %s22_s16, 512  ;;  %p8149_p12 = scmp.lt.s32.totalorder %s22_s16, %s22_s16 }
  0x1c   :  { %p8145_p11 = scmp.ne.s32.totalorder %s22_s16, %s8144_s24  ;;  %p8150_p13 = scmp.lt.s32.totalorder %s8144_s24, %s8144_s24 }
  0x1e   :  { %p8151_p0 = por %p8150_p13, %p8149_p12 }
  0x20   :  { %p8152_p1 = pnand %p8151_p0, %p8145_p11 }
  0x22   :  { %8155 = shalt.err (!%p8152_p1)
}
  0x23   :  { %s8234_s1 = smov 256   ;;  %s8235_s25 = smov 16  }
  0x24   :  { %27 = dma.hbm_to_vmem [thread:$0]  %s13085_s0, 512, %s22_s16, [#allocation3], %s8234_s1, %s8234_s1, %s8235_s25  }
  0x25   :  { %s8236_s28 = smov [#allocation7]   ;;  %s8237_s30 = smov [#allocation8]  }
  0x26   :  { %s47_s29 = sshll.u32 %s8236_s28, 4  ;;  %s61_s8 = sshll.u32 %s8237_s30, 4  ;;  %s48_s29 = int_to_ptr.vmem [resolvable:$true] %s47_s29  ;;  %s8308_s8 = int_to_ptr.vmem [resolvable:$true] %s61_s8 }
  0x27   :  { %s8156_s13 = scalar_lea.hbm %s13088_s3, 16384 }
  0x28   :  { %p8157_p2 = scmp.ne.s32.totalorder %s13088_s3, %s8156_s13  ;;  %p8160_p3 = scmp.lt.u32.totalorder %s8156_s13, %s13088_s3 }
  0x2a   :  { %p8162_p4 = pnand %p8160_p3, %p8157_p2 }
  0x2c   :  { %8165 = shalt.err (!%p8162_p4)
}
  0x2d   :  { %s8166_s0 = scalar_lea.vmem %s48_s29, 16384  ;;  %p8171_p6 = scmp.lt.s32.totalorder %s48_s29, %s48_s29 }
  0x2e   :  { %p8167_p5 = scmp.ne.s32.totalorder %s48_s29, %s8166_s0  ;;  %p8172_p7 = scmp.lt.s32.totalorder %s8166_s0, %s8166_s0 }
  0x30   :  { %p8173_p8 = por %p8172_p7, %p8171_p6 }
  0x32   :  { %p8174_p9 = pnand %p8173_p8, %p8167_p5 }
  0x34   :  { %8177 = shalt.err (!%p8174_p9)
}
  0x35   :  { %53 = dma.hbm_to_vmem [thread:$0]  %s13088_s3, 16384, %s48_s29, [#allocation6], %s8231_s11, %s8231_s11, %s8232_s12  }
  0x36   :  { %s8178_s22 = scalar_lea.hbm %s13090_s5, 4096 }
  0x37   :  { %p8179_p10 = scmp.ne.s32.totalorder %s13090_s5, %s8178_s22  ;;  %p8182_p11 = scmp.lt.u32.totalorder %s8178_s22, %s13090_s5 }
  0x39   :  { %p8184_p12 = pnand %p8182_p11, %p8179_p10 }
  0x3b   :  { %8187 = shalt.err (!%p8184_p12)
}
  0x3c   :  { %s8188_s26 = scalar_lea.vmem %s8308_s8, 4096  ;;  %p8193_p0 = scmp.lt.s32.totalorder %s8308_s8, %s8308_s8 }
  0x3d   :  { %p8189_p13 = scmp.ne.s32.totalorder %s8308_s8, %s8188_s26  ;;  %p8194_p1 = scmp.lt.s32.totalorder %s8188_s26, %s8188_s26 }
  0x3f   :  { %p8195_p2 = por %p8194_p1, %p8193_p0 }
  0x41   :  { %p8196_p3 = pnand %p8195_p2, %p8189_p13 }
  0x43   :  { %8199 = shalt.err (!%p8196_p3)
}
  0x44   :  { %s8238_s3 = smov 128   ;;  %s8239_s11 = smov 8  }
  0x45   :  { %67 = dma.hbm_to_vmem [thread:$0]  %s13090_s5, 4096, %s8308_s8, [#allocation9], %s8238_s3, %s8238_s3, %s8239_s11  }
  0x46   :  { %8222 = dma.done.wait [#allocation3], 512  }
  0x47   :  { %8223 = vsyncadd [#allocation3], 4294966784 }
  0x48   :  { %8224 = dma.done.wait [#allocation6], 28160  }
  0x49   :  { %8225 = vsyncadd [#allocation6], 4294939136 }
  0x4a   :  { %8226 = dma.done.wait [#allocation9], 4096  }
  0x4b   :  { %8227 = vsyncadd [#allocation9], 4294963200  ;;  %v87_v0 = vld [vmem:[#allocation5 + $0x8] sm:$0xff]  ;;  %v89_v2 = vld [vmem:[#allocation5 + $0x18] sm:$0xff]  ;;  %vm207_vm0 = vcmask 1043456   ;;  %vm200_vm1 = vcmask 424960  }
  0x4c   :  { %v91_v1 = vld [vmem:[#allocation5 + $0x28] sm:$0xff]  ;;  %v220_v3 = vand.u32 4294901760, %v87_v0  ;;  %v93_v5 = vld [vmem:[#allocation5 + $0x38] sm:$0xff]  ;;  %v1332_v6 = vand.u32 4294901760, %v89_v2  ;;  %v86_v7 = vld [vmem:[#allocation5] sm:$0xff] }
  0x4d   :  { %v224_v4 = vand.u32 4294901760, %v91_v1  ;;  %v90_v8 = vld [vmem:[#allocation5 + $0x20] sm:$0xff]  ;;  %v1336_v9 = vand.u32 4294901760, %v93_v5  ;;  %v222_v10 = vand.u32 4294901760, %v86_v7  ;;  %v88_v12 = vld [vmem:[#allocation5 + $0x10] sm:$0xff]  ;;  %v95_v14 = vld [vmem:[#allocation5 + $0x48] sm:$0xff] }
  0x4e   :  { %v226_v11 = vand.u32 4294901760, %v90_v8  ;;  %v92_v13 = vld [vmem:[#allocation5 + $0x30] sm:$0xff]  ;;  %v8347_v16 = vsub.f32 %v87_v0, %v220_v3  ;;  %v8351_v18 = vsub.f32 %v89_v2, %v1332_v6  ;;  %v99_v19 = vld [vmem:[#allocation5 + $0x68] sm:$0xff]  ;;  %v97_v20 = vld [vmem:[#allocation5 + $0x58] sm:$0xff]  ;;  %v1334_v28 = vand.u32 4294901760, %v88_v12 }
  0x4f   :  { %v8345_v15 = vpack.c.bf16 %v224_v4, %v220_v3  ;;  %v8349_v17 = vsub.f32 %v91_v1, %v224_v4  ;;  %v101_v21 = vld [vmem:[#allocation5 + $0x78] sm:$0xff]  ;;  %v8353_v22 = vpack.c.bf16 %v1336_v9, %v1332_v6  ;;  %v8355_v23 = vsub.f32 %v93_v5, %v1336_v9  ;;  %v94_v26 = vld [vmem:[#allocation5 + $0x40] sm:$0xff]  ;;  %v96_v36 = vld [vmem:[#allocation5 + $0x50] sm:$0xff] }
  0x50   :  { %14074 = vst [vmem:[#allocation16_spill] sm:$0xff] %v8347_v16  ;;  %14076 = vst [vmem:[#allocation18_spill] sm:$0xff] %v8351_v18  ;;  %v8357_v24 = vpack.c.bf16 %v226_v11, %v222_v10  ;;  %v8359_v25 = vsub.f32 %v86_v7, %v222_v10  ;;  %v8362_v27 = vsub.f32 %v90_v8, %v226_v11  ;;  %v1338_v29 = vand.u32 4294901760, %v92_v13  ;;  %v98_v31 = vld [vmem:[#allocation5 + $0x60] sm:$0xff]  ;;  %v100_v37 = vld [vmem:[#allocation5 + $0x70] sm:$0xff] }
  0x51   :  { %14073 = vst [vmem:[#allocation15_spill] sm:$0xff] %v8345_v15  ;;  %14075 = vst [vmem:[#allocation17_spill] sm:$0xff] %v8349_v17  ;;  %6518 = vmatprep.subr.bf16.mxu0 %v8345_v15  ;;  %v228_v30 = vand.u32 4294901760, %v95_v14  ;;  %6782 = vmatprep.subr.bf16.mxu1 %v8353_v22  ;;  %v232_v32 = vand.u32 4294901760, %v99_v19  ;;  %v1340_v33 = vand.u32 4294901760, %v97_v20  ;;  %v1344_v34 = vand.u32 4294901760, %v101_v21 }
  0x52   :  { %14077 = vst [vmem:[#allocation19_spill] sm:$0xff] %v8353_v22  ;;  %14078 = vst [vmem:[#allocation20_spill] sm:$0xff] %v8355_v23  ;;  %6520 = vmatpush1.bf16.msra.mxu0 %v8357_v24  ;;  %v230_v35 = vand.u32 4294901760, %v94_v26  ;;  %v8366_v38 = vpack.c.bf16 %v1338_v29, %v1334_v28  ;;  %v8368_v39 = vsub.f32 %v88_v12, %v1334_v28  ;;  %v103_v42 = vld [vmem:[#allocation5 + $0x88] sm:$0xff]  ;;  %v105_v44 = vld [vmem:[#allocation5 + $0x98] sm:$0xff]  ;;  %v234_v51 = vand.u32 4294901760, %v98_v31 }
  0x53   :  { %14079 = vst [vmem:[#allocation21_spill] sm:$0xff] %v8357_v24  ;;  %14080 = vst [vmem:[#allocation22_spill] sm:$0xff] %v8359_v25  ;;  %v8370_v40 = vsub.f32 %v92_v13, %v1338_v29  ;;  %v8372_v41 = vsub.f32 %v95_v14, %v228_v30  ;;  %v107_v43 = vld [vmem:[#allocation5 + $0xa8] sm:$0xff]  ;;  %v8374_v45 = vpack.c.bf16 %v232_v32, %v228_v30  ;;  %v109_v49 = vld [vmem:[#allocation5 + $0xb8] sm:$0xff]  ;;  %v1342_v53 = vand.u32 4294901760, %v96_v36 }
  0x54   :  { %14081 = vst [vmem:[#allocation23_spill] sm:$0xff] %v8362_v27  ;;  %14082 = vst [vmem:[#allocation24_spill] sm:$0xff] %v8366_v38  ;;  %v8376_v46 = vsub.f32 %v99_v19, %v232_v32  ;;  %v8378_v47 = vpack.c.bf16 %v1344_v34, %v1340_v33  ;;  %v8380_v48 = vsub.f32 %v97_v20, %v1340_v33  ;;  %6784 = vmatpush1.bf16.msra.mxu1 %v8366_v38  ;;  %v102_v58 = vld [vmem:[#allocation5 + $0x80] sm:$0xff]  ;;  %v104_v0 = vld [vmem:[#allocation5 + $0x90] sm:$0xff] }
  0x55   :  { %14083 = vst [vmem:[#allocation25_spill] sm:$0xff] %v8368_v39  ;;  %14084 = vst [vmem:[#allocation26_spill] sm:$0xff] %v8370_v40  ;;  %v8383_v50 = vsub.f32 %v101_v21, %v1344_v34  ;;  %v8385_v52 = vsub.f32 %v94_v26, %v230_v35  ;;  %6522 = vmatprep.subr.bf16.mxu0 %v8374_v45  ;;  %v1346_v54 = vand.u32 4294901760, %v100_v37  ;;  %v236_v55 = vand.u32 4294901760, %v103_v42  ;;  %v106_v59 = vld [vmem:[#allocation5 + $0xa0] sm:$0xff]  ;;  %v108_v1 = vld [vmem:[#allocation5 + $0xb0] sm:$0xff] }
  0x56   :  { %14085 = vst [vmem:[#allocation27_spill] sm:$0xff] %v8372_v41  ;;  %14086 = vst [vmem:[#allocation28_spill] sm:$0xff] %v8374_v45  ;;  %6786 = vmatprep.subr.bf16.mxu1 %v8378_v47  ;;  %v240_v56 = vand.u32 4294901760, %v107_v43  ;;  %v1348_v57 = vand.u32 4294901760, %v105_v44  ;;  %v8389_v60 = vpack.c.bf16 %v234_v51, %v230_v35  ;;  %v8391_v61 = vsub.f32 %v98_v31, %v234_v51  ;;  %v111_v2 = vld [vmem:[#allocation5 + $0xc8] sm:$0xff]  ;;  %v113_v8 = vld [vmem:[#allocation5 + $0xd8] sm:$0xff] }
  0x57   :  { %14087 = vst [vmem:[#allocation29_spill] sm:$0xff] %v8376_v46  ;;  %14088 = vst [vmem:[#allocation30_spill] sm:$0xff] %v8378_v47  ;;  %v8393_v62 = vsub.f32 %v96_v36, %v1342_v53  ;;  %v1352_v63 = vand.u32 4294901760, %v109_v49  ;;  %v8395_v3 = vpack.c.bf16 %v1346_v54, %v1342_v53  ;;  %v8397_v4 = vsub.f32 %v100_v37, %v1346_v54  ;;  %v115_v7 = vld [vmem:[#allocation5 + $0xe8] sm:$0xff]  ;;  %v117_v9 = vld [vmem:[#allocation5 + $0xf8] sm:$0xff] }
  0x58   :  { %14089 = vst [vmem:[#allocation31_spill] sm:$0xff] %v8380_v48  ;;  %14090 = vst [vmem:[#allocation32_spill] sm:$0xff] %v8383_v50  ;;  %v8399_v5 = vpack.c.bf16 %v240_v56, %v236_v55  ;;  %v8401_v6 = vsub.f32 %v103_v42, %v236_v55  ;;  %6524 = vmatpush1.bf16.msra.mxu0 %v8389_v60  ;;  %v8404_v10 = vsub.f32 %v107_v43, %v240_v56  ;;  %v110_v31 = vld [vmem:[#allocation5 + $0xc0] sm:$0xff]  ;;  %v112_v37 = vld [vmem:[#allocation5 + $0xd0] sm:$0xff] }
  0x59   :  { %14091 = vst [vmem:[#allocation33_spill] sm:$0xff] %v8385_v52  ;;  %14092 = vst [vmem:[#allocation34_spill] sm:$0xff] %v8389_v60  ;;  %v8406_v11 = vpack.c.bf16 %v1352_v63, %v1348_v57  ;;  %v8408_v12 = vsub.f32 %v105_v44, %v1348_v57  ;;  %v8410_v13 = vsub.f32 %v109_v49, %v1352_v63  ;;  %6788 = vmatpush1.bf16.msra.mxu1 %v8395_v3  ;;  %v114_v36 = vld [vmem:[#allocation5 + $0xe0] sm:$0xff]  ;;  %v116_v42 = vld [vmem:[#allocation5 + $0xf0] sm:$0xff] }
  0x5a   :  { %14093 = vst [vmem:[#allocation35_spill] sm:$0xff] %v8391_v61  ;;  %14094 = vst [vmem:[#allocation36_spill] sm:$0xff] %v8393_v62  ;;  %6526 = vmatprep.subr.bf16.mxu0 %v8399_v5  ;;  %v238_v14 = vand.u32 4294901760, %v102_v58  ;;  %v242_v19 = vand.u32 4294901760, %v106_v59  ;;  %v1350_v20 = vand.u32 4294901760, %v104_v0  ;;  %v1354_v21 = vand.u32 4294901760, %v108_v1 }
  0x5b   :  { %14095 = vst [vmem:[#allocation37_spill] sm:$0xff] %v8395_v3  ;;  %14096 = vst [vmem:[#allocation38_spill] sm:$0xff] %v8397_v4  ;;  %6790 = vmatprep.subr.bf16.mxu1 %v8406_v11  ;;  %v244_v26 = vand.u32 4294901760, %v111_v2  ;;  %v248_v28 = vand.u32 4294901760, %v115_v7  ;;  %v1356_v29 = vand.u32 4294901760, %v113_v8  ;;  %v1360_v30 = vand.u32 4294901760, %v117_v9 }
  0x5c   :  { %14097 = vst [vmem:[#allocation39_spill] sm:$0xff] %v8399_v5  ;;  %14098 = vst [vmem:[#allocation40_spill] sm:$0xff] %v8401_v6  ;;  %v8415_v32 = vpack.c.bf16 %v242_v19, %v238_v14  ;;  %v8417_v33 = vsub.f32 %v102_v58, %v238_v14  ;;  %v8419_v34 = vsub.f32 %v106_v59, %v242_v19  ;;  %v119_v53 = vld [vmem:[#allocation5 + $0x108] sm:$0xff]  ;;  %v121_v55 = vld [vmem:[#allocation5 + $0x118] sm:$0xff]  ;;  %v246_v59 = vand.u32 4294901760, %v110_v31 }
  0x5d   :  { %14099 = vst [vmem:[#allocation41_spill] sm:$0xff] %v8404_v10  ;;  %14100 = vst [vmem:[#allocation42_spill] sm:$0xff] %v8406_v11  ;;  %v8421_v35 = vpack.c.bf16 %v1354_v21, %v1350_v20  ;;  %v8423_v43 = vsub.f32 %v104_v0, %v1350_v20  ;;  %v8425_v44 = vsub.f32 %v108_v1, %v1354_v21  ;;  %v123_v54 = vld [vmem:[#allocation5 + $0x128] sm:$0xff]  ;;  %v250_v0 = vand.u32 4294901760, %v114_v36  ;;  %v125_v14 = vld [vmem:[#allocation5 + $0x138] sm:$0xff] }
  0x5e   :  { %14101 = vst [vmem:[#allocation43_spill] sm:$0xff] %v8408_v12  ;;  %14102 = vst [vmem:[#allocation44_spill] sm:$0xff] %v8410_v13  ;;  %v8427_v49 = vpack.c.bf16 %v248_v28, %v244_v26  ;;  %v8429_v51 = vsub.f32 %v111_v2, %v244_v26  ;;  %6528 = vmatpush1.bf16.msra.mxu0 %v8415_v32  ;;  %v8433_v56 = vsub.f32 %v115_v7, %v248_v28  ;;  %v118_v26 = vld [vmem:[#allocation5 + $0x100] sm:$0xff]  ;;  %v131_v11 = vld [vmem:[#allocation5 + $0x168] sm:$0xff] }
  0x5f   :  { %14103 = vst [vmem:[#allocation45_spill] sm:$0xff] %v8415_v32  ;;  %14104 = vst [vmem:[#allocation46_spill] sm:$0xff] %v8417_v33  ;;  %6792 = vmatpush1.bf16.msra.mxu1 %v8421_v35  ;;  %v8435_v57 = vpack.c.bf16 %v1360_v30, %v1356_v29  ;;  %v8437_v58 = vsub.f32 %v113_v8, %v1356_v29  ;;  %v8440_v63 = vsub.f32 %v117_v9, %v1360_v30  ;;  %v122_v28 = vld [vmem:[#allocation5 + $0x120] sm:$0xff]  ;;  %v120_v8 = vld [vmem:[#allocation5 + $0x110] sm:$0xff] }
  0x60   :  { %14105 = vst [vmem:[#allocation47_spill] sm:$0xff] %v8419_v34  ;;  %14106 = vst [vmem:[#allocation48_spill] sm:$0xff] %v8421_v35  ;;  %6530 = vmatprep.subr.bf16.mxu0 %v8427_v49  ;;  %v1358_v1 = vand.u32 4294901760, %v112_v37  ;;  %v1362_v2 = vand.u32 4294901760, %v116_v42  ;;  %v8443_v19 = vsub.f32 %v110_v31, %v246_v59  ;;  %v252_v20 = vand.u32 4294901760, %v119_v53  ;;  %v127_v32 = vld [vmem:[#allocation5 + $0x148] sm:$0xff] }
  0x61   :  { %14107 = vst [vmem:[#allocation49_spill] sm:$0xff] %v8423_v43  ;;  %14108 = vst [vmem:[#allocation50_spill] sm:$0xff] %v8425_v44  ;;  %6794 = vmatprep.subr.bf16.mxu1 %v8435_v57  ;;  %v256_v7 = vand.u32 4294901760, %v123_v54  ;;  %v1364_v21 = vand.u32 4294901760, %v121_v55  ;;  %v8445_v29 = vpack.c.bf16 %v250_v0, %v246_v59  ;;  %v8447_v35 = vsub.f32 %v114_v36, %v250_v0  ;;  %v129_v47 = vld [vmem:[#allocation5 + $0x158] sm:$0xff]  ;;  %v128_v45 = vld [vmem:[#allocation5 + $0x150] sm:$0xff] }
  0x62   :  { %14109 = vst [vmem:[#allocation51_spill] sm:$0xff] %v8427_v49  ;;  %14110 = vst [vmem:[#allocation52_spill] sm:$0xff] %v8429_v51  ;;  %v8449_v9 = vpack.c.bf16 %v1362_v2, %v1358_v1  ;;  %v8451_v30 = vsub.f32 %v112_v37, %v1358_v1  ;;  %v124_v49 = vld [vmem:[#allocation5 + $0x130] sm:$0xff]  ;;  %v8457_v5 = vsub.f32 %v119_v53, %v252_v20  ;;  %v1368_v36 = vand.u32 4294901760, %v125_v14  ;;  %v133_v53 = vld [vmem:[#allocation5 + $0x178] sm:$0xff] }
  0x63   :  { %14111 = vst [vmem:[#allocation53_spill] sm:$0xff] %v8433_v56  ;;  %14112 = vst [vmem:[#allocation54_spill] sm:$0xff] %v8435_v57  ;;  %v8453_v57 = vsub.f32 %v116_v42, %v1362_v2  ;;  %v8455_v31 = vpack.c.bf16 %v256_v7, %v252_v20  ;;  %v8459_v3 = vsub.f32 %v123_v54, %v256_v7  ;;  %6532 = vmatpush1.bf16.msra.mxu0 %v8445_v29  ;;  %v132_v15 = vld [vmem:[#allocation5 + $0x170] sm:$0xff] }
  0x64   :  { %14113 = vst [vmem:[#allocation55_spill] sm:$0xff] %v8437_v58  ;;  %14114 = vst [vmem:[#allocation56_spill] sm:$0xff] %v8440_v63  ;;  %6796 = vmatpush1.bf16.msra.mxu1 %v8449_v9  ;;  %v8463_v59 = vsub.f32 %v121_v55, %v1364_v21  ;;  %v254_v37 = vand.u32 4294901760, %v118_v26  ;;  %v258_v0 = vand.u32 4294901760, %v122_v28  ;;  %v1366_v1 = vand.u32 4294901760, %v120_v8  ;;  %v126_v55 = vld [vmem:[#allocation5 + $0x140] sm:$0xff] }
  0x65   :  { %14115 = vst [vmem:[#allocation57_spill] sm:$0xff] %v8443_v19  ;;  %14116 = vst [vmem:[#allocation58_spill] sm:$0xff] %v8445_v29  ;;  %6534 = vmatprep.subr.bf16.mxu0 %v8455_v31  ;;  %v1370_v42 = vand.u32 4294901760, %v124_v49  ;;  %v260_v2 = vand.u32 4294901760, %v127_v32  ;;  %v264_v60 = vand.u32 4294901760, %v131_v11  ;;  %v8466_v20 = vpack.c.bf16 %v1368_v36, %v1364_v21  ;;  %v130_v29 = vld [vmem:[#allocation5 + $0x160] sm:$0xff] }
  0x66   :  { %14117 = vst [vmem:[#allocation59_spill] sm:$0xff] %v8447_v35  ;;  %14118 = vst [vmem:[#allocation60_spill] sm:$0xff] %v8449_v9  ;;  %v8468_v54 = vsub.f32 %v125_v14, %v1368_v36  ;;  %v8470_v7 = vpack.c.bf16 %v258_v0, %v254_v37  ;;  %v8472_v9 = vsub.f32 %v118_v26, %v254_v37  ;;  %v135_v21 = vld [vmem:[#allocation5 + $0x188] sm:$0xff]  ;;  %v262_v37 = vand.u32 4294901760, %v126_v55 }
  0x67   :  { %14119 = vst [vmem:[#allocation61_spill] sm:$0xff] %v8451_v30  ;;  %14120 = vst [vmem:[#allocation62_spill] sm:$0xff] %v8453_v57  ;;  %v8474_v38 = vsub.f32 %v122_v28, %v258_v0  ;;  %v8478_v24 = vsub.f32 %v120_v8, %v1366_v1  ;;  %v8480_v22 = vsub.f32 %v124_v49, %v1370_v42  ;;  %6798 = vmatprep.subr.bf16.mxu1 %v8466_v20 }
  0x68   :  { %14121 = vst [vmem:[#allocation63_spill] sm:$0xff] %v8455_v31  ;;  %14122 = vst [vmem:[#allocation64_spill] sm:$0xff] %v8457_v5  ;;  %v8476_v31 = vpack.c.bf16 %v1370_v42, %v1366_v1  ;;  %6536 = vmatpush1.bf16.msra.mxu0 %v8470_v7  ;;  %v8484_v14 = vpack.c.bf16 %v264_v60, %v260_v2  ;;  %v8486_v26 = vsub.f32 %v127_v32, %v260_v2 }
  0x69   :  { %14123 = vst [vmem:[#allocation65_spill] sm:$0xff] %v8459_v3  ;;  %14124 = vst [vmem:[#allocation66_spill] sm:$0xff] %v8463_v59  ;;  %v139_v59 = vld [vmem:[#allocation5 + $0x1a8] sm:$0xff]  ;;  %v8488_v36 = vsub.f32 %v131_v11, %v264_v60  ;;  %v1372_v28 = vand.u32 4294901760, %v129_v47  ;;  %v1376_v8 = vand.u32 4294901760, %v133_v53  ;;  %v266_v49 = vand.u32 4294901760, %v130_v29 }
  0x6a   :  { %14125 = vst [vmem:[#allocation67_spill] sm:$0xff] %v8466_v20  ;;  %14126 = vst [vmem:[#allocation68_spill] sm:$0xff] %v8468_v54  ;;  %6800 = vmatpush1.bf16.msra.mxu1 %v8476_v31  ;;  %v1374_v0 = vand.u32 4294901760, %v128_v45  ;;  %6538 = vmatprep.subr.bf16.mxu0 %v8484_v14  ;;  %v1378_v42 = vand.u32 4294901760, %v132_v15  ;;  %v268_v20 = vand.u32 4294901760, %v135_v21  ;;  %v8500_v2 = vsub.f32 %v126_v55, %v262_v37  ;;  %v147_v54 = vld [vmem:[#allocation5 + $0x1e8] sm:$0xff] }
  0x6b   :  { %14127 = vst [vmem:[#allocation69_spill] sm:$0xff] %v8470_v7  ;;  %14128 = vst [vmem:[#allocation70_spill] sm:$0xff] %v8472_v9  ;;  %v8492_v1 = vsub.f32 %v129_v47, %v1372_v28  ;;  %v272_v7 = vand.u32 4294901760, %v139_v59  ;;  %v8494_v32 = vpack.c.bf16 %v1376_v8, %v1372_v28  ;;  %v8496_v60 = vsub.f32 %v133_v53, %v1376_v8  ;;  %v140_v9 = vld [vmem:[#allocation5 + $0x1b0] sm:$0xff]  ;;  %v143_v28 = vld [vmem:[#allocation5 + $0x1c8] sm:$0xff] }
  0x6c   :  { %14129 = vst [vmem:[#allocation71_spill] sm:$0xff] %v8474_v38  ;;  %14130 = vst [vmem:[#allocation72_spill] sm:$0xff] %v8476_v31  ;;  %v8498_v11 = vpack.c.bf16 %v266_v49, %v262_v37  ;;  %v134_v31 = vld [vmem:[#allocation5 + $0x180] sm:$0xff]  ;;  %v8502_v38 = vsub.f32 %v130_v29, %v266_v49  ;;  %v8504_v47 = vpack.c.bf16 %v1378_v42, %v1374_v0 }
  0x6d   :  { %14131 = vst [vmem:[#allocation73_spill] sm:$0xff] %v8478_v24  ;;  %14132 = vst [vmem:[#allocation74_spill] sm:$0xff] %v8480_v22  ;;  %v137_v22 = vld [vmem:[#allocation5 + $0x198] sm:$0xff]  ;;  %6802 = vmatprep.subr.bf16.mxu1 %v8494_v32  ;;  %v8512_v53 = vpack.c.bf16 %v272_v7, %v268_v20  ;;  %v8514_v55 = vsub.f32 %v135_v21, %v268_v20  ;;  %v8516_v8 = vsub.f32 %v139_v59, %v272_v7 }
  0x6e   :  { %14133 = vst [vmem:[#allocation75_spill] sm:$0xff] %v8484_v14  ;;  %14134 = vst [vmem:[#allocation76_spill] sm:$0xff] %v8486_v26  ;;  %v141_v24 = vld [vmem:[#allocation5 + $0x1b8] sm:$0xff]  ;;  %v136_v26 = vld [vmem:[#allocation5 + $0x190] sm:$0xff]  ;;  %v8506_v14 = vsub.f32 %v128_v45, %v1374_v0  ;;  %6540 = vmatpush1.bf16.msra.mxu0 %v8498_v11  ;;  %v1380_v29 = vand.u32 4294901760, %v137_v22  ;;  %6804 = vmatpush1.bf16.msra.mxu1 %v8504_v47  ;;  %v270_v37 = vand.u32 4294901760, %v134_v31 }
  0x6f   :  { %14135 = vst [vmem:[#allocation77_spill] sm:$0xff] %v8488_v36  ;;  %14136 = vst [vmem:[#allocation78_spill] sm:$0xff] %v8492_v1  ;;  %v138_v36 = vld [vmem:[#allocation5 + $0x1a0] sm:$0xff]  ;;  %v8508_v1 = vsub.f32 %v132_v15, %v1378_v42  ;;  %v1384_v45 = vand.u32 4294901760, %v141_v24  ;;  %v1382_v49 = vand.u32 4294901760, %v136_v26  ;;  %6542 = vmatprep.subr.bf16.mxu0 %v8512_v53  ;;  %v1386_v42 = vand.u32 4294901760, %v140_v9 }
  0x70   :  { %14137 = vst [vmem:[#allocation79_spill] sm:$0xff] %v8494_v32  ;;  %14138 = vst [vmem:[#allocation80_spill] sm:$0xff] %v8496_v60  ;;  %v274_v15 = vand.u32 4294901760, %v138_v36  ;;  %v8520_v0 = vsub.f32 %v137_v22, %v1380_v29  ;;  %v276_v32 = vand.u32 4294901760, %v143_v28  ;;  %v8528_v21 = vsub.f32 %v134_v31, %v270_v37  ;;  %v155_v60 = vld [vmem:[#allocation5 + $0x228] sm:$0xff] }
  0x71   :  { %14139 = vst [vmem:[#allocation81_spill] sm:$0xff] %v8498_v11  ;;  %14140 = vst [vmem:[#allocation82_spill] sm:$0xff] %v8500_v2  ;;  %v280_v11 = vand.u32 4294901760, %v147_v54  ;;  %v8522_v20 = vpack.c.bf16 %v1384_v45, %v1380_v29  ;;  %v8524_v59 = vsub.f32 %v141_v24, %v1384_v45  ;;  %v8532_v22 = vpack.c.bf16 %v1386_v42, %v1382_v49  ;;  %v148_v2 = vld [vmem:[#allocation5 + $0x1f0] sm:$0xff]  ;;  %v151_v29 = vld [vmem:[#allocation5 + $0x208] sm:$0xff] }
  0x72   :  { %14141 = vst [vmem:[#allocation83_spill] sm:$0xff] %v8502_v38  ;;  %14142 = vst [vmem:[#allocation84_spill] sm:$0xff] %v8504_v47  ;;  %v8526_v7 = vpack.c.bf16 %v274_v15, %v270_v37  ;;  %v142_v47 = vld [vmem:[#allocation5 + $0x1c0] sm:$0xff]  ;;  %v8530_v38 = vsub.f32 %v138_v36, %v274_v15  ;;  %v8542_v31 = vsub.f32 %v143_v28, %v276_v32 }
  0x73   :  { %14143 = vst [vmem:[#allocation85_spill] sm:$0xff] %v8506_v14  ;;  %14144 = vst [vmem:[#allocation86_spill] sm:$0xff] %v8508_v1  ;;  %v145_v1 = vld [vmem:[#allocation5 + $0x1d8] sm:$0xff]  ;;  %6806 = vmatprep.subr.bf16.mxu1 %v8522_v20  ;;  %v8540_v24 = vpack.c.bf16 %v280_v11, %v276_v32  ;;  %v8544_v45 = vsub.f32 %v147_v54, %v280_v11  ;;  %v278_v37 = vand.u32 4294901760, %v142_v47 }
  0x74   :  { %14145 = vst [vmem:[#allocation87_spill] sm:$0xff] %v8512_v53  ;;  %14146 = vst [vmem:[#allocation88_spill] sm:$0xff] %v8514_v55  ;;  %v149_v14 = vld [vmem:[#allocation5 + $0x1f8] sm:$0xff]  ;;  %v144_v55 = vld [vmem:[#allocation5 + $0x1d0] sm:$0xff]  ;;  %v8534_v53 = vsub.f32 %v136_v26, %v1382_v49  ;;  %6544 = vmatpush1.bf16.msra.mxu0 %v8526_v7  ;;  %v1388_v36 = vand.u32 4294901760, %v145_v1  ;;  %6808 = vmatpush1.bf16.msra.mxu1 %v8532_v22 }
  0x75   :  { %14147 = vst [vmem:[#allocation89_spill] sm:$0xff] %v8516_v8  ;;  %14148 = vst [vmem:[#allocation90_spill] sm:$0xff] %v8520_v0  ;;  %v146_v8 = vld [vmem:[#allocation5 + $0x1e0] sm:$0xff]  ;;  %v8536_v0 = vsub.f32 %v140_v9, %v1386_v42  ;;  %v1392_v26 = vand.u32 4294901760, %v149_v14  ;;  %v1390_v15 = vand.u32 4294901760, %v144_v55  ;;  %6546 = vmatprep.subr.bf16.mxu0 %v8540_v24  ;;  %v1394_v42 = vand.u32 4294901760, %v148_v2 }
  0x76   :  { %14149 = vst [vmem:[#allocation91_spill] sm:$0xff] %v8522_v20  ;;  %14150 = vst [vmem:[#allocation92_spill] sm:$0xff] %v8524_v59  ;;  %v282_v9 = vand.u32 4294901760, %v146_v8  ;;  %v8548_v49 = vsub.f32 %v145_v1, %v1388_v36  ;;  %v284_v20 = vand.u32 4294901760, %v151_v29  ;;  %v8556_v28 = vsub.f32 %v142_v47, %v278_v37  ;;  %v163_v59 = vld [vmem:[#allocation5 + $0x268] sm:$0xff] }
  0x77   :  { %14151 = vst [vmem:[#allocation93_spill] sm:$0xff] %v8526_v7  ;;  %14152 = vst [vmem:[#allocation94_spill] sm:$0xff] %v8528_v21  ;;  %v288_v7 = vand.u32 4294901760, %v155_v60  ;;  %v8550_v32 = vpack.c.bf16 %v1392_v26, %v1388_v36  ;;  %v8552_v54 = vsub.f32 %v149_v14, %v1392_v26  ;;  %v8560_v1 = vpack.c.bf16 %v1394_v42, %v1390_v15  ;;  %v156_v21 = vld [vmem:[#allocation5 + $0x230] sm:$0xff]  ;;  %v159_v36 = vld [vmem:[#allocation5 + $0x248] sm:$0xff] }
  0x78   :  { %14153 = vst [vmem:[#allocation95_spill] sm:$0xff] %v8530_v38  ;;  %14154 = vst [vmem:[#allocation96_spill] sm:$0xff] %v8532_v22  ;;  %v8554_v11 = vpack.c.bf16 %v282_v9, %v278_v37  ;;  %v150_v22 = vld [vmem:[#allocation5 + $0x200] sm:$0xff]  ;;  %v8558_v38 = vsub.f32 %v146_v8, %v282_v9  ;;  %v8570_v47 = vsub.f32 %v151_v29, %v284_v20 }
  0x79   :  { %14155 = vst [vmem:[#allocation97_spill] sm:$0xff] %v8534_v53  ;;  %14156 = vst [vmem:[#allocation98_spill] sm:$0xff] %v8536_v0  ;;  %v153_v0 = vld [vmem:[#allocation5 + $0x218] sm:$0xff]  ;;  %6810 = vmatprep.subr.bf16.mxu1 %v8550_v32  ;;  %v8568_v14 = vpack.c.bf16 %v288_v7, %v284_v20  ;;  %v8572_v26 = vsub.f32 %v155_v60, %v288_v7  ;;  %v286_v37 = vand.u32 4294901760, %v150_v22 }
  0x7a   :  { %14157 = vst [vmem:[#allocation99_spill] sm:$0xff] %v8540_v24  ;;  %14158 = vst [vmem:[#allocation100_spill] sm:$0xff] %v8542_v31  ;;  %v157_v53 = vld [vmem:[#allocation5 + $0x238] sm:$0xff]  ;;  %v152_v31 = vld [vmem:[#allocation5 + $0x210] sm:$0xff]  ;;  %v8562_v24 = vsub.f32 %v144_v55, %v1390_v15  ;;  %6548 = vmatpush1.bf16.msra.mxu0 %v8554_v11  ;;  %v1396_v8 = vand.u32 4294901760, %v153_v0  ;;  %6812 = vmatpush1.bf16.msra.mxu1 %v8560_v1 }
  0x7b   :  { %14159 = vst [vmem:[#allocation101_spill] sm:$0xff] %v8544_v45  ;;  %14160 = vst [vmem:[#allocation102_spill] sm:$0xff] %v8548_v49  ;;  %v154_v45 = vld [vmem:[#allocation5 + $0x220] sm:$0xff]  ;;  %v8564_v49 = vsub.f32 %v148_v2, %v1394_v42  ;;  %v1400_v55 = vand.u32 4294901760, %v157_v53  ;;  %v1398_v9 = vand.u32 4294901760, %v152_v31  ;;  %6550 = vmatprep.subr.bf16.mxu0 %v8568_v14  ;;  %v1402_v42 = vand.u32 4294901760, %v156_v21 }
  0x7c   :  { %14161 = vst [vmem:[#allocation103_spill] sm:$0xff] %v8550_v32  ;;  %14162 = vst [vmem:[#allocation104_spill] sm:$0xff] %v8552_v54  ;;  %v290_v2 = vand.u32 4294901760, %v154_v45  ;;  %v8576_v15 = vsub.f32 %v153_v0, %v1396_v8  ;;  %v296_v32 = vand.u32 4294901760, %v163_v59  ;;  %v165_v20 = vld [vmem:[#allocation5 + $0x278] sm:$0xff]  ;;  %v171_v54 = vld [vmem:[#allocation5 + $0x2a8] sm:$0xff] }
  0x7d   :  { %14163 = vst [vmem:[#allocation105_spill] sm:$0xff] %v8554_v11  ;;  %14164 = vst [vmem:[#allocation106_spill] sm:$0xff] %v8556_v28  ;;  %v292_v11 = vand.u32 4294901760, %v159_v36  ;;  %v8578_v29 = vpack.c.bf16 %v1400_v55, %v1396_v8  ;;  %v8580_v60 = vsub.f32 %v157_v53, %v1400_v55  ;;  %v8588_v0 = vpack.c.bf16 %v1402_v42, %v1398_v9  ;;  %v164_v28 = vld [vmem:[#allocation5 + $0x270] sm:$0xff]  ;;  %v167_v8 = vld [vmem:[#allocation5 + $0x288] sm:$0xff] }
  0x7e   :  { %14165 = vst [vmem:[#allocation107_spill] sm:$0xff] %v8558_v38  ;;  %14166 = vst [vmem:[#allocation108_spill] sm:$0xff] %v8560_v1  ;;  %v8582_v7 = vpack.c.bf16 %v290_v2, %v286_v37  ;;  %v8584_v1 = vsub.f32 %v150_v22, %v286_v37  ;;  %v8586_v38 = vsub.f32 %v154_v45, %v290_v2 }
  0x7f   :  { %14167 = vst [vmem:[#allocation109_spill] sm:$0xff] %v8562_v24  ;;  %14168 = vst [vmem:[#allocation110_spill] sm:$0xff] %v8564_v49  ;;  %v161_v49 = vld [vmem:[#allocation5 + $0x258] sm:$0xff]  ;;  %v160_v24 = vld [vmem:[#allocation5 + $0x250] sm:$0xff]  ;;  %6814 = vmatprep.subr.bf16.mxu1 %v8578_v29  ;;  %v8596_v53 = vpack.c.bf16 %v296_v32, %v292_v11  ;;  %v8598_v22 = vsub.f32 %v159_v36, %v292_v11  ;;  %v8600_v55 = vsub.f32 %v163_v59, %v296_v32 }
  0x80   :  { %14169 = vst [vmem:[#allocation111_spill] sm:$0xff] %v8568_v14  ;;  %14170 = vst [vmem:[#allocation112_spill] sm:$0xff] %v8570_v47  ;;  %v162_v47 = vld [vmem:[#allocation5 + $0x260] sm:$0xff]  ;;  %v8590_v14 = vsub.f32 %v152_v31, %v1398_v9  ;;  %6552 = vmatpush1.bf16.msra.mxu0 %v8582_v7  ;;  %v1404_v45 = vand.u32 4294901760, %v161_v49  ;;  %6816 = vmatpush1.bf16.msra.mxu1 %v8588_v0  ;;  %v1408_v31 = vand.u32 4294901760, %v165_v20  ;;  %v1406_v2 = vand.u32 4294901760, %v160_v24 }
  0x81   :  { %14171 = vst [vmem:[#allocation113_spill] sm:$0xff] %v8572_v26  ;;  %14172 = vst [vmem:[#allocation114_spill] sm:$0xff] %v8576_v15  ;;  %v158_v26 = vld [vmem:[#allocation5 + $0x240] sm:$0xff]  ;;  %v8592_v15 = vsub.f32 %v156_v21, %v1402_v42  ;;  %v298_v37 = vand.u32 4294901760, %v162_v47  ;;  %6554 = vmatprep.subr.bf16.mxu0 %v8596_v53  ;;  %v1410_v42 = vand.u32 4294901760, %v164_v28  ;;  %v173_v11 = vld [vmem:[#allocation5 + $0x2b8] sm:$0xff] }
  0x82   :  { %14173 = vst [vmem:[#allocation115_spill] sm:$0xff] %v8578_v29  ;;  %14174 = vst [vmem:[#allocation116_spill] sm:$0xff] %v8580_v60  ;;  %v294_v21 = vand.u32 4294901760, %v158_v26  ;;  %v8604_v9 = vsub.f32 %v161_v49, %v1404_v45  ;;  %v304_v29 = vand.u32 4294901760, %v171_v54  ;;  %v8606_v36 = vpack.c.bf16 %v1408_v31, %v1404_v45  ;;  %v175_v45 = vld [vmem:[#allocation5 + $0x2c8] sm:$0xf] }
  0x83   :  { %14175 = vst [vmem:[#allocation117_spill] sm:$0xff] %v8582_v7  ;;  %14176 = vst [vmem:[#allocation118_spill] sm:$0xff] %v8584_v1  ;;  %v300_v7 = vand.u32 4294901760, %v167_v8  ;;  %v8608_v59 = vsub.f32 %v165_v20, %v1408_v31  ;;  %v8616_v49 = vpack.c.bf16 %v1410_v42, %v1406_v2  ;;  %v172_v1 = vld [vmem:[#allocation5 + $0x2b0] sm:$0xff]  ;;  %v177_v60 = vld [vmem:[#allocation5 + $0x2d8] sm:$0xf] }
  0x84   :  { %14177 = vst [vmem:[#allocation119_spill] sm:$0xff] %v8586_v38  ;;  %14178 = vst [vmem:[#allocation120_spill] sm:$0xff] %v8588_v0  ;;  %v8610_v32 = vpack.c.bf16 %v298_v37, %v294_v21  ;;  %v8612_v0 = vsub.f32 %v158_v26, %v294_v21  ;;  %v8614_v38 = vsub.f32 %v162_v47, %v298_v37  ;;  %6818 = vmatprep.subr.bf16.mxu1 %v8606_v36 }
  0x85   :  { %14179 = vst [vmem:[#allocation121_spill] sm:$0xff] %v8590_v14  ;;  %14180 = vst [vmem:[#allocation122_spill] sm:$0xff] %v8592_v15  ;;  %v169_v15 = vld [vmem:[#allocation5 + $0x298] sm:$0xff]  ;;  %v168_v14 = vld [vmem:[#allocation5 + $0x290] sm:$0xff]  ;;  %v8624_v26 = vpack.c.bf16 %v304_v29, %v300_v7  ;;  %v8626_v20 = vsub.f32 %v167_v8, %v300_v7  ;;  %v8628_v31 = vsub.f32 %v171_v54, %v304_v29  ;;  %6820 = vmatpush1.bf16.msra.mxu1 %v8616_v49 }
  0x86   :  { %14181 = vst [vmem:[#allocation123_spill] sm:$0xff] %v8596_v53  ;;  %14182 = vst [vmem:[#allocation124_spill] sm:$0xff] %v8598_v22  ;;  %v170_v22 = vld [vmem:[#allocation5 + $0x2a0] sm:$0xff]  ;;  %v8618_v53 = vsub.f32 %v160_v24, %v1406_v2  ;;  %6556 = vmatpush1.bf16.msra.mxu0 %v8610_v32  ;;  %v1412_v47 = vand.u32 4294901760, %v169_v15  ;;  %v1416_v24 = vand.u32 4294901760, %v173_v11  ;;  %v1414_v37 = vand.u32 4294901760, %v168_v14 }
  0x87   :  { %14183 = vst [vmem:[#allocation125_spill] sm:$0xff] %v8600_v55  ;;  %14184 = vst [vmem:[#allocation126_spill] sm:$0xff] %v8604_v9  ;;  %v166_v55 = vld [vmem:[#allocation5 + $0x280] sm:$0xff]  ;;  %v8620_v9 = vsub.f32 %v164_v28, %v1410_v42  ;;  %v306_v28 = vand.u32 4294901760, %v170_v22  ;;  %6558 = vmatprep.subr.bf16.mxu0 %v8624_v26  ;;  %v8638_v7 = vsel %vm207_vm0, %v177_v60, 0 }
  0x88   :  { %14185 = vst [vmem:[#allocation127_spill] sm:$0xff] %v8606_v36  ;;  %14186 = vst [vmem:[#allocation128_spill] sm:$0xff] %v8608_v59  ;;  %v302_v21 = vand.u32 4294901760, %v166_v55  ;;  %v174_v2 = vld [vmem:[#allocation5 + $0x2c0] sm:$0xf]  ;;  %v8632_v42 = vsub.f32 %v169_v15, %v1412_v47  ;;  %v1418_v36 = vand.u32 4294901760, %v172_v1  ;;  %v8640_v29 = vpack.c.bf16 %v1416_v24, %v1412_v47 }
  0x89   :  { %14187 = vst [vmem:[#allocation129_spill] sm:$0xff] %v8610_v32  ;;  %14188 = vst [vmem:[#allocation130_spill] sm:$0xff] %v8616_v49  ;;  %v8635_v32 = vsel %vm207_vm0, %v175_v45, 0  ;;  %v176_v54 = vld [vmem:[#allocation5 + $0x2d0] sm:$0xf]  ;;  %v8642_v8 = vsub.f32 %v173_v11, %v1416_v24  ;;  %v8648_v15 = vsub.f32 %v170_v22, %v306_v28  ;;  %v8652_v45 = vsub.f32 %v168_v14, %v1414_v37  ;;  %v82_v24 = vld [vmem:[#allocation2] sm:$0xff] }
  0x8a   :  { %14189 = vst [vmem:[#allocation131_spill] sm:$0xff] %v8618_v53  ;;  %14190 = vst [vmem:[#allocation132_spill] sm:$0xff] %v8620_v9  ;;  %v8644_v49 = vpack.c.bf16 %v306_v28, %v302_v21  ;;  %v8654_v9 = vsub.f32 %v172_v1, %v1418_v36  ;;  %6822 = vmatprep.subr.bf16.mxu1 %v8640_v29  ;;  %v8659_v60 = vand.u32 4294901760, %v8635_v32  ;;  %v209_v11 = vsel %vm207_vm0, %v174_v2, 0 }
  0x8b   :  { %14191 = vst [vmem:[#allocation133_spill] sm:$0xff] %v8624_v26  ;;  %14192 = vst [vmem:[#allocation134_spill] sm:$0xff] %v8626_v20  ;;  %v83_v20 = vld [vmem:[#allocation2 + $0x8] sm:$0xff]  ;;  %v85_v26 = vld [vmem:[#allocation2 + $0x18] sm:$0xff]  ;;  %v215_v22 = vsel %vm207_vm0, %v176_v54, 0  ;;  %v8667_v14 = vand.u32 4294901760, %v209_v11 }
  0x8c   :  { %14193 = vst [vmem:[#allocation135_spill] sm:$0xff] %v8628_v31  ;;  %14194 = vst [vmem:[#allocation136_spill] sm:$0xff] %v8632_v42  ;;  %v8646_v31 = vsub.f32 %v166_v55, %v302_v21  ;;  %v8650_v42 = vpack.c.bf16 %v1418_v36, %v1414_v37  ;;  %6560 = vmatpush1.bf16.msra.mxu0 %v8644_v49  ;;  %v8662_v55 = vand.u32 4294901760, %v8638_v7  ;;  %v8669_v1 = vand.u32 4294901760, %v215_v22 }
  0x8d   :  { %14195 = vst [vmem:[#allocation137_spill] sm:$0xff] %v8638_v7  ;;  %14196 = vst [vmem:[#allocation138_spill] sm:$0xff] %v8640_v29  ;;  %v202_v36 = vsel %vm200_vm1, %v83_v20, 0  ;;  %v8673_v47 = vsel %vm200_vm1, %v85_v26, 0  ;;  %309 = vmatprep.subr.mxu0 %v8659_v60  ;;  %v13229_v37 = vand.u32 4294901760, %v8347_v16  ;;  %v13232_v2 = vand.u32 4294901760, %v8349_v17 }
  0x8e   :  { %14197 = vst [vmem:[#allocation139_spill] sm:$0xff] %v8644_v49  ;;  %14198 = vst [vmem:[#allocation140_spill] sm:$0xff] %v8650_v42  ;;  %6824 = vmatpush1.bf16.msra.mxu1 %v8650_v42  ;;  %v8677_v21 = vand.u32 4294901760, %v202_v36  ;;  %v8680_v28 = vand.u32 4294901760, %v8673_v47  ;;  %v8685_v54 = vsub.f32 %v209_v11, %v8667_v14  ;;  %v8688_v26 = vsub.f32 %v215_v22, %v8669_v1 }
  0x8f   :  { %14199 = vst [vmem:[#allocation141_spill] sm:$0xff] %v8659_v60  ;;  %14200 = vst [vmem:[#allocation142_spill] sm:$0xff] %v8662_v55  ;;  %1421 = vmatprep.subr.mxu1 %v8662_v55  ;;  %v13240_v20 = vand.u32 4294901760, %v8351_v18  ;;  %v13241_v42 = vand.u32 4294901760, %v8355_v23  ;;  %v366_v29 = vsub.f32 %v8347_v16, %v13229_v37  ;;  %v378_v11 = vsub.f32 %v8349_v17, %v13232_v2 }
  0x90   :  { %14201 = vst [vmem:[#allocation143_spill] sm:$0xff] %v8667_v14  ;;  %14202 = vst [vmem:[#allocation144_spill] sm:$0xff] %v8669_v1  ;;  %311 = vmatpush1.msra.mxu0 %v8667_v14  ;;  %v8694_v49 = vsub.f32 %v202_v36, %v8677_v21  ;;  %v13249_v14 = vand.u32 4294901760, %v8359_v25  ;;  %v13250_v37 = vand.u32 4294901760, %v8362_v27 }
  0x91   :  { %14203 = vst [vmem:[#allocation145_spill] sm:$0xff] %v8677_v21  ;;  %14204 = vst [vmem:[#allocation146_spill] sm:$0xff] %v8680_v28  ;;  %v1478_v22 = vsub.f32 %v8351_v18, %v13240_v20  ;;  %v1490_v36 = vsub.f32 %v8355_v23, %v13241_v42  ;;  %v367_v2 = vand.u32 4294901760, %v366_v29  ;;  %v379_v17 = vand.u32 4294901760, %v378_v11 }
  0x92   :  { %14205 = vst [vmem:[#allocation147_spill] sm:$0xff] %v8685_v54  ;;  %14206 = vst [vmem:[#allocation148_spill] sm:$0xff] %v8688_v26  ;;  %v8702_v54 = vand.u32 4294901760, %v82_v24  ;;  %1423 = vmatpush1.msra.mxu1 %v8669_v1  ;;  %v8714_v21 = vand.u32 4294901760, %v8694_v49  ;;  %v372_v20 = vsub.f32 %v8359_v25, %v13249_v14  ;;  %v384_v42 = vsub.f32 %v8362_v27, %v13250_v37 }
  0x93   :  { %14207 = vst [vmem:[#allocation149_spill] sm:$0xff] %v8694_v49  ;;  %v1479_v1 = vand.u32 4294901760, %v1478_v22  ;;  %v1491_v26 = vand.u32 4294901760, %v1490_v36  ;;  %v6561_v18 = vpack.c.bf16 %v379_v17, %v367_v2  ;;  %v13253_v17 = vand.u32 4294901760, %v8372_v41 }
  0x94   :  { %14208 = vst [vmem:[#allocation150_spill] sm:$0xff] %v8702_v54  ;;  %14209 = vst [vmem:[#allocation151_spill] sm:$0xff] %v8714_v21  ;;  %v8717_v16 = vsub.f32 %v82_v24, %v8702_v54  ;;  %v333_v23 = vsub.f32 %v8694_v49, %v8714_v21  ;;  %v13251_v24 = vand.u32 4294901760, %v8368_v39  ;;  %v373_v22 = vand.u32 4294901760, %v372_v20 }
  0x95   :  { %v6825_v11 = vpack.c.bf16 %v1491_v26, %v1479_v1  ;;  %v385_v36 = vand.u32 4294901760, %v384_v42  ;;  %v13252_v54 = vand.u32 4294901760, %v8370_v40  ;;  %6562 = vmatprep.subr.bf16.mxu0 %v6561_v18  ;;  %v13254_v42 = vand.u32 4294901760, %v8376_v46 }
  0x96   :  { %14210 = vst [vmem:[#allocation152_spill] sm:$0xff] %v8717_v16  ;;  %v8728_v29 = vand.u32 4294901760, %v8717_v16  ;;  %v334_v7 = vand.u32 4294901760, %v333_v23  ;;  %v1484_v37 = vsub.f32 %v8368_v39, %v13251_v24  ;;  %v13257_v23 = vand.u32 4294901760, %v8380_v48 }
  0x97   :  { %6826 = vmatprep.subr.bf16.mxu1 %v6825_v11  ;;  %v6563_v2 = vpack.c.bf16 %v385_v36, %v373_v22  ;;  %v1496_v1 = vsub.f32 %v8370_v40, %v13252_v54  ;;  %v390_v20 = vsub.f32 %v8372_v41, %v13253_v17  ;;  %v13260_v24 = vand.u32 4294901760, %v8383_v50 }
  0x98   :  { %14211 = vst [vmem:[#allocation153_spill] sm:$0xff] %v8728_v29  ;;  %v339_v14 = vsub.f32 %v8717_v16, %v8728_v29  ;;  %335 = vmatprep.mubr.f32.mxu0 %v334_v7  ;;  %1447 = vmatprep.mubr.f32.mxu1 %v334_v7  ;;  %v1485_v26 = vand.u32 4294901760, %v1484_v37  ;;  %v402_v22 = vsub.f32 %v8376_v46, %v13254_v42  ;;  %v13261_v54 = vand.u32 4294901760, %v8385_v52 }
  0x99   :  { %v1497_v11 = vand.u32 4294901760, %v1496_v1  ;;  %v1502_v36 = vsub.f32 %v8380_v48, %v13257_v23  ;;  %v391_v7 = vand.u32 4294901760, %v390_v20  ;;  %v13262_v37 = vand.u32 4294901760, %v8391_v61 }
  0x9a   :  { %v340_v18 = vand.u32 4294901760, %v339_v14  ;;  %v1514_v14 = vsub.f32 %v8383_v50, %v13260_v24  ;;  %v13263_v1 = vand.u32 4294901760, %v8393_v62  ;;  %v403_v42 = vand.u32 4294901760, %v402_v22 }
  0x9b   :  { %v6827_v17 = vpack.c.bf16 %v1497_v11, %v1485_v26  ;;  %v1503_v29 = vand.u32 4294901760, %v1502_v36  ;;  %v396_v23 = vsub.f32 %v8385_v52, %v13261_v54  ;;  %v13266_v24 = vand.u32 4294901760, %v8397_v4 }
  0x9c   :  { %341 = vmatmul.mubr.f32.vlgmr.msra.gmra.mrb[0].mxu0 %v340_v18  ;;  %1453 = vmatmul.mubr.f32.vlgmr.msra.gmra.mrb[0].mxu1 %v340_v18  ;;  %v1515_v21 = vand.u32 4294901760, %v1514_v14  ;;  %v408_v18 = vsub.f32 %v8391_v61, %v13262_v37  ;;  %v1508_v20 = vsub.f32 %v8393_v62, %v13263_v1  ;;  %v13264_v11 = vand.u32 4294901760, %v8401_v6 }
  0x9d   :  { %6564 = vmatpush1.bf16.msra.mxu0 %v6563_v2  ;;  %6828 = vmatpush1.bf16.msra.mxu1 %v6827_v17  ;;  %v6565_v2 = vpack.c.bf16 %v403_v42, %v391_v7  ;;  %v397_v26 = vand.u32 4294901760, %v396_v23  ;;  %v13265_v22 = vand.u32 4294901760, %v8404_v10  ;;  %v1520_v37 = vsub.f32 %v8397_v4, %v13266_v24 }
  0x9e   :  { %v6829_v36 = vpack.c.bf16 %v1515_v21, %v1503_v29  ;;  %v409_v54 = vand.u32 4294901760, %v408_v18  ;;  %v1509_v14 = vand.u32 4294901760, %v1508_v20  ;;  %v414_v1 = vsub.f32 %v8401_v6, %v13264_v11 }
  0x9f   :  { %6566 = vmatprep.subr.bf16.mxu0 %v6565_v2  ;;  %v426_v17 = vsub.f32 %v8404_v10, %v13265_v22  ;;  %v13267_v42 = vand.u32 4294901760, %v8408_v12  ;;  %v13270_v23 = vand.u32 4294901760, %v8410_v13  ;;  %v1521_v29 = vand.u32 4294901760, %v1520_v37 }
  0xa0   :  { %6830 = vmatprep.subr.bf16.mxu1 %v6829_v36  ;;  %v6567_v21 = vpack.c.bf16 %v409_v54, %v397_v26  ;;  %v13281_v7 = vand.u32 4294901760, %v8417_v33  ;;  %v13271_v18 = vand.u32 4294901760, %v8419_v34  ;;  %v415_v20 = vand.u32 4294901760, %v414_v1 }
  0xa1   :  { %v427_v2 = vand.u32 4294901760, %v426_v17  ;;  %v1526_v11 = vsub.f32 %v8408_v12, %v13267_v42  ;;  %v1538_v22 = vsub.f32 %v8410_v13, %v13270_v23  ;;  %v6831_v24 = vpack.c.bf16 %v1521_v29, %v1509_v14 }
  0xa2   :  { %6568 = vmatpush1.bf16.msra.mxu0 %v6567_v21  ;;  %v420_v54 = vsub.f32 %v8417_v33, %v13281_v7  ;;  %v432_v37 = vsub.f32 %v8419_v34, %v13271_v18  ;;  %v13277_v1 = vand.u32 4294901760, %v8423_v43  ;;  %v13273_v42 = vand.u32 4294901760, %v8425_v44 }
  0xa3   :  { %v6569_v26 = vpack.c.bf16 %v427_v2, %v415_v20  ;;  %v1527_v36 = vand.u32 4294901760, %v1526_v11  ;;  %v1539_v17 = vand.u32 4294901760, %v1538_v22  ;;  %6832 = vmatpush1.bf16.msra.mxu1 %v6831_v24  ;;  %v13272_v21 = vand.u32 4294901760, %v8429_v51 }
  0xa4   :  { %v421_v16 = vand.u32 4294901760, %v420_v54  ;;  %v433_v23 = vand.u32 4294901760, %v432_v37  ;;  %v1532_v14 = vsub.f32 %v8423_v43, %v13277_v1  ;;  %v1544_v18 = vsub.f32 %v8425_v44, %v13273_v42 }
  0xa5   :  { %6570 = vmatprep.subr.bf16.mxu0 %v6569_v26  ;;  %v6833_v29 = vpack.c.bf16 %v1539_v17, %v1527_v36  ;;  %v13274_v11 = vand.u32 4294901760, %v8433_v56  ;;  %v13275_v22 = vand.u32 4294901760, %v8437_v58  ;;  %v438_v2 = vsub.f32 %v8429_v51, %v13272_v21 }
  0xa6   :  { %v6571_v20 = vpack.c.bf16 %v433_v23, %v421_v16  ;;  %v1533_v24 = vand.u32 4294901760, %v1532_v14  ;;  %v13276_v54 = vand.u32 4294901760, %v8440_v63  ;;  %v1545_v37 = vand.u32 4294901760, %v1544_v18 }
  0xa7   :  { %6834 = vmatprep.subr.bf16.mxu1 %v6833_v29  ;;  %v450_v26 = vsub.f32 %v8433_v56, %v13274_v11  ;;  %v1550_v36 = vsub.f32 %v8437_v58, %v13275_v22  ;;  %v13278_v17 = vand.u32 4294901760, %v8443_v19  ;;  %v439_v16 = vand.u32 4294901760, %v438_v2 }
  0xa8   :  { %6572 = vmatpush1.bf16.msra.mxu0 %v6571_v20  ;;  %v1562_v23 = vsub.f32 %v8440_v63, %v13276_v54  ;;  %v13279_v14 = vand.u32 4294901760, %v8447_v35  ;;  %v13280_v18 = vand.u32 4294901760, %v8451_v30  ;;  %v6835_v29 = vpack.c.bf16 %v1545_v37, %v1533_v24 }
  0xa9   :  { %v451_v21 = vand.u32 4294901760, %v450_v26  ;;  %v1551_v42 = vand.u32 4294901760, %v1550_v36  ;;  %v444_v11 = vsub.f32 %v8443_v19, %v13278_v17  ;;  %v13284_v54 = vand.u32 4294901760, %v8453_v57 }
  0xaa   :  { %v1563_v22 = vand.u32 4294901760, %v1562_v23  ;;  %v456_v20 = vsub.f32 %v8447_v35, %v13279_v14  ;;  %v1556_v2 = vsub.f32 %v8451_v30, %v13280_v18  ;;  %6836 = vmatpush1.bf16.msra.mxu1 %v6835_v29  ;;  %v13287_v37 = vand.u32 4294901760, %v8457_v5  ;;  %v14213_v29 = vld [vmem:[#allocation68_spill] sm:$0xff]  ;;  %v14215_v35 = vld [vmem:[#allocation71_spill] sm:$0xff] }
  0xab   :  { %v6573_v1 = vpack.c.bf16 %v451_v21, %v439_v16  ;;  %v445_v24 = vand.u32 4294901760, %v444_v11  ;;  %v13288_v26 = vand.u32 4294901760, %v8459_v3  ;;  %v1568_v14 = vsub.f32 %v8453_v57, %v13284_v54  ;;  %v14212_v11 = vld [vmem:[#allocation66_spill] sm:$0xff] }
  0xac   :  { %v6837_v36 = vpack.c.bf16 %v1563_v22, %v1551_v42  ;;  %v457_v17 = vand.u32 4294901760, %v456_v20  ;;  %v1557_v23 = vand.u32 4294901760, %v1556_v2  ;;  %v462_v18 = vsub.f32 %v8457_v5, %v13287_v37  ;;  %v14214_v20 = vld [vmem:[#allocation70_spill] sm:$0xff] }
  0xad   :  { %6574 = vmatprep.subr.bf16.mxu0 %v6573_v1  ;;  %v474_v21 = vsub.f32 %v8459_v3, %v13288_v26  ;;  %v13293_v16 = vand.u32 4294901760, %v14212_v11  ;;  %v13298_v7 = vand.u32 4294901760, %v14213_v29  ;;  %v1569_v22 = vand.u32 4294901760, %v1568_v14 }
  0xae   :  { %6838 = vmatprep.subr.bf16.mxu1 %v6837_v36  ;;  %v6575_v42 = vpack.c.bf16 %v457_v17, %v445_v24  ;;  %v13299_v2 = vand.u32 4294901760, %v14214_v20  ;;  %v13300_v54 = vand.u32 4294901760, %v14215_v35  ;;  %v463_v1 = vand.u32 4294901760, %v462_v18  ;;  %v14216_v18 = vld [vmem:[#allocation73_spill] sm:$0xff] }
  0xaf   :  { %v475_v19 = vand.u32 4294901760, %v474_v21  ;;  %v1574_v37 = vsub.f32 %v14212_v11, %v13293_v16  ;;  %v1586_v26 = vsub.f32 %v14213_v29, %v13298_v7  ;;  %v6839_v49 = vpack.c.bf16 %v1569_v22, %v1557_v23  ;;  %v14217_v16 = vld [vmem:[#allocation74_spill] sm:$0xff] }
  0xb0   :  { %6576 = vmatpush1.bf16.msra.mxu0 %v6575_v42  ;;  %v468_v17 = vsub.f32 %v14214_v20, %v13299_v2  ;;  %v480_v14 = vsub.f32 %v14215_v35, %v13300_v54  ;;  %v13303_v24 = vand.u32 4294901760, %v14216_v18  ;;  %v13305_v58 = vand.u32 4294901760, %v14217_v16  ;;  %v14218_v42 = vld [vmem:[#allocation76_spill] sm:$0xff] }
  0xb1   :  { %v6577_v36 = vpack.c.bf16 %v475_v19, %v463_v1  ;;  %v1575_v21 = vand.u32 4294901760, %v1574_v37  ;;  %v1587_v63 = vand.u32 4294901760, %v1586_v26  ;;  %6840 = vmatpush1.bf16.msra.mxu1 %v6839_v49  ;;  %v13306_v22 = vand.u32 4294901760, %v14218_v42  ;;  %v14219_v19 = vld [vmem:[#allocation77_spill] sm:$0xff]  ;;  %v14220_v26 = vld [vmem:[#allocation78_spill] sm:$0xff] }
  0xb2   :  { %v469_v56 = vand.u32 4294901760, %v468_v17  ;;  %v481_v7 = vand.u32 4294901760, %v480_v14  ;;  %v1580_v23 = vsub.f32 %v14216_v18, %v13303_v24  ;;  %v1592_v54 = vsub.f32 %v14217_v16, %v13305_v58  ;;  %v14221_v14 = vld [vmem:[#allocation80_spill] sm:$0xff] }
  0xb3   :  { %6578 = vmatprep.subr.bf16.mxu0 %v6577_v36  ;;  %v6841_v2 = vpack.c.bf16 %v1587_v63, %v1575_v21  ;;  %v13310_v37 = vand.u32 4294901760, %v14219_v19  ;;  %v13311_v1 = vand.u32 4294901760, %v14220_v26  ;;  %v486_v17 = vsub.f32 %v14218_v42, %v13306_v22  ;;  %v14222_v21 = vld [vmem:[#allocation82_spill] sm:$0xff] }
  0xb4   :  { %v6579_v51 = vpack.c.bf16 %v481_v7, %v469_v56  ;;  %v1581_v49 = vand.u32 4294901760, %v1580_v23  ;;  %v13312_v24 = vand.u32 4294901760, %v14221_v14  ;;  %v1593_v18 = vand.u32 4294901760, %v1592_v54  ;;  %v14223_v23 = vld [vmem:[#allocation83_spill] sm:$0xff] }
  0xb5   :  { %6842 = vmatprep.subr.bf16.mxu1 %v6841_v2  ;;  %v498_v63 = vsub.f32 %v14219_v19, %v13310_v37  ;;  %v1598_v36 = vsub.f32 %v14220_v26, %v13311_v1  ;;  %v13317_v58 = vand.u32 4294901760, %v14222_v21  ;;  %v487_v56 = vand.u32 4294901760, %v486_v17  ;;  %v14224_v2 = vld [vmem:[#allocation85_spill] sm:$0xff] }
  0xb6   :  { %6580 = vmatpush1.bf16.msra.mxu0 %v6579_v51  ;;  %v1610_v7 = vsub.f32 %v14221_v14, %v13312_v24  ;;  %v13318_v22 = vand.u32 4294901760, %v14223_v23  ;;  %v13319_v54 = vand.u32 4294901760, %v14224_v2  ;;  %v6843_v42 = vpack.c.bf16 %v1593_v18, %v1581_v49  ;;  %v14225_v24 = vld [vmem:[#allocation86_spill] sm:$0xff]  ;;  %v14226_v49 = vld [vmem:[#allocation88_spill] sm:$0xff] }
  0xb7   :  { %v499_v16 = vand.u32 4294901760, %v498_v63  ;;  %v1599_v35 = vand.u32 4294901760, %v1598_v36  ;;  %v492_v37 = vsub.f32 %v14222_v21, %v13317_v58  ;;  %v13322_v14 = vand.u32 4294901760, %v14225_v24  ;;  %v14227_v36 = vld [vmem:[#allocation89_spill] sm:$0xff] }
  0xb8   :  { %v1611_v1 = vand.u32 4294901760, %v1610_v7  ;;  %v504_v51 = vsub.f32 %v14223_v23, %v13318_v22  ;;  %v1604_v17 = vsub.f32 %v14224_v2, %v13319_v54  ;;  %6844 = vmatpush1.bf16.msra.mxu1 %v6843_v42  ;;  %v13324_v63 = vand.u32 4294901760, %v14226_v49  ;;  %v14228_v42 = vld [vmem:[#allocation90_spill] sm:$0xff]  ;;  %v14231_v23 = vld [vmem:[#allocation95_spill] sm:$0xff] }
  0xb9   :  { %v6581_v26 = vpack.c.bf16 %v499_v16, %v487_v56  ;;  %v493_v18 = vand.u32 4294901760, %v492_v37  ;;  %v13325_v19 = vand.u32 4294901760, %v14227_v36  ;;  %v1616_v22 = vsub.f32 %v14225_v24, %v13322_v14  ;;  %v14229_v56 = vld [vmem:[#allocation92_spill] sm:$0xff] }
  0xba   :  { %v6845_v20 = vpack.c.bf16 %v1611_v1, %v1599_v35  ;;  %v505_v58 = vand.u32 4294901760, %v504_v51  ;;  %v1605_v7 = vand.u32 4294901760, %v1604_v17  ;;  %v510_v54 = vsub.f32 %v14226_v49, %v13324_v63  ;;  %v14230_v51 = vld [vmem:[#allocation94_spill] sm:$0xff] }
  0xbb   :  { %6582 = vmatprep.subr.bf16.mxu0 %v6581_v26  ;;  %v522_v16 = vsub.f32 %v14227_v36, %v13325_v19  ;;  %v13328_v37 = vand.u32 4294901760, %v14228_v42  ;;  %v13331_v2 = vand.u32 4294901760, %v14229_v56  ;;  %v1617_v1 = vand.u32 4294901760, %v1616_v22  ;;  %v14232_v22 = vld [vmem:[#allocation97_spill] sm:$0xff] }
  0xbc   :  { %6846 = vmatprep.subr.bf16.mxu1 %v6845_v20  ;;  %v6583_v35 = vpack.c.bf16 %v505_v58, %v493_v18  ;;  %v13332_v17 = vand.u32 4294901760, %v14230_v51  ;;  %v13333_v14 = vand.u32 4294901760, %v14231_v23  ;;  %v511_v26 = vand.u32 4294901760, %v510_v54 }
  0xbd   :  { %v523_v24 = vand.u32 4294901760, %v522_v16  ;;  %v1622_v63 = vsub.f32 %v14228_v42, %v13328_v37  ;;  %v1634_v19 = vsub.f32 %v14229_v56, %v13331_v2  ;;  %v6847_v36 = vpack.c.bf16 %v1617_v1, %v1605_v7  ;;  %v14233_v37 = vld [vmem:[#allocation98_spill] sm:$0xff] }
  0xbe   :  { %6584 = vmatpush1.bf16.msra.mxu0 %v6583_v35  ;;  %v516_v58 = vsub.f32 %v14230_v51, %v13332_v17  ;;  %v528_v20 = vsub.f32 %v14231_v23, %v13333_v14  ;;  %v13335_v54 = vand.u32 4294901760, %v14232_v22  ;;  %v13337_v42 = vand.u32 4294901760, %v14233_v37  ;;  %v14234_v35 = vld [vmem:[#allocation100_spill] sm:$0xff] }
  0xbf   :  { %v6585_v18 = vpack.c.bf16 %v523_v24, %v511_v26  ;;  %v1623_v16 = vand.u32 4294901760, %v1622_v63  ;;  %v1635_v49 = vand.u32 4294901760, %v1634_v19  ;;  %6848 = vmatpush1.bf16.msra.mxu1 %v6847_v36  ;;  %v13338_v1 = vand.u32 4294901760, %v14234_v35  ;;  %v14235_v24 = vld [vmem:[#allocation101_spill] sm:$0xff]  ;;  %v14236_v19 = vld [vmem:[#allocation102_spill] sm:$0xff] }
  0xc0   :  { %v517_v21 = vand.u32 4294901760, %v516_v58  ;;  %v529_v2 = vand.u32 4294901760, %v528_v20  ;;  %v1628_v7 = vsub.f32 %v14232_v22, %v13335_v54  ;;  %v1640_v14 = vsub.f32 %v14233_v37, %v13337_v42  ;;  %v14237_v20 = vld [vmem:[#allocation104_spill] sm:$0xff] }
  0xc1   :  { %6586 = vmatprep.subr.bf16.mxu0 %v6585_v18  ;;  %v6849_v17 = vpack.c.bf16 %v1635_v49, %v1623_v16  ;;  %v13342_v63 = vand.u32 4294901760, %v14235_v24  ;;  %v13343_v26 = vand.u32 4294901760, %v14236_v19  ;;  %v534_v58 = vsub.f32 %v14234_v35, %v13338_v1  ;;  %v14238_v16 = vld [vmem:[#allocation106_spill] sm:$0xff] }
  0xc2   :  { %v6587_v23 = vpack.c.bf16 %v529_v2, %v517_v21  ;;  %v1629_v36 = vand.u32 4294901760, %v1628_v7  ;;  %v13344_v54 = vand.u32 4294901760, %v14237_v20  ;;  %v1641_v22 = vand.u32 4294901760, %v1640_v14  ;;  %v14239_v7 = vld [vmem:[#allocation107_spill] sm:$0xff] }
  0xc3   :  { %6850 = vmatprep.subr.bf16.mxu1 %v6849_v17  ;;  %v546_v49 = vsub.f32 %v14235_v24, %v13342_v63  ;;  %v1646_v18 = vsub.f32 %v14236_v19, %v13343_v26  ;;  %v13349_v42 = vand.u32 4294901760, %v14238_v16  ;;  %v535_v21 = vand.u32 4294901760, %v534_v58  ;;  %v14240_v17 = vld [vmem:[#allocation109_spill] sm:$0xff] }
  0xc4   :  { %6588 = vmatpush1.bf16.msra.mxu0 %v6587_v23  ;;  %v1658_v2 = vsub.f32 %v14237_v20, %v13344_v54  ;;  %v13350_v1 = vand.u32 4294901760, %v14239_v7  ;;  %v13351_v14 = vand.u32 4294901760, %v14240_v17  ;;  %v6851_v35 = vpack.c.bf16 %v1641_v22, %v1629_v36  ;;  %v14241_v54 = vld [vmem:[#allocation110_spill] sm:$0xff]  ;;  %v14242_v36 = vld [vmem:[#allocation112_spill] sm:$0xff] }
  0xc5   :  { %v547_v37 = vand.u32 4294901760, %v546_v49  ;;  %v1647_v51 = vand.u32 4294901760, %v1646_v18  ;;  %v540_v63 = vsub.f32 %v14238_v16, %v13349_v42  ;;  %v13354_v20 = vand.u32 4294901760, %v14241_v54  ;;  %v14243_v18 = vld [vmem:[#allocation113_spill] sm:$0xff] }
  0xc6   :  { %v1659_v26 = vand.u32 4294901760, %v1658_v2  ;;  %v552_v23 = vsub.f32 %v14239_v7, %v13350_v1  ;;  %v1652_v58 = vsub.f32 %v14240_v17, %v13351_v14  ;;  %6852 = vmatpush1.bf16.msra.mxu1 %v6851_v35  ;;  %v13356_v49 = vand.u32 4294901760, %v14242_v36  ;;  %v14244_v35 = vld [vmem:[#allocation114_spill] sm:$0xff]  ;;  %v14247_v7 = vld [vmem:[#allocation119_spill] sm:$0xff] }
  0xc7   :  { %v6589_v19 = vpack.c.bf16 %v547_v37, %v535_v21  ;;  %v541_v22 = vand.u32 4294901760, %v540_v63  ;;  %v13357_v24 = vand.u32 4294901760, %v14243_v18  ;;  %v1664_v1 = vsub.f32 %v14241_v54, %v13354_v20  ;;  %v14245_v21 = vld [vmem:[#allocation116_spill] sm:$0xff] }
  0xc8   :  { %v6853_v56 = vpack.c.bf16 %v1659_v26, %v1647_v51  ;;  %v553_v42 = vand.u32 4294901760, %v552_v23  ;;  %v1653_v2 = vand.u32 4294901760, %v1652_v58  ;;  %v558_v14 = vsub.f32 %v14242_v36, %v13356_v49  ;;  %v14246_v23 = vld [vmem:[#allocation118_spill] sm:$0xff] }
  0xc9   :  { %6590 = vmatprep.subr.bf16.mxu0 %v6589_v19  ;;  %v570_v37 = vsub.f32 %v14243_v18, %v13357_v24  ;;  %v13360_v63 = vand.u32 4294901760, %v14244_v35  ;;  %v13363_v17 = vand.u32 4294901760, %v14245_v21  ;;  %v1665_v26 = vand.u32 4294901760, %v1664_v1  ;;  %v14248_v1 = vld [vmem:[#allocation121_spill] sm:$0xff] }
  0xca   :  { %6854 = vmatprep.subr.bf16.mxu1 %v6853_v56  ;;  %v6591_v51 = vpack.c.bf16 %v553_v42, %v541_v22  ;;  %v13364_v58 = vand.u32 4294901760, %v14246_v23  ;;  %v13365_v20 = vand.u32 4294901760, %v14247_v7  ;;  %v559_v19 = vand.u32 4294901760, %v558_v14 }
  0xcb   :  { %v571_v54 = vand.u32 4294901760, %v570_v37  ;;  %v1670_v49 = vsub.f32 %v14244_v35, %v13360_v63  ;;  %v1682_v24 = vsub.f32 %v14245_v21, %v13363_v17  ;;  %v6855_v18 = vpack.c.bf16 %v1665_v26, %v1653_v2  ;;  %v14249_v63 = vld [vmem:[#allocation122_spill] sm:$0xff] }
  0xcc   :  { %6592 = vmatpush1.bf16.msra.mxu0 %v6591_v51  ;;  %v564_v42 = vsub.f32 %v14246_v23, %v13364_v58  ;;  %v576_v56 = vsub.f32 %v14247_v7, %v13365_v20  ;;  %v13367_v14 = vand.u32 4294901760, %v14248_v1  ;;  %v13369_v35 = vand.u32 4294901760, %v14249_v63  ;;  %v14250_v51 = vld [vmem:[#allocation124_spill] sm:$0xff] }
  0xcd   :  { %v6593_v22 = vpack.c.bf16 %v571_v54, %v559_v19  ;;  %v1671_v37 = vand.u32 4294901760, %v1670_v49  ;;  %v1683_v36 = vand.u32 4294901760, %v1682_v24  ;;  %6856 = vmatpush1.bf16.msra.mxu1 %v6855_v18  ;;  %v13368_v26 = vand.u32 4294901760, %v14250_v51  ;;  %v14251_v54 = vld [vmem:[#allocation125_spill] sm:$0xff]  ;;  %v14252_v24 = vld [vmem:[#allocation126_spill] sm:$0xff] }
  0xce   :  { %v565_v16 = vand.u32 4294901760, %v564_v42  ;;  %v577_v17 = vand.u32 4294901760, %v576_v56  ;;  %v1676_v2 = vsub.f32 %v14248_v1, %v13367_v14  ;;  %v1688_v20 = vsub.f32 %v14249_v63, %v13369_v35 }
  0xcf   :  { %6594 = vmatprep.subr.bf16.mxu0 %v6593_v22  ;;  %v6857_v58 = vpack.c.bf16 %v1683_v36, %v1671_v37  ;;  %v13370_v49 = vand.u32 4294901760, %v14251_v54  ;;  %v13371_v19 = vand.u32 4294901760, %v14252_v24  ;;  %v582_v42 = vsub.f32 %v14250_v51, %v13368_v26 }
  0xd0   :  { %v6595_v7 = vpack.c.bf16 %v577_v17, %v565_v16  ;;  %v1677_v18 = vand.u32 4294901760, %v1676_v2  ;;  %v13372_v56 = vand.u32 4294901760, %v8608_v59  ;;  %v1689_v14 = vand.u32 4294901760, %v1688_v20 }
  0xd1   :  { %6858 = vmatprep.subr.bf16.mxu1 %v6857_v58  ;;  %v594_v36 = vsub.f32 %v14251_v54, %v13370_v49  ;;  %v1694_v22 = vsub.f32 %v14252_v24, %v13371_v19  ;;  %v13378_v37 = vand.u32 4294901760, %v8612_v0  ;;  %v583_v16 = vand.u32 4294901760, %v582_v42 }
  0xd2   :  { %6596 = vmatpush1.bf16.msra.mxu0 %v6595_v7  ;;  %v1706_v17 = vsub.f32 %v8608_v59, %v13372_v56  ;;  %v13379_v2 = vand.u32 4294901760, %v8614_v38  ;;  %v13380_v20 = vand.u32 4294901760, %v8618_v53  ;;  %v6859_v58 = vpack.c.bf16 %v1689_v14, %v1677_v18  ;;  %v14253_v56 = vld [vmem:[#allocation132_spill] sm:$0xff]  ;;  %v14254_v18 = vld [vmem:[#allocation134_spill] sm:$0xff] }
  0xd3   :  { %v595_v26 = vand.u32 4294901760, %v594_v36  ;;  %v1695_v35 = vand.u32 4294901760, %v1694_v22  ;;  %v588_v49 = vsub.f32 %v8612_v0, %v13378_v37  ;;  %v13381_v59 = vand.u32 4294901760, %v14253_v56  ;;  %v14255_v22 = vld [vmem:[#allocation135_spill] sm:$0xff] }
  0xd4   :  { %v1707_v19 = vand.u32 4294901760, %v1706_v17  ;;  %v600_v7 = vsub.f32 %v8614_v38, %v13379_v2  ;;  %v1700_v42 = vsub.f32 %v8618_v53, %v13380_v20  ;;  %6860 = vmatpush1.bf16.msra.mxu1 %v6859_v58  ;;  %v13382_v36 = vand.u32 4294901760, %v14254_v18  ;;  %v14313_v53 = vld [vmem:[#allocation55_spill] sm:$0xff] }
  0xd5   :  { %v6597_v24 = vpack.c.bf16 %v595_v26, %v583_v16  ;;  %v589_v14 = vand.u32 4294901760, %v588_v49  ;;  %v13383_v54 = vand.u32 4294901760, %v14255_v22  ;;  %v1712_v2 = vsub.f32 %v14253_v56, %v13381_v59  ;;  %v14256_v49 = vld [vmem:[#allocation136_spill] sm:$0xff] }
  0xd6   :  { %v6861_v51 = vpack.c.bf16 %v1707_v19, %v1695_v35  ;;  %v601_v37 = vand.u32 4294901760, %v600_v7  ;;  %v1701_v17 = vand.u32 4294901760, %v1700_v42  ;;  %v606_v20 = vsub.f32 %v14254_v18, %v13382_v36 }
  0xd7   :  { %6598 = vmatprep.subr.bf16.mxu0 %v6597_v24  ;;  %v618_v26 = vsub.f32 %v14255_v22, %v13383_v54  ;;  %v13385_v16 = vand.u32 4294901760, %v14256_v49  ;;  %v13387_v58 = vand.u32 4294901760, %v8642_v8  ;;  %v1713_v19 = vand.u32 4294901760, %v1712_v2 }
  0xd8   :  { %6862 = vmatprep.subr.bf16.mxu1 %v6861_v51  ;;  %v6599_v35 = vpack.c.bf16 %v601_v37, %v589_v14  ;;  %v13391_v7 = vand.u32 4294901760, %v8646_v31  ;;  %v13388_v42 = vand.u32 4294901760, %v8648_v15  ;;  %v607_v24 = vand.u32 4294901760, %v606_v20  ;;  %v84_v20 = vld [vmem:[#allocation2 + $0x10] sm:$0xff] }
  0xd9   :  { %v619_v59 = vand.u32 4294901760, %v618_v26  ;;  %v1718_v36 = vsub.f32 %v14256_v49, %v13385_v16  ;;  %v1730_v54 = vsub.f32 %v8642_v8, %v13387_v58  ;;  %v6863_v22 = vpack.c.bf16 %v1713_v19, %v1701_v17 }
  0xda   :  { %6600 = vmatpush1.bf16.msra.mxu0 %v6599_v35  ;;  %v612_v51 = vsub.f32 %v8646_v31, %v13391_v7  ;;  %v624_v37 = vsub.f32 %v8648_v15, %v13388_v42  ;;  %v13390_v2 = vand.u32 4294901760, %v8652_v45  ;;  %v13389_v49 = vand.u32 4294901760, %v8654_v9 }
  0xdb   :  { %v6601_v14 = vpack.c.bf16 %v619_v59, %v607_v24  ;;  %v1719_v26 = vand.u32 4294901760, %v1718_v36  ;;  %v1731_v16 = vand.u32 4294901760, %v1730_v54  ;;  %6864 = vmatpush1.bf16.msra.mxu1 %v6863_v22  ;;  %v9059_v19 = vsub.f32 %v8673_v47, %v8680_v28  ;;  %v14261_v47 = vld [vmem:[#allocation137_spill] sm:$0xff] }
  0xdc   :  { %v613_v58 = vand.u32 4294901760, %v612_v51  ;;  %v625_v35 = vand.u32 4294901760, %v624_v37  ;;  %v1724_v17 = vsub.f32 %v8652_v45, %v13390_v2  ;;  %v1736_v59 = vsub.f32 %v8654_v9, %v13389_v49  ;;  %v14264_v49 = vld [vmem:[#allocation147_spill] sm:$0xff] }
  0xdd   :  { %14257 = vst [vmem:[#allocation116_spill] sm:$0xff] %v9059_v19  ;;  %6602 = vmatprep.subr.bf16.mxu0 %v6601_v14  ;;  %v6865_v42 = vpack.c.bf16 %v1731_v16, %v1719_v26  ;;  %v9064_v54 = vand.u32 4294901760, %v84_v20  ;;  %v9068_v36 = vsub.f32 %v8635_v32, %v8659_v60  ;;  %v9071_v51 = vand.u32 4294901760, %v9059_v19 }
  0xde   :  { %v6603_v22 = vpack.c.bf16 %v625_v35, %v613_v58  ;;  %v1725_v24 = vand.u32 4294901760, %v1724_v17  ;;  %v9075_v37 = vsub.f32 %v14261_v47, %v8662_v55  ;;  %v1737_v16 = vand.u32 4294901760, %v1736_v59  ;;  %v14265_v35 = vld [vmem:[#allocation148_spill] sm:$0xff] }
  0xdf   :  { %14258 = vst [vmem:[#allocation118_spill] sm:$0xff] %v9064_v54  ;;  %14259 = vst [vmem:[#allocation121_spill] sm:$0xff] %v9068_v36  ;;  %6866 = vmatprep.subr.bf16.mxu1 %v6865_v42  ;;  %v9078_v14 = vsub.f32 %v84_v20, %v9064_v54  ;;  %v13396_v26 = vand.u32 4294901760, %v9068_v36  ;;  %v13399_v2 = vand.u32 4294901760, %v14264_v49  ;;  %v349_v32 = vsub.f32 %v9059_v19, %v9071_v51 }
  0xe0   :  { %14260 = vst [vmem:[#allocation122_spill] sm:$0xff] %v9071_v51  ;;  %14262 = vst [vmem:[#allocation134_spill] sm:$0xff] %v9075_v37  ;;  %6604 = vmatpush1.bf16.msra.mxu0 %v6603_v22  ;;  %v13405_v58 = vand.u32 4294901760, %v9075_v37  ;;  %v13408_v17 = vand.u32 4294901760, %v14265_v35  ;;  %v6867_v7 = vpack.c.bf16 %v1737_v16, %v1725_v24 }
  0xe1   :  { %14263 = vst [vmem:[#allocation137_spill] sm:$0xff] %v9078_v14  ;;  %v9087_v47 = vand.u32 4294901760, %v9078_v14  ;;  %v630_v42 = vsub.f32 %v9068_v36, %v13396_v26  ;;  %v636_v20 = vsub.f32 %v14264_v49, %v13399_v2  ;;  %v350_v59 = vand.u32 4294901760, %v349_v32  ;;  %v14267_v2 = vld [vmem:[#allocation16_spill] sm:$0xff]  ;;  %v14268_v32 = vld [vmem:[#allocation17_spill] sm:$0xff]  ;;  %v14269_v49 = vld [vmem:[#allocation18_spill] sm:$0xff] }
  0xe2   :  { %v1742_v22 = vsub.f32 %v9075_v37, %v13405_v58  ;;  %v1748_v24 = vsub.f32 %v14265_v35, %v13408_v17  ;;  %6868 = vmatpush1.bf16.msra.mxu1 %v6867_v7  ;;  %v6605_v19 = vpack.c.bf16 %v14268_v32, %v14267_v2  ;;  %v14270_v36 = vld [vmem:[#allocation20_spill] sm:$0xff]  ;;  %v6607_v7 = vpack.c.bf16 %v8362_v27, %v8359_v25  ;;  %v14295_v25 = vld [vmem:[#allocation102_spill] sm:$0xff] }
  0xe3   :  { %14266 = vst [vmem:[#allocation154_spill] sm:$0xff] %v9087_v47  ;;  %v355_v16 = vsub.f32 %v9078_v14, %v9087_v47  ;;  %v631_v51 = vand.u32 4294901760, %v630_v42  ;;  %v637_v55 = vand.u32 4294901760, %v636_v20  ;;  %351 = vmatprep.mubr.f32.mxu0 %v350_v59  ;;  %1463 = vmatprep.mubr.f32.mxu1 %v350_v59  ;;  %v6869_v58 = vpack.c.bf16 %v14270_v36, %v14269_v49  ;;  %v14296_v36 = vld [vmem:[#allocation104_spill] sm:$0xff]  ;;  %v14298_v49 = vld [vmem:[#allocation107_spill] sm:$0xff]  ;;  %v14300_v2 = vld [vmem:[#allocation110_spill] sm:$0xff] }
  0xe4   :  { %v1743_v26 = vand.u32 4294901760, %v1742_v22  ;;  %v1749_v60 = vand.u32 4294901760, %v1748_v24  ;;  %v6871_v17 = vpack.c.bf16 %v8370_v40, %v8368_v39  ;;  %v6609_v42 = vpack.c.bf16 %v8376_v46, %v8372_v41  ;;  %v14290_v46 = vld [vmem:[#allocation95_spill] sm:$0xff]  ;;  %v14293_v39 = vld [vmem:[#allocation100_spill] sm:$0xff]  ;;  %v14303_v35 = vld [vmem:[#allocation114_spill] sm:$0xff] }
  0xe5   :  { %v356_v37 = vand.u32 4294901760, %v355_v16  ;;  %632 = vmatprep.subr.mxu0 %v631_v51  ;;  %v6873_v20 = vpack.c.bf16 %v8383_v50, %v8380_v48  ;;  %v6611_v59 = vpack.c.bf16 %v8391_v61, %v8385_v52  ;;  %v6875_v51 = vpack.c.bf16 %v8397_v4, %v8393_v62  ;;  %v14283_v61 = vld [vmem:[#allocation86_spill] sm:$0xff]  ;;  %v14288_v50 = vld [vmem:[#allocation92_spill] sm:$0xff]  ;;  %v14291_v62 = vld [vmem:[#allocation97_spill] sm:$0xff] }
  0xe6   :  { %1744 = vmatprep.subr.mxu1 %v1743_v26  ;;  %638 = vmatpush1.msra.mxu0 %v637_v55  ;;  %v6613_v22 = vpack.c.bf16 %v8404_v10, %v8401_v6  ;;  %v6877_v24 = vpack.c.bf16 %v8410_v13, %v8408_v12  ;;  %v6615_v55 = vpack.c.bf16 %v8419_v34, %v8417_v33  ;;  %v14271_v26 = vld [vmem:[#allocation145_spill] sm:$0xff]  ;;  %v14272_v12 = vld [vmem:[#allocation70_spill] sm:$0xff]  ;;  %v14273_v34 = vld [vmem:[#allocation71_spill] sm:$0xff] }
  0xe7   :  { %357 = vmatmul.mubr.f32.gmra.mrb[2].mxu0 %v356_v37  ;;  %1469 = vmatmul.mubr.f32.gmra.mrb[2].mxu1 %v356_v37  ;;  %v6879_v16 = vpack.c.bf16 %v8425_v44, %v8423_v43  ;;  %v6883_v47 = vpack.c.bf16 %v8453_v57, %v8451_v30  ;;  %v6621_v37 = vpack.c.bf16 %v8459_v3, %v8457_v5  ;;  %v14275_v10 = vld [vmem:[#allocation74_spill] sm:$0xff]  ;;  %v14294_v52 = vld [vmem:[#allocation101_spill] sm:$0xff]  ;;  %v14301_v41 = vld [vmem:[#allocation112_spill] sm:$0xff] }
  0xe8   :  { %1750 = vmatpush1.msra.mxu1 %v1749_v60  ;;  %658 = vmatprep.mubr.f32.mxu0 %v14271_v26  ;;  %v6885_v13 = vpack.c.bf16 %v14213_v29, %v14212_v11  ;;  %v14280_v3 = vld [vmem:[#allocation82_spill] sm:$0xff]  ;;  %v14285_v60 = vld [vmem:[#allocation88_spill] sm:$0xff]  ;;  %v14286_v11 = vld [vmem:[#allocation89_spill] sm:$0xff] }
  0xe9   :  { %6606 = vmatprep.subr.bf16.mxu0 %v6605_v19  ;;  %1770 = vmatprep.mubr.f32.mxu1 %v14271_v26  ;;  %v14281_v19 = vld [vmem:[#allocation83_spill] sm:$0xff]  ;;  %v14282_v26 = vld [vmem:[#allocation85_spill] sm:$0xff]  ;;  %v14284_v29 = vld [vmem:[#allocation150_spill] sm:$0xff] }
  0xea   :  { %6870 = vmatprep.subr.bf16.mxu1 %v6869_v58  ;;  %v14287_v58 = vld [vmem:[#allocation90_spill] sm:$0xff]  ;;  %v14299_v48 = vld [vmem:[#allocation109_spill] sm:$0xff]  ;;  %v14304_v57 = vld [vmem:[#allocation119_spill] sm:$0xff]  ;;  %v14319_v33 = vand.u32 4294901760, %v14281_v19 }
  0xeb   :  { %660 = vmatmul.mubr.f32.vlgmr.msra.gmra.mrb[0].mxu0 %v14284_v29  ;;  %1772 = vmatmul.mubr.f32.vlgmr.msra.gmra.mrb[0].mxu1 %v14284_v29  ;;  %v14289_v4 = vld [vmem:[#allocation94_spill] sm:$0xff]  ;;  %v14308_v44 = vld [vmem:[#allocation128_spill] sm:$0xff]  ;;  %v14312_v40 = vld [vmem:[#allocation53_spill] sm:$0xff] }
  0xec   :  { %6608 = vmatpush1.bf16.msra.mxu0 %v6607_v7  ;;  %6872 = vmatpush1.bf16.msra.mxu1 %v6871_v17  ;;  %v14292_v5 = vld [vmem:[#allocation98_spill] sm:$0xff]  ;;  %v14302_v7 = vld [vmem:[#allocation113_spill] sm:$0xff]  ;;  %v14310_v29 = vld [vmem:[#allocation136_spill] sm:$0xff] }
  0xed   :  { %6610 = vmatprep.subr.bf16.mxu0 %v6609_v42  ;;  %6874 = vmatprep.subr.bf16.mxu1 %v6873_v20  ;;  %v14297_v6 = vld [vmem:[#allocation106_spill] sm:$0xff]  ;;  %v14305_v42 = vld [vmem:[#allocation124_spill] sm:$0xff]  ;;  %v14306_v20 = vld [vmem:[#allocation125_spill] sm:$0xff] }
  0xee   :  { %666 = vmatprep.mubr.f32.mxu0 %v8680_v28  ;;  %v14307_v32 = vld [vmem:[#allocation126_spill] sm:$0xff]  ;;  %1778 = vmatprep.mubr.f32.mxu1 %v8680_v28  ;;  %v14311_v17 = vld [vmem:[#allocation52_spill] sm:$0xff]  ;;  %v14317_v14 = vld [vmem:[#allocation59_spill] sm:$0xff]  ;;  %v14322_v28 = vand.u32 4294901760, %v14283_v61 }
  0xef   :  { %v6617_v56 = vpack.c.bf16 %v14312_v40, %v14311_v17  ;;  %v14314_v27 = vld [vmem:[#allocation56_spill] sm:$0xff]  ;;  %668 = vmatmul.mubr.f32.gmra.mrb[2].mxu0 %v9064_v54  ;;  %1780 = vmatmul.mubr.f32.gmra.mrb[2].mxu1 %v9064_v54  ;;  %v14321_v54 = vand.u32 4294901760, %v14282_v26 }
  0xf0   :  { %6612 = vmatpush1.bf16.msra.mxu0 %v6611_v59  ;;  %6876 = vmatpush1.bf16.msra.mxu1 %v6875_v51  ;;  %v6881_v43 = vpack.c.bf16 %v14314_v27, %v14313_v53  ;;  %v14315_v59 = vld [vmem:[#allocation149_spill] sm:$0xff] }
  0xf1   :  { %6614 = vmatprep.subr.bf16.mxu0 %v6613_v22  ;;  %6878 = vmatprep.subr.bf16.mxu1 %v6877_v24  ;;  %v14316_v51 = vld [vmem:[#allocation57_spill] sm:$0xff]  ;;  %v14318_v24 = vand.u32 4294901760, %v14280_v3 }
  0xf2   :  { %832 = vmatprep.mubr.f32.mxu0 %v14315_v59  ;;  %1944 = vmatprep.mubr.f32.mxu1 %v14315_v59  ;;  %v6619_v22 = vpack.c.bf16 %v14317_v14, %v14316_v51  ;;  %v9211_v59 = vpack.c.bf16 %v14322_v28, %v14321_v54  ;;  %v14328_v14 = vand.u32 4294901760, %v14288_v50  ;;  %v14333_v54 = vand.u32 4294901760, %v14291_v62 }
  0xf3   :  { %v9205_v30 = vpack.c.bf16 %v14319_v33, %v14318_v24  ;;  %v14334_v24 = vand.u32 4294901760, %v14292_v5 }
  0xf4   :  { %6616 = vmatpush1.bf16.msra.mxu0 %v6615_v55  ;;  %6880 = vmatpush1.bf16.msra.mxu1 %v6879_v16  ;;  %14323 = vst [vmem:[#allocation82_spill] sm:$0xff] %v9211_v59  ;;  %v14324_v55 = vand.u32 4294901760, %v14285_v60  ;;  %v14325_v16 = vand.u32 4294901760, %v14286_v11  ;;  %v14377_v59 = vld [vmem:[#allocation77_spill] sm:$0xff] }
  0xf5   :  { %6618 = vmatprep.subr.bf16.mxu0 %v6617_v56  ;;  %6882 = vmatprep.subr.bf16.mxu1 %v6881_v43  ;;  %14320 = vst [vmem:[#allocation70_spill] sm:$0xff] %v9205_v30  ;;  %v14327_v43 = vand.u32 4294901760, %v14287_v58 }
  0xf6   :  { %v9217_v56 = vpack.c.bf16 %v14325_v16, %v14324_v55  ;;  %v9235_v55 = vpack.c.bf16 %v14334_v24, %v14333_v54  ;;  %v14336_v16 = vand.u32 4294901760, %v14293_v39  ;;  %v14345_v54 = vand.u32 4294901760, %v14299_v48 }
  0xf7   :  { %v9223_v33 = vpack.c.bf16 %v14328_v14, %v14327_v43  ;;  %v14346_v24 = vand.u32 4294901760, %v14300_v2 }
  0xf8   :  { %6620 = vmatpush1.bf16.msra.mxu0 %v6619_v22  ;;  %6884 = vmatpush1.bf16.msra.mxu1 %v6883_v47  ;;  %14326 = vst [vmem:[#allocation83_spill] sm:$0xff] %v9217_v56  ;;  %v14330_v47 = vand.u32 4294901760, %v14289_v4  ;;  %v14331_v22 = vand.u32 4294901760, %v14290_v46  ;;  %14335 = vst [vmem:[#allocation88_spill] sm:$0xff] %v9235_v55  ;;  %v14337_v56 = vand.u32 4294901760, %v14294_v52 }
  0xf9   :  { %14329 = vst [vmem:[#allocation85_spill] sm:$0xff] %v9223_v33  ;;  %6622 = vmatprep.subr.bf16.mxu0 %v6621_v37  ;;  %6886 = vmatprep.subr.bf16.mxu1 %v6885_v13  ;;  %v14339_v13 = vand.u32 4294901760, %v14295_v25  ;;  %v14340_v37 = vand.u32 4294901760, %v14296_v36  ;;  %v9259_v55 = vpack.c.bf16 %v14346_v24, %v14345_v54  ;;  %v14357_v54 = vand.u32 4294901760, %v14248_v1 }
  0xfa   :  { %v9229_v28 = vpack.c.bf16 %v14331_v22, %v14330_v47  ;;  %v9241_v14 = vpack.c.bf16 %v14337_v56, %v14336_v16  ;;  %v14342_v47 = vand.u32 4294901760, %v14297_v6  ;;  %v14343_v22 = vand.u32 4294901760, %v14298_v49 }
  0xfb   :  { %v9247_v43 = vpack.c.bf16 %v14340_v37, %v14339_v13  ;;  %14347 = vst [vmem:[#allocation94_spill] sm:$0xff] %v9259_v55  ;;  %v14348_v56 = vand.u32 4294901760, %v14301_v41  ;;  %v14349_v16 = vand.u32 4294901760, %v14302_v7  ;;  %v14351_v13 = vand.u32 4294901760, %v14303_v35 }
  0xfc   :  { %14332 = vst [vmem:[#allocation86_spill] sm:$0xff] %v9229_v28  ;;  %14338 = vst [vmem:[#allocation89_spill] sm:$0xff] %v9241_v14  ;;  %v9253_v28 = vpack.c.bf16 %v14343_v22, %v14342_v47  ;;  %v14352_v37 = vand.u32 4294901760, %v14245_v21  ;;  %v14354_v47 = vand.u32 4294901760, %v14246_v23  ;;  %v14355_v22 = vand.u32 4294901760, %v14304_v57 }
  0xfd   :  { %14341 = vst [vmem:[#allocation90_spill] sm:$0xff] %v9247_v43  ;;  %v9265_v14 = vpack.c.bf16 %v14349_v16, %v14348_v56  ;;  %v14358_v24 = vand.u32 4294901760, %v14249_v63  ;;  %v14360_v56 = vand.u32 4294901760, %v14305_v42  ;;  %v14361_v16 = vand.u32 4294901760, %v14306_v20 }
  0xfe   :  { %14344 = vst [vmem:[#allocation92_spill] sm:$0xff] %v9253_v28  ;;  %v9271_v43 = vpack.c.bf16 %v14352_v37, %v14351_v13  ;;  %v9277_v28 = vpack.c.bf16 %v14355_v22, %v14354_v47  ;;  %v14363_v13 = vpack.c.bf16 %v14273_v34, %v14272_v12  ;;  %v14364_v37 = vld [vmem:[#allocation73_spill] sm:$0xff]  ;;  %v14366_v22 = vand.u32 4294901760, %v14307_v32 }
  0xff   :  { %14350 = vst [vmem:[#allocation95_spill] sm:$0xff] %v9265_v14  ;;  %v9283_v55 = vpack.c.bf16 %v14358_v24, %v14357_v54  ;;  %v9289_v14 = vpack.c.bf16 %v14361_v16, %v14360_v56  ;;  %v14365_v47 = vpack.c.bf16 %v14275_v10, %v14364_v37  ;;  %v14369_v24 = vand.u32 4294901760, %v8612_v0  ;;  %v14372_v16 = vld [vmem:[#allocation131_spill] sm:$0xff]  ;;  %v14380_v10 = vld [vmem:[#allocation80_spill] sm:$0xff]  ;;  %v14381_v37 = vld [vmem:[#allocation78_spill] sm:$0xff] }
 0x100   :  { %14353 = vst [vmem:[#allocation97_spill] sm:$0xff] %v9271_v43  ;;  %14356 = vst [vmem:[#allocation98_spill] sm:$0xff] %v9277_v28  ;;  %6624 = vmatpush1.bf16.msra.mxu0 %v14363_v13  ;;  %v14367_v28 = vand.u32 4294901760, %v14308_v44  ;;  %v14374_v43 = vld [vmem:[#allocation132_spill] sm:$0xff] }
 0x101   :  { %14359 = vst [vmem:[#allocation100_spill] sm:$0xff] %v9283_v55  ;;  %14362 = vst [vmem:[#allocation101_spill] sm:$0xff] %v9289_v14  ;;  %6888 = vmatpush1.bf16.msra.mxu1 %v14365_v47  ;;  %v14370_v55 = vand.u32 4294901760, %v8614_v38  ;;  %v14373_v14 = vand.u32 4294901760, %v14372_v16  ;;  %v14375_v13 = vand.u32 4294901760, %v14374_v43  ;;  %v14378_v47 = vld [vmem:[#allocation76_spill] sm:$0xff] }
 0x102   :  { %v9301_v54 = vpack.c.bf16 %v14367_v28, %v14366_v22  ;;  %v14379_v30 = vpack.c.bf16 %v14377_v59, %v14378_v47  ;;  %v14382_v28 = vpack.c.bf16 %v14380_v10, %v14381_v37  ;;  %v14383_v22 = vand.u32 4294901760, %v14254_v18 }
 0x103   :  { %v9307_v56 = vpack.c.bf16 %v14370_v55, %v14369_v24  ;;  %v9313_v33 = vpack.c.bf16 %v14375_v13, %v14373_v14  ;;  %v14386_v24 = vand.u32 4294901760, %v14310_v29  ;;  %v14388_v13 = vand.u32 4294901760, %v8646_v31 }
 0x104   :  { %14368 = vst [vmem:[#allocation102_spill] sm:$0xff] %v9301_v54  ;;  %6626 = vmatprep.subr.bf16.mxu0 %v14379_v30  ;;  %6890 = vmatprep.subr.bf16.mxu1 %v14382_v28  ;;  %v14384_v54 = vld [vmem:[#allocation135_spill] sm:$0xff]  ;;  %v14389_v30 = vand.u32 4294901760, %v8648_v15  ;;  %v14390_v28 = vand.u32 4294901760, %v8652_v45  ;;  %v14391_v10 = vand.u32 4294901760, %v8654_v9 }
 0x105   :  { %14371 = vst [vmem:[#allocation104_spill] sm:$0xff] %v9307_v56  ;;  %14376 = vst [vmem:[#allocation106_spill] sm:$0xff] %v9313_v33  ;;  %v14385_v34 = vand.u32 4294901760, %v14384_v54  ;;  %v14387_v56 = vand.u32 4294901760, %v8642_v8 }
 0x106   :  { %v9337_v33 = vpack.c.bf16 %v14389_v30, %v14388_v13  ;;  %v9343_v37 = vpack.c.bf16 %v14391_v10, %v14390_v28  ;;  %v14396_v10 = vpack.c.bf16 %v14290_v46, %v14289_v4  ;;  %v14401_v46 = vpack.c.bf16 %v14300_v2, %v14299_v48  ;;  %v14427_v2 = vld [vmem:[#allocation34_spill] sm:$0xff]  ;;  %v9445_v30 = vld [vmem:[#allocation7 + $0x18] sm:$0xff]  ;;  %v14443_v28 = vld [vmem:[#allocation69_spill] sm:$0xff] }
 0x107   :  { %v9325_v55 = vpack.c.bf16 %v14385_v34, %v14383_v22  ;;  %v9331_v14 = vpack.c.bf16 %v14387_v56, %v14386_v24  ;;  %v14392_v34 = vpack.c.bf16 %v14281_v19, %v14280_v3  ;;  %v14393_v56 = vpack.c.bf16 %v14283_v61, %v14282_v26  ;;  %v14431_v26 = vld [vmem:[#allocation151_spill] sm:$0xff]  ;;  %v14433_v19 = vld [vmem:[#allocation48_spill] sm:$0xff]  ;;  %v9443_v13 = vld [vmem:[#allocation7 + $0x28] sm:$0xff]  ;;  %14442 = vst [vmem:[#allocation110_spill] sm:$0xff] %v9445_v30 }
 0x108   :  { %v14394_v22 = vpack.c.bf16 %v14286_v11, %v14285_v60  ;;  %v14395_v24 = vpack.c.bf16 %v14288_v50, %v14287_v58  ;;  %v14397_v3 = vpack.c.bf16 %v14292_v5, %v14291_v62  ;;  %v14398_v61 = vpack.c.bf16 %v14294_v52, %v14293_v39  ;;  %v14432_v60 = vld [vmem:[#allocation45_spill] sm:$0xff]  ;;  %v14434_v58 = vld [vmem:[#allocation51_spill] sm:$0xff]  ;;  %14441 = vst [vmem:[#allocation109_spill] sm:$0xff] %v9443_v13 }
 0x109   :  { %6628 = vmatpush1.bf16.msra.mxu0 %v14392_v34  ;;  %6892 = vmatpush1.bf16.msra.mxu1 %v14393_v56  ;;  %v14399_v11 = vpack.c.bf16 %v14296_v36, %v14295_v25  ;;  %v14400_v50 = vpack.c.bf16 %v14298_v49, %v14297_v6  ;;  %v14402_v62 = vpack.c.bf16 %v14302_v7, %v14301_v41  ;;  %v14426_v49 = vld [vmem:[#allocation137_spill] sm:$0xff]  ;;  %v14435_v7 = vld [vmem:[#allocation54_spill] sm:$0xff]  ;;  %v14444_v34 = vld [vmem:[#allocation72_spill] sm:$0xff] }
 0x10a   :  { %6630 = vmatprep.subr.bf16.mxu0 %v14394_v22  ;;  %6894 = vmatprep.subr.bf16.mxu1 %v14395_v24  ;;  %v14403_v39 = vpack.c.bf16 %v14245_v21, %v14303_v35  ;;  %v14404_v25 = vpack.c.bf16 %v14304_v57, %v14246_v23  ;;  %v14405_v52 = vpack.c.bf16 %v14249_v63, %v14248_v1  ;;  %v14415_v63 = vld [vmem:[#allocation134_spill] sm:$0xff]  ;;  %v14416_v21 = vld [vmem:[#allocation147_spill] sm:$0xff]  ;;  %v14417_v23 = vld [vmem:[#allocation148_spill] sm:$0xff]  ;;  %v13452_v22 = vand.u32 4294901760, %v9443_v13 }
 0x10b   :  { %v14406_v48 = vpack.c.bf16 %v14306_v20, %v14305_v42  ;;  %v14407_v41 = vpack.c.bf16 %v14308_v44, %v14307_v32  ;;  %v14408_v4 = vpack.c.bf16 %v8614_v38, %v8612_v0  ;;  %v14409_v5 = vpack.c.bf16 %v14374_v43, %v14372_v16  ;;  %v14414_v0 = vld [vmem:[#allocation121_spill] sm:$0xff]  ;;  %v14418_v1 = vld [vmem:[#allocation15_spill] sm:$0xff]  ;;  %v14430_v32 = vld [vmem:[#allocation42_spill] sm:$0xff] }
 0x10c   :  { %v14410_v6 = vpack.c.bf16 %v14384_v54, %v14254_v18  ;;  %v14411_v57 = vpack.c.bf16 %v8642_v8, %v14310_v29  ;;  %v14412_v44 = vpack.c.bf16 %v8648_v15, %v8646_v31  ;;  %v14413_v38 = vpack.c.bf16 %v8654_v9, %v8652_v45  ;;  %v14419_v8 = vld [vmem:[#allocation19_spill] sm:$0xff]  ;;  %v14420_v29 = vld [vmem:[#allocation152_spill] sm:$0xff]  ;;  %v14421_v31 = vld [vmem:[#allocation21_spill] sm:$0xff] }
 0x10d   :  { %6632 = vmatpush1.bf16.msra.mxu0 %v14396_v10  ;;  %6896 = vmatpush1.bf16.msra.mxu1 %v14397_v3  ;;  %v14422_v9 = vld [vmem:[#allocation24_spill] sm:$0xff]  ;;  %v14424_v45 = vld [vmem:[#allocation30_spill] sm:$0xff]  ;;  %v14428_v36 = vld [vmem:[#allocation37_spill] sm:$0xff]  ;;  %v13451_v10 = vand.u32 4294901760, %v9445_v30 }
 0x10e   :  { %6634 = vmatprep.subr.bf16.mxu0 %v14398_v61  ;;  %6898 = vmatprep.subr.bf16.mxu1 %v14399_v11  ;;  %v14423_v15 = vld [vmem:[#allocation28_spill] sm:$0xff]  ;;  %v14429_v35 = vld [vmem:[#allocation39_spill] sm:$0xff]  ;;  %v14436_v42 = vld [vmem:[#allocation58_spill] sm:$0xff] }
 0x10f   :  { %v14425_v18 = vld [vmem:[#allocation116_spill] sm:$0xff]  ;;  %v14438_v43 = vld [vmem:[#allocation63_spill] sm:$0xff]  ;;  %v9441_v16 = vld [vmem:[#allocation7 + $0x8] sm:$0xff] }
 0x110   :  { %v14437_v20 = vld [vmem:[#allocation60_spill] sm:$0xff]  ;;  %v14439_v54 = vld [vmem:[#allocation67_spill] sm:$0xff]  ;;  %14440 = vst [vmem:[#allocation107_spill] sm:$0xff] %v9441_v16  ;;  %v13454_v56 = vand.u32 4294901760, %v9441_v16  ;;  %v9454_v3 = vld [vmem:[#allocation7] sm:$0xff] }
 0x111   :  { %6636 = vmatpush1.bf16.msra.mxu0 %v14400_v50  ;;  %6900 = vmatpush1.bf16.msra.mxu1 %v14401_v46  ;;  %v9451_v24 = vld [vmem:[#allocation7 + $0x38] sm:$0xff]  ;;  %14446 = vst [vmem:[#allocation113_spill] sm:$0xff] %v9454_v3  ;;  %v9456_v61 = vld [vmem:[#allocation7 + $0x20] sm:$0xff]  ;;  %v14448_v11 = vld [vmem:[#allocation75_spill] sm:$0xff] }
 0x112   :  { %6638 = vmatprep.subr.bf16.mxu0 %v14402_v62  ;;  %6902 = vmatprep.subr.bf16.mxu1 %v14403_v39  ;;  %14445 = vst [vmem:[#allocation112_spill] sm:$0xff] %v9451_v24  ;;  %14447 = vst [vmem:[#allocation114_spill] sm:$0xff] %v9456_v61  ;;  %v14449_v50 = vld [vmem:[#allocation79_spill] sm:$0xff]  ;;  %v13453_v46 = vand.u32 4294901760, %v9451_v24  ;;  %v13456_v62 = vand.u32 4294901760, %v9454_v3 }
 0x113   :  { %v9462_v39 = vld [vmem:[#allocation7 + $0x10] sm:$0xff] }
 0x114   :  { %14450 = vst [vmem:[#allocation119_spill] sm:$0xff] %v9462_v39 }
 0x115   :  { %6640 = vmatpush1.bf16.msra.mxu0 %v14404_v25  ;;  %6904 = vmatpush1.bf16.msra.mxu1 %v14405_v52  ;;  %v9464_v25 = vld [vmem:[#allocation7 + $0x30] sm:$0xff]  ;;  %v9466_v52 = vld [vmem:[#allocation7 + $0x48] sm:$0xff] }
 0x116   :  { %6642 = vmatprep.subr.bf16.mxu0 %v14406_v48  ;;  %6906 = vmatprep.subr.bf16.mxu1 %v14407_v41  ;;  %14451 = vst [vmem:[#allocation124_spill] sm:$0xff] %v9464_v25  ;;  %14452 = vst [vmem:[#allocation125_spill] sm:$0xff] %v9466_v52  ;;  %v9471_v48 = vsub.f32 %v9441_v16, %v13454_v56  ;;  %v9476_v41 = vsub.f32 %v9443_v13, %v13452_v22  ;;  %v13466_v22 = vand.u32 4294901760, %v9462_v39  ;;  %v9589_v13 = vld [vmem:[#allocation7 + $0xa0] sm:$0xff] }
 0x117   :  { %v14470_v56 = vand.u32 4294901760, %v9464_v25  ;;  %14494 = vst [vmem:[#allocation34_spill] sm:$0xff] %v9589_v13 }
 0x118   :  { %14453 = vst [vmem:[#allocation126_spill] sm:$0xff] %v9471_v48  ;;  %14454 = vst [vmem:[#allocation128_spill] sm:$0xff] %v9476_v41  ;;  %v9517_v48 = vld [vmem:[#allocation7 + $0x60] sm:$0xff]  ;;  %v14483_v41 = vld [vmem:[#allocation96_spill] sm:$0xff] }
 0x119   :  { %6644 = vmatpush1.bf16.msra.mxu0 %v14408_v4  ;;  %6908 = vmatpush1.bf16.msra.mxu1 %v14409_v5  ;;  %v9481_v4 = vsub.f32 %v9445_v30, %v13451_v10  ;;  %v13461_v5 = vand.u32 4294901760, %v9456_v61  ;;  %14467 = vst [vmem:[#allocation132_spill] sm:$0xff] %v9517_v48  ;;  %v9591_v30 = vld [vmem:[#allocation7 + $0x90] sm:$0xff] }
 0x11a   :  { %6646 = vmatprep.subr.bf16.mxu0 %v14410_v6  ;;  %6910 = vmatprep.subr.bf16.mxu1 %v14411_v57  ;;  %v9484_v6 = vld [vmem:[#allocation7 + $0x68] sm:$0xff]  ;;  %v9486_v57 = vld [vmem:[#allocation7 + $0x58] sm:$0xff]  ;;  %14495 = vst [vmem:[#allocation37_spill] sm:$0xff] %v9591_v30 }
 0x11b   :  { %14455 = vst [vmem:[#allocation136_spill] sm:$0xff] %v9481_v4  ;;  %14456 = vst [vmem:[#allocation52_spill] sm:$0xff] %v9484_v6  ;;  %v9507_v10 = vsub.f32 %v9456_v61, %v13461_v5  ;;  %v9519_v5 = vld [vmem:[#allocation7 + $0x50] sm:$0xff] }
 0x11c   :  { %14457 = vst [vmem:[#allocation53_spill] sm:$0xff] %v9486_v57  ;;  %14468 = vst [vmem:[#allocation77_spill] sm:$0xff] %v9519_v5  ;;  %v9537_v61 = vld [vmem:[#allocation7 + $0x70] sm:$0xff] }
 0x11d   :  { %6648 = vmatpush1.bf16.msra.mxu0 %v14412_v44  ;;  %6912 = vmatpush1.bf16.msra.mxu1 %v14413_v38  ;;  %v9488_v44 = vld [vmem:[#allocation7 + $0x78] sm:$0xff]  ;;  %v9493_v38 = vsub.f32 %v9451_v24, %v13453_v46  ;;  %14464 = vst [vmem:[#allocation131_spill] sm:$0xff] %v9507_v10  ;;  %v9524_v46 = vsub.f32 %v9462_v39, %v13466_v22  ;;  %14474 = vst [vmem:[#allocation134_spill] sm:$0xff] %v9537_v61  ;;  %v14476_v24 = vand.u32 4294901760, %v9484_v6  ;;  %v14490_v39 = vld [vmem:[#allocation103_spill] sm:$0xff] }
 0x11e   :  { %808 = vmatprep.subr.mxu0 %v14414_v0  ;;  %1920 = vmatprep.subr.mxu1 %v14415_v63  ;;  %14458 = vst [vmem:[#allocation55_spill] sm:$0xff] %v9488_v44  ;;  %v9529_v10 = vsub.f32 %v9464_v25, %v14470_v56 }
 0x11f   :  { %14459 = vst [vmem:[#allocation56_spill] sm:$0xff] %v9493_v38  ;;  %v14465_v38 = vld [vmem:[#allocation87_spill] sm:$0xff]  ;;  %14469 = vst [vmem:[#allocation76_spill] sm:$0xff] %v9524_v46  ;;  %v9544_v22 = vsub.f32 %v9484_v6, %v14476_v24  ;;  %v14478_v46 = vand.u32 4294901760, %v9486_v57  ;;  %v13484_v24 = vand.u32 4294901760, %v9517_v48 }
 0x120   :  { %14471 = vst [vmem:[#allocation135_spill] sm:$0xff] %v9529_v10  ;;  %v9551_v10 = vld [vmem:[#allocation7 + $0xa8] sm:$0xff]  ;;  %v14489_v6 = vld [vmem:[#allocation99_spill] sm:$0xff] }
 0x121   :  { %811 = vmatpush1.msra.mxu0 %v14416_v21  ;;  %1923 = vmatpush1.msra.mxu1 %v14417_v23  ;;  %14477 = vst [vmem:[#allocation148_spill] sm:$0xff] %v9544_v22  ;;  %v9549_v56 = vsub.f32 %v9486_v57, %v14478_v46  ;;  %14480 = vst [vmem:[#allocation19_spill] sm:$0xff] %v9551_v10  ;;  %v9569_v57 = vld [vmem:[#allocation7 + $0xb8] sm:$0xff] }
 0x122   :  { %6650 = vmatprep.subr.bf16.mxu0 %v14418_v1  ;;  %6914 = vmatprep.subr.bf16.mxu1 %v14419_v8  ;;  %14488 = vst [vmem:[#allocation28_spill] sm:$0xff] %v9569_v57 }
 0x123   :  { %835 = vmatmul.mubr.f32.vlgmr.msra.gmra.mrb[0].mxu0 %v14420_v29  ;;  %1947 = vmatmul.mubr.f32.vlgmr.msra.gmra.mrb[0].mxu1 %v14420_v29  ;;  %v9498_v29 = vsub.f32 %v9454_v3, %v13456_v62  ;;  %v14466_v62 = vld [vmem:[#allocation91_spill] sm:$0xff]  ;;  %v9539_v3 = vld [vmem:[#allocation7 + $0x88] sm:$0xff]  ;;  %14479 = vst [vmem:[#allocation15_spill] sm:$0xff] %v9549_v56  ;;  %v13486_v56 = vand.u32 4294901760, %v9519_v5 }
 0x124   :  { %6652 = vmatpush1.bf16.msra.mxu0 %v14421_v31  ;;  %6916 = vmatpush1.bf16.msra.mxu1 %v14422_v9  ;;  %14475 = vst [vmem:[#allocation147_spill] sm:$0xff] %v9539_v3 }
 0x125   :  { %6654 = vmatprep.subr.bf16.mxu0 %v14423_v15  ;;  %6918 = vmatprep.subr.bf16.mxu1 %v14424_v45  ;;  %14460 = vst [vmem:[#allocation149_spill] sm:$0xff] %v9498_v29  ;;  %v14472_v29 = vand.u32 4294901760, %v9466_v52 }
 0x126   :  { %842 = vmatprep.mubr.f32.mxu0 %v14425_v18  ;;  %1954 = vmatprep.mubr.f32.mxu1 %v14425_v18  ;;  %v9500_v18 = vld [vmem:[#allocation7 + $0x40] sm:$0xff] }
 0x127   :  { %845 = vmatmul.mubr.f32.gmra.mrb[2].mxu0 %v14426_v49  ;;  %1957 = vmatmul.mubr.f32.gmra.mrb[2].mxu1 %v14426_v49  ;;  %14461 = vst [vmem:[#allocation57_spill] sm:$0xff] %v9500_v18  ;;  %v14462_v49 = vld [vmem:[#allocation81_spill] sm:$0xff]  ;;  %v9534_v4 = vsub.f32 %v9466_v52, %v14472_v29  ;;  %v9553_v29 = vld [vmem:[#allocation7 + $0x98] sm:$0xff]  ;;  %v14484_v52 = vand.u32 4294901760, %v9488_v44  ;;  %v14486_v22 = vand.u32 4294901760, %v9500_v18 }
 0x128   :  { %6656 = vmatpush1.bf16.msra.mxu0 %v14427_v2  ;;  %6920 = vmatpush1.bf16.msra.mxu1 %v14428_v36  ;;  %14481 = vst [vmem:[#allocation152_spill] sm:$0xff] %v9553_v29 }
 0x129   :  { %6658 = vmatprep.subr.bf16.mxu0 %v14429_v35  ;;  %6922 = vmatprep.subr.bf16.mxu1 %v14430_v32  ;;  %14473 = vst [vmem:[#allocation121_spill] sm:$0xff] %v9534_v4  ;;  %v14482_v4 = vld [vmem:[#allocation93_spill] sm:$0xff]  ;;  %v9560_v25 = vsub.f32 %v9488_v44, %v14484_v52  ;;  %v9566_v46 = vsub.f32 %v9500_v18, %v14486_v22  ;;  %v14496_v52 = vand.u32 4294901760, %v9537_v61 }
 0x12a   :  { %964 = vmatprep.mubr.f32.mxu0 %v14431_v26  ;;  %2076 = vmatprep.mubr.f32.mxu1 %v14431_v26  ;;  %v14463_v26 = vld [vmem:[#allocation84_spill] sm:$0xff]  ;;  %v9580_v44 = vsub.f32 %v9517_v48, %v13484_v24  ;;  %v9585_v22 = vsub.f32 %v9519_v5, %v13486_v56  ;;  %v14498_v24 = vand.u32 4294901760, %v9539_v3  ;;  %v14502_v18 = vld [vmem:[#allocation105_spill] sm:$0xff]  ;;  %v14504_v48 = vand.u32 4294901760, %v9551_v10 }
 0x12b   :  { %14485 = vst [vmem:[#allocation21_spill] sm:$0xff] %v9560_v25  ;;  %14487 = vst [vmem:[#allocation24_spill] sm:$0xff] %v9566_v46  ;;  %v9575_v25 = vld [vmem:[#allocation7 + $0x80] sm:$0xff]  ;;  %v9596_v16 = vsub.f32 %v9537_v61, %v14496_v52  ;;  %v9606_v46 = vld [vmem:[#allocation7 + $0xc8] sm:$0xff] }
 0x12c   :  { %6660 = vmatpush1.bf16.msra.mxu0 %v14432_v60  ;;  %6924 = vmatpush1.bf16.msra.mxu1 %v14433_v19  ;;  %14491 = vst [vmem:[#allocation30_spill] sm:$0xff] %v9575_v25  ;;  %14492 = vst [vmem:[#allocation116_spill] sm:$0xff] %v9580_v44  ;;  %v9601_v44 = vsub.f32 %v9539_v3, %v14498_v24  ;;  %v14503_v5 = vld [vmem:[#allocation108_spill] sm:$0xff]  ;;  %v9613_v52 = vsub.f32 %v9551_v10, %v14504_v48  ;;  %v13499_v56 = vand.u32 4294901760, %v9575_v25  ;;  %v14510_v61 = vld [vmem:[#allocation111_spill] sm:$0xff] }
 0x12d   :  { %6662 = vmatprep.subr.bf16.mxu0 %v14434_v58  ;;  %6926 = vmatprep.subr.bf16.mxu1 %v14435_v7  ;;  %14493 = vst [vmem:[#allocation137_spill] sm:$0xff] %v9585_v22  ;;  %14497 = vst [vmem:[#allocation39_spill] sm:$0xff] %v9596_v16  ;;  %v9604_v22 = vld [vmem:[#allocation7 + $0xb0] sm:$0xff]  ;;  %v14506_v16 = vand.u32 4294901760, %v9553_v29  ;;  %v9623_v3 = vld [vmem:[#allocation7 + $0xd8] sm:$0xff] }
 0x12e   :  { %14499 = vst [vmem:[#allocation42_spill] sm:$0xff] %v9601_v44  ;;  %14500 = vst [vmem:[#allocation151_spill] sm:$0xff] %v9604_v22  ;;  %v9621_v44 = vld [vmem:[#allocation7 + $0xe8] sm:$0xff]  ;;  %v14543_v10 = vld [vmem:[#allocation17_spill] sm:$0xff] }
 0x12f   :  { %14501 = vst [vmem:[#allocation45_spill] sm:$0xff] %v9606_v46  ;;  %14505 = vst [vmem:[#allocation48_spill] sm:$0xff] %v9613_v52  ;;  %v9618_v24 = vsub.f32 %v9553_v29, %v14506_v16  ;;  %v13503_v52 = vand.u32 4294901760, %v9589_v13  ;;  %v13505_v16 = vand.u32 4294901760, %v9591_v30  ;;  %v9639_v29 = vsub.f32 %v9575_v25, %v13499_v56  ;;  %v14522_v25 = vld [vmem:[#allocation117_spill] sm:$0xff]  ;;  %v9676_v56 = vld [vmem:[#allocation7 + $0x108] sm:$0xff] }
 0x130   :  { %6664 = vmatpush1.bf16.msra.mxu0 %v14436_v42  ;;  %6928 = vmatpush1.bf16.msra.mxu1 %v14437_v20  ;;  %14508 = vst [vmem:[#allocation54_spill] sm:$0xff] %v9621_v44  ;;  %14509 = vst [vmem:[#allocation58_spill] sm:$0xff] %v9623_v3 }
 0x131   :  { %6666 = vmatprep.subr.bf16.mxu0 %v14438_v43  ;;  %6930 = vmatprep.subr.bf16.mxu1 %v14439_v54  ;;  %14507 = vst [vmem:[#allocation51_spill] sm:$0xff] %v9618_v24  ;;  %v9634_v24 = vld [vmem:[#allocation7 + $0xf8] sm:$0xff]  ;;  %14515 = vst [vmem:[#allocation67_spill] sm:$0xff] %v9639_v29  ;;  %v9659_v29 = vld [vmem:[#allocation7 + $0xd0] sm:$0xff] }
 0x132   :  { %14514 = vst [vmem:[#allocation63_spill] sm:$0xff] %v9634_v24  ;;  %14520 = vst [vmem:[#allocation158_spill] sm:$0xff] %v9659_v29 }
 0x133   :  { %14528 = vst [vmem:[#allocation162_spill] sm:$0xff] %v9676_v56 }
 0x134   :  { %6668 = vmatpush1.bf16.msra.mxu0 %v14443_v28  ;;  %6932 = vmatpush1.bf16.msra.mxu1 %v14444_v34 }
 0x135   :  { %6670 = vmatprep.subr.bf16.mxu0 %v14448_v11  ;;  %6934 = vmatprep.subr.bf16.mxu1 %v14449_v50 }
 0x138   :  { %6672 = vmatpush1.bf16.msra.mxu0 %v14462_v49  ;;  %6936 = vmatpush1.bf16.msra.mxu1 %v14463_v26  ;;  %v14605_v26 = vld [vmem:[#allocation35_spill] sm:$0xff] }
 0x139   :  { %6674 = vmatprep.subr.bf16.mxu0 %v14465_v38  ;;  %6938 = vmatprep.subr.bf16.mxu1 %v14466_v62  ;;  %v14576_v62 = vld [vmem:[#allocation26_spill] sm:$0xff]  ;;  %v14606_v49 = vand.u32 4294901760, %v14605_v26  ;;  %v14618_v26 = vld [vmem:[#allocation143_spill] sm:$0xff] }
 0x13c   :  { %6676 = vmatpush1.bf16.msra.mxu0 %v14482_v4  ;;  %6940 = vmatpush1.bf16.msra.mxu1 %v14483_v41  ;;  %v9726_v41 = vld [vmem:[#allocation7 + $0x110] sm:$0xff]  ;;  %v14555_v4 = vld [vmem:[#allocation20_spill] sm:$0xff] }
 0x13d   :  { %6678 = vmatprep.subr.bf16.mxu0 %v14489_v6  ;;  %6942 = vmatprep.subr.bf16.mxu1 %v14490_v39  ;;  %v9645_v39 = vld [vmem:[#allocation7 + $0xe0] sm:$0xff]  ;;  %14550 = vst [vmem:[#allocation171_spill] sm:$0xff] %v9726_v41 }
 0x13e   :  { %14517 = vst [vmem:[#allocation155_spill] sm:$0xff] %v9645_v39 }
 0x140   :  { %6680 = vmatpush1.bf16.msra.mxu0 %v14502_v18  ;;  %6944 = vmatpush1.bf16.msra.mxu1 %v14503_v5  ;;  %v14511_v18 = vld [vmem:[#allocation115_spill] sm:$0xff]  ;;  %v14512_v5 = vand.u32 4294901760, %v9569_v57 }
 0x141   :  { %6682 = vmatprep.subr.bf16.mxu0 %v14510_v61  ;;  %6946 = vmatprep.subr.bf16.mxu1 %v14511_v18  ;;  %v9643_v61 = vld [vmem:[#allocation7 + $0xc0] sm:$0xff]  ;;  %v9661_v18 = vld [vmem:[#allocation7 + $0xf0] sm:$0xff] }
 0x142   :  { %v9630_v48 = vsub.f32 %v9569_v57, %v14512_v5  ;;  %14516 = vst [vmem:[#allocation69_spill] sm:$0xff] %v9643_v61  ;;  %v9650_v5 = vsub.f32 %v9589_v13, %v13503_v52  ;;  %14521 = vst [vmem:[#allocation159_spill] sm:$0xff] %v9661_v18  ;;  %v14523_v57 = vld [vmem:[#allocation120_spill] sm:$0xff]  ;;  %v14524_v52 = vand.u32 4294901760, %v9604_v22  ;;  %v14530_v13 = vld [vmem:[#allocation127_spill] sm:$0xff]  ;;  %v14545_v6 = vand.u32 4294901760, %v9643_v61 }
 0x144   :  { %14513 = vst [vmem:[#allocation60_spill] sm:$0xff] %v9630_v48  ;;  %14518 = vst [vmem:[#allocation156_spill] sm:$0xff] %v9650_v5  ;;  %v9655_v48 = vsub.f32 %v9591_v30, %v13505_v16  ;;  %6684 = vmatpush1.bf16.msra.mxu0 %v14522_v25  ;;  %6948 = vmatpush1.bf16.msra.mxu1 %v14523_v57  ;;  %v9668_v5 = vsub.f32 %v9604_v22, %v14524_v52  ;;  %v14526_v16 = vand.u32 4294901760, %v9606_v46  ;;  %v14529_v30 = vld [vmem:[#allocation123_spill] sm:$0xff] }
 0x145   :  { %6686 = vmatprep.subr.bf16.mxu0 %v14529_v30  ;;  %6950 = vmatprep.subr.bf16.mxu1 %v14530_v13  ;;  %v14531_v57 = vand.u32 4294901760, %v9621_v44  ;;  %v14533_v52 = vand.u32 4294901760, %v9623_v3  ;;  %v14547_v13 = vand.u32 4294901760, %v9645_v39 }
 0x146   :  { %14519 = vst [vmem:[#allocation157_spill] sm:$0xff] %v9655_v48  ;;  %14525 = vst [vmem:[#allocation160_spill] sm:$0xff] %v9668_v5  ;;  %v9673_v48 = vsub.f32 %v9606_v46, %v14526_v16  ;;  %v14536_v46 = vand.u32 4294901760, %v9634_v24  ;;  %v14541_v16 = vld [vmem:[#allocation16_spill] sm:$0xff] }
 0x147   :  { %v9683_v25 = vsub.f32 %v9621_v44, %v14531_v57  ;;  %v9688_v5 = vsub.f32 %v9623_v3, %v14533_v52  ;;  %v9703_v44 = vld [vmem:[#allocation7 + $0x138] sm:$0xff]  ;;  %v9705_v52 = vld [vmem:[#allocation7 + $0x100] sm:$0xff]  ;;  %v14544_v3 = vand.u32 4294901760, %v14543_v10  ;;  %v9721_v57 = vsub.f32 %v9645_v39, %v14547_v13  ;;  %v14552_v10 = vld [vmem:[#allocation130_spill] sm:$0xff] }
 0x148   :  { %14527 = vst [vmem:[#allocation161_spill] sm:$0xff] %v9673_v48  ;;  %v9692_v48 = vld [vmem:[#allocation7 + $0x128] sm:$0xff]  ;;  %v9697_v22 = vsub.f32 %v9634_v24, %v14536_v46  ;;  %14539 = vst [vmem:[#allocation168_spill] sm:$0xff] %v9703_v44  ;;  %v9716_v46 = vsub.f32 %v9643_v61, %v14545_v6  ;;  %v9724_v24 = vld [vmem:[#allocation7 + $0x120] sm:$0xff]  ;;  %6952 = vmatpush1.bf16.msra.mxu1 %v14552_v10  ;;  %v14556_v6 = vand.u32 4294901760, %v14555_v4  ;;  %v14557_v61 = vand.u32 4294901760, %v9659_v29 }
 0x149   :  { %14532 = vst [vmem:[#allocation163_spill] sm:$0xff] %v9683_v25  ;;  %14534 = vst [vmem:[#allocation164_spill] sm:$0xff] %v9688_v5  ;;  %v9701_v25 = vld [vmem:[#allocation7 + $0x118] sm:$0xff]  ;;  %v14542_v5 = vand.u32 4294901760, %v14541_v16  ;;  %v14551_v16 = vld [vmem:[#allocation129_spill] sm:$0xff] }
 0x14a   :  { %14535 = vst [vmem:[#allocation165_spill] sm:$0xff] %v9692_v48  ;;  %14537 = vst [vmem:[#allocation166_spill] sm:$0xff] %v9697_v22  ;;  %6688 = vmatpush1.bf16.msra.mxu0 %v14551_v16  ;;  %v9737_v13 = vsub.f32 %v9659_v29, %v14557_v61  ;;  %v14559_v22 = vand.u32 4294901760, %v9661_v18  ;;  %v14561_v16 = vld [vmem:[#allocation133_spill] sm:$0xff]  ;;  %v14562_v10 = vld [vmem:[#allocation138_spill] sm:$0xff] }
 0x14b   :  { %14538 = vst [vmem:[#allocation167_spill] sm:$0xff] %v9701_v25  ;;  %14540 = vst [vmem:[#allocation169_spill] sm:$0xff] %v9705_v52  ;;  %v9711_v30 = vpack.c.bf16 %v14544_v3, %v14542_v5  ;;  %v14553_v3 = vld [vmem:[#allocation18_spill] sm:$0xff]  ;;  %6690 = vmatprep.subr.bf16.mxu0 %v14561_v16  ;;  %6954 = vmatprep.subr.bf16.mxu1 %v14562_v10  ;;  %v14568_v39 = vld [vmem:[#allocation23_spill] sm:$0xff]  ;;  %v14570_v10 = vand.u32 4294901760, %v9692_v48 }
 0x14c   :  { %14546 = vst [vmem:[#allocation16_spill] sm:$0xff] %v9716_v46  ;;  %14548 = vst [vmem:[#allocation17_spill] sm:$0xff] %v9721_v57  ;;  %v14554_v5 = vand.u32 4294901760, %v14553_v3  ;;  %v9742_v57 = vsub.f32 %v9661_v18, %v14559_v22  ;;  %v14563_v3 = vand.u32 4294901760, %v9676_v56  ;;  %v14566_v22 = vld [vmem:[#allocation22_spill] sm:$0xff]  ;;  %v14569_v18 = vand.u32 4294901760, %v14568_v39 }
 0x14d   :  { %14549 = vst [vmem:[#allocation170_spill] sm:$0xff] %v9724_v24  ;;  %14558 = vst [vmem:[#allocation18_spill] sm:$0xff] %v9737_v13  ;;  %v9755_v13 = vld [vmem:[#allocation7 + $0x130] sm:$0xff]  ;;  %v9764_v16 = vsub.f32 %v9692_v48, %v14570_v10  ;;  %v9770_v61 = vld [vmem:[#allocation7 + $0x168] sm:$0xff]  ;;  %v14578_v39 = vand.u32 4294901760, %v9701_v25 }
 0x14e   :  { %v6957_v46 = vpack.c.bf16 %v14556_v6, %v14554_v5  ;;  %14560 = vst [vmem:[#allocation20_spill] sm:$0xff] %v9742_v57  ;;  %v9750_v4 = vsub.f32 %v9676_v56, %v14563_v3  ;;  %14565 = vst [vmem:[#allocation173_spill] sm:$0xff] %v9755_v13  ;;  %v14567_v57 = vand.u32 4294901760, %v14566_v22  ;;  %v14574_v6 = vld [vmem:[#allocation25_spill] sm:$0xff]  ;;  %v14577_v22 = vand.u32 4294901760, %v14576_v62  ;;  %v14585_v62 = vld [vmem:[#allocation139_spill] sm:$0xff] }
 0x14f   :  { %14571 = vst [vmem:[#allocation22_spill] sm:$0xff] %v9764_v16  ;;  %14573 = vst [vmem:[#allocation174_spill] sm:$0xff] %v9770_v61  ;;  %v14575_v56 = vand.u32 4294901760, %v14574_v6  ;;  %v14582_v5 = vand.u32 4294901760, %v9705_v52  ;;  %v9791_v16 = vld [vmem:[#allocation7 + $0x158] sm:$0xff]  ;;  %6692 = vmatpush1.bf16.msra.mxu0 %v14585_v62 }
 0x150   :  { %14564 = vst [vmem:[#allocation172_spill] sm:$0xff] %v9750_v4  ;;  %v6695_v29 = vpack.c.bf16 %v14569_v18, %v14567_v57  ;;  %v9768_v4 = vld [vmem:[#allocation7 + $0x148] sm:$0xff]  ;;  %v9779_v18 = vsub.f32 %v9701_v25, %v14578_v39  ;;  %v14580_v57 = vand.u32 4294901760, %v9703_v44  ;;  %v9793_v6 = vld [vmem:[#allocation7 + $0x178] sm:$0xff] }
 0x151   :  { %14572 = vst [vmem:[#allocation23_spill] sm:$0xff] %v9768_v4  ;;  %v6959_v38 = vpack.c.bf16 %v14577_v22, %v14575_v56  ;;  %v9789_v3 = vsub.f32 %v9705_v52, %v14582_v5  ;;  %14584 = vst [vmem:[#allocation176_spill] sm:$0xff] %v9793_v6  ;;  %v14586_v56 = vld [vmem:[#allocation140_spill] sm:$0xff]  ;;  %v14587_v22 = vld [vmem:[#allocation27_spill] sm:$0xff] }
 0x152   :  { %14579 = vst [vmem:[#allocation25_spill] sm:$0xff] %v9779_v18  ;;  %v9784_v10 = vsub.f32 %v9703_v44, %v14580_v57  ;;  %6956 = vmatpush1.bf16.msra.mxu1 %v14586_v56  ;;  %v14588_v39 = vand.u32 4294901760, %v14587_v22  ;;  %v14589_v18 = vld [vmem:[#allocation29_spill] sm:$0xff]  ;;  %v14591_v57 = vand.u32 4294901760, %v9724_v24  ;;  %v14601_v62 = vld [vmem:[#allocation32_spill] sm:$0xff] }
 0x153   :  { %14583 = vst [vmem:[#allocation175_spill] sm:$0xff] %v9789_v3  ;;  %v14590_v25 = vand.u32 4294901760, %v14589_v18  ;;  %v14593_v3 = vand.u32 4294901760, %v9726_v41  ;;  %v9812_v44 = vld [vmem:[#allocation7 + $0x140] sm:$0xff]  ;;  %v14598_v18 = vld [vmem:[#allocation142_spill] sm:$0xff] }
 0x154   :  { %14581 = vst [vmem:[#allocation26_spill] sm:$0xff] %v9784_v10  ;;  %v9804_v10 = vsub.f32 %v9724_v24, %v14591_v57  ;;  %14595 = vst [vmem:[#allocation177_spill] sm:$0xff] %v9812_v44  ;;  %v9814_v56 = vld [vmem:[#allocation7 + $0x160] sm:$0xff]  ;;  %2052 = vmatprep.subr.mxu1 %v14598_v18  ;;  %v14602_v57 = vand.u32 4294901760, %v14601_v62  ;;  %v14610_v18 = vld [vmem:[#allocation38_spill] sm:$0xff]  ;;  %v14612_v62 = vand.u32 4294901760, %v9755_v13 }
 0x155   :  { %v6697_v48 = vpack.c.bf16 %v14590_v25, %v14588_v39  ;;  %v9810_v52 = vsub.f32 %v9726_v41, %v14593_v3  ;;  %14596 = vst [vmem:[#allocation178_spill] sm:$0xff] %v9814_v56  ;;  %v14597_v22 = vld [vmem:[#allocation141_spill] sm:$0xff]  ;;  %v14599_v25 = vld [vmem:[#allocation31_spill] sm:$0xff]  ;;  %v13542_v3 = vand.u32 4294901760, %v9768_v4  ;;  %v14611_v34 = vand.u32 4294901760, %v14610_v18 }
 0x156   :  { %14592 = vst [vmem:[#allocation27_spill] sm:$0xff] %v9804_v10  ;;  %940 = vmatprep.subr.mxu0 %v14597_v22  ;;  %v14600_v39 = vand.u32 4294901760, %v14599_v25  ;;  %v14603_v24 = vld [vmem:[#allocation33_spill] sm:$0xff]  ;;  %v9830_v41 = vld [vmem:[#allocation7 + $0x150] sm:$0xff]  ;;  %v14608_v22 = vld [vmem:[#allocation36_spill] sm:$0xff]  ;;  %v14626_v18 = vand.u32 4294901760, %v9793_v6 }
 0x157   :  { %14594 = vst [vmem:[#allocation29_spill] sm:$0xff] %v9810_v52  ;;  %v14604_v5 = vand.u32 4294901760, %v14603_v24  ;;  %v13546_v52 = vand.u32 4294901760, %v9770_v61  ;;  %14607 = vst [vmem:[#allocation31_spill] sm:$0xff] %v9830_v41  ;;  %v14609_v11 = vand.u32 4294901760, %v14608_v22  ;;  %v9841_v24 = vsub.f32 %v9755_v13, %v14612_v62  ;;  %v9863_v62 = vld [vmem:[#allocation7 + $0x198] sm:$0xff]  ;;  %942 = vmatpush1.msra.mxu0 %v14618_v26 }
 0x158   :  { %v6961_v10 = vpack.c.bf16 %v14602_v57, %v14600_v39  ;;  %v9847_v39 = vld [vmem:[#allocation7 + $0x188] sm:$0xff]  ;;  %v9852_v22 = vsub.f32 %v9768_v4, %v13542_v3  ;;  %v9882_v26 = vld [vmem:[#allocation7 + $0x1b8] sm:$0xff]  ;;  %6694 = vmatprep.subr.bf16.mxu0 %v9711_v30  ;;  %v14633_v30 = vld [vmem:[#allocation43_spill] sm:$0xff] }
 0x159   :  { %v9826_v50 = vpack.c.bf16 %v14606_v49, %v14604_v5  ;;  %v9836_v25 = vpack.c.bf16 %v14611_v34, %v14609_v11  ;;  %14613 = vst [vmem:[#allocation32_spill] sm:$0xff] %v9841_v24  ;;  %v9845_v5 = vld [vmem:[#allocation7 + $0x170] sm:$0xff]  ;;  %14615 = vst [vmem:[#allocation35_spill] sm:$0xff] %v9847_v39  ;;  %v9857_v34 = vsub.f32 %v9770_v61, %v13546_v52  ;;  %v9861_v57 = vld [vmem:[#allocation7 + $0x1a8] sm:$0xff]  ;;  %v14624_v52 = vand.u32 4294901760, %v9791_v16 }
 0x15a   :  { %14614 = vst [vmem:[#allocation33_spill] sm:$0xff] %v9845_v5  ;;  %14616 = vst [vmem:[#allocation36_spill] sm:$0xff] %v9852_v22  ;;  %v14619_v49 = vld [vmem:[#allocation144_spill] sm:$0xff]  ;;  %v14622_v22 = vld [vmem:[#allocation41_spill] sm:$0xff]  ;;  %v9879_v11 = vsub.f32 %v9793_v6, %v14626_v18 }
 0x15b   :  { %14617 = vst [vmem:[#allocation38_spill] sm:$0xff] %v9857_v34  ;;  %2054 = vmatpush1.msra.mxu1 %v14619_v49  ;;  %v14620_v24 = vld [vmem:[#allocation40_spill] sm:$0xff]  ;;  %v14623_v4 = vand.u32 4294901760, %v14622_v22  ;;  %v9874_v34 = vsub.f32 %v9791_v16, %v14624_v52  ;;  %v9884_v49 = vld [vmem:[#allocation7 + $0x180] sm:$0xff]  ;;  %v14630_v52 = vand.u32 4294901760, %v9814_v56  ;;  %v9928_v22 = vld [vmem:[#allocation7 + $0x1b0] sm:$0xff] }
 0x15c   :  { %v14621_v3 = vand.u32 4294901760, %v14620_v24  ;;  %14627 = vst [vmem:[#allocation41_spill] sm:$0xff] %v9879_v11  ;;  %6958 = vmatprep.subr.bf16.mxu1 %v6957_v46  ;;  %v9899_v61 = vld [vmem:[#allocation7 + $0x1a0] sm:$0xff]  ;;  %v14634_v46 = vand.u32 4294901760, %v14633_v30  ;;  %14643 = vst [vmem:[#allocation181_spill] sm:$0xff] %v9928_v22  ;;  %v9930_v18 = vld [vmem:[#allocation7 + $0x1c8] sm:$0xff] }
 0x15d   :  { %14625 = vst [vmem:[#allocation40_spill] sm:$0xff] %v9874_v34  ;;  %v9895_v24 = vsub.f32 %v9814_v56, %v14630_v52  ;;  %v14632_v11 = vld [vmem:[#allocation153_spill] sm:$0xff]  ;;  %v14635_v34 = vld [vmem:[#allocation44_spill] sm:$0xff]  ;;  %14644 = vst [vmem:[#allocation182_spill] sm:$0xff] %v9930_v18 }
 0x15e   :  { %v6701_v13 = vpack.c.bf16 %v14623_v4, %v14621_v3  ;;  %v14628_v4 = vand.u32 4294901760, %v9812_v44  ;;  %968 = vmatmul.mubr.f32.vlgmr.msra.gmra.mrb[0].mxu0 %v14632_v11  ;;  %2080 = vmatmul.mubr.f32.vlgmr.msra.gmra.mrb[0].mxu1 %v14632_v11  ;;  %v14639_v11 = vand.u32 4294901760, %v9845_v5  ;;  %v14651_v56 = vld [vmem:[#allocation50_spill] sm:$0xff] }
 0x15f   :  { %14631 = vst [vmem:[#allocation180_spill] sm:$0xff] %v9895_v24  ;;  %v9914_v24 = vld [vmem:[#allocation7 + $0x190] sm:$0xff]  ;;  %6696 = vmatpush1.bf16.msra.mxu0 %v6695_v29  ;;  %6960 = vmatpush1.bf16.msra.mxu1 %v6959_v38  ;;  %v14645_v38 = vld [vmem:[#allocation46_spill] sm:$0xff] }
 0x160   :  { %v9890_v3 = vsub.f32 %v9812_v44, %v14628_v4  ;;  %v14636_v4 = vand.u32 4294901760, %v14635_v34  ;;  %v14637_v44 = vand.u32 4294901760, %v9830_v41  ;;  %v9919_v30 = vsub.f32 %v9845_v5, %v14639_v11  ;;  %6698 = vmatprep.subr.bf16.mxu0 %v6697_v48  ;;  %6962 = vmatprep.subr.bf16.mxu1 %v6961_v10  ;;  %v14649_v5 = vld [vmem:[#allocation49_spill] sm:$0xff]  ;;  %v9946_v6 = vld [vmem:[#allocation7 + $0x1e8] sm:$0xff]  ;;  %v9948_v48 = vld [vmem:[#allocation7 + $0x1d8] sm:$0xff] }
 0x161   :  { %v14641_v34 = vand.u32 4294901760, %v9847_v39  ;;  %v14646_v29 = vand.u32 4294901760, %v14645_v38  ;;  %14656 = vst [vmem:[#allocation49_spill] sm:$0xff] %v9948_v48  ;;  %v14657_v10 = vld [vmem:[#allocation122_spill] sm:$0xff] }
 0x162   :  { %14629 = vst [vmem:[#allocation179_spill] sm:$0xff] %v9890_v3  ;;  %v6965_v3 = vpack.c.bf16 %v14636_v4, %v14634_v46  ;;  %v9910_v52 = vsub.f32 %v9830_v41, %v14637_v44  ;;  %14640 = vst [vmem:[#allocation43_spill] sm:$0xff] %v9919_v30  ;;  %v14650_v41 = vand.u32 4294901760, %v14649_v5  ;;  %v14653_v44 = vand.u32 4294901760, %v9861_v57  ;;  %976 = vmatprep.mubr.f32.mxu0 %v14657_v10 }
 0x163   :  { %v9924_v46 = vsub.f32 %v9847_v39, %v14641_v34  ;;  %v14652_v34 = vand.u32 4294901760, %v14651_v56  ;;  %2088 = vmatprep.mubr.f32.mxu1 %v14657_v10  ;;  %v14658_v5 = vand.u32 4294901760, %v9863_v62  ;;  %v14666_v10 = vand.u32 4294901760, %v14311_v17  ;;  %6700 = vmatpush1.bf16.msra.mxu0 %v9826_v50 }
 0x164   :  { %14638 = vst [vmem:[#allocation153_spill] sm:$0xff] %v9910_v52  ;;  %v14647_v52 = vld [vmem:[#allocation47_spill] sm:$0xff]  ;;  %v9943_v4 = vsub.f32 %v9861_v57, %v14653_v44  ;;  %v14662_v44 = vand.u32 4294901760, %v9884_v49  ;;  %6964 = vmatpush1.bf16.msra.mxu1 %v9836_v25  ;;  %v14673_v17 = vand.u32 4294901760, %v14314_v27  ;;  %6702 = vmatprep.subr.bf16.mxu0 %v6701_v13  ;;  %v14677_v50 = vand.u32 4294901760, %v9928_v22 }
 0x165   :  { %14642 = vst [vmem:[#allocation44_spill] sm:$0xff] %v9924_v46  ;;  %v14648_v11 = vand.u32 4294901760, %v14647_v52  ;;  %v6967_v46 = vpack.c.bf16 %v14652_v34, %v14650_v41  ;;  %14655 = vst [vmem:[#allocation47_spill] sm:$0xff] %v9946_v6  ;;  %v9955_v56 = vsub.f32 %v9863_v62, %v14658_v5  ;;  %v14660_v41 = vand.u32 4294901760, %v9882_v26  ;;  %v9970_v34 = vld [vmem:[#allocation7 + $0x1c0] sm:$0xff]  ;;  %6966 = vmatprep.subr.bf16.mxu1 %v6965_v3  ;;  %v14684_v3 = vld [vmem:[#allocation59_spill] sm:$0xff] }
 0x166   :  { %14654 = vst [vmem:[#allocation46_spill] sm:$0xff] %v9943_v4  ;;  %v9965_v38 = vsub.f32 %v9884_v49, %v14662_v44  ;;  %14665 = vst [vmem:[#allocation185_spill] sm:$0xff] %v9970_v34  ;;  %v14667_v5 = vand.u32 4294901760, %v14312_v40  ;;  %v14672_v40 = vand.u32 4294901760, %v14313_v53  ;;  %v10005_v53 = vsub.f32 %v9928_v22, %v14677_v50  ;;  %v14686_v50 = vld [vmem:[#allocation61_spill] sm:$0xff] }
 0x167   :  { %v6703_v30 = vpack.c.bf16 %v14648_v11, %v14646_v29  ;;  %14659 = vst [vmem:[#allocation50_spill] sm:$0xff] %v9955_v56  ;;  %v9960_v52 = vsub.f32 %v9882_v26, %v14660_v41  ;;  %v9968_v11 = vld [vmem:[#allocation7 + $0x1f8] sm:$0xff]  ;;  %v14668_v56 = vld [vmem:[#allocation154_spill] sm:$0xff]  ;;  %v14669_v41 = vand.u32 4294901760, %v9899_v61  ;;  %v10000_v29 = vld [vmem:[#allocation7 + $0x1d0] sm:$0xff]  ;;  %v14679_v27 = vand.u32 4294901760, %v9930_v18 }
 0x168   :  { %14663 = vst [vmem:[#allocation183_spill] sm:$0xff] %v9965_v38  ;;  %14664 = vst [vmem:[#allocation184_spill] sm:$0xff] %v9968_v11  ;;  %v6705_v39 = vpack.c.bf16 %v14667_v5, %v14666_v10  ;;  %980 = vmatmul.mubr.f32.gmra.mrb[2].mxu0 %v14668_v56  ;;  %2092 = vmatmul.mubr.f32.gmra.mrb[2].mxu1 %v14668_v56  ;;  %v6969_v56 = vpack.c.bf16 %v14673_v17, %v14672_v40  ;;  %v14674_v10 = vand.u32 4294901760, %v9914_v24  ;;  %v10016_v38 = vld [vmem:[#allocation7 + $0x208] sm:$0xff] }
 0x169   :  { %14661 = vst [vmem:[#allocation122_spill] sm:$0xff] %v9960_v52  ;;  %v9981_v44 = vsub.f32 %v9899_v61, %v14669_v41  ;;  %v9985_v52 = vld [vmem:[#allocation7 + $0x1e0] sm:$0xff]  ;;  %14676 = vst [vmem:[#allocation188_spill] sm:$0xff] %v10000_v29  ;;  %v10010_v25 = vsub.f32 %v9930_v18, %v14679_v27  ;;  %v14683_v13 = vand.u32 4294901760, %v14316_v51  ;;  %v14685_v41 = vand.u32 4294901760, %v14684_v3  ;;  %v10034_v51 = vld [vmem:[#allocation7 + $0x228] sm:$0xff]  ;;  %6704 = vmatpush1.bf16.msra.mxu0 %v6703_v30 }
 0x16a   :  { %14671 = vst [vmem:[#allocation186_spill] sm:$0xff] %v9985_v52  ;;  %v9996_v5 = vsub.f32 %v9914_v24, %v14674_v10  ;;  %14678 = vst [vmem:[#allocation189_spill] sm:$0xff] %v10005_v53  ;;  %v10014_v10 = vld [vmem:[#allocation7 + $0x1f0] sm:$0xff]  ;;  %v14687_v53 = vand.u32 4294901760, %v14686_v50  ;;  %v14690_v27 = vld [vmem:[#allocation145_spill] sm:$0xff]  ;;  %v14691_v17 = vand.u32 4294901760, %v9946_v6  ;;  %6968 = vmatpush1.bf16.msra.mxu1 %v6967_v46  ;;  %6706 = vmatprep.subr.bf16.mxu0 %v6705_v39 }
 0x16b   :  { %14670 = vst [vmem:[#allocation154_spill] sm:$0xff] %v9981_v44  ;;  %14680 = vst [vmem:[#allocation190_spill] sm:$0xff] %v10010_v25  ;;  %v14688_v44 = vld [vmem:[#allocation62_spill] sm:$0xff]  ;;  %1189 = vmatprep.mubr.f32.mxu0 %v14690_v27  ;;  %2301 = vmatprep.mubr.f32.mxu1 %v14690_v27  ;;  %v10036_v3 = vld [vmem:[#allocation7 + $0x218] sm:$0xff]  ;;  %v13586_v50 = vand.u32 4294901760, %v10016_v38  ;;  %v14711_v39 = vand.u32 4294901760, %v10014_v10 }
 0x16c   :  { %14675 = vst [vmem:[#allocation187_spill] sm:$0xff] %v9996_v5  ;;  %14681 = vst [vmem:[#allocation191_spill] sm:$0xff] %v10014_v10  ;;  %v6707_v5 = vpack.c.bf16 %v14685_v41, %v14683_v13  ;;  %v14689_v4 = vand.u32 4294901760, %v14688_v44  ;;  %v10031_v40 = vsub.f32 %v9946_v6, %v14691_v17  ;;  %v14693_v41 = vand.u32 4294901760, %v9948_v48  ;;  %v10054_v25 = vld [vmem:[#allocation7 + $0x238] sm:$0xff]  ;;  %6970 = vmatprep.subr.bf16.mxu1 %v6969_v56 }
 0x16d   :  { %14682 = vst [vmem:[#allocation192_spill] sm:$0xff] %v10016_v38  ;;  %v14697_v13 = vand.u32 4294901760, %v9970_v34  ;;  %v14707_v30 = vld [vmem:[#allocation68_spill] sm:$0xff]  ;;  %v10087_v56 = vsub.f32 %v10014_v10, %v14711_v39  ;;  %v14717_v39 = vld [vmem:[#allocation73_spill] sm:$0xff]  ;;  %v14719_v10 = vld [vmem:[#allocation74_spill] sm:$0xff] }
 0x16e   :  { %v6971_v22 = vpack.c.bf16 %v14689_v4, %v14687_v53  ;;  %14692 = vst [vmem:[#allocation59_spill] sm:$0xff] %v10031_v40  ;;  %v10041_v44 = vsub.f32 %v9948_v48, %v14693_v41  ;;  %v14695_v4 = vand.u32 4294901760, %v9968_v11  ;;  %v10056_v40 = vld [vmem:[#allocation7 + $0x200] sm:$0xff]  ;;  %v14699_v41 = vld [vmem:[#allocation64_spill] sm:$0xff]  ;;  %v14708_v46 = vand.u32 4294901760, %v14707_v30  ;;  %6708 = vmatpush1.bf16.msra.mxu0 %v6707_v5 }
 0x16f   :  { %v10051_v17 = vsub.f32 %v9970_v34, %v14697_v13  ;;  %v14701_v48 = vld [vmem:[#allocation65_spill] sm:$0xff]  ;;  %v10082_v13 = vld [vmem:[#allocation7 + $0x210] sm:$0xff]  ;;  %v14723_v30 = vand.u32 4294901760, %v10036_v3  ;;  %v14731_v5 = vand.u32 4294901760, %v14377_v59 }
 0x170   :  { %14694 = vst [vmem:[#allocation61_spill] sm:$0xff] %v10041_v44  ;;  %v10046_v53 = vsub.f32 %v9968_v11, %v14695_v4  ;;  %v14700_v44 = vand.u32 4294901760, %v14699_v41  ;;  %v14702_v6 = vand.u32 4294901760, %v14701_v48  ;;  %v14703_v4 = vand.u32 4294901760, %v9985_v52  ;;  %v14715_v48 = vld [vmem:[#allocation71_spill] sm:$0xff]  ;;  %6972 = vmatpush1.bf16.msra.mxu1 %v6971_v22 }
 0x171   :  { %14698 = vst [vmem:[#allocation145_spill] sm:$0xff] %v10051_v17  ;;  %v14705_v17 = vld [vmem:[#allocation66_spill] sm:$0xff]  ;;  %v14709_v41 = vand.u32 4294901760, %v10000_v29  ;;  %v14730_v22 = vand.u32 4294901760, %v14378_v47  ;;  %v14739_v47 = vand.u32 4294901760, %v10082_v13 }
 0x172   :  { %14696 = vst [vmem:[#allocation62_spill] sm:$0xff] %v10046_v53  ;;  %v6709_v18 = vpack.c.bf16 %v14702_v6, %v14700_v44  ;;  %v10065_v53 = vsub.f32 %v9985_v52, %v14703_v4  ;;  %v14706_v34 = vand.u32 4294901760, %v14705_v17  ;;  %v10080_v4 = vld [vmem:[#allocation7 + $0x220] sm:$0xff]  ;;  %14712 = vst [vmem:[#allocation66_spill] sm:$0xff] %v10087_v56  ;;  %v14714_v44 = vand.u32 4294901760, %v14272_v12  ;;  %v10120_v12 = vld [vmem:[#allocation7 + $0x258] sm:$0xff] }
 0x173   :  { %v10076_v6 = vsub.f32 %v10000_v29, %v14709_v41  ;;  %v10098_v41 = vld [vmem:[#allocation7 + $0x248] sm:$0xff]  ;;  %v14718_v56 = vand.u32 4294901760, %v14717_v39  ;;  %v14720_v29 = vand.u32 4294901760, %v14719_v10  ;;  %v10156_v59 = vsub.f32 %v10082_v13, %v14739_v47 }
 0x174   :  { %14704 = vst [vmem:[#allocation64_spill] sm:$0xff] %v10065_v53  ;;  %v6973_v11 = vpack.c.bf16 %v14708_v46, %v14706_v34  ;;  %v10092_v34 = vsub.f32 %v10016_v38, %v13586_v50  ;;  %v10096_v46 = vld [vmem:[#allocation7 + $0x230] sm:$0xff]  ;;  %v14721_v50 = vand.u32 4294901760, %v10034_v51  ;;  %v10118_v38 = vld [vmem:[#allocation7 + $0x268] sm:$0xff]  ;;  %6710 = vmatprep.subr.bf16.mxu0 %v6709_v18 }
 0x175   :  { %14710 = vst [vmem:[#allocation65_spill] sm:$0xff] %v10076_v6  ;;  %v14716_v6 = vand.u32 4294901760, %v14715_v48  ;;  %v6975_v52 = vpack.c.bf16 %v14720_v29, %v14718_v56  ;;  %v10134_v56 = vld [vmem:[#allocation7 + $0x278] sm:$0xff]  ;;  %v14732_v39 = vld [vmem:[#allocation78_spill] sm:$0xff]  ;;  %14740 = vst [vmem:[#allocation195_spill] sm:$0xff] %v10156_v59 }
 0x176   :  { %14713 = vst [vmem:[#allocation68_spill] sm:$0xff] %v10092_v34  ;;  %v10111_v17 = vsub.f32 %v10034_v51, %v14721_v50  ;;  %v10116_v34 = vsub.f32 %v10036_v3, %v14723_v30  ;;  %v14727_v50 = vand.u32 4294901760, %v10056_v40  ;;  %14729 = vst [vmem:[#allocation194_spill] sm:$0xff] %v10134_v56  ;;  %6974 = vmatprep.subr.bf16.mxu1 %v6973_v11  ;;  %v13597_v11 = vand.u32 4294901760, %v10118_v38  ;;  %v10177_v47 = vld [vmem:[#allocation7 + $0x288] sm:$0xff]  ;;  %v10201_v59 = vld [vmem:[#allocation7 + $0x2b8] sm:$0xff] }
 0x177   :  { %v6711_v53 = vpack.c.bf16 %v14716_v6, %v14714_v44  ;;  %v14725_v6 = vand.u32 4294901760, %v10054_v25  ;;  %v6713_v30 = vpack.c.bf16 %v14731_v5, %v14730_v22  ;;  %v14737_v44 = vand.u32 4294901760, %v10080_v4  ;;  %v10162_v22 = vld [vmem:[#allocation7 + $0x250] sm:$0xff]  ;;  %14746 = vst [vmem:[#allocation201_spill] sm:$0xff] %v10177_v47  ;;  %6976 = vmatpush1.bf16.msra.mxu1 %v6975_v52  ;;  %14754 = vst [vmem:[#allocation207_spill] sm:$0xff] %v10201_v59 }
 0x178   :  { %14722 = vst [vmem:[#allocation71_spill] sm:$0xff] %v10111_v17  ;;  %14724 = vst [vmem:[#allocation73_spill] sm:$0xff] %v10116_v34  ;;  %v10131_v48 = vsub.f32 %v10056_v40, %v14727_v50  ;;  %v13593_v17 = vand.u32 4294901760, %v10096_v46  ;;  %v13595_v50 = vand.u32 4294901760, %v10098_v41  ;;  %v14752_v52 = vand.u32 4294901760, %v10134_v56 }
 0x179   :  { %v10125_v29 = vsub.f32 %v10054_v25, %v14725_v6  ;;  %v14733_v6 = vand.u32 4294901760, %v14732_v39  ;;  %v10151_v18 = vsub.f32 %v10080_v4, %v14737_v44  ;;  %14742 = vst [vmem:[#allocation197_spill] sm:$0xff] %v10162_v22  ;;  %6712 = vmatpush1.bf16.msra.mxu0 %v6711_v53  ;;  %v10192_v39 = vld [vmem:[#allocation7 + $0x298] sm:$0xff] }
 0x17a   :  { %14728 = vst [vmem:[#allocation193_spill] sm:$0xff] %v10131_v48  ;;  %v10146_v48 = vld [vmem:[#allocation7 + $0x240] sm:$0xff]  ;;  %v10167_v5 = vsub.f32 %v10096_v46, %v13593_v17  ;;  %v10172_v44 = vsub.f32 %v10098_v41, %v13595_v50  ;;  %v14748_v17 = vand.u32 4294901760, %v10120_v12  ;;  %14751 = vst [vmem:[#allocation205_spill] sm:$0xff] %v10192_v39  ;;  %6714 = vmatprep.subr.bf16.mxu0 %v6713_v30 }
 0x17b   :  { %14726 = vst [vmem:[#allocation74_spill] sm:$0xff] %v10125_v29  ;;  %v14734_v29 = vld [vmem:[#allocation80_spill] sm:$0xff]  ;;  %14736 = vst [vmem:[#allocation78_spill] sm:$0xff] %v10146_v48  ;;  %v13603_v50 = vand.u32 4294901760, %v10146_v48  ;;  %v10197_v53 = vsub.f32 %v10134_v56, %v14752_v52  ;;  %v10210_v30 = vld [vmem:[#allocation7 + $0x280] sm:$0xff] }
 0x17c   :  { %v14735_v10 = vand.u32 4294901760, %v14734_v29  ;;  %14738 = vst [vmem:[#allocation80_spill] sm:$0xff] %v10151_v18  ;;  %14743 = vst [vmem:[#allocation198_spill] sm:$0xff] %v10167_v5  ;;  %v10182_v29 = vsub.f32 %v10118_v38, %v13597_v11  ;;  %v10187_v5 = vsub.f32 %v10120_v12, %v14748_v17  ;;  %v10212_v18 = vld [vmem:[#allocation7 + $0x2a0] sm:$0xff]  ;;  %v14762_v56 = vld [vmem:[#allocation82_spill] sm:$0xff] }
 0x17d   :  { %14744 = vst [vmem:[#allocation199_spill] sm:$0xff] %v10172_v44  ;;  %v10190_v44 = vld [vmem:[#allocation7 + $0x2a8] sm:$0xff]  ;;  %14753 = vst [vmem:[#allocation206_spill] sm:$0xff] %v10197_v53  ;;  %v10206_v17 = vsub.f32 %v10146_v48, %v13603_v50 }
 0x17e   :  { %v6977_v34 = vpack.c.bf16 %v14735_v10, %v14733_v6  ;;  %v10160_v10 = vld [vmem:[#allocation7 + $0x260] sm:$0xff]  ;;  %v10175_v6 = vld [vmem:[#allocation7 + $0x270] sm:$0xff]  ;;  %14747 = vst [vmem:[#allocation202_spill] sm:$0xff] %v10182_v29  ;;  %14749 = vst [vmem:[#allocation203_spill] sm:$0xff] %v10187_v5  ;;  %v13609_v29 = vand.u32 4294901760, %v10162_v22 }
 0x17f   :  { %14741 = vst [vmem:[#allocation196_spill] sm:$0xff] %v10160_v10  ;;  %14745 = vst [vmem:[#allocation200_spill] sm:$0xff] %v10175_v6  ;;  %v13607_v11 = vand.u32 4294901760, %v10160_v10  ;;  %v14761_v48 = vld [vmem:[#allocation70_spill] sm:$0xff] }
 0x180   :  { %14750 = vst [vmem:[#allocation204_spill] sm:$0xff] %v10190_v44  ;;  %6978 = vmatprep.subr.bf16.mxu1 %v6977_v34  ;;  %14755 = vst [vmem:[#allocation208_spill] sm:$0xff] %v10206_v17  ;;  %v10222_v53 = vsub.f32 %v10162_v22, %v13609_v29  ;;  %v10226_v17 = vld [vmem:[#allocation7 + $0x290] sm:$0xff]  ;;  %6716 = vmatpush1.bf16.msra.mxu0 %v14761_v48  ;;  %v14765_v29 = vand.u32 4294901760, %v10177_v47  ;;  %v10243_v50 = vld [vmem:[#allocation7 + $0x2c8] sm:$0xff]  ;;  %v14769_v48 = vand.u32 4294901760, %v10190_v44 }
 0x181   :  { %14756 = vst [vmem:[#allocation209_spill] sm:$0xff] %v10210_v30  ;;  %14757 = vst [vmem:[#allocation210_spill] sm:$0xff] %v10212_v18  ;;  %v10217_v52 = vsub.f32 %v10160_v10, %v13607_v11  ;;  %v10228_v34 = vld [vmem:[#allocation7 + $0x2b0] sm:$0xff]  ;;  %6980 = vmatpush1.bf16.msra.mxu1 %v14762_v56  ;;  %v14763_v11 = vand.u32 4294901760, %v10175_v6  ;;  %v14768_v10 = vld [vmem:[#allocation85_spill] sm:$0xff] }
 0x182   :  { %14759 = vst [vmem:[#allocation212_spill] sm:$0xff] %v10222_v53  ;;  %14760 = vst [vmem:[#allocation213_spill] sm:$0xff] %v10226_v17  ;;  %v10240_v53 = vsub.f32 %v10177_v47, %v14765_v29  ;;  %v14767_v22 = vld [vmem:[#allocation83_spill] sm:$0xff]  ;;  %6982 = vmatprep.subr.bf16.mxu1 %v14768_v10  ;;  %v10250_v56 = vsub.f32 %v10190_v44, %v14769_v48  ;;  %v13623_v29 = vand.u32 4294901760, %v10210_v30  ;;  %v10270_v44 = vld [vmem:[#allocation7 + $0x2f8] sm:$0xff] }
 0x183   :  { %14758 = vst [vmem:[#allocation211_spill] sm:$0xff] %v10217_v52  ;;  %v10235_v52 = vsub.f32 %v10175_v6, %v14763_v11  ;;  %6718 = vmatprep.subr.bf16.mxu0 %v14767_v22  ;;  %v14771_v11 = vand.u32 4294901760, %v10192_v39  ;;  %v14773_v22 = vand.u32 4294901760, %v10201_v59  ;;  %v10287_v48 = vld [vmem:[#allocation7 + $0x2d0] sm:$0xff]  ;;  %v14781_v6 = vand.u32 4294901760, %v10226_v17 }
 0x184   :  { %14766 = vst [vmem:[#allocation82_spill] sm:$0xff] %v10240_v53  ;;  %14770 = vst [vmem:[#allocation83_spill] sm:$0xff] %v10250_v56  ;;  %v10259_v53 = vld [vmem:[#allocation7 + $0x2e8] sm:$0xff]  ;;  %v10268_v56 = vld [vmem:[#allocation7 + $0x2d8] sm:$0xff]  ;;  %v10277_v5 = vsub.f32 %v10210_v30, %v13623_v29 }
 0x185   :  { %14764 = vst [vmem:[#allocation70_spill] sm:$0xff] %v10235_v52  ;;  %v10255_v52 = vsub.f32 %v10192_v39, %v14771_v11  ;;  %v10264_v10 = vsub.f32 %v10201_v59, %v14773_v22  ;;  %v10272_v11 = vld [vmem:[#allocation7 + $0x2c0] sm:$0xff]  ;;  %v14779_v59 = vld [vmem:[#allocation86_spill] sm:$0xff]  ;;  %v14780_v39 = vld [vmem:[#allocation88_spill] sm:$0xff]  ;;  %v10294_v29 = vsub.f32 %v10226_v17, %v14781_v6  ;;  %v13632_v47 = vand.u32 4294901760, %v10259_v53 }
 0x186   :  { %14775 = vst [vmem:[#allocation215_spill] sm:$0xff] %v10277_v5  ;;  %6720 = vmatpush1.bf16.msra.mxu0 %v14779_v59  ;;  %6984 = vmatpush1.bf16.msra.mxu1 %v14780_v39  ;;  %v14783_v5 = vand.u32 4294901760, %v10228_v34  ;;  %v14787_v59 = vand.u32 4294901760, %v10243_v50  ;;  %v13634_v30 = vand.u32 4294901760, %v10268_v56  ;;  %v13636_v6 = vand.u32 4294901760, %v10270_v44  ;;  %v10312_v17 = vld [vmem:[#allocation7 + $0x2f0] sm:$0xff] }
 0x187   :  { %14772 = vst [vmem:[#allocation85_spill] sm:$0xff] %v10255_v52  ;;  %14774 = vst [vmem:[#allocation214_spill] sm:$0xff] %v10264_v10  ;;  %v14776_v52 = vand.u32 4294901760, %v10212_v18  ;;  %v10285_v10 = vld [vmem:[#allocation7 + $0x2e0] sm:$0xff] }
 0x188   :  { %14778 = vst [vmem:[#allocation217_spill] sm:$0xff] %v10285_v10  ;;  %14782 = vst [vmem:[#allocation86_spill] sm:$0xff] %v10294_v29  ;;  %v10307_v39 = vsub.f32 %v10243_v50, %v14787_v59  ;;  %v10324_v59 = vsub.f32 %v10268_v56, %v13634_v30  ;;  %v10329_v29 = vsub.f32 %v10270_v44, %v13636_v6  ;;  %v13641_v30 = vand.u32 4294901760, %v10312_v17 }
 0x189   :  { %v10282_v22 = vsub.f32 %v10212_v18, %v14776_v52  ;;  %v10299_v52 = vsub.f32 %v10228_v34, %v14783_v5  ;;  %v14786_v18 = vld [vmem:[#allocation90_spill] sm:$0xff]  ;;  %v10317_v5 = vsub.f32 %v10259_v53, %v13632_v47  ;;  %v14794_v47 = vld [vmem:[#allocation92_spill] sm:$0xff] }
 0x18a   :  { %6986 = vmatprep.subr.bf16.mxu1 %v14786_v18  ;;  %14790 = vst [vmem:[#allocation218_spill] sm:$0xff] %v10324_v59  ;;  %14791 = vst [vmem:[#allocation219_spill] sm:$0xff] %v10329_v29  ;;  %v14795_v18 = vld [vmem:[#allocation94_spill] sm:$0xff]  ;;  %v14798_v59 = vand.u32 4294901760, %v10287_v48  ;;  %v14800_v29 = vld [vmem:[#allocation95_spill] sm:$0xff] }
 0x18b   :  { %14777 = vst [vmem:[#allocation216_spill] sm:$0xff] %v10282_v22  ;;  %14784 = vst [vmem:[#allocation88_spill] sm:$0xff] %v10299_v52  ;;  %v14785_v22 = vld [vmem:[#allocation89_spill] sm:$0xff]  ;;  %6988 = vmatpush1.bf16.msra.mxu1 %v14795_v18  ;;  %v14803_v18 = vld [vmem:[#allocation98_spill] sm:$0xff] }
 0x18c   :  { %6722 = vmatprep.subr.bf16.mxu0 %v14785_v22  ;;  %14788 = vst [vmem:[#allocation89_spill] sm:$0xff] %v10307_v39  ;;  %14789 = vst [vmem:[#allocation90_spill] sm:$0xff] %v10317_v5  ;;  %v14792_v39 = vand.u32 4294901760, %v10272_v11  ;;  %v14796_v22 = vand.u32 4294901760, %v10285_v10  ;;  %v10347_v6 = vsub.f32 %v10287_v48, %v14798_v59  ;;  %v14808_v59 = vld [vmem:[#allocation106_spill] sm:$0xff] }
 0x18d   :  { %6724 = vmatpush1.bf16.msra.mxu0 %v14794_v47  ;;  %v10354_v47 = vsub.f32 %v10312_v17, %v13641_v30 }
 0x18e   :  { %v10334_v52 = vsub.f32 %v10272_v11, %v14792_v39  ;;  %v10341_v5 = vsub.f32 %v10285_v10, %v14796_v22  ;;  %14799 = vst [vmem:[#allocation94_spill] sm:$0xff] %v10347_v6  ;;  %6726 = vmatprep.subr.bf16.mxu0 %v14800_v29  ;;  %v14801_v39 = vld [vmem:[#allocation97_spill] sm:$0xff]  ;;  %v14804_v22 = vld [vmem:[#allocation100_spill] sm:$0xff]  ;;  %v14809_v29 = vand.u32 4294901760, %v14414_v0  ;;  %v14817_v0 = vld [vmem:[#allocation75_spill] sm:$0xff] }
 0x18f   :  { %6990 = vmatprep.subr.bf16.mxu1 %v14801_v39  ;;  %14802 = vst [vmem:[#allocation95_spill] sm:$0xff] %v10354_v47  ;;  %v14807_v10 = vld [vmem:[#allocation104_spill] sm:$0xff]  ;;  %v14810_v39 = vand.u32 4294901760, %v14415_v63  ;;  %v14818_v63 = vld [vmem:[#allocation79_spill] sm:$0xff] }
 0x190   :  { %14793 = vst [vmem:[#allocation220_spill] sm:$0xff] %v10334_v52  ;;  %14797 = vst [vmem:[#allocation92_spill] sm:$0xff] %v10341_v5  ;;  %6992 = vmatpush1.bf16.msra.mxu1 %v14804_v22  ;;  %v14805_v5 = vld [vmem:[#allocation101_spill] sm:$0xff]  ;;  %v14806_v52 = vld [vmem:[#allocation102_spill] sm:$0xff] }
 0x191   :  { %6728 = vmatpush1.bf16.msra.mxu0 %v14803_v18  ;;  %6994 = vmatprep.subr.bf16.mxu1 %v14806_v52  ;;  %v14811_v52 = vand.u32 4294901760, %v14416_v21  ;;  %v14819_v21 = vld [vmem:[#allocation81_spill] sm:$0xff]  ;;  %v14842_v18 = vld [vmem:[#allocation142_spill] sm:$0xff]  ;;  %v14843_v22 = vld [vmem:[#allocation107_spill] sm:$0xff] }
 0x192   :  { %6730 = vmatprep.subr.bf16.mxu0 %v14805_v5  ;;  %v14841_v5 = vld [vmem:[#allocation141_spill] sm:$0xff] }
 0x194   :  { %6996 = vmatpush1.bf16.msra.mxu1 %v14808_v59  ;;  %v14844_v59 = vand.u32 4294901760, %v14843_v22 }
 0x195   :  { %6732 = vmatpush1.bf16.msra.mxu0 %v14807_v10  ;;  %6998 = vmatprep.subr.bf16.mxu1 %v9331_v14  ;;  %v14812_v10 = vand.u32 4294901760, %v14417_v23  ;;  %v14816_v14 = vld [vmem:[#allocation72_spill] sm:$0xff] }
 0x196   :  { %6734 = vmatprep.subr.bf16.mxu0 %v9325_v55  ;;  %v14813_v55 = vld [vmem:[#allocation150_spill] sm:$0xff]  ;;  %v14820_v23 = vld [vmem:[#allocation84_spill] sm:$0xff] }
 0x198   :  { %7000 = vmatpush1.bf16.msra.mxu1 %v9343_v37  ;;  %v14815_v37 = vld [vmem:[#allocation118_spill] sm:$0xff] }
 0x199   :  { %6736 = vmatpush1.bf16.msra.mxu0 %v9337_v33  ;;  %2277 = vmatprep.subr.mxu1 %v14810_v39  ;;  %v14814_v33 = vld [vmem:[#allocation146_spill] sm:$0xff] }
 0x19a   :  { %1165 = vmatprep.subr.mxu0 %v14809_v29  ;;  %v14845_v29 = vld [vmem:[#allocation109_spill] sm:$0xff] }
 0x19b   :  { %v14846_v39 = vand.u32 4294901760, %v14845_v29  ;;  %v14880_v29 = vld [vmem:[#allocation77_spill] sm:$0xff] }
 0x19c   :  { %2281 = vmatpush1.msra.mxu1 %v14812_v10  ;;  %v14848_v10 = vld [vmem:[#allocation110_spill] sm:$0xff] }
 0x19d   :  { %1169 = vmatpush1.msra.mxu0 %v14811_v52  ;;  %7002 = vmatprep.subr.bf16.mxu1 %v14419_v8  ;;  %v14822_v8 = vld [vmem:[#allocation91_spill] sm:$0xff]  ;;  %v10432_v52 = vpack.c.bf16 %v14846_v39, %v14844_v59  ;;  %v14881_v39 = vand.u32 4294901760, %v14880_v29 }
 0x19e   :  { %6738 = vmatprep.subr.bf16.mxu0 %v14418_v1  ;;  %1191 = vmatmul.mubr.f32.vlgmr.msra.gmra.mrb[0].mxu0 %v14813_v55  ;;  %v14821_v1 = vld [vmem:[#allocation87_spill] sm:$0xff] }
 0x19f   :  { %2303 = vmatmul.mubr.f32.vlgmr.msra.gmra.mrb[0].mxu1 %v14813_v55  ;;  %6740 = vmatpush1.bf16.msra.mxu0 %v14421_v31  ;;  %v14823_v31 = vld [vmem:[#allocation93_spill] sm:$0xff]  ;;  %14847 = vst [vmem:[#allocation97_spill] sm:$0xff] %v10432_v52 }
 0x1a0   :  { %7004 = vmatpush1.bf16.msra.mxu1 %v14422_v9  ;;  %6742 = vmatprep.subr.bf16.mxu0 %v14423_v15  ;;  %v14824_v9 = vld [vmem:[#allocation96_spill] sm:$0xff]  ;;  %v14825_v15 = vld [vmem:[#allocation99_spill] sm:$0xff] }
 0x1a1   :  { %7006 = vmatprep.subr.bf16.mxu1 %v14424_v45  ;;  %1197 = vmatprep.mubr.f32.mxu0 %v14814_v33  ;;  %v14826_v45 = vld [vmem:[#allocation103_spill] sm:$0xff] }
 0x1a2   :  { %2309 = vmatprep.mubr.f32.mxu1 %v14814_v33  ;;  %1199 = vmatmul.mubr.f32.gmra.mrb[2].mxu0 %v14815_v37 }
 0x1a3   :  { %2311 = vmatmul.mubr.f32.gmra.mrb[2].mxu1 %v14815_v37  ;;  %6744 = vmatpush1.bf16.msra.mxu0 %v14427_v2  ;;  %v14827_v2 = vld [vmem:[#allocation105_spill] sm:$0xff] }
 0x1a4   :  { %7008 = vmatpush1.bf16.msra.mxu1 %v14428_v36  ;;  %6746 = vmatprep.subr.bf16.mxu0 %v14429_v35  ;;  %v14828_v36 = vld [vmem:[#allocation108_spill] sm:$0xff]  ;;  %v14829_v35 = vld [vmem:[#allocation111_spill] sm:$0xff] }
 0x1a5   :  { %7010 = vmatprep.subr.bf16.mxu1 %v14430_v32  ;;  %1316 = vmatprep.mubr.f32.mxu0 %v14690_v27  ;;  %v14830_v32 = vld [vmem:[#allocation115_spill] sm:$0xff] }
 0x1a6   :  { %2428 = vmatprep.mubr.f32.mxu1 %v14690_v27  ;;  %v14840_v27 = vld [vmem:[#allocation140_spill] sm:$0xff] }
 0x1a7   :  { %6748 = vmatpush1.bf16.msra.mxu0 %v14432_v60  ;;  %v14831_v60 = vld [vmem:[#allocation117_spill] sm:$0xff] }
 0x1a8   :  { %7012 = vmatpush1.bf16.msra.mxu1 %v14433_v19  ;;  %6750 = vmatprep.subr.bf16.mxu0 %v14434_v58  ;;  %v14832_v19 = vld [vmem:[#allocation120_spill] sm:$0xff]  ;;  %v14833_v58 = vld [vmem:[#allocation123_spill] sm:$0xff] }
 0x1a9   :  { %7014 = vmatprep.subr.bf16.mxu1 %v14435_v7  ;;  %v14834_v7 = vld [vmem:[#allocation127_spill] sm:$0xff] }
 0x1ab   :  { %6752 = vmatpush1.bf16.msra.mxu0 %v14436_v42  ;;  %v14835_v42 = vld [vmem:[#allocation129_spill] sm:$0xff] }
 0x1ac   :  { %7016 = vmatpush1.bf16.msra.mxu1 %v14437_v20  ;;  %6754 = vmatprep.subr.bf16.mxu0 %v14438_v43  ;;  %v14836_v20 = vld [vmem:[#allocation130_spill] sm:$0xff]  ;;  %v14837_v43 = vld [vmem:[#allocation133_spill] sm:$0xff] }
 0x1ad   :  { %7018 = vmatprep.subr.bf16.mxu1 %v14439_v54  ;;  %v14838_v54 = vld [vmem:[#allocation138_spill] sm:$0xff] }
 0x1af   :  { %6756 = vmatpush1.bf16.msra.mxu0 %v14443_v28  ;;  %v14839_v28 = vld [vmem:[#allocation139_spill] sm:$0xff] }
 0x1b0   :  { %7020 = vmatpush1.bf16.msra.mxu1 %v14816_v14  ;;  %6758 = vmatprep.subr.bf16.mxu0 %v14817_v0  ;;  %v14849_v14 = vand.u32 4294901760, %v14848_v10  ;;  %v14850_v0 = vld [vmem:[#allocation112_spill] sm:$0xff]  ;;  %v14882_v10 = vld [vmem:[#allocation134_spill] sm:$0xff] }
 0x1b1   :  { %7022 = vmatprep.subr.bf16.mxu1 %v14818_v63  ;;  %v14851_v63 = vand.u32 4294901760, %v14850_v0 }
 0x1b3   :  { %6760 = vmatpush1.bf16.msra.mxu0 %v14819_v21  ;;  %v10438_v21 = vpack.c.bf16 %v14851_v63, %v14849_v14  ;;  %v14883_v14 = vand.u32 4294901760, %v14882_v10  ;;  %v14885_v63 = vld [vmem:[#allocation147_spill] sm:$0xff] }
 0x1b4   :  { %7024 = vmatpush1.bf16.msra.mxu1 %v14820_v23  ;;  %6762 = vmatprep.subr.bf16.mxu0 %v14821_v1  ;;  %v14853_v23 = vld [vmem:[#allocation143_spill] sm:$0xff]  ;;  %v14854_v1 = vld [vmem:[#allocation144_spill] sm:$0xff] }
 0x1b5   :  { %7026 = vmatprep.subr.bf16.mxu1 %v14822_v8  ;;  %14852 = vst [vmem:[#allocation98_spill] sm:$0xff] %v10438_v21  ;;  %v14855_v8 = vld [vmem:[#allocation113_spill] sm:$0xff]  ;;  %v10484_v0 = vpack.c.bf16 %v14883_v14, %v14881_v39  ;;  %v14910_v39 = vld [vmem:[#allocation58_spill] sm:$0xff]  ;;  %v14912_v14 = vld [vmem:[#allocation63_spill] sm:$0xff] }
 0x1b6   :  { %v14911_v10 = vand.u32 4294901760, %v14910_v39 }
 0x1b7   :  { %6764 = vmatpush1.bf16.msra.mxu0 %v14823_v31  ;;  %v14856_v31 = vand.u32 4294901760, %v14855_v8  ;;  %14884 = vst [vmem:[#allocation150_spill] sm:$0xff] %v10484_v0 }
 0x1b8   :  { %7028 = vmatpush1.bf16.msra.mxu1 %v14824_v9  ;;  %6766 = vmatprep.subr.bf16.mxu0 %v14825_v15  ;;  %v14857_v9 = vld [vmem:[#allocation114_spill] sm:$0xff] }
 0x1b9   :  { %7030 = vmatprep.subr.bf16.mxu1 %v14826_v45  ;;  %v14858_v15 = vand.u32 4294901760, %v14857_v9  ;;  %v14890_v9 = vld [vmem:[#allocation152_spill] sm:$0xff] }
 0x1bb   :  { %6768 = vmatpush1.bf16.msra.mxu0 %v14827_v2  ;;  %v10446_v45 = vpack.c.bf16 %v14858_v15, %v14856_v31  ;;  %v14860_v2 = vld [vmem:[#allocation119_spill] sm:$0xff]  ;;  %v14891_v15 = vand.u32 4294901760, %v14890_v9 }
 0x1bc   :  { %7032 = vmatpush1.bf16.msra.mxu1 %v14828_v36  ;;  %6770 = vmatprep.subr.bf16.mxu0 %v14829_v35  ;;  %v14861_v36 = vand.u32 4294901760, %v14860_v2  ;;  %v14862_v35 = vld [vmem:[#allocation124_spill] sm:$0xff]  ;;  %v14917_v9 = vld [vmem:[#allocation155_spill] sm:$0xff] }
 0x1bd   :  { %7034 = vmatprep.subr.bf16.mxu1 %v14830_v32  ;;  %14859 = vst [vmem:[#allocation100_spill] sm:$0xff] %v10446_v45  ;;  %v14863_v32 = vand.u32 4294901760, %v14862_v35  ;;  %v14892_v2 = vld [vmem:[#allocation28_spill] sm:$0xff] }
 0x1bf   :  { %6772 = vmatpush1.bf16.msra.mxu0 %v14831_v60  ;;  %v10452_v60 = vpack.c.bf16 %v14863_v32, %v14861_v36  ;;  %v14893_v36 = vand.u32 4294901760, %v14892_v2 }
 0x1c0   :  { %7036 = vmatpush1.bf16.msra.mxu1 %v14832_v19  ;;  %6774 = vmatprep.subr.bf16.mxu0 %v14833_v58  ;;  %v14865_v19 = vld [vmem:[#allocation125_spill] sm:$0xff] }
 0x1c1   :  { %7038 = vmatprep.subr.bf16.mxu1 %v14834_v7  ;;  %14864 = vst [vmem:[#allocation101_spill] sm:$0xff] %v10452_v60  ;;  %v14866_v58 = vand.u32 4294901760, %v14865_v19  ;;  %v14867_v7 = vld [vmem:[#allocation52_spill] sm:$0xff]  ;;  %v10498_v35 = vpack.c.bf16 %v14893_v36, %v14891_v15  ;;  %v14897_v19 = vld [vmem:[#allocation34_spill] sm:$0xff]  ;;  %v14918_v15 = vand.u32 4294901760, %v14917_v9 }
 0x1c2   :  { %v14920_v36 = vld [vmem:[#allocation158_spill] sm:$0xff] }
 0x1c3   :  { %6776 = vmatpush1.bf16.msra.mxu0 %v14835_v42  ;;  %v14868_v42 = vand.u32 4294901760, %v14867_v7  ;;  %14894 = vst [vmem:[#allocation118_spill] sm:$0xff] %v10498_v35 }
 0x1c4   :  { %7040 = vmatpush1.bf16.msra.mxu1 %v14836_v20  ;;  %6778 = vmatprep.subr.bf16.mxu0 %v14837_v43  ;;  %v14870_v43 = vld [vmem:[#allocation53_spill] sm:$0xff] }
 0x1c5   :  { %7042 = vmatprep.subr.bf16.mxu1 %v14838_v54  ;;  %v10462_v20 = vpack.c.bf16 %v14868_v42, %v14866_v58  ;;  %v14871_v54 = vand.u32 4294901760, %v14870_v43  ;;  %v14898_v58 = vand.u32 4294901760, %v14897_v19  ;;  %v14900_v42 = vld [vmem:[#allocation37_spill] sm:$0xff] }
 0x1c6   :  { %v14901_v43 = vand.u32 4294901760, %v14900_v42  ;;  %v14925_v42 = vld [vmem:[#allocation162_spill] sm:$0xff] }
 0x1c7   :  { %6780 = vmatpush1.bf16.msra.mxu0 %v14839_v28  ;;  %14869 = vst [vmem:[#allocation102_spill] sm:$0xff] %v10462_v20  ;;  %v14872_v28 = vld [vmem:[#allocation55_spill] sm:$0xff] }
 0x1c8   :  { %7044 = vmatpush1.bf16.msra.mxu1 %v14840_v27  ;;  %1294 = vmatprep.subr.mxu0 %v14841_v5  ;;  %v14873_v27 = vand.u32 4294901760, %v14872_v28 }
 0x1c9   :  { %2406 = vmatprep.subr.mxu1 %v14842_v18  ;;  %v14877_v18 = vld [vmem:[#allocation132_spill] sm:$0xff] }
 0x1ca   :  { %v10468_v5 = vpack.c.bf16 %v14873_v27, %v14871_v54  ;;  %v14878_v22 = vand.u32 4294901760, %v14877_v18  ;;  %v14902_v54 = vld [vmem:[#allocation151_spill] sm:$0xff]  ;;  %v14907_v18 = vld [vmem:[#allocation54_spill] sm:$0xff] }
 0x1cb   :  { %1296 = vmatpush1.msra.mxu0 %v14853_v23  ;;  %v14886_v23 = vand.u32 4294901760, %v14885_v63  ;;  %v14903_v28 = vand.u32 4294901760, %v14902_v54  ;;  %v14913_v63 = vand.u32 4294901760, %v14912_v14  ;;  %v14927_v54 = vld [vmem:[#allocation165_spill] sm:$0xff] }
 0x1cc   :  { %2408 = vmatpush1.msra.mxu1 %v14854_v1  ;;  %1318 = vmatmul.mubr.f32.vlgmr.msra.gmra.mrb[0].mxu0 %v14813_v55  ;;  %14874 = vst [vmem:[#allocation104_spill] sm:$0xff] %v10468_v5  ;;  %v14887_v1 = vld [vmem:[#allocation19_spill] sm:$0xff]  ;;  %v14935_v14 = vld [vmem:[#allocation169_spill] sm:$0xff] }
 0x1cd   :  { %2430 = vmatmul.mubr.f32.vlgmr.msra.gmra.mrb[0].mxu1 %v14813_v55  ;;  %1324 = vmatprep.mubr.f32.mxu0 %v14814_v33  ;;  %v14875_v55 = vld [vmem:[#allocation57_spill] sm:$0xff]  ;;  %v14888_v8 = vand.u32 4294901760, %v14887_v1  ;;  %v10514_v27 = vpack.c.bf16 %v14903_v28, %v14901_v43  ;;  %v14926_v43 = vand.u32 4294901760, %v14925_v42  ;;  %v14928_v28 = vand.u32 4294901760, %v14927_v54  ;;  %v14945_v42 = vld [vmem:[#allocation23_spill] sm:$0xff]  ;;  %v14947_v54 = vld [vmem:[#allocation174_spill] sm:$0xff] }
 0x1ce   :  { %2436 = vmatprep.mubr.f32.mxu1 %v14814_v33  ;;  %7046 = vmatprep.subr.bf16.mxu0 %v10432_v52  ;;  %v14876_v33 = vand.u32 4294901760, %v14875_v55  ;;  %v14905_v55 = vld [vmem:[#allocation45_spill] sm:$0xff] }
 0x1cf   :  { %7430 = vmatprep.subr.bf16.mxu1 %v10438_v21  ;;  %7048 = vmatpush1.bf16.msra.mxu0 %v10446_v45  ;;  %v10492_v31 = vpack.c.bf16 %v14888_v8, %v14886_v23  ;;  %14904 = vst [vmem:[#allocation75_spill] sm:$0xff] %v10514_v27  ;;  %v10528_v23 = vpack.c.bf16 %v14913_v63, %v14911_v10  ;;  %v14915_v1 = vld [vmem:[#allocation69_spill] sm:$0xff]  ;;  %v14936_v63 = vand.u32 4294901760, %v14935_v14 }
 0x1d0   :  { %7432 = vmatpush1.bf16.msra.mxu1 %v10452_v60  ;;  %v10478_v59 = vpack.c.bf16 %v14878_v22, %v14876_v33  ;;  %1326 = vmatmul.mubr.f32.gmra.mrb[2].mxu0 %v14815_v37  ;;  %v14906_v33 = vand.u32 4294901760, %v14905_v55  ;;  %v14908_v22 = vand.u32 4294901760, %v14907_v18  ;;  %v14916_v8 = vand.u32 4294901760, %v14915_v1  ;;  %v14937_v1 = vld [vmem:[#allocation170_spill] sm:$0xff]  ;;  %v15142_v45 = vld [vmem:[#allocation21_spill] sm:$0xff] }
 0x1d1   :  { %2438 = vmatmul.mubr.f32.gmra.mrb[2].mxu1 %v14815_v37  ;;  %14889 = vst [vmem:[#allocation146_spill] sm:$0xff] %v10492_v31  ;;  %7050 = vmatprep.subr.bf16.mxu0 %v10462_v20  ;;  %v14895_v37 = vld [vmem:[#allocation30_spill] sm:$0xff]  ;;  %14914 = vst [vmem:[#allocation81_spill] sm:$0xff] %v10528_v23  ;;  %v10550_v55 = vpack.c.bf16 %v14928_v28, %v14926_v43  ;;  %v14946_v43 = vand.u32 4294901760, %v14945_v42  ;;  %v14948_v28 = vand.u32 4294901760, %v14947_v54  ;;  %v14961_v42 = vld [vmem:[#allocation33_spill] sm:$0xff] }
 0x1d2   :  { %14879 = vst [vmem:[#allocation106_spill] sm:$0xff] %v10478_v59  ;;  %7434 = vmatprep.subr.bf16.mxu1 %v10468_v5  ;;  %v14896_v32 = vand.u32 4294901760, %v14895_v37  ;;  %v10522_v29 = vpack.c.bf16 %v14908_v22, %v14906_v33  ;;  %v10536_v2 = vpack.c.bf16 %v14918_v15, %v14916_v8  ;;  %v14921_v37 = vand.u32 4294901760, %v14920_v36  ;;  %v14930_v33 = vld [vmem:[#allocation167_spill] sm:$0xff]  ;;  %v14932_v22 = vld [vmem:[#allocation168_spill] sm:$0xff] }
 0x1d3   :  { %7052 = vmatpush1.bf16.msra.mxu0 %v10478_v59  ;;  %14929 = vst [vmem:[#allocation91_spill] sm:$0xff] %v10550_v55  ;;  %v14931_v18 = vand.u32 4294901760, %v14930_v33  ;;  %v14933_v39 = vand.u32 4294901760, %v14932_v22  ;;  %v14938_v8 = vand.u32 4294901760, %v14937_v1  ;;  %v14940_v15 = vld [vmem:[#allocation171_spill] sm:$0xff]  ;;  %v10578_v33 = vpack.c.bf16 %v14948_v28, %v14946_v43  ;;  %v14951_v22 = vld [vmem:[#allocation176_spill] sm:$0xff] }
 0x1d4   :  { %7436 = vmatpush1.bf16.msra.mxu1 %v10484_v0  ;;  %v10508_v7 = vpack.c.bf16 %v14898_v58, %v14896_v32  ;;  %7054 = vmatprep.subr.bf16.mxu0 %v10492_v31  ;;  %14909 = vst [vmem:[#allocation79_spill] sm:$0xff] %v10522_v29  ;;  %14919 = vst [vmem:[#allocation84_spill] sm:$0xff] %v10536_v2  ;;  %v14922_v32 = vld [vmem:[#allocation159_spill] sm:$0xff]  ;;  %v14941_v36 = vand.u32 4294901760, %v14940_v15  ;;  %v14962_v43 = vand.u32 4294901760, %v14961_v42 }
 0x1d5   :  { %7438 = vmatprep.subr.bf16.mxu1 %v10498_v35  ;;  %v14923_v19 = vand.u32 4294901760, %v14922_v32  ;;  %v10556_v10 = vpack.c.bf16 %v14933_v39, %v14931_v18  ;;  %v10564_v9 = vpack.c.bf16 %v14938_v8, %v14936_v63  ;;  %14949 = vst [vmem:[#allocation103_spill] sm:$0xff] %v10578_v33  ;;  %v14950_v18 = vand.u32 4294901760, %v9791_v16  ;;  %v14954_v63 = vld [vmem:[#allocation177_spill] sm:$0xff]  ;;  %v14956_v8 = vld [vmem:[#allocation178_spill] sm:$0xff]  ;;  %v14964_v16 = vld [vmem:[#allocation35_spill] sm:$0xff] }
 0x1d6   :  { %14899 = vst [vmem:[#allocation72_spill] sm:$0xff] %v10508_v7  ;;  %v14952_v39 = vand.u32 4294901760, %v14951_v22  ;;  %v14955_v1 = vand.u32 4294901760, %v14954_v63  ;;  %v14957_v15 = vand.u32 4294901760, %v14956_v8  ;;  %v14965_v28 = vand.u32 4294901760, %v14964_v16  ;;  %v14980_v16 = vld [vmem:[#allocation47_spill] sm:$0xff] }
 0x1d7   :  { %7056 = vmatpush1.bf16.msra.mxu0 %v10508_v7  ;;  %v10542_v58 = vpack.c.bf16 %v14923_v19, %v14921_v37  ;;  %14934 = vst [vmem:[#allocation93_spill] sm:$0xff] %v10556_v10  ;;  %14939 = vst [vmem:[#allocation96_spill] sm:$0xff] %v10564_v9  ;;  %v14942_v37 = vld [vmem:[#allocation173_spill] sm:$0xff]  ;;  %v14969_v63 = vand.u32 4294901760, %v9882_v26  ;;  %v14971_v8 = vand.u32 4294901760, %v9884_v49  ;;  %v14978_v26 = vld [vmem:[#allocation182_spill] sm:$0xff] }
 0x1d8   :  { %7440 = vmatpush1.bf16.msra.mxu1 %v10514_v27  ;;  %7058 = vmatprep.subr.bf16.mxu0 %v10522_v29  ;;  %v14943_v32 = vand.u32 4294901760, %v14942_v37  ;;  %v10584_v14 = vpack.c.bf16 %v14952_v39, %v14950_v18  ;;  %v14959_v37 = vld [vmem:[#allocation31_spill] sm:$0xff]  ;;  %v14966_v18 = vand.u32 4294901760, %v9861_v57  ;;  %v14968_v39 = vand.u32 4294901760, %v9863_v62  ;;  %v14983_v49 = vld [vmem:[#allocation49_spill] sm:$0xff] }
 0x1d9   :  { %14924 = vst [vmem:[#allocation87_spill] sm:$0xff] %v10542_v58  ;;  %7442 = vmatprep.subr.bf16.mxu1 %v10528_v23  ;;  %v14974_v57 = vand.u32 4294901760, %v9914_v24  ;;  %v14979_v62 = vand.u32 4294901760, %v14978_v26  ;;  %v14988_v24 = vld [vmem:[#allocation185_spill] sm:$0xff]  ;;  %v14993_v26 = vld [vmem:[#allocation188_spill] sm:$0xff]  ;;  %v15141_v20 = vld [vmem:[#allocation15_spill] sm:$0xff] }
 0x1da   :  { %v10570_v19 = vpack.c.bf16 %v14943_v32, %v14941_v36  ;;  %14953 = vst [vmem:[#allocation105_spill] sm:$0xff] %v10584_v14  ;;  %v10592_v36 = vpack.c.bf16 %v14957_v15, %v14955_v1  ;;  %v14960_v32 = vand.u32 4294901760, %v14959_v37  ;;  %v10606_v22 = vpack.c.bf16 %v14966_v18, %v14965_v28 }
 0x1db   :  { %7060 = vmatpush1.bf16.msra.mxu0 %v10536_v2  ;;  %v10612_v1 = vpack.c.bf16 %v14969_v63, %v14968_v39  ;;  %v14972_v15 = vand.u32 4294901760, %v9899_v61  ;;  %v14981_v28 = vand.u32 4294901760, %v14980_v16  ;;  %v14984_v61 = vand.u32 4294901760, %v14983_v49  ;;  %v14985_v39 = vld [vmem:[#allocation184_spill] sm:$0xff]  ;;  %v2580_v2 = vld [vmem:[#allocation7 + $0x3e0] sm:$0xff] }
 0x1dc   :  { %7444 = vmatpush1.bf16.msra.mxu1 %v10542_v58  ;;  %14944 = vst [vmem:[#allocation99_spill] sm:$0xff] %v10570_v19  ;;  %7062 = vmatprep.subr.bf16.mxu0 %v10550_v55  ;;  %14958 = vst [vmem:[#allocation108_spill] sm:$0xff] %v10592_v36  ;;  %v10598_v54 = vpack.c.bf16 %v14962_v43, %v14960_v32  ;;  %v14975_v32 = vld [vmem:[#allocation181_spill] sm:$0xff]  ;;  %v14986_v63 = vand.u32 4294901760, %v14985_v39  ;;  %v14994_v16 = vand.u32 4294901760, %v14993_v26  ;;  %v14998_v49 = vld [vmem:[#allocation192_spill] sm:$0xff] }
 0x1dd   :  { %7446 = vmatprep.subr.bf16.mxu1 %v10556_v10  ;;  %14967 = vst [vmem:[#allocation115_spill] sm:$0xff] %v10606_v22  ;;  %14970 = vst [vmem:[#allocation117_spill] sm:$0xff] %v10612_v1  ;;  %v10620_v37 = vpack.c.bf16 %v14972_v15, %v14971_v8  ;;  %v14976_v42 = vand.u32 4294901760, %v14975_v32  ;;  %v10634_v18 = vpack.c.bf16 %v14981_v28, %v14979_v62  ;;  %v14989_v15 = vand.u32 4294901760, %v14988_v24  ;;  %v14995_v62 = vld [vmem:[#allocation191_spill] sm:$0xff]  ;;  %v2576_v58 = vld [vmem:[#allocation7 + $0x3c0] sm:$0xff] }
 0x1de   :  { %14963 = vst [vmem:[#allocation111_spill] sm:$0xff] %v10598_v54  ;;  %v10640_v8 = vpack.c.bf16 %v14986_v63, %v14984_v61  ;;  %v14996_v28 = vand.u32 4294901760, %v14995_v62  ;;  %v14999_v61 = vand.u32 4294901760, %v14998_v49  ;;  %v15000_v39 = vand.u32 4294901760, %v10034_v51 }
 0x1df   :  { %7064 = vmatpush1.bf16.msra.mxu0 %v10564_v9  ;;  %14973 = vst [vmem:[#allocation120_spill] sm:$0xff] %v10620_v37  ;;  %v10626_v43 = vpack.c.bf16 %v14976_v42, %v14974_v57  ;;  %14982 = vst [vmem:[#allocation127_spill] sm:$0xff] %v10634_v18  ;;  %v14990_v57 = vld [vmem:[#allocation186_spill] sm:$0xff]  ;;  %v15002_v24 = vand.u32 4294901760, %v10036_v3  ;;  %v15006_v26 = vand.u32 4294901760, %v10080_v4  ;;  %v15008_v51 = vand.u32 4294901760, %v10082_v13 }
 0x1e0   :  { %7448 = vmatpush1.bf16.msra.mxu1 %v10570_v19  ;;  %7066 = vmatprep.subr.bf16.mxu0 %v10578_v33  ;;  %14987 = vst [vmem:[#allocation129_spill] sm:$0xff] %v10640_v8  ;;  %v14991_v32 = vand.u32 4294901760, %v14990_v57  ;;  %v10654_v30 = vpack.c.bf16 %v14996_v28, %v14994_v16  ;;  %v10662_v63 = vpack.c.bf16 %v15000_v39, %v14999_v61  ;;  %v15009_v62 = vand.u32 4294901760, %v10096_v46  ;;  %v15015_v4 = vld [vmem:[#allocation194_spill] sm:$0xff] }
 0x1e1   :  { %7450 = vmatprep.subr.bf16.mxu1 %v10584_v14  ;;  %14977 = vst [vmem:[#allocation123_spill] sm:$0xff] %v10626_v43  ;;  %v15012_v3 = vand.u32 4294901760, %v10118_v38  ;;  %v15016_v61 = vand.u32 4294901760, %v15015_v4  ;;  %v15018_v13 = vld [vmem:[#allocation78_spill] sm:$0xff] }
 0x1e2   :  { %v10648_v42 = vpack.c.bf16 %v14991_v32, %v14989_v15  ;;  %14997 = vst [vmem:[#allocation133_spill] sm:$0xff] %v10654_v30  ;;  %15001 = vst [vmem:[#allocation138_spill] sm:$0xff] %v10662_v63  ;;  %v15003_v15 = vand.u32 4294901760, %v10054_v25  ;;  %v15005_v32 = vand.u32 4294901760, %v10056_v40  ;;  %v10682_v28 = vpack.c.bf16 %v15009_v62, %v15008_v51  ;;  %v2577_v14 = vld [vmem:[#allocation7 + $0x3c8] sm:$0xff] }
 0x1e3   :  { %7068 = vmatpush1.bf16.msra.mxu0 %v10592_v36  ;;  %v15011_v25 = vand.u32 4294901760, %v10098_v41  ;;  %v15014_v40 = vand.u32 4294901760, %v10120_v12  ;;  %v15019_v46 = vand.u32 4294901760, %v15018_v13  ;;  %v15023_v41 = vld [vmem:[#allocation197_spill] sm:$0xff]  ;;  %v2581_v33 = vld [vmem:[#allocation7 + $0x3e8] sm:$0xff]  ;;  %v2726_v9 = vand.u32 4294901760, %v2577_v14 }
 0x1e4   :  { %7452 = vmatpush1.bf16.msra.mxu1 %v10598_v54  ;;  %7070 = vmatprep.subr.bf16.mxu0 %v10606_v22  ;;  %14992 = vst [vmem:[#allocation130_spill] sm:$0xff] %v10648_v42  ;;  %v10668_v57 = vpack.c.bf16 %v15003_v15, %v15002_v24  ;;  %v10676_v16 = vpack.c.bf16 %v15006_v26, %v15005_v32  ;;  %15010 = vst [vmem:[#allocation141_spill] sm:$0xff] %v10682_v28  ;;  %v15020_v24 = vld [vmem:[#allocation196_spill] sm:$0xff]  ;;  %v15024_v38 = vand.u32 4294901760, %v15023_v41  ;;  %v15028_v12 = vld [vmem:[#allocation201_spill] sm:$0xff] }
 0x1e5   :  { %7454 = vmatprep.subr.bf16.mxu1 %v10612_v1  ;;  %v10690_v49 = vpack.c.bf16 %v15012_v3, %v15011_v25  ;;  %v10696_v39 = vpack.c.bf16 %v15016_v61, %v15014_v40  ;;  %v15021_v15 = vand.u32 4294901760, %v15020_v24  ;;  %v15025_v26 = vld [vmem:[#allocation200_spill] sm:$0xff]  ;;  %v15029_v25 = vand.u32 4294901760, %v15028_v12  ;;  %v15033_v61 = vld [vmem:[#allocation205_spill] sm:$0xff] }
 0x1e6   :  { %15004 = vst [vmem:[#allocation139_spill] sm:$0xff] %v10668_v57  ;;  %15007 = vst [vmem:[#allocation140_spill] sm:$0xff] %v10676_v16  ;;  %v15026_v51 = vand.u32 4294901760, %v15025_v26  ;;  %v15030_v3 = vld [vmem:[#allocation204_spill] sm:$0xff]  ;;  %v15034_v13 = vand.u32 4294901760, %v15033_v61  ;;  %v15038_v41 = vld [vmem:[#allocation209_spill] sm:$0xff] }
 0x1e7   :  { %7072 = vmatpush1.bf16.msra.mxu0 %v10620_v37  ;;  %15013 = vst [vmem:[#allocation142_spill] sm:$0xff] %v10690_v49  ;;  %15017 = vst [vmem:[#allocation107_spill] sm:$0xff] %v10696_v39  ;;  %v10704_v32 = vpack.c.bf16 %v15021_v15, %v15019_v46  ;;  %v15031_v40 = vand.u32 4294901760, %v15030_v3  ;;  %v15035_v46 = vld [vmem:[#allocation207_spill] sm:$0xff]  ;;  %v15040_v26 = vld [vmem:[#allocation210_spill] sm:$0xff]  ;;  %v15047_v61 = vand.u32 4294901760, %v10243_v50 }
 0x1e8   :  { %7456 = vmatpush1.bf16.msra.mxu1 %v10626_v43  ;;  %7074 = vmatprep.subr.bf16.mxu0 %v10634_v18  ;;  %v10710_v62 = vpack.c.bf16 %v15026_v51, %v15024_v38  ;;  %v15036_v24 = vand.u32 4294901760, %v15035_v46  ;;  %v15039_v38 = vand.u32 4294901760, %v15038_v41  ;;  %v15041_v51 = vand.u32 4294901760, %v15040_v26  ;;  %v15043_v12 = vld [vmem:[#allocation213_spill] sm:$0xff] }
 0x1e9   :  { %7458 = vmatprep.subr.bf16.mxu1 %v10640_v8  ;;  %15022 = vst [vmem:[#allocation109_spill] sm:$0xff] %v10704_v32  ;;  %v10718_v4 = vpack.c.bf16 %v15031_v40, %v15029_v25  ;;  %v15044_v3 = vand.u32 4294901760, %v15043_v12  ;;  %v15045_v25 = vand.u32 4294901760, %v10228_v34  ;;  %v15051_v41 = vand.u32 4294901760, %v10270_v44  ;;  %v15054_v26 = vld [vmem:[#allocation217_spill] sm:$0xff]  ;;  %v10772_v44 = vld [vmem:[#allocation7 + $0x308] sm:$0xff] }
 0x1ea   :  { %15027 = vst [vmem:[#allocation110_spill] sm:$0xff] %v10710_v62  ;;  %v10724_v15 = vpack.c.bf16 %v15036_v24, %v15034_v13  ;;  %v15048_v13 = vand.u32 4294901760, %v10259_v53  ;;  %v15050_v24 = vand.u32 4294901760, %v10268_v56  ;;  %v15053_v34 = vand.u32 4294901760, %v10272_v11  ;;  %v10774_v56 = vld [vmem:[#allocation7 + $0x328] sm:$0xff]  ;;  %v10776_v11 = vld [vmem:[#allocation7 + $0x318] sm:$0xff] }
 0x1eb   :  { %7076 = vmatpush1.bf16.msra.mxu0 %v10648_v42  ;;  %15032 = vst [vmem:[#allocation112_spill] sm:$0xff] %v10718_v4  ;;  %v10738_v40 = vpack.c.bf16 %v15045_v25, %v15044_v3  ;;  %v15057_v50 = vand.u32 4294901760, %v10287_v48  ;;  %v15058_v53 = vand.u32 4294901760, %v10312_v17  ;;  %v13655_v48 = vand.u32 4294901760, %v10772_v44  ;;  %v10780_v25 = vld [vmem:[#allocation7 + $0x338] sm:$0xff]  ;;  %v2568_v18 = vld [vmem:[#allocation7 + $0x380] sm:$0xff] }
 0x1ec   :  { %7460 = vmatpush1.bf16.msra.mxu1 %v10654_v30  ;;  %7078 = vmatprep.subr.bf16.mxu0 %v10662_v63  ;;  %15037 = vst [vmem:[#allocation143_spill] sm:$0xff] %v10724_v15  ;;  %v10746_v46 = vpack.c.bf16 %v15048_v13, %v15047_v61  ;;  %v13654_v17 = vand.u32 4294901760, %v10774_v56  ;;  %v10782_v61 = vld [vmem:[#allocation7 + $0x300] sm:$0xff]  ;;  %v13657_v13 = vand.u32 4294901760, %v10776_v11  ;;  %v2575_v42 = vld [vmem:[#allocation7 + $0x3b8] sm:$0xff]  ;;  %v2720_v43 = vand.u32 4294901760, %v2568_v18 }
 0x1ed   :  { %7462 = vmatprep.subr.bf16.mxu1 %v10668_v57  ;;  %15046 = vst [vmem:[#allocation113_spill] sm:$0xff] %v10738_v40  ;;  %v10766_v3 = vpack.c.bf16 %v15058_v53, %v15057_v50  ;;  %v2571_v57 = vld [vmem:[#allocation7 + $0x398] sm:$0xff]  ;;  %v2730_v10 = vand.u32 4294901760, %v2581_v33  ;;  %v15080_v23 = vand.u32 4294901760, %v10772_v44  ;;  %v15082_v29 = vand.u32 4294901760, %v10774_v56 }
 0x1ee   :  { %15049 = vst [vmem:[#allocation114_spill] sm:$0xff] %v10746_v46  ;;  %v10797_v50 = vpack.c.bf16 %v13654_v17, %v13655_v48  ;;  %v15062_v17 = vand.u32 4294901760, %v10782_v61  ;;  %v4064_v8 = vand.u32 4294901760, %v2571_v57  ;;  %v15086_v35 = vand.u32 4294901760, %v10780_v25 }
 0x1ef   :  { %7080 = vmatpush1.bf16.msra.mxu0 %v10676_v16  ;;  %15059 = vst [vmem:[#allocation125_spill] sm:$0xff] %v10766_v3  ;;  %v10889_v27 = vsub.f32 %v10774_v56, %v15082_v29 }
 0x1f0   :  { %7464 = vmatpush1.bf16.msra.mxu1 %v10682_v28  ;;  %7082 = vmatprep.subr.bf16.mxu0 %v10690_v49  ;;  %15060 = vst [vmem:[#allocation52_spill] sm:$0xff] %v10797_v50  ;;  %v10899_v31 = vsub.f32 %v10780_v25, %v15086_v35 }
 0x1f1   :  { %7466 = vmatprep.subr.bf16.mxu1 %v10696_v39  ;;  %v10732_v39 = vpack.c.bf16 %v15041_v51, %v15039_v38  ;;  %v10752_v38 = vpack.c.bf16 %v15051_v41, %v15050_v24  ;;  %v15055_v51 = vand.u32 4294901760, %v15054_v26  ;;  %v13656_v24 = vand.u32 4294901760, %v10780_v25  ;;  %v10786_v41 = vld [vmem:[#allocation7 + $0x320] sm:$0xff]  ;;  %v10789_v26 = vld [vmem:[#allocation7 + $0x310] sm:$0xff]  ;;  %15083 = vst [vmem:[#allocation37_spill] sm:$0xff] %v10889_v27 }
 0x1f2   :  { %v13666_v53 = vand.u32 4294901760, %v10786_v41  ;;  %15087 = vst [vmem:[#allocation45_spill] sm:$0xff] %v10899_v31  ;;  %v15090_v29 = vand.u32 4294901760, %v10786_v41 }
 0x1f3   :  { %7084 = vmatpush1.bf16.msra.mxu0 %v10704_v32  ;;  %15042 = vst [vmem:[#allocation144_spill] sm:$0xff] %v10732_v39  ;;  %15052 = vst [vmem:[#allocation119_spill] sm:$0xff] %v10752_v38  ;;  %v10760_v12 = vpack.c.bf16 %v15055_v51, %v15053_v34  ;;  %v10791_v51 = vld [vmem:[#allocation7 + $0x330] sm:$0xff]  ;;  %v10823_v34 = vld [vmem:[#allocation7 + $0x378] sm:$0xff] }
 0x1f4   :  { %7468 = vmatpush1.bf16.msra.mxu1 %v10710_v62  ;;  %7086 = vmatprep.subr.bf16.mxu0 %v10718_v4  ;;  %v10819_v48 = vpack.c.bf16 %v13666_v53, %v15062_v17  ;;  %v15065_v4 = vand.u32 4294901760, %v10791_v51  ;;  %v13695_v53 = vand.u32 4294901760, %v10823_v34  ;;  %v10840_v62 = vld [vmem:[#allocation7 + $0x350] sm:$0xff]  ;;  %v10910_v56 = vsub.f32 %v10786_v41, %v15090_v29 }
 0x1f5   :  { %7470 = vmatprep.subr.bf16.mxu1 %v10724_v15  ;;  %15056 = vst [vmem:[#allocation124_spill] sm:$0xff] %v10760_v12  ;;  %v10828_v15 = vld [vmem:[#allocation7 + $0x360] sm:$0xff]  ;;  %v15094_v35 = vand.u32 4294901760, %v10791_v51  ;;  %v2732_v41 = vand.u32 4294901760, %v2580_v2 }
 0x1f6   :  { %15063 = vst [vmem:[#allocation55_spill] sm:$0xff] %v10819_v48  ;;  %v15073_v28 = vand.u32 4294901760, %v10828_v15  ;;  %15091 = vst [vmem:[#allocation58_spill] sm:$0xff] %v10910_v56 }
 0x1f7   :  { %7088 = vmatpush1.bf16.msra.mxu0 %v10732_v39  ;;  %v10826_v39 = vld [vmem:[#allocation7 + $0x340] sm:$0xff]  ;;  %v10920_v25 = vsub.f32 %v10791_v51, %v15094_v35 }
 0x1f8   :  { %7472 = vmatpush1.bf16.msra.mxu1 %v10738_v40  ;;  %7090 = vmatprep.subr.bf16.mxu0 %v10746_v46  ;;  %v10810_v46 = vld [vmem:[#allocation7 + $0x368] sm:$0xff]  ;;  %v10812_v40 = vld [vmem:[#allocation7 + $0x358] sm:$0xff]  ;;  %v15105_v59 = vand.u32 4294901760, %v10826_v39 }
 0x1f9   :  { %7474 = vmatprep.subr.bf16.mxu1 %v10752_v38  ;;  %v10808_v38 = vld [vmem:[#allocation7 + $0x348] sm:$0xff]  ;;  %v15068_v32 = vand.u32 4294901760, %v10810_v46  ;;  %15095 = vst [vmem:[#allocation69_spill] sm:$0xff] %v10920_v25  ;;  %v15101_v51 = vand.u32 4294901760, %v10812_v40 }
 0x1fa   :  { %v15097_v29 = vand.u32 4294901760, %v10808_v38 }
 0x1fb   :  { %7092 = vmatpush1.bf16.msra.mxu0 %v10760_v12  ;;  %v10842_v12 = vld [vmem:[#allocation7 + $0x370] sm:$0xff]  ;;  %v10939_v35 = vsub.f32 %v10812_v40, %v15101_v51  ;;  %v10967_v51 = vsub.f32 %v2571_v57, %v4064_v8 }
 0x1fc   :  { %7476 = vmatpush1.bf16.msra.mxu1 %v10766_v3  ;;  %v10804_v3 = vpack.c.bf16 %v13656_v24, %v13657_v13  ;;  %7094 = vmatprep.subr.bf16.mxu0 %v10797_v50  ;;  %v15064_v50 = vand.u32 4294901760, %v10789_v26  ;;  %v15070_v24 = vand.u32 4294901760, %v10812_v40  ;;  %v10929_v0 = vsub.f32 %v10808_v38, %v15097_v29 }
 0x1fd   :  { %15102 = vst [vmem:[#allocation162_spill] sm:$0xff] %v10939_v35  ;;  %v15107_v29 = vand.u32 4294901760, %v10828_v15  ;;  %15113 = vst [vmem:[#allocation23_spill] sm:$0xff] %v10967_v51 }
 0x1fe   :  { %15061 = vst [vmem:[#allocation53_spill] sm:$0xff] %v10804_v3  ;;  %7478 = vmatprep.subr.bf16.mxu1 %v10804_v3  ;;  %v10835_v17 = vpack.c.bf16 %v15065_v4, %v15064_v50  ;;  %v15067_v3 = vand.u32 4294901760, %v10808_v38  ;;  %v4058_v4 = vand.u32 4294901760, %v10840_v62  ;;  %v4062_v50 = vand.u32 4294901760, %v10842_v12  ;;  %15098 = vst [vmem:[#allocation158_spill] sm:$0xff] %v10929_v0 }
 0x1ff   :  { %7096 = vmatpush1.bf16.msra.mxu0 %v10819_v48  ;;  %v10858_v13 = vpack.c.bf16 %v13695_v53, %v15070_v24  ;;  %v15072_v48 = vand.u32 4294901760, %v10826_v39  ;;  %v2572_v24 = vld [vmem:[#allocation7 + $0x3a0] sm:$0xff]  ;;  %v4068_v53 = vand.u32 4294901760, %v2575_v42  ;;  %v10949_v38 = vsub.f32 %v10826_v39, %v15105_v59 }
 0x200   :  { %15066 = vst [vmem:[#allocation57_spill] sm:$0xff] %v10835_v17  ;;  %v10849_v49 = vpack.c.bf16 %v15068_v32, %v15067_v3  ;;  %7480 = vmatpush1.bf16.msra.mxu1 %v10835_v17  ;;  %v2569_v32 = vld [vmem:[#allocation7 + $0x388] sm:$0xff]  ;;  %v10867_v63 = vpack.c.bf16 %v4062_v50, %v4058_v4  ;;  %v2724_v37 = vand.u32 4294901760, %v2572_v24  ;;  %v10960_v40 = vsub.f32 %v10842_v12, %v4062_v50  ;;  %v2578_v12 = vld [vmem:[#allocation7 + $0x3d0] sm:$0xff] }
 0x201   :  { %15071 = vst [vmem:[#allocation77_spill] sm:$0xff] %v10858_v13  ;;  %v10864_v16 = vpack.c.bf16 %v15073_v28, %v15072_v48  ;;  %v2573_v3 = vld [vmem:[#allocation7 + $0x3a8] sm:$0xff]  ;;  %v2718_v17 = vand.u32 4294901760, %v2569_v32  ;;  %7482 = vmatprep.subr.bf16.mxu1 %v10858_v13  ;;  %v2570_v28 = vld [vmem:[#allocation7 + $0x390] sm:$0xff]  ;;  %v10874_v54 = vpack.c.bf16 %v4068_v53, %v4064_v8  ;;  %v2579_v13 = vld [vmem:[#allocation7 + $0x3d8] sm:$0xff]  ;;  %v10969_v59 = vsub.f32 %v2575_v42, %v4068_v53 }
 0x202   :  { %15069 = vst [vmem:[#allocation132_spill] sm:$0xff] %v10849_v49  ;;  %7098 = vmatprep.subr.bf16.mxu0 %v10849_v49  ;;  %15075 = vst [vmem:[#allocation147_spill] sm:$0xff] %v10867_v63  ;;  %v2722_v30 = vand.u32 4294901760, %v2573_v3  ;;  %v2574_v48 = vld [vmem:[#allocation7 + $0x3b0] sm:$0xff]  ;;  %v4066_v49 = vand.u32 4294901760, %v2570_v28  ;;  %v10876_v36 = vpack.c.bf16 %v2724_v37, %v2720_v43  ;;  %v4072_v55 = vand.u32 4294901760, %v2579_v13 }
 0x203   :  { %15074 = vst [vmem:[#allocation134_spill] sm:$0xff] %v10864_v16  ;;  %7100 = vmatpush1.bf16.msra.mxu0 %v10864_v16  ;;  %v4070_v22 = vand.u32 4294901760, %v2574_v48  ;;  %15077 = vst [vmem:[#allocation152_spill] sm:$0xff] %v10874_v54  ;;  %v2583_v16 = vld [vmem:[#allocation7 + $0x3f8] sm:$0xff]  ;;  %v10971_v39 = vsub.f32 %v2568_v18, %v2720_v43  ;;  %v10979_v50 = vsub.f32 %v2577_v14, %v2726_v9 }
 0x204   :  { %v10871_v1 = vpack.c.bf16 %v2722_v30, %v2718_v17  ;;  %7484 = vmatpush1.bf16.msra.mxu1 %v10867_v63  ;;  %15078 = vst [vmem:[#allocation28_spill] sm:$0xff] %v10876_v36  ;;  %v10884_v63 = vsub.f32 %v10772_v44, %v15080_v23  ;;  %v15088_v23 = vand.u32 4294901760, %v10782_v61  ;;  %15106 = vst [vmem:[#allocation167_spill] sm:$0xff] %v10949_v38 }
 0x205   :  { %v10879_v19 = vpack.c.bf16 %v4070_v22, %v4066_v49  ;;  %7486 = vmatprep.subr.bf16.mxu1 %v10874_v54  ;;  %v2728_v54 = vand.u32 4294901760, %v2576_v58  ;;  %15110 = vst [vmem:[#allocation170_spill] sm:$0xff] %v10960_v40  ;;  %15114 = vst [vmem:[#allocation174_spill] sm:$0xff] %v10969_v59  ;;  %v10985_v8 = vsub.f32 %v2579_v13, %v4072_v55 }
 0x206   :  { %15076 = vst [vmem:[#allocation19_spill] sm:$0xff] %v10871_v1  ;;  %7102 = vmatprep.subr.bf16.mxu0 %v10871_v1  ;;  %15081 = vst [vmem:[#allocation34_spill] sm:$0xff] %v10884_v63  ;;  %v15084_v1 = vand.u32 4294901760, %v10776_v11  ;;  %v10905_v44 = vsub.f32 %v10782_v61, %v15088_v23  ;;  %v10924_v61 = vpack.c.bf16 %v2730_v10, %v2726_v9  ;;  %v4076_v23 = vand.u32 4294901760, %v2583_v16  ;;  %v15127_v9 = vld [vmem:[#allocation126_spill] sm:$0xff] }
 0x207   :  { %15079 = vst [vmem:[#allocation30_spill] sm:$0xff] %v10879_v19  ;;  %7104 = vmatpush1.bf16.msra.mxu0 %v10876_v36  ;;  %15115 = vst [vmem:[#allocation176_spill] sm:$0xff] %v10971_v39  ;;  %v10989_v43 = vpack.c.bf16 %v2732_v41, %v2728_v54  ;;  %v10993_v18 = vsub.f32 %v2580_v2, %v2732_v41  ;;  %v13757_v14 = vand.u32 4294901760, %v15127_v9 }
 0x208   :  { %v10894_v7 = vsub.f32 %v10776_v11, %v15084_v1  ;;  %15089 = vst [vmem:[#allocation54_spill] sm:$0xff] %v10905_v44  ;;  %v15092_v1 = vand.u32 4294901760, %v10789_v26  ;;  %7488 = vmatpush1.bf16.msra.mxu1 %v10879_v19  ;;  %15096 = vst [vmem:[#allocation155_spill] sm:$0xff] %v10924_v61  ;;  %v15103_v19 = vand.u32 4294901760, %v10823_v34  ;;  %7106 = vmatprep.subr.bf16.mxu0 %v10924_v61  ;;  %v15137_v61 = vld [vmem:[#allocation135_spill] sm:$0xff] }
 0x209   :  { %15119 = vst [vmem:[#allocation33_spill] sm:$0xff] %v10979_v50  ;;  %15122 = vst [vmem:[#allocation182_spill] sm:$0xff] %v10985_v8  ;;  %v10987_v42 = vsub.f32 %v2583_v16, %v4076_v23  ;;  %v15130_v16 = vld [vmem:[#allocation56_spill] sm:$0xff]  ;;  %v13775_v5 = vand.u32 4294901760, %v15137_v61 }
 0x20a   :  { %15085 = vst [vmem:[#allocation151_spill] sm:$0xff] %v10894_v7  ;;  %v10915_v11 = vsub.f32 %v10789_v26, %v15092_v1  ;;  %v15099_v26 = vand.u32 4294901760, %v10810_v46  ;;  %v10944_v36 = vsub.f32 %v10823_v34, %v15103_v19  ;;  %v10963_v19 = vsub.f32 %v2569_v32, %v2718_v17  ;;  %15124 = vst [vmem:[#allocation49_spill] sm:$0xff] %v10989_v43 }
 0x20b   :  { %v10965_v34 = vsub.f32 %v2573_v3, %v2722_v30  ;;  %v10981_v17 = vsub.f32 %v2581_v33, %v2730_v10  ;;  %v10983_v30 = vpack.c.bf16 %v4076_v23, %v4072_v55  ;;  %15123 = vst [vmem:[#allocation47_spill] sm:$0xff] %v10987_v42  ;;  %15126 = vst [vmem:[#allocation185_spill] sm:$0xff] %v10993_v18  ;;  %v15128_v10 = vld [vmem:[#allocation128_spill] sm:$0xff]  ;;  %7108 = vmatpush1.bf16.msra.mxu0 %v10989_v43 }
 0x20c   :  { %15093 = vst [vmem:[#allocation63_spill] sm:$0xff] %v10915_v11  ;;  %v10934_v1 = vsub.f32 %v10810_v46, %v15099_v26  ;;  %15104 = vst [vmem:[#allocation165_spill] sm:$0xff] %v10944_v36  ;;  %v10954_v46 = vsub.f32 %v10828_v15, %v15107_v29  ;;  %v10957_v26 = vsub.f32 %v10840_v62, %v4058_v4  ;;  %v2582_v4 = vld [vmem:[#allocation7 + $0x3f0] sm:$0xff]  ;;  %v13756_v33 = vand.u32 4294901760, %v15128_v10  ;;  %v15129_v55 = vld [vmem:[#allocation136_spill] sm:$0xff] }
 0x20d   :  { %15111 = vst [vmem:[#allocation171_spill] sm:$0xff] %v10963_v19  ;;  %15112 = vst [vmem:[#allocation173_spill] sm:$0xff] %v10965_v34  ;;  %v10973_v15 = vsub.f32 %v2572_v24, %v2724_v37  ;;  %v10975_v29 = vsub.f32 %v2570_v28, %v4066_v49  ;;  %v10977_v62 = vsub.f32 %v2574_v48, %v4070_v22  ;;  %7490 = vmatprep.subr.bf16.mxu1 %v10983_v30 }
 0x20e   :  { %15100 = vst [vmem:[#allocation159_spill] sm:$0xff] %v10934_v1  ;;  %15108 = vst [vmem:[#allocation168_spill] sm:$0xff] %v10954_v46  ;;  %v10991_v37 = vsub.f32 %v2576_v58, %v2728_v54  ;;  %v4074_v22 = vand.u32 4294901760, %v2578_v12  ;;  %v4078_v57 = vand.u32 4294901760, %v2582_v4  ;;  %v13760_v49 = vand.u32 4294901760, %v15129_v55 }
 0x20f   :  { %15109 = vst [vmem:[#allocation169_spill] sm:$0xff] %v10957_v26  ;;  %15116 = vst [vmem:[#allocation177_spill] sm:$0xff] %v10973_v15  ;;  %v13767_v13 = vand.u32 4294901760, %v15130_v16  ;;  %v2770_v54 = vsub.f32 %v15127_v9, %v13757_v14  ;;  %v2782_v32 = vsub.f32 %v15128_v10, %v13756_v33  ;;  %v15135_v14 = vld [vmem:[#allocation131_spill] sm:$0xff]  ;;  %v15166_v9 = vld [vmem:[#allocation156_spill] sm:$0xff] }
 0x210   :  { %15117 = vst [vmem:[#allocation178_spill] sm:$0xff] %v10975_v29  ;;  %15118 = vst [vmem:[#allocation31_spill] sm:$0xff] %v10977_v62  ;;  %v11001_v53 = vpack.c.bf16 %v4078_v57, %v4074_v22  ;;  %v11003_v58 = vsub.f32 %v2578_v12, %v4074_v22  ;;  %v11005_v2 = vsub.f32 %v2582_v4, %v4078_v57  ;;  %v180_v22 = vlaneseq  ;;  %v15134_v57 = vld [vmem:[#allocation149_spill] sm:$0xff]  ;;  %v15163_v10 = vld [vmem:[#allocation51_spill] sm:$0xff] }
 0x211   :  { %15120 = vst [vmem:[#allocation35_spill] sm:$0xff] %v10981_v17  ;;  %15121 = vst [vmem:[#allocation181_spill] sm:$0xff] %v10983_v30  ;;  %v4116_v3 = vsub.f32 %v15129_v55, %v13760_v49  ;;  %v4128_v24 = vsub.f32 %v15130_v16, %v13767_v13  ;;  %v2771_v28 = vand.u32 4294901760, %v2770_v54  ;;  %v2783_v48 = vand.u32 4294901760, %v2782_v32  ;;  %v15136_v49 = vld [vmem:[#allocation76_spill] sm:$0xff]  ;;  %v15161_v16 = vld [vmem:[#allocation42_spill] sm:$0xff] }
 0x212   :  { %15125 = vst [vmem:[#allocation184_spill] sm:$0xff] %v10991_v37  ;;  %15131 = vst [vmem:[#allocation186_spill] sm:$0xff] %v11001_v53  ;;  %7492 = vmatpush1.bf16.msra.mxu1 %v11001_v53  ;;  %v13770_v33 = vand.u32 4294901760, %v15134_v57  ;;  %v13768_v43 = vand.u32 4294901760, %v15135_v14  ;;  %v13769_v30 = vand.u32 4294901760, %v15136_v49  ;;  %v11024_v13 = vshrl.u32 %v180_v22, 7 }
 0x213   :  { %15132 = vst [vmem:[#allocation188_spill] sm:$0xff] %v11003_v58  ;;  %15133 = vst [vmem:[#allocation191_spill] sm:$0xff] %v11005_v2  ;;  %v4117_v23 = vand.u32 4294901760, %v4116_v3  ;;  %v4129_v41 = vand.u32 4294901760, %v4128_v24  ;;  %v7109_v12 = vpack.c.bf16 %v2783_v48, %v2771_v28  ;;  %v4134_v24 = vsub.f32 %v15137_v61, %v13775_v5  ;;  %v15168_v58 = vld [vmem:[#allocation160_spill] sm:$0xff] }
 0x214   :  { %15138 = vst [vmem:[#allocation192_spill] sm:$0xff] %v11024_v13  ;;  %v2776_v54 = vsub.f32 %v15134_v57, %v13770_v33  ;;  %v2788_v32 = vsub.f32 %v15135_v14, %v13768_v43  ;;  %v4122_v3 = vsub.f32 %v15136_v49, %v13769_v30  ;;  %v15139_v43 = vld [vmem:[#allocation121_spill] sm:$0xff]  ;;  %v15140_v33 = vld [vmem:[#allocation148_spill] sm:$0xff]  ;;  %v15149_v53 = vsub.s32 3, %v11024_v13 }
 0x215   :  { %v7493_v4 = vpack.c.bf16 %v4129_v41, %v4117_v23  ;;  %7110 = vmatprep.subr.bf16.mxu0 %v7109_v12  ;;  %v4135_v28 = vand.u32 4294901760, %v4134_v24  ;;  %v15143_v23 = vsub.s32 0, %v11024_v13  ;;  %v15152_v24 = vand.u32 4294901760, %v15139_v43  ;;  %v15156_v49 = vld [vmem:[#allocation24_spill] sm:$0xff] }
 0x216   :  { %v2777_v12 = vand.u32 4294901760, %v2776_v54  ;;  %v2789_v22 = vand.u32 4294901760, %v2788_v32  ;;  %v4123_v60 = vand.u32 4294901760, %v4122_v3  ;;  %v15145_v54 = vsub.s32 2, %v11024_v13 }
 0x217   :  { %7494 = vmatprep.subr.bf16.mxu1 %v7493_v4  ;;  %v178_v4 = vld [vmem:[%s13087_s2] sm:$0xf]  ;;  %v15147_v32 = vsub.s32 1, %v11024_v13  ;;  %v2794_v48 = vsub.f32 %v15139_v43, %v15152_v24  ;;  %v15159_v14 = vand.u32 4294901760, %v15142_v45  ;;  %v15160_v43 = vld [vmem:[#allocation39_spill] sm:$0xff]  ;;  %v15169_v57 = vand.u32 4294901760, %v15156_v49 }
 0x218   :  { %v11051_v21 = vrot.slane %v178_v4, %v15143_v23  ;;  %v11055_v41 = vrot.slane %v178_v4, %v15145_v54  ;;  %v11063_v30 = vrot.slane %v178_v4, %v15149_v53  ;;  %v11065_v3 = vpack.c.bf16 %v2789_v22, %v2777_v12  ;;  %v15157_v53 = vld [vmem:[#allocation116_spill] sm:$0xff]  ;;  %v15158_v12 = vld [vmem:[#allocation137_spill] sm:$0xff] }
 0x219   :  { %v11059_v52 = vrot.slane %v178_v4, %v15147_v32  ;;  %v15153_v23 = vand.u32 4294901760, %v15140_v33  ;;  %v15154_v54 = vand.u32 4294901760, %v15141_v20  ;;  %v11076_v32 = vpack.c.bf16 %v4135_v28, %v4123_v60  ;;  %v15164_v60 = vld [vmem:[#allocation60_spill] sm:$0xff] }
 0x21a   :  { %15144 = vst [vmem:[#allocation194_spill] sm:$0xff] %v11051_v21  ;;  %15146 = vst [vmem:[#allocation78_spill] sm:$0xff] %v11055_v41  ;;  %v4152_v24 = vsub.f32 %v15142_v45, %v15159_v14  ;;  %v15170_v55 = vand.u32 4294901760, %v15157_v53  ;;  %v15171_v28 = vand.u32 4294901760, %v15158_v12  ;;  %v15173_v14 = vand.u32 4294901760, %v15161_v16  ;;  %v15183_v41 = vld [vmem:[#allocation164_spill] sm:$0xff] }
 0x21b   :  { %15148 = vst [vmem:[#allocation196_spill] sm:$0xff] %v11059_v52  ;;  %15150 = vst [vmem:[#allocation197_spill] sm:$0xff] %v11063_v30  ;;  %v2806_v5 = vsub.f32 %v15140_v33, %v15153_v23  ;;  %v4140_v61 = vsub.f32 %v15141_v20, %v15154_v54  ;;  %v15162_v33 = vld [vmem:[#allocation48_spill] sm:$0xff]  ;;  %v15165_v20 = vld [vmem:[#allocation67_spill] sm:$0xff]  ;;  %v2800_v23 = vsub.f32 %v15156_v49, %v15169_v57  ;;  %v15175_v49 = vand.u32 4294901760, %v15163_v10 }
 0x21c   :  { %15151 = vst [vmem:[#allocation200_spill] sm:$0xff] %v11065_v3  ;;  %15155 = vst [vmem:[#allocation201_spill] sm:$0xff] %v11076_v32  ;;  %v2795_v32 = vand.u32 4294901760, %v2794_v48  ;;  %v15167_v3 = vld [vmem:[#allocation157_spill] sm:$0xff]  ;;  %v2812_v54 = vsub.f32 %v15157_v53, %v15170_v55  ;;  %v4146_v13 = vsub.f32 %v15158_v12, %v15171_v28  ;;  %v4153_v4 = vand.u32 4294901760, %v4152_v24  ;;  %v15182_v30 = vld [vmem:[#allocation163_spill] sm:$0xff] }
 0x21d   :  { %v2807_v22 = vand.u32 4294901760, %v2806_v5  ;;  %v4141_v45 = vand.u32 4294901760, %v4140_v61  ;;  %v15172_v5 = vand.u32 4294901760, %v15160_v43  ;;  %v2818_v61 = vsub.f32 %v15161_v16, %v15173_v14 }
 0x21e   :  { %v15174_v2 = vand.u32 4294901760, %v15162_v33  ;;  %v4164_v55 = vsub.f32 %v15163_v10, %v15175_v49  ;;  %v15176_v53 = vand.u32 4294901760, %v15164_v60  ;;  %v15177_v28 = vand.u32 4294901760, %v15165_v20  ;;  %v15181_v10 = vld [vmem:[#allocation161_spill] sm:$0xff] }
 0x21f   :  { %v4158_v48 = vsub.f32 %v15160_v43, %v15172_v5  ;;  %v15178_v43 = vand.u32 4294901760, %v15166_v9  ;;  %v15179_v16 = vand.u32 4294901760, %v15167_v3  ;;  %v13821_v12 = vand.u32 4294901760, %v15181_v10 }
 0x220   :  { %v2830_v57 = vsub.f32 %v15162_v33, %v15174_v2  ;;  %v4176_v24 = vsub.f32 %v15164_v60, %v15176_v53  ;;  %v2824_v5 = vsub.f32 %v15165_v20, %v15177_v28  ;;  %v15180_v33 = vand.u32 4294901760, %v15168_v58  ;;  %v15184_v20 = vld [vmem:[#allocation166_spill] sm:$0xff] }
 0x221   :  { %v2836_v14 = vsub.f32 %v15166_v9, %v15178_v43  ;;  %v4170_v2 = vsub.f32 %v15167_v3, %v15179_v16  ;;  %v2801_v60 = vand.u32 4294901760, %v2800_v23  ;;  %v2813_v52 = vand.u32 4294901760, %v2812_v54 }
 0x222   :  { %v4182_v49 = vsub.f32 %v15168_v58, %v15180_v33  ;;  %v13820_v28 = vand.u32 4294901760, %v15183_v41  ;;  %v13822_v21 = vand.u32 4294901760, %v15184_v20  ;;  %v4147_v18 = vand.u32 4294901760, %v4146_v13 }
 0x223   :  { %v4159_v43 = vand.u32 4294901760, %v4158_v48  ;;  %v2819_v9 = vand.u32 4294901760, %v2818_v61  ;;  %v2831_v37 = vand.u32 4294901760, %v2830_v57  ;;  %v4165_v42 = vand.u32 4294901760, %v4164_v55  ;;  %v15187_v57 = vld [vmem:[#allocation16_spill] sm:$0xff] }
 0x224   :  { %v4177_v16 = vand.u32 4294901760, %v4176_v24  ;;  %v2825_v3 = vand.u32 4294901760, %v2824_v5  ;;  %v2837_v8 = vand.u32 4294901760, %v2836_v14  ;;  %v4171_v17 = vand.u32 4294901760, %v4170_v2  ;;  %v15190_v14 = vld [vmem:[#allocation17_spill] sm:$0xff] }
 0x225   :  { %v4183_v33 = vand.u32 4294901760, %v4182_v49  ;;  %v11136_v53 = vsub.f32 %v15181_v10, %v13821_v12  ;;  %v15185_v23 = vand.u32 4294901760, %v15182_v30  ;;  %v11143_v13 = vpack.c.bf16 %v2807_v22, %v2795_v32  ;;  %v15191_v32 = vld [vmem:[#allocation18_spill] sm:$0xff]  ;;  %v15209_v10 = vld [vmem:[#allocation36_spill] sm:$0xff] }
 0x226   :  { %v11148_v48 = vsub.f32 %v15183_v41, %v13820_v28  ;;  %v11153_v61 = vsub.f32 %v15184_v20, %v13822_v21  ;;  %v11156_v24 = vpack.c.bf16 %v4153_v4, %v4141_v45  ;;  %v11158_v5 = vpack.c.bf16 %v2813_v52, %v2801_v60  ;;  %v15197_v52 = vld [vmem:[#allocation20_spill] sm:$0xff]  ;;  %v15205_v20 = vld [vmem:[#allocation27_spill] sm:$0xff] }
 0x227   :  { %v11141_v54 = vsub.f32 %v15182_v30, %v15185_v23  ;;  %15186 = vst [vmem:[#allocation204_spill] sm:$0xff] %v11143_v13  ;;  %v13826_v2 = vand.u32 4294901760, %v15190_v14  ;;  %v11162_v49 = vpack.c.bf16 %v4159_v43, %v4147_v18  ;;  %v11164_v23 = vpack.c.bf16 %v2831_v37, %v2819_v9  ;;  %v15212_v4 = vld [vmem:[#allocation40_spill] sm:$0xff] }
 0x228   :  { %15188 = vst [vmem:[#allocation205_spill] sm:$0xff] %v11156_v24  ;;  %15189 = vst [vmem:[#allocation207_spill] sm:$0xff] %v11158_v5  ;;  %v11166_v28 = vpack.c.bf16 %v4177_v16, %v4165_v42  ;;  %v11168_v12 = vpack.c.bf16 %v2837_v8, %v2825_v3  ;;  %v11170_v21 = vpack.c.bf16 %v4183_v33, %v4171_v17  ;;  %v2843_v55 = vand.u32 4294901760, %v11136_v53  ;;  %v15199_v42 = vld [vmem:[#allocation172_spill] sm:$0xff]  ;;  %v15201_v53 = vld [vmem:[#allocation22_spill] sm:$0xff] }
 0x229   :  { %15192 = vst [vmem:[#allocation209_spill] sm:$0xff] %v11162_v49  ;;  %15193 = vst [vmem:[#allocation210_spill] sm:$0xff] %v11164_v23  ;;  %v2855_v45 = vand.u32 4294901760, %v11141_v54  ;;  %v4189_v60 = vand.u32 4294901760, %v11148_v48  ;;  %v4201_v22 = vand.u32 4294901760, %v11153_v61  ;;  %v15198_v18 = vand.u32 4294901760, %v15187_v57 }
 0x22a   :  { %15194 = vst [vmem:[#allocation213_spill] sm:$0xff] %v11166_v28  ;;  %15195 = vst [vmem:[#allocation217_spill] sm:$0xff] %v11168_v12  ;;  %v2860_v17 = vsub.f32 %v15190_v14, %v13826_v2  ;;  %v15200_v8 = vand.u32 4294901760, %v15191_v32  ;;  %v15202_v16 = vld [vmem:[#allocation25_spill] sm:$0xff]  ;;  %v15203_v54 = vld [vmem:[#allocation26_spill] sm:$0xff]  ;;  %v15207_v41 = vand.u32 4294901760, %v15197_v52 }
 0x22b   :  { %15196 = vst [vmem:[#allocation221_spill] sm:$0xff] %v11170_v21  ;;  %v2848_v37 = vsub.f32 %v15187_v57, %v15198_v18  ;;  %v15204_v61 = vld [vmem:[#allocation175_spill] sm:$0xff]  ;;  %v15206_v57 = vld [vmem:[#allocation29_spill] sm:$0xff]  ;;  %v15208_v14 = vld [vmem:[#allocation32_spill] sm:$0xff]  ;;  %v15211_v33 = vand.u32 4294901760, %v15199_v42  ;;  %v15214_v23 = vand.u32 4294901760, %v15201_v53  ;;  %v11247_v5 = vpack.c.bf16 %v2855_v45, %v2843_v55 }
 0x22c   :  { %v4194_v3 = vsub.f32 %v15191_v32, %v15200_v8  ;;  %v4206_v2 = vsub.f32 %v15197_v52, %v15207_v41  ;;  %v15210_v32 = vld [vmem:[#allocation38_spill] sm:$0xff]  ;;  %v15213_v18 = vld [vmem:[#allocation41_spill] sm:$0xff]  ;;  %v2861_v9 = vand.u32 4294901760, %v2860_v17  ;;  %v15215_v30 = vand.u32 4294901760, %v15202_v16  ;;  %v15226_v49 = vld [vmem:[#allocation180_spill] sm:$0xff] }
 0x22d   :  { %v2849_v58 = vand.u32 4294901760, %v2848_v37  ;;  %v2866_v48 = vsub.f32 %v15199_v42, %v15211_v33  ;;  %v2878_v41 = vsub.f32 %v15201_v53, %v15214_v23  ;;  %v15216_v37 = vand.u32 4294901760, %v15203_v54  ;;  %v15234_v55 = vld [vmem:[#allocation46_spill] sm:$0xff] }
 0x22e   :  { %v4195_v28 = vand.u32 4294901760, %v4194_v3  ;;  %v4212_v8 = vsub.f32 %v15202_v16, %v15215_v30  ;;  %v15217_v33 = vand.u32 4294901760, %v15204_v61  ;;  %v15218_v12 = vand.u32 4294901760, %v15205_v20 }
 0x22f   :  { %v4224_v43 = vsub.f32 %v15203_v54, %v15216_v37  ;;  %v15219_v3 = vand.u32 4294901760, %v15206_v57  ;;  %v4207_v53 = vand.u32 4294901760, %v4206_v2  ;;  %v15220_v42 = vand.u32 4294901760, %v15208_v14 }
 0x230   :  { %v2872_v21 = vsub.f32 %v15204_v61, %v15217_v33  ;;  %v2884_v17 = vsub.f32 %v15205_v20, %v15218_v12  ;;  %v15221_v16 = vand.u32 4294901760, %v15209_v10  ;;  %v15222_v54 = vand.u32 4294901760, %v15210_v32 }
 0x231   :  { %v4218_v23 = vsub.f32 %v15206_v57, %v15219_v3  ;;  %v4230_v30 = vsub.f32 %v15208_v14, %v15220_v42  ;;  %v2867_v61 = vand.u32 4294901760, %v2866_v48  ;;  %v15223_v12 = vand.u32 4294901760, %v15212_v4  ;;  %v15225_v57 = vld [vmem:[#allocation179_spill] sm:$0xff] }
 0x232   :  { %v2890_v37 = vsub.f32 %v15209_v10, %v15221_v16  ;;  %v2902_v33 = vsub.f32 %v15210_v32, %v15222_v54  ;;  %v15224_v3 = vand.u32 4294901760, %v15213_v18  ;;  %v13851_v52 = vand.u32 4294901760, %v15225_v57  ;;  %v15227_v16 = vld [vmem:[#allocation153_spill] sm:$0xff] }
 0x233   :  { %v4236_v20 = vsub.f32 %v15212_v4, %v15223_v12  ;;  %v2879_v42 = vand.u32 4294901760, %v2878_v41  ;;  %v4213_v14 = vand.u32 4294901760, %v4212_v8  ;;  %v13850_v10 = vand.u32 4294901760, %v15227_v16  ;;  %v15228_v12 = vld [vmem:[#allocation43_spill] sm:$0xff]  ;;  %v15229_v8 = vld [vmem:[#allocation44_spill] sm:$0xff] }
 0x234   :  { %v4248_v2 = vsub.f32 %v15213_v18, %v15224_v3  ;;  %v4225_v24 = vand.u32 4294901760, %v4224_v43  ;;  %v2873_v13 = vand.u32 4294901760, %v2872_v21  ;;  %v2885_v54 = vand.u32 4294901760, %v2884_v17 }
 0x235   :  { %v4219_v48 = vand.u32 4294901760, %v4218_v23  ;;  %v4231_v32 = vand.u32 4294901760, %v4230_v30  ;;  %v2891_v50 = vand.u32 4294901760, %v2890_v37  ;;  %v2903_v62 = vand.u32 4294901760, %v2902_v33 }
 0x236   :  { %v13849_v4 = vand.u32 4294901760, %v15228_v12  ;;  %v4237_v29 = vand.u32 4294901760, %v4236_v20  ;;  %v4249_v15 = vand.u32 4294901760, %v4248_v2  ;;  %v11244_v41 = vsub.f32 %v15225_v57, %v13851_v52  ;;  %v15245_v52 = vld [vmem:[#allocation216_spill] sm:$0xff] }
 0x237   :  { %v13848_v3 = vand.u32 4294901760, %v15229_v8  ;;  %v11249_v43 = vpack.c.bf16 %v4201_v22, %v4189_v60  ;;  %v15230_v21 = vand.u32 4294901760, %v15226_v49  ;;  %v11259_v20 = vsub.f32 %v15227_v16, %v13850_v10 }
 0x238   :  { %v11261_v23 = vpack.c.bf16 %v2861_v9, %v2849_v58  ;;  %v11263_v30 = vpack.c.bf16 %v4207_v53, %v4195_v28  ;;  %v11265_v37 = vpack.c.bf16 %v2879_v42, %v2867_v61  ;;  %v13852_v45 = vand.u32 4294901760, %v15234_v55  ;;  %v15241_v53 = vld [vmem:[#allocation214_spill] sm:$0xff] }
 0x239   :  { %v11254_v17 = vsub.f32 %v15226_v49, %v15230_v21  ;;  %v11268_v22 = vpack.c.bf16 %v4225_v24, %v4213_v14  ;;  %v11270_v60 = vpack.c.bf16 %v2885_v54, %v2873_v13  ;;  %v11272_v33 = vpack.c.bf16 %v4231_v32, %v4219_v48  ;;  %v15240_v32 = vld [vmem:[#allocation85_spill] sm:$0xff]  ;;  %v15244_v54 = vld [vmem:[#allocation215_spill] sm:$0xff]  ;;  %v15246_v28 = vld [vmem:[#allocation86_spill] sm:$0xff] }
 0x23a   :  { %15231 = vst [vmem:[#allocation222_spill] sm:$0xff] %v11261_v23  ;;  %15232 = vst [vmem:[#allocation223_spill] sm:$0xff] %v11263_v30  ;;  %v11277_v2 = vsub.f32 %v15228_v12, %v13849_v4  ;;  %v11279_v21 = vpack.c.bf16 %v2903_v62, %v2891_v50  ;;  %v11281_v58 = vpack.c.bf16 %v4249_v15, %v4237_v29  ;;  %v13856_v9 = vand.u32 4294901760, %v15240_v32  ;;  %v15242_v29 = vld [vmem:[#allocation50_spill] sm:$0xff]  ;;  %v15247_v62 = vld [vmem:[#allocation88_spill] sm:$0xff] }
 0x23b   :  { %15233 = vst [vmem:[#allocation224_spill] sm:$0xff] %v11265_v37  ;;  %15235 = vst [vmem:[#allocation225_spill] sm:$0xff] %v11268_v22  ;;  %v11287_v24 = vsub.f32 %v15229_v8, %v13848_v3  ;;  %v13857_v61 = vand.u32 4294901760, %v15241_v53  ;;  %v11296_v15 = vsub.f32 %v15234_v55, %v13852_v45  ;;  %v15243_v50 = vld [vmem:[#allocation122_spill] sm:$0xff]  ;;  %v13859_v48 = vand.u32 4294901760, %v15244_v54  ;;  %v15248_v55 = vld [vmem:[#allocation183_spill] sm:$0xff] }
 0x23c   :  { %15236 = vst [vmem:[#allocation226_spill] sm:$0xff] %v11270_v60  ;;  %15237 = vst [vmem:[#allocation227_spill] sm:$0xff] %v11272_v33  ;;  %v4356_v4 = vsub.f32 %v15240_v32, %v13856_v9  ;;  %v13863_v14 = vand.u32 4294901760, %v15245_v52  ;;  %v13864_v42 = vand.u32 4294901760, %v15246_v28  ;;  %v13865_v3 = vand.u32 4294901760, %v15247_v62  ;;  %v15249_v49 = vld [vmem:[#allocation89_spill] sm:$0xff] }
 0x23d   :  { %15238 = vst [vmem:[#allocation228_spill] sm:$0xff] %v11279_v21  ;;  %15239 = vst [vmem:[#allocation229_spill] sm:$0xff] %v11281_v58  ;;  %v4368_v10 = vsub.f32 %v15241_v53, %v13857_v61  ;;  %v3016_v13 = vsub.f32 %v15244_v54, %v13859_v48  ;;  %v13866_v57 = vand.u32 4294901760, %v15249_v49  ;;  %v15252_v58 = vld [vmem:[#allocation218_spill] sm:$0xff]  ;;  %v13872_v37 = vand.u32 4294901760, %v10347_v6 }
 0x23e   :  { %v4357_v12 = vand.u32 4294901760, %v4356_v4  ;;  %v3028_v61 = vsub.f32 %v15245_v52, %v13863_v14  ;;  %v4362_v45 = vsub.f32 %v15246_v28, %v13864_v42  ;;  %v4374_v48 = vsub.f32 %v15247_v62, %v13865_v3  ;;  %v15251_v4 = vld [vmem:[#allocation90_spill] sm:$0xff]  ;;  %v15253_v42 = vld [vmem:[#allocation219_spill] sm:$0xff] }
 0x23f   :  { %v4369_v9 = vand.u32 4294901760, %v4368_v10  ;;  %v3017_v16 = vand.u32 4294901760, %v3016_v13  ;;  %v13867_v10 = vand.u32 4294901760, %v15251_v4  ;;  %v13868_v21 = vand.u32 4294901760, %v15252_v58 }
 0x240   :  { %v3029_v8 = vand.u32 4294901760, %v3028_v61  ;;  %v4363_v33 = vand.u32 4294901760, %v4362_v45  ;;  %v4375_v14 = vand.u32 4294901760, %v4374_v48  ;;  %v3034_v13 = vsub.f32 %v15249_v49, %v13866_v57  ;;  %v15255_v61 = vld [vmem:[#allocation220_spill] sm:$0xff] }
 0x241   :  { %v11326_v18 = vpack.c.bf16 %v4369_v9, %v4357_v12  ;;  %v13869_v60 = vand.u32 4294901760, %v15253_v42  ;;  %v3046_v12 = vsub.f32 %v15251_v4, %v13867_v10  ;;  %v4380_v9 = vsub.f32 %v15252_v58, %v13868_v21 }
 0x242   :  { %v11334_v22 = vpack.c.bf16 %v3029_v8, %v3017_v16  ;;  %v13870_v3 = vand.u32 4294901760, %v15255_v61  ;;  %v11343_v45 = vpack.c.bf16 %v4375_v14, %v4363_v33  ;;  %v3035_v48 = vand.u32 4294901760, %v3034_v13 }
 0x243   :  { %15250 = vst [vmem:[#allocation85_spill] sm:$0xff] %v11326_v18  ;;  %v4392_v57 = vsub.f32 %v15253_v42, %v13869_v60  ;;  %v15257_v18 = vld [vmem:[#allocation92_spill] sm:$0xff]  ;;  %v3047_v8 = vand.u32 4294901760, %v3046_v12  ;;  %v13873_v14 = vand.u32 4294901760, %v10354_v47  ;;  %v13874_v13 = vand.u32 4294901760, %v10884_v63 }
 0x244   :  { %15254 = vst [vmem:[#allocation214_spill] sm:$0xff] %v11334_v22  ;;  %15256 = vst [vmem:[#allocation215_spill] sm:$0xff] %v11343_v45  ;;  %v13871_v16 = vand.u32 4294901760, %v15257_v18  ;;  %v4381_v22 = vand.u32 4294901760, %v4380_v9  ;;  %v3040_v10 = vsub.f32 %v15255_v61, %v13870_v3  ;;  %v4386_v12 = vsub.f32 %v10347_v6, %v13872_v37 }
 0x245   :  { %v4393_v21 = vand.u32 4294901760, %v4392_v57  ;;  %v11358_v60 = vpack.c.bf16 %v3047_v8, %v3035_v48  ;;  %v13875_v9 = vand.u32 4294901760, %v10889_v27  ;;  %v3058_v30 = vsub.f32 %v10884_v63, %v13874_v13 }
 0x246   :  { %v3052_v33 = vsub.f32 %v15257_v18, %v13871_v16  ;;  %v3041_v45 = vand.u32 4294901760, %v3040_v10  ;;  %v4398_v16 = vsub.f32 %v10354_v47, %v13873_v14  ;;  %v4387_v48 = vand.u32 4294901760, %v4386_v12 }
 0x247   :  { %15258 = vst [vmem:[#allocation230_spill] sm:$0xff] %v11358_v60  ;;  %v11364_v3 = vpack.c.bf16 %v4393_v21, %v4381_v22  ;;  %v3070_v10 = vsub.f32 %v10889_v27, %v13875_v9  ;;  %v13876_v8 = vand.u32 4294901760, %v10894_v7  ;;  %v13877_v37 = vand.u32 4294901760, %v10899_v31 }
 0x248   :  { %v3053_v57 = vand.u32 4294901760, %v3052_v33  ;;  %v4399_v21 = vand.u32 4294901760, %v4398_v16  ;;  %v3059_v33 = vand.u32 4294901760, %v3058_v30  ;;  %v13879_v9 = vand.u32 4294901760, %v10910_v56 }
 0x249   :  { %15259 = vst [vmem:[#allocation231_spill] sm:$0xff] %v11364_v3  ;;  %v13878_v3 = vand.u32 4294901760, %v10905_v44  ;;  %v3071_v14 = vand.u32 4294901760, %v3070_v10  ;;  %v4404_v13 = vsub.f32 %v10894_v7, %v13876_v8  ;;  %v4416_v12 = vsub.f32 %v10899_v31, %v13877_v37  ;;  %v15370_v7 = vld [vmem:[#allocation225_spill] sm:$0xff]  ;;  %v15380_v31 = vld [vmem:[#allocation198_spill] sm:$0xff] }
 0x24a   :  { %v11377_v22 = vpack.c.bf16 %v3053_v57, %v3041_v45  ;;  %v11387_v60 = vpack.c.bf16 %v4399_v21, %v4387_v48  ;;  %v13880_v30 = vand.u32 4294901760, %v10915_v11  ;;  %v13882_v16 = vand.u32 4294901760, %v10920_v25 }
 0x24b   :  { %v3064_v45 = vsub.f32 %v10905_v44, %v13878_v3  ;;  %v11394_v57 = vpack.c.bf16 %v3071_v14, %v3059_v33  ;;  %v4405_v10 = vand.u32 4294901760, %v4404_v13  ;;  %v4417_v8 = vand.u32 4294901760, %v4416_v12  ;;  %v15397_v44 = vld [vmem:[#allocation70_spill] sm:$0xff] }
 0x24c   :  { %15260 = vst [vmem:[#allocation232_spill] sm:$0xff] %v11377_v22  ;;  %15261 = vst [vmem:[#allocation233_spill] sm:$0xff] %v11387_v60  ;;  %v3076_v37 = vsub.f32 %v10910_v56, %v13879_v9  ;;  %v4410_v48 = vsub.f32 %v10915_v11, %v13880_v30  ;;  %v4422_v21 = vsub.f32 %v10920_v25, %v13882_v16  ;;  %v13881_v3 = vand.u32 4294901760, %v10929_v0  ;;  %v15361_v56 = vld [vmem:[#allocation222_spill] sm:$0xff]  ;;  %v15401_v25 = vld [vmem:[#allocation83_spill] sm:$0xff] }
 0x24d   :  { %15262 = vst [vmem:[#allocation234_spill] sm:$0xff] %v11394_v57  ;;  %v3065_v22 = vand.u32 4294901760, %v3064_v45  ;;  %v11406_v60 = vpack.c.bf16 %v4417_v8, %v4405_v10  ;;  %v13883_v13 = vand.u32 4294901760, %v10934_v1  ;;  %v13884_v33 = vand.u32 4294901760, %v10939_v35  ;;  %v15400_v11 = vld [vmem:[#allocation82_spill] sm:$0xff] }
 0x24e   :  { %v3077_v14 = vand.u32 4294901760, %v3076_v37  ;;  %v4411_v12 = vand.u32 4294901760, %v4410_v48  ;;  %v4423_v9 = vand.u32 4294901760, %v4422_v21  ;;  %v3082_v45 = vsub.f32 %v10929_v0, %v13881_v3 }
 0x24f   :  { %15263 = vst [vmem:[#allocation235_spill] sm:$0xff] %v11406_v60  ;;  %v13885_v30 = vand.u32 4294901760, %v10944_v36  ;;  %v3094_v8 = vsub.f32 %v10934_v1, %v13883_v13  ;;  %v4428_v37 = vsub.f32 %v10939_v35, %v13884_v33  ;;  %v13886_v10 = vand.u32 4294901760, %v10949_v38 }
 0x250   :  { %v11414_v57 = vpack.c.bf16 %v3077_v14, %v3065_v22  ;;  %v11423_v48 = vpack.c.bf16 %v4423_v9, %v4411_v12  ;;  %v3083_v21 = vand.u32 4294901760, %v3082_v45  ;;  %v13887_v22 = vand.u32 4294901760, %v10954_v46 }
 0x251   :  { %v4440_v3 = vsub.f32 %v10944_v36, %v13885_v30  ;;  %v3095_v14 = vand.u32 4294901760, %v3094_v8  ;;  %v4429_v16 = vand.u32 4294901760, %v4428_v37  ;;  %v3088_v13 = vsub.f32 %v10949_v38, %v13886_v10 }
 0x252   :  { %15264 = vst [vmem:[#allocation236_spill] sm:$0xff] %v11414_v57  ;;  %15265 = vst [vmem:[#allocation237_spill] sm:$0xff] %v11423_v48  ;;  %v13888_v57 = vand.u32 4294901760, %v10957_v26  ;;  %v3100_v9 = vsub.f32 %v10954_v46, %v13887_v22  ;;  %v13889_v12 = vand.u32 4294901760, %v10960_v40  ;;  %v13890_v45 = vand.u32 4294901760, %v10963_v19  ;;  %v15286_v46 = vld [vmem:[#allocation197_spill] sm:$0xff] }
 0x253   :  { %v4441_v33 = vand.u32 4294901760, %v4440_v3  ;;  %v11438_v30 = vpack.c.bf16 %v3095_v14, %v3083_v21  ;;  %v3089_v48 = vand.u32 4294901760, %v3088_v13  ;;  %v13891_v37 = vand.u32 4294901760, %v10965_v34 }
 0x254   :  { %v4434_v8 = vsub.f32 %v10957_v26, %v13888_v57  ;;  %v3101_v3 = vand.u32 4294901760, %v3100_v9  ;;  %v4446_v22 = vsub.f32 %v10960_v40, %v13889_v12  ;;  %v3106_v60 = vsub.f32 %v10963_v19, %v13890_v45 }
 0x255   :  { %15266 = vst [vmem:[#allocation238_spill] sm:$0xff] %v11438_v30  ;;  %v11444_v10 = vpack.c.bf16 %v4441_v33, %v4429_v16  ;;  %v3118_v13 = vsub.f32 %v10965_v34, %v13891_v37  ;;  %v13894_v14 = vand.u32 4294901760, %v10967_v51  ;;  %v13895_v57 = vand.u32 4294901760, %v10969_v59  ;;  %v15269_v37 = vld [vmem:[#allocation177_spill] sm:$0xff] }
 0x256   :  { %v4435_v21 = vand.u32 4294901760, %v4434_v8  ;;  %v11457_v16 = vpack.c.bf16 %v3101_v3, %v3089_v48  ;;  %v4447_v33 = vand.u32 4294901760, %v4446_v22  ;;  %v3107_v9 = vand.u32 4294901760, %v3106_v60  ;;  %v15271_v60 = vld [vmem:[#allocation178_spill] sm:$0xff]  ;;  %v15272_v3 = vld [vmem:[#allocation31_spill] sm:$0xff] }
 0x257   :  { %15267 = vst [vmem:[#allocation239_spill] sm:$0xff] %v11444_v10  ;;  %v13898_v10 = vand.u32 4294901760, %v10971_v39  ;;  %v3119_v12 = vand.u32 4294901760, %v3118_v13  ;;  %v4452_v45 = vsub.f32 %v10967_v51, %v13894_v14  ;;  %v4464_v8 = vsub.f32 %v10969_v59, %v13895_v57 }
 0x258   :  { %15268 = vst [vmem:[#allocation240_spill] sm:$0xff] %v11457_v16  ;;  %v13903_v30 = vand.u32 4294901760, %v15269_v37  ;;  %v11467_v23 = vpack.c.bf16 %v4447_v33, %v4435_v21  ;;  %v13904_v22 = vand.u32 4294901760, %v15271_v60  ;;  %v13907_v13 = vand.u32 4294901760, %v15272_v3 }
 0x259   :  { %v3112_v48 = vsub.f32 %v10971_v39, %v13898_v10  ;;  %v11474_v16 = vpack.c.bf16 %v3119_v12, %v3107_v9  ;;  %v4453_v34 = vand.u32 4294901760, %v4452_v45  ;;  %v4465_v14 = vand.u32 4294901760, %v4464_v8  ;;  %v15274_v10 = vld [vmem:[#allocation33_spill] sm:$0xff]  ;;  %v15276_v45 = vld [vmem:[#allocation35_spill] sm:$0xff]  ;;  %v15277_v8 = vld [vmem:[#allocation182_spill] sm:$0xff] }
 0x25a   :  { %15270 = vst [vmem:[#allocation241_spill] sm:$0xff] %v11467_v23  ;;  %v3124_v57 = vsub.f32 %v15269_v37, %v13903_v30  ;;  %v4458_v21 = vsub.f32 %v15271_v60, %v13904_v22  ;;  %v4470_v33 = vsub.f32 %v15272_v3, %v13907_v13  ;;  %v13909_v23 = vand.u32 4294901760, %v15274_v10  ;;  %v15278_v22 = vld [vmem:[#allocation47_spill] sm:$0xff]  ;;  %v15285_v13 = vld [vmem:[#allocation196_spill] sm:$0xff] }
 0x25b   :  { %15273 = vst [vmem:[#allocation242_spill] sm:$0xff] %v11474_v16  ;;  %v3113_v59 = vand.u32 4294901760, %v3112_v48  ;;  %v11486_v39 = vpack.c.bf16 %v4465_v14, %v4453_v34  ;;  %v13911_v9 = vand.u32 4294901760, %v15276_v45  ;;  %v13917_v16 = vand.u32 4294901760, %v15277_v8  ;;  %v15280_v14 = vld [vmem:[#allocation184_spill] sm:$0xff] }
 0x25c   :  { %v3125_v12 = vand.u32 4294901760, %v3124_v57  ;;  %v4459_v51 = vand.u32 4294901760, %v4458_v21  ;;  %v4471_v30 = vand.u32 4294901760, %v4470_v33  ;;  %v3130_v48 = vsub.f32 %v15274_v10, %v13909_v23 }
 0x25d   :  { %15275 = vst [vmem:[#allocation243_spill] sm:$0xff] %v11486_v39  ;;  %v13923_v60 = vand.u32 4294901760, %v15278_v22  ;;  %v3142_v34 = vsub.f32 %v15276_v45, %v13911_v9  ;;  %v4476_v57 = vsub.f32 %v15277_v8, %v13917_v16  ;;  %v15284_v9 = vld [vmem:[#allocation78_spill] sm:$0xff] }
 0x25e   :  { %v11494_v37 = vpack.c.bf16 %v3125_v12, %v3113_v59  ;;  %v11503_v39 = vpack.c.bf16 %v4471_v30, %v4459_v51  ;;  %v3131_v3 = vand.u32 4294901760, %v3130_v48  ;;  %v15282_v12 = vld [vmem:[#allocation185_spill] sm:$0xff]  ;;  %v15287_v48 = vand.u32 4294901760, %v15280_v14 }
 0x25f   :  { %v4488_v59 = vsub.f32 %v15278_v22, %v13923_v60  ;;  %v3143_v16 = vand.u32 4294901760, %v3142_v34  ;;  %v4477_v8 = vand.u32 4294901760, %v4476_v57 }
 0x260   :  { %15279 = vst [vmem:[#allocation244_spill] sm:$0xff] %v11494_v37  ;;  %15281 = vst [vmem:[#allocation245_spill] sm:$0xff] %v11503_v39  ;;  %v15283_v37 = vld [vmem:[#allocation194_spill] sm:$0xff]  ;;  %v3136_v39 = vsub.f32 %v15280_v14, %v15287_v48  ;;  %v15381_v14 = vld [vmem:[#allocation199_spill] sm:$0xff] }
 0x261   :  { %v4489_v30 = vand.u32 4294901760, %v4488_v59  ;;  %v11516_v23 = vpack.c.bf16 %v3143_v16, %v3131_v3 }
 0x263   :  { %15288 = vst [vmem:[#allocation194_spill] sm:$0xff] %v11516_v23 }
 0x29f   :  { %v1319_v21 = vpop.f32.mrb[0].mxu0 }
 0x2a0   :  { %v2431_v33 = vpop.f32.mrb[0].mxu1  ;;  %v8005_v10 = vadd.f32 %v1319_v21, %v15283_v37  ;;  %v1321_v19 = vpop.f32.mrb[1].mxu0  ;;  %v15289_v21 = vand.u32 4294901760, %v15282_v12 }
 0x2a1   :  { %v8009_v45 = vadd.f32 %v2431_v33, %v15284_v9  ;;  %v2433_v40 = vpop.f32.mrb[1].mxu1  ;;  %v8006_v26 = vadd.f32 %v1321_v19, %v15285_v13  ;;  %v11521_v19 = vpack.c.bf16 %v4489_v30, %v4477_v8 }
 0x2a2   :  { %v8010_v51 = vadd.f32 %v2433_v40, %v15286_v46  ;;  %v2444_v60 = vmax.f32 %v8005_v10, 0.0  ;;  %v3148_v33 = vsub.f32 %v15282_v12, %v15289_v21  ;;  %v3137_v40 = vand.u32 4294901760, %v3136_v39 }
 0x2a3   :  { %v2446_v22 = vmax.f32 %v8009_v45, 0.0  ;;  %v2445_v38 = vmax.f32 %v8006_v26, 0.0  ;;  %v1327_v57 = vpop.f32.mrb[2].mxu0  ;;  %15290 = vst [vmem:[#allocation78_spill] sm:$0xff] %v11521_v19  ;;  %v15291_v26 = vld [vmem:[#allocation188_spill] sm:$0xff]  ;;  %v15323_v19 = vld [vmem:[#allocation201_spill] sm:$0xff] }
 0x2a4   :  { %v2447_v34 = vmax.f32 %v8010_v51, 0.0  ;;  %v2439_v36 = vpop.f32.mrb[2].mxu1  ;;  %v8007_v35 = vadd.f32 %v1327_v57, %v15283_v37  ;;  %v1329_v10 = vpop.f32.mrb[3].mxu0  ;;  %v3149_v16 = vand.u32 4294901760, %v3148_v33  ;;  %v13932_v51 = vand.u32 4294901760, %v15291_v26  ;;  %v15297_v33 = vld [vmem:[#allocation191_spill] sm:$0xff] }
 0x2a5   :  { %v2452_v59 = vmax.f32 %v2444_v60, %v2446_v22  ;;  %v8011_v48 = vadd.f32 %v2439_v36, %v15284_v9  ;;  %v2441_v45 = vpop.f32.mrb[3].mxu1  ;;  %v8008_v23 = vadd.f32 %v1329_v10, %v15285_v13  ;;  %v15296_v13 = vld [vmem:[#allocation154_spill] sm:$0xff] }
 0x2a6   :  { %v2453_v3 = vmax.f32 %v2445_v38, %v2447_v34  ;;  %v8012_v21 = vadd.f32 %v2441_v45, %v15286_v46  ;;  %v2448_v8 = vmax.f32 %v8007_v35, 0.0  ;;  %v11530_v39 = vpack.c.bf16 %v3149_v16, %v3137_v40  ;;  %v15299_v40 = vld [vmem:[#allocation187_spill] sm:$0xff] }
 0x2a7   :  { %v11528_v12 = vand.u32 4294901760, %v2452_v59  ;;  %v2450_v30 = vmax.f32 %v8011_v48, 0.0  ;;  %v2449_v37 = vmax.f32 %v8008_v23, 0.0  ;;  %v4482_v38 = vsub.f32 %v15291_v26, %v13932_v51  ;;  %v15300_v23 = vld [vmem:[#allocation189_spill] sm:$0xff]  ;;  %v15383_v26 = vld [vmem:[#allocation227_spill] sm:$0xff] }
 0x2a8   :  { %15293 = vst [vmem:[#allocation197_spill] sm:$0xff] %v11530_v39  ;;  %v11532_v60 = vand.u32 4294901760, %v2453_v3  ;;  %v2451_v36 = vmax.f32 %v8012_v21, 0.0  ;;  %v13933_v34 = vand.u32 4294901760, %v15297_v33  ;;  %v15319_v39 = vld [vmem:[#allocation62_spill] sm:$0xff] }
 0x2a9   :  { %15292 = vst [vmem:[#allocation196_spill] sm:$0xff] %v11528_v12  ;;  %v11538_v22 = vsub.f32 %v2452_v59, %v11528_v12  ;;  %v2454_v46 = vmax.f32 %v2448_v8, %v2450_v30  ;;  %v4483_v59 = vand.u32 4294901760, %v4482_v38  ;;  %v15305_v30 = vand.u32 4294901760, %v15242_v29 }
 0x2aa   :  { %15294 = vst [vmem:[#allocation246_spill] sm:$0xff] %v11532_v60  ;;  %v11543_v35 = vsub.f32 %v2453_v3, %v11532_v60  ;;  %v2455_v57 = vmax.f32 %v2449_v37, %v2451_v36  ;;  %v4494_v21 = vsub.f32 %v15297_v33, %v13933_v34  ;;  %v15306_v36 = vand.u32 4294901760, %v15243_v50  ;;  %v15320_v33 = vld [vmem:[#allocation145_spill] sm:$0xff] }
 0x2ab   :  { %15295 = vst [vmem:[#allocation247_spill] sm:$0xff] %v11538_v22  ;;  %v11548_v45 = vand.u32 4294901760, %v11538_v22  ;;  %v11550_v16 = vand.u32 4294901760, %v2454_v46  ;;  %v4260_v37 = vsub.f32 %v15242_v29, %v15305_v30  ;;  %v15308_v34 = vand.u32 4294901760, %v15248_v55 }
 0x2ac   :  { %15298 = vst [vmem:[#allocation248_spill] sm:$0xff] %v11543_v35  ;;  %v11555_v8 = vand.u32 4294901760, %v2455_v57  ;;  %v11558_v3 = vand.u32 4294901760, %v11543_v35  ;;  %v4272_v51 = vsub.f32 %v15243_v50, %v15306_v36  ;;  %v4495_v9 = vand.u32 4294901760, %v4494_v21 }
 0x2ad   :  { %15301 = vst [vmem:[#allocation249_spill] sm:$0xff] %v11548_v45  ;;  %15302 = vst [vmem:[#allocation250_spill] sm:$0xff] %v11550_v16  ;;  %v11567_v10 = vsub.f32 %v2454_v46, %v11550_v16  ;;  %v2743_v38 = vsub.f32 %v11538_v22, %v11548_v45  ;;  %v2920_v48 = vsub.f32 %v15248_v55, %v15308_v34  ;;  %v15310_v29 = vand.u32 4294901760, %v15296_v13  ;;  %v15318_v16 = vld [vmem:[#allocation61_spill] sm:$0xff]  ;;  %v15321_v22 = vld [vmem:[#allocation64_spill] sm:$0xff] }
 0x2ae   :  { %15303 = vst [vmem:[#allocation251_spill] sm:$0xff] %v11555_v8  ;;  %15304 = vst [vmem:[#allocation252_spill] sm:$0xff] %v11558_v3  ;;  %v11575_v12 = vsub.f32 %v2455_v57, %v11555_v8  ;;  %v2737_v30 = vsub.f32 %v11543_v35, %v11558_v3  ;;  %v15311_v46 = vand.u32 4294901760, %v15299_v40  ;;  %v15313_v34 = vand.u32 4294901760, %v15300_v23  ;;  %v15314_v57 = vld [vmem:[#allocation190_spill] sm:$0xff] }
 0x2af   :  { %15307 = vst [vmem:[#allocation253_spill] sm:$0xff] %v11567_v10  ;;  %v2932_v36 = vsub.f32 %v15296_v13, %v15310_v29  ;;  %v11586_v45 = vand.u32 4294901760, %v11567_v10  ;;  %v11592_v55 = vpack.c.bf16 %v4495_v9, %v4483_v59  ;;  %v15317_v29 = vld [vmem:[#allocation59_spill] sm:$0xff]  ;;  %v2927_v59 = vand.u32 4294901760, %v11296_v15 }
 0x2b0   :  { %15309 = vst [vmem:[#allocation254_spill] sm:$0xff] %v11575_v12  ;;  %v4266_v50 = vsub.f32 %v15299_v40, %v15311_v46  ;;  %v4278_v21 = vsub.f32 %v15300_v23, %v15313_v34  ;;  %v2738_v3 = vand.u32 4294901760, %v2737_v30  ;;  %v11595_v35 = vand.u32 4294901760, %v11575_v12 }
 0x2b1   :  { %15312 = vst [vmem:[#allocation255_spill] sm:$0xff] %v11586_v45  ;;  %15315 = vst [vmem:[#allocation190_spill] sm:$0xff] %v11592_v55  ;;  %v2744_v46 = vand.u32 4294901760, %v2743_v38  ;;  %v2759_v40 = vsub.f32 %v11567_v10, %v11586_v45  ;;  %v4261_v30 = vand.u32 4294901760, %v4260_v37  ;;  %v13965_v13 = vand.u32 4294901760, %v15321_v22  ;;  %v15322_v10 = vld [vmem:[#allocation200_spill] sm:$0xff] }
 0x2b2   :  { %15316 = vst [vmem:[#allocation256_spill] sm:$0xff] %v11595_v35  ;;  %2739 = vmatprep.mubr.f32.mxu0 %v2738_v3  ;;  %4085 = vmatprep.mubr.f32.mxu1 %v2738_v3  ;;  %v2753_v9 = vsub.f32 %v11575_v12, %v11595_v35  ;;  %v4273_v38 = vand.u32 4294901760, %v4272_v51  ;;  %v2921_v8 = vand.u32 4294901760, %v2920_v48  ;;  %v2933_v23 = vand.u32 4294901760, %v2932_v36  ;;  %v15326_v51 = vld [vmem:[#allocation204_spill] sm:$0xff]  ;;  %v15327_v48 = vld [vmem:[#allocation205_spill] sm:$0xff] }
 0x2b3   :  { %2745 = vmatmul.mubr.f32.vlgmr.msra.gmra.mrb[4].mxu0 %v2744_v46  ;;  %4091 = vmatmul.mubr.f32.vlgmr.msra.gmra.mrb[4].mxu1 %v2744_v46  ;;  %v4267_v45 = vand.u32 4294901760, %v4266_v50  ;;  %v4279_v3 = vand.u32 4294901760, %v4278_v21  ;;  %v15324_v55 = vand.u32 4294901760, %v15314_v57  ;;  %v15325_v15 = vand.u32 4294901760, %v15317_v29 }
 0x2b4   :  { %7112 = vmatpush1.bf16.msra.mxu0 %v15322_v10  ;;  %7496 = vmatpush1.bf16.msra.mxu1 %v15323_v19  ;;  %v2754_v34 = vand.u32 4294901760, %v2753_v9  ;;  %v2760_v50 = vand.u32 4294901760, %v2759_v40  ;;  %v15328_v10 = vand.u32 4294901760, %v15318_v16  ;;  %v15329_v36 = vand.u32 4294901760, %v15319_v39  ;;  %v15331_v9 = vld [vmem:[#allocation65_spill] sm:$0xff] }
 0x2b5   :  { %v11612_v35 = vsub.f32 %v15314_v57, %v15324_v55  ;;  %v11617_v37 = vsub.f32 %v15317_v29, %v15325_v15  ;;  %7114 = vmatprep.subr.bf16.mxu0 %v15326_v51  ;;  %7498 = vmatprep.subr.bf16.mxu1 %v15327_v48  ;;  %v15330_v21 = vand.u32 4294901760, %v15320_v33  ;;  %v11639_v40 = vsub.f32 %v15321_v22, %v13965_v13  ;;  %v15332_v51 = vld [vmem:[#allocation66_spill] sm:$0xff]  ;;  %v15339_v48 = vld [vmem:[#allocation71_spill] sm:$0xff] }
 0x2b6   :  { %v11624_v19 = vsub.f32 %v15318_v16, %v15328_v10  ;;  %v11629_v55 = vsub.f32 %v15319_v39, %v15329_v36  ;;  %2755 = vmatprep.mubr.f32.mxu0 %v2754_v34  ;;  %4101 = vmatprep.mubr.f32.mxu1 %v2754_v34  ;;  %v15333_v10 = vld [vmem:[#allocation68_spill] sm:$0xff]  ;;  %v15334_v36 = vand.u32 4294901760, %v11244_v41  ;;  %v15336_v34 = vand.u32 4294901760, %v11259_v20  ;;  %v15340_v16 = vld [vmem:[#allocation207_spill] sm:$0xff] }
 0x2b7   :  { %v11634_v46 = vsub.f32 %v15320_v33, %v15330_v21  ;;  %2761 = vmatmul.mubr.f32.gmra.mrb[6].mxu0 %v2760_v50  ;;  %4107 = vmatmul.mubr.f32.gmra.mrb[6].mxu1 %v2760_v50  ;;  %v15335_v21 = vand.u32 4294901760, %v11254_v17  ;;  %v15337_v39 = vand.u32 4294901760, %v11277_v2  ;;  %v15338_v15 = vand.u32 4294901760, %v11287_v24  ;;  %v15341_v50 = vld [vmem:[#allocation209_spill] sm:$0xff] }
 0x2b8   :  { %v13968_v12 = vand.u32 4294901760, %v15339_v48  ;;  %7116 = vmatpush1.bf16.msra.mxu0 %v15340_v16  ;;  %7500 = vmatpush1.bf16.msra.mxu1 %v15341_v50  ;;  %v11663_v41 = vpack.c.bf16 %v4273_v38, %v4261_v30  ;;  %v11665_v17 = vpack.c.bf16 %v2933_v23, %v2921_v8  ;;  %v2939_v20 = vand.u32 4294901760, %v11612_v35  ;;  %v15343_v23 = vld [vmem:[#allocation213_spill] sm:$0xff] }
 0x2b9   :  { %v11648_v33 = vpack.c.bf16 %v15335_v21, %v15334_v36  ;;  %v11654_v13 = vpack.c.bf16 %v15337_v39, %v15336_v34  ;;  %v11658_v22 = vpack.c.bf16 %v2927_v59, %v15338_v15  ;;  %v11667_v36 = vpack.c.bf16 %v4279_v3, %v4267_v45  ;;  %3152 = vmatprep.mubr.f32.mxu0 %v11532_v60  ;;  %v15342_v59 = vld [vmem:[#allocation210_spill] sm:$0xff]  ;;  %v15347_v15 = vld [vmem:[#allocation217_spill] sm:$0xff] }
 0x2ba   :  { %4498 = vmatprep.mubr.f32.mxu1 %v11532_v60  ;;  %v2951_v2 = vand.u32 4294901760, %v11617_v37  ;;  %v4285_v24 = vand.u32 4294901760, %v11624_v19  ;;  %v4297_v39 = vand.u32 4294901760, %v11629_v55  ;;  %v2945_v16 = vand.u32 4294901760, %v11634_v46  ;;  %7118 = vmatprep.subr.bf16.mxu0 %v15342_v59  ;;  %v15348_v21 = vld [vmem:[#allocation221_spill] sm:$0xff] }
 0x2bb   :  { %7502 = vmatprep.subr.bf16.mxu1 %v15343_v23  ;;  %v2957_v45 = vand.u32 4294901760, %v11639_v40  ;;  %v15344_v35 = vand.u32 4294901760, %v15331_v9  ;;  %v15345_v30 = vand.u32 4294901760, %v15332_v51  ;;  %v15346_v3 = vand.u32 4294901760, %v15333_v10  ;;  %v15349_v34 = vld [vmem:[#allocation73_spill] sm:$0xff]  ;;  %v15382_v40 = vld [vmem:[#allocation226_spill] sm:$0xff] }
 0x2bc   :  { %v11693_v19 = vsub.f32 %v15339_v48, %v13968_v12  ;;  %7120 = vmatpush1.bf16.msra.mxu0 %v15347_v15  ;;  %7504 = vmatpush1.bf16.msra.mxu1 %v15348_v21  ;;  %v15375_v0 = vand.u32 4294901760, %v15349_v34  ;;  %v15377_v46 = vld [vmem:[#allocation193_spill] sm:$0xff] }
 0x2bd   :  { %v4290_v8 = vsub.f32 %v15331_v9, %v15344_v35  ;;  %v4302_v38 = vsub.f32 %v15332_v51, %v15345_v30  ;;  %v11688_v37 = vsub.f32 %v15333_v10, %v15346_v3  ;;  %7122 = vmatprep.subr.bf16.mxu0 %v11247_v5  ;;  %7506 = vmatprep.subr.bf16.mxu1 %v11249_v43  ;;  %v15350_v30 = vld [vmem:[#allocation74_spill] sm:$0xff]  ;;  %v15362_v35 = vld [vmem:[#allocation223_spill] sm:$0xff]  ;;  %v15369_v3 = vld [vmem:[#allocation224_spill] sm:$0xff] }
 0x2be   :  { %v4308_v55 = vsub.f32 %v15349_v34, %v15375_v0  ;;  %v15376_v50 = vand.u32 4294901760, %v15350_v30  ;;  %v7137_v43 = vpack.c.bf16 %v2951_v2, %v2939_v20  ;;  %v7521_v0 = vpack.c.bf16 %v4297_v39, %v4285_v24  ;;  %v15386_v15 = vld [vmem:[#allocation229_spill] sm:$0xff] }
 0x2bf   :  { %v4291_v5 = vand.u32 4294901760, %v4290_v8  ;;  %v4303_v60 = vand.u32 4294901760, %v4302_v38  ;;  %v15378_v38 = vld [vmem:[#allocation80_spill] sm:$0xff]  ;;  %v7139_v23 = vpack.c.bf16 %v2957_v45, %v2945_v16  ;;  %v2963_v59 = vand.u32 4294901760, %v11688_v37  ;;  %v15387_v8 = vld [vmem:[#allocation203_spill] sm:$0xff] }
 0x2c0   :  { %7124 = vmatpush1.bf16.msra.mxu0 %v15361_v56  ;;  %7508 = vmatpush1.bf16.msra.mxu1 %v15362_v35  ;;  %v15379_v56 = vld [vmem:[#allocation195_spill] sm:$0xff]  ;;  %v2975_v2 = vand.u32 4294901760, %v11693_v19  ;;  %v15388_v35 = vld [vmem:[#allocation206_spill] sm:$0xff]  ;;  %v15390_v39 = vand.u32 4294901760, %v15378_v38  ;;  %v15392_v37 = vand.u32 4294901760, %v15380_v31 }
 0x2c1   :  { %7126 = vmatprep.subr.bf16.mxu0 %v15369_v3  ;;  %7510 = vmatprep.subr.bf16.mxu1 %v15370_v7  ;;  %v4320_v3 = vsub.f32 %v15350_v30, %v15376_v50  ;;  %v15384_v50 = vld [vmem:[#allocation202_spill] sm:$0xff]  ;;  %v15385_v7 = vld [vmem:[#allocation228_spill] sm:$0xff]  ;;  %v7523_v20 = vpack.c.bf16 %v4303_v60, %v4291_v5  ;;  %v15391_v45 = vand.u32 4294901760, %v15379_v56 }
 0x2c2   :  { %v13987_v1 = vand.u32 4294901760, %v15384_v50  ;;  %v2980_v16 = vsub.f32 %v15378_v38, %v15390_v39  ;;  %v4326_v19 = vsub.f32 %v15380_v31, %v15392_v37  ;;  %v15394_v5 = vld [vmem:[#allocation208_spill] sm:$0xff]  ;;  %v7141_v63 = vpack.c.bf16 %v2975_v2, %v2963_v59 }
 0x2c3   :  { %v4321_v21 = vand.u32 4294901760, %v4320_v3  ;;  %v4314_v60 = vsub.f32 %v15379_v56, %v15391_v45  ;;  %v15396_v45 = vld [vmem:[#allocation212_spill] sm:$0xff]  ;;  %v15405_v2 = vand.u32 4294901760, %v15397_v44 }
 0x2c4   :  { %7128 = vmatpush1.bf16.msra.mxu0 %v15382_v40  ;;  %7512 = vmatpush1.bf16.msra.mxu1 %v15383_v26  ;;  %v4309_v40 = vand.u32 4294901760, %v4308_v55  ;;  %v15389_v26 = vand.u32 4294901760, %v15377_v46  ;;  %v2981_v37 = vand.u32 4294901760, %v2980_v16  ;;  %v15404_v59 = vand.u32 4294901760, %v15396_v45 }
 0x2c5   :  { %7130 = vmatprep.subr.bf16.mxu0 %v15385_v7  ;;  %7514 = vmatprep.subr.bf16.mxu1 %v15386_v15  ;;  %v15393_v15 = vand.u32 4294901760, %v15381_v14  ;;  %v2998_v7 = vsub.f32 %v15384_v50, %v13987_v1  ;;  %v13999_v1 = vand.u32 4294901760, %v15400_v11  ;;  %v4315_v6 = vand.u32 4294901760, %v4314_v60 }
 0x2c6   :  { %v2968_v24 = vsub.f32 %v15377_v46, %v15389_v26  ;;  %v15395_v26 = vld [vmem:[#allocation211_spill] sm:$0xff]  ;;  %v7525_v12 = vpack.c.bf16 %v4321_v21, %v4309_v40  ;;  %v4338_v21 = vsub.f32 %v15396_v45, %v15404_v59  ;;  %v4350_v40 = vsub.f32 %v15397_v44, %v15405_v2 }
 0x2c7   :  { %v2986_v55 = vsub.f32 %v15381_v14, %v15393_v15  ;;  %v15398_v15 = vand.u32 4294901760, %v15387_v8 }
 0x2c8   :  { %7132 = vmatpush1.bf16.msra.mxu0 %v11648_v33  ;;  %7516 = vmatpush1.bf16.msra.mxu1 %v11654_v13  ;;  %v15399_v13 = vand.u32 4294901760, %v15388_v35  ;;  %v2969_v27 = vand.u32 4294901760, %v2968_v24  ;;  %v4351_v59 = vand.u32 4294901760, %v4350_v40  ;;  %v15420_v40 = vld [vmem:[#allocation240_spill] sm:$0xff] }
 0x2c9   :  { %7134 = vmatprep.subr.bf16.mxu0 %v11658_v22  ;;  %7518 = vmatprep.subr.bf16.mxu1 %v11663_v41  ;;  %v4332_v33 = vsub.f32 %v15387_v8, %v15398_v15  ;;  %v4327_v22 = vand.u32 4294901760, %v4326_v19  ;;  %v2987_v47 = vand.u32 4294901760, %v2986_v55  ;;  %v15402_v41 = vand.u32 4294901760, %v15394_v5 }
 0x2ca   :  { %v4344_v3 = vsub.f32 %v15388_v35, %v15399_v13  ;;  %v2999_v15 = vand.u32 4294901760, %v2998_v7  ;;  %v15403_v13 = vand.u32 4294901760, %v15395_v26  ;;  %v7143_v19 = vpack.c.bf16 %v2981_v37, %v2969_v27  ;;  %v15415_v37 = vld [vmem:[#allocation235_spill] sm:$0xff] }
 0x2cb   :  { %v2992_v61 = vsub.f32 %v15394_v5, %v15402_v41  ;;  %v4333_v24 = vand.u32 4294901760, %v4332_v33  ;;  %v7527_v55 = vpack.c.bf16 %v4327_v22, %v4315_v6  ;;  %v15407_v6 = vld [vmem:[#allocation85_spill] sm:$0xff] }
 0x2cc   :  { %7136 = vmatpush1.bf16.msra.mxu0 %v11665_v17  ;;  %7520 = vmatpush1.bf16.msra.mxu1 %v11667_v36  ;;  %v3004_v39 = vsub.f32 %v15395_v26, %v15403_v13  ;;  %v4345_v16 = vand.u32 4294901760, %v4344_v3  ;;  %v3010_v17 = vsub.f32 %v15400_v11, %v13999_v1  ;;  %v15406_v36 = vand.u32 4294901760, %v15401_v25  ;;  %v15417_v22 = vld [vmem:[#allocation237_spill] sm:$0xff] }
 0x2cd   :  { %7138 = vmatprep.subr.bf16.mxu0 %v7137_v43  ;;  %7522 = vmatprep.subr.bf16.mxu1 %v7521_v0  ;;  %v2993_v7 = vand.u32 4294901760, %v2992_v61  ;;  %v4339_v13 = vand.u32 4294901760, %v4338_v21  ;;  %v7145_v43 = vpack.c.bf16 %v2999_v15, %v2987_v47  ;;  %v15408_v61 = vld [vmem:[#allocation214_spill] sm:$0xff]  ;;  %v15419_v21 = vld [vmem:[#allocation239_spill] sm:$0xff] }
 0x2ce   :  { %v3022_v60 = vsub.f32 %v15401_v25, %v15406_v36  ;;  %v3005_v41 = vand.u32 4294901760, %v3004_v39  ;;  %v7529_v0 = vpack.c.bf16 %v4345_v16, %v4333_v24  ;;  %v3011_v3 = vand.u32 4294901760, %v3010_v17  ;;  %v15410_v47 = vld [vmem:[#allocation230_spill] sm:$0xff]  ;;  %v15421_v24 = vld [vmem:[#allocation241_spill] sm:$0xff]  ;;  %v15423_v17 = vld [vmem:[#allocation243_spill] sm:$0xff] }
 0x2cf   :  { %v7531_v1 = vpack.c.bf16 %v4351_v59, %v4339_v13  ;;  %v15414_v39 = vld [vmem:[#allocation234_spill] sm:$0xff]  ;;  %v15424_v36 = vld [vmem:[#allocation244_spill] sm:$0xff] }
 0x2d0   :  { %7140 = vmatpush1.bf16.msra.mxu0 %v7139_v23  ;;  %7524 = vmatpush1.bf16.msra.mxu1 %v7523_v20  ;;  %v3023_v33 = vand.u32 4294901760, %v3022_v60  ;;  %v7147_v2 = vpack.c.bf16 %v3005_v41, %v2993_v7  ;;  %v15412_v23 = vld [vmem:[#allocation232_spill] sm:$0xff]  ;;  %v15413_v20 = vld [vmem:[#allocation233_spill] sm:$0xff]  ;;  %v15418_v15 = vld [vmem:[#allocation238_spill] sm:$0xff] }
 0x2d1   :  { %7142 = vmatprep.subr.bf16.mxu0 %v7141_v63  ;;  %7526 = vmatprep.subr.bf16.mxu1 %v7525_v12  ;;  %v15409_v63 = vld [vmem:[#allocation215_spill] sm:$0xff]  ;;  %v15422_v16 = vld [vmem:[#allocation242_spill] sm:$0xff]  ;;  %v15425_v60 = vld [vmem:[#allocation245_spill] sm:$0xff] }
 0x2d2   :  { %v7149_v27 = vpack.c.bf16 %v3023_v33, %v3011_v3  ;;  %v15411_v12 = vld [vmem:[#allocation231_spill] sm:$0xff]  ;;  %v15428_v7 = vld [vmem:[#allocation126_spill] sm:$0xff]  ;;  %v15429_v41 = vld [vmem:[#allocation128_spill] sm:$0xff] }
 0x2d3   :  { %v7173_v13 = vpack.c.bf16 %v15429_v41, %v15428_v7  ;;  %v15430_v59 = vld [vmem:[#allocation136_spill] sm:$0xff]  ;;  %v15432_v3 = vld [vmem:[#allocation197_spill] sm:$0xff]  ;;  %v15433_v33 = vld [vmem:[#allocation190_spill] sm:$0xff] }
 0x2d4   :  { %7144 = vmatpush1.bf16.msra.mxu0 %v7143_v19  ;;  %7528 = vmatpush1.bf16.msra.mxu1 %v7527_v55  ;;  %v15426_v19 = vld [vmem:[#allocation194_spill] sm:$0xff] }
 0x2d5   :  { %7146 = vmatprep.subr.bf16.mxu0 %v7145_v43  ;;  %7530 = vmatprep.subr.bf16.mxu1 %v7529_v0  ;;  %v15427_v55 = vld [vmem:[#allocation78_spill] sm:$0xff]  ;;  %v15431_v43 = vld [vmem:[#allocation56_spill] sm:$0xff] }
 0x2d6   :  { %v7557_v0 = vpack.c.bf16 %v15431_v43, %v15430_v59 }
 0x2d8   :  { %7148 = vmatpush1.bf16.msra.mxu0 %v7147_v2  ;;  %7532 = vmatpush1.bf16.msra.mxu1 %v7531_v1  ;;  %v15416_v1 = vld [vmem:[#allocation236_spill] sm:$0xff]  ;;  %v15434_v2 = vld [vmem:[#allocation149_spill] sm:$0xff] }
 0x2d9   :  { %7150 = vmatprep.subr.bf16.mxu0 %v7149_v27  ;;  %7534 = vmatprep.subr.bf16.mxu1 %v15407_v6  ;;  %v15435_v27 = vld [vmem:[#allocation131_spill] sm:$0xff] }
 0x2da   :  { %v7175_v6 = vpack.c.bf16 %v15435_v27, %v15434_v2 }
 0x2dc   :  { %7152 = vmatpush1.bf16.msra.mxu0 %v15408_v61  ;;  %7536 = vmatpush1.bf16.msra.mxu1 %v15409_v63  ;;  %v15436_v61 = vld [vmem:[#allocation76_spill] sm:$0xff]  ;;  %v15437_v63 = vld [vmem:[#allocation135_spill] sm:$0xff] }
 0x2dd   :  { %7154 = vmatprep.subr.bf16.mxu0 %v15410_v47  ;;  %7538 = vmatprep.subr.bf16.mxu1 %v15411_v12  ;;  %v7559_v47 = vpack.c.bf16 %v15437_v63, %v15436_v61  ;;  %v15438_v12 = vld [vmem:[#allocation121_spill] sm:$0xff] }
 0x2e0   :  { %7156 = vmatpush1.bf16.msra.mxu0 %v15412_v23  ;;  %7540 = vmatpush1.bf16.msra.mxu1 %v15413_v20  ;;  %v15439_v23 = vld [vmem:[#allocation148_spill] sm:$0xff] }
 0x2e1   :  { %7158 = vmatprep.subr.bf16.mxu0 %v15414_v39  ;;  %7542 = vmatprep.subr.bf16.mxu1 %v15415_v37  ;;  %v7177_v20 = vpack.c.bf16 %v15439_v23, %v15438_v12  ;;  %v15440_v39 = vld [vmem:[#allocation15_spill] sm:$0xff]  ;;  %v15441_v37 = vld [vmem:[#allocation21_spill] sm:$0xff] }
 0x2e4   :  { %7160 = vmatpush1.bf16.msra.mxu0 %v15416_v1  ;;  %7544 = vmatpush1.bf16.msra.mxu1 %v15417_v22  ;;  %v7561_v1 = vpack.c.bf16 %v15441_v37, %v15440_v39  ;;  %v15442_v22 = vld [vmem:[#allocation196_spill] sm:$0xff]  ;;  %v15467_v37 = vld [vmem:[#allocation22_spill] sm:$0xff] }
 0x2e5   :  { %7162 = vmatprep.subr.bf16.mxu0 %v15418_v15  ;;  %7546 = vmatprep.subr.bf16.mxu1 %v15419_v21  ;;  %v15443_v15 = vld [vmem:[#allocation251_spill] sm:$0xff]  ;;  %v15444_v21 = vld [vmem:[#allocation24_spill] sm:$0xff] }
 0x2e8   :  { %7164 = vmatpush1.bf16.msra.mxu0 %v15420_v40  ;;  %7548 = vmatpush1.bf16.msra.mxu1 %v15421_v24  ;;  %v15445_v40 = vld [vmem:[#allocation116_spill] sm:$0xff] }
 0x2e9   :  { %7166 = vmatprep.subr.bf16.mxu0 %v15422_v16  ;;  %7550 = vmatprep.subr.bf16.mxu1 %v15423_v17  ;;  %v7179_v24 = vpack.c.bf16 %v15445_v40, %v15444_v21  ;;  %v15446_v16 = vld [vmem:[#allocation137_spill] sm:$0xff]  ;;  %v15447_v17 = vld [vmem:[#allocation39_spill] sm:$0xff] }
 0x2ea   :  { %v15463_v40 = vld [vmem:[#allocation17_spill] sm:$0xff] }
 0x2ec   :  { %7168 = vmatpush1.bf16.msra.mxu0 %v15424_v36  ;;  %7552 = vmatpush1.bf16.msra.mxu1 %v15425_v60  ;;  %v7563_v36 = vpack.c.bf16 %v15447_v17, %v15446_v16  ;;  %v15448_v60 = vld [vmem:[#allocation42_spill] sm:$0xff] }
 0x2ed   :  { %7170 = vmatprep.subr.bf16.mxu0 %v15426_v19  ;;  %7554 = vmatprep.subr.bf16.mxu1 %v15427_v55  ;;  %v15449_v19 = vld [vmem:[#allocation48_spill] sm:$0xff] }
 0x2ee   :  { %v7181_v55 = vpack.c.bf16 %v15449_v19, %v15448_v60  ;;  %v15458_v19 = vld [vmem:[#allocation161_spill] sm:$0xff]  ;;  %v15459_v60 = vld [vmem:[#allocation163_spill] sm:$0xff] }
 0x2ef   :  { %v7185_v16 = vpack.c.bf16 %v15459_v60, %v15458_v19  ;;  %v15469_v60 = vld [vmem:[#allocation26_spill] sm:$0xff]  ;;  %v15471_v19 = vld [vmem:[#allocation27_spill] sm:$0xff] }
 0x2f0   :  { %7172 = vmatpush1.bf16.msra.mxu0 %v15432_v3  ;;  %7556 = vmatpush1.bf16.msra.mxu1 %v15433_v33  ;;  %v15452_v33 = vld [vmem:[#allocation250_spill] sm:$0xff] }
 0x2f1   :  { %7174 = vmatprep.subr.bf16.mxu0 %v7173_v13  ;;  %7558 = vmatprep.subr.bf16.mxu1 %v7557_v0  ;;  %v15450_v13 = vld [vmem:[#allocation51_spill] sm:$0xff]  ;;  %v15451_v0 = vld [vmem:[#allocation60_spill] sm:$0xff] }
 0x2f2   :  { %v7565_v3 = vpack.c.bf16 %v15451_v0, %v15450_v13  ;;  %v15460_v0 = vld [vmem:[#allocation164_spill] sm:$0xff]  ;;  %v15461_v13 = vld [vmem:[#allocation166_spill] sm:$0xff] }
 0x2f3   :  { %3154 = vmatmul.mubr.f32.vlgmr.msra.gmra.mrb[4].mxu0 %v15442_v22  ;;  %4500 = vmatmul.mubr.f32.vlgmr.msra.gmra.mrb[4].mxu1 %v15442_v22 }
 0x2f4   :  { %3160 = vmatprep.mubr.f32.mxu0 %v15443_v15  ;;  %7176 = vmatpush1.bf16.msra.mxu0 %v7175_v6  ;;  %v15453_v6 = vld [vmem:[#allocation248_spill] sm:$0xff] }
 0x2f5   :  { %4506 = vmatprep.mubr.f32.mxu1 %v15443_v15  ;;  %7560 = vmatpush1.bf16.msra.mxu1 %v7559_v47  ;;  %v15454_v15 = vld [vmem:[#allocation67_spill] sm:$0xff]  ;;  %v15455_v47 = vld [vmem:[#allocation156_spill] sm:$0xff] }
 0x2f6   :  { %7178 = vmatprep.subr.bf16.mxu0 %v7177_v20  ;;  %7562 = vmatprep.subr.bf16.mxu1 %v7561_v1  ;;  %v7183_v22 = vpack.c.bf16 %v15455_v47, %v15454_v15  ;;  %v15456_v20 = vld [vmem:[#allocation157_spill] sm:$0xff]  ;;  %v15457_v1 = vld [vmem:[#allocation160_spill] sm:$0xff] }
 0x2f7   :  { %3162 = vmatmul.mubr.f32.gmra.mrb[6].mxu0 %v15452_v33  ;;  %4508 = vmatmul.mubr.f32.gmra.mrb[6].mxu1 %v15452_v33  ;;  %v7567_v17 = vpack.c.bf16 %v15457_v1, %v15456_v20  ;;  %v7569_v33 = vpack.c.bf16 %v15461_v13, %v15460_v0  ;;  %v15465_v47 = vld [vmem:[#allocation20_spill] sm:$0xff]  ;;  %v15468_v20 = vld [vmem:[#allocation25_spill] sm:$0xff] }
 0x2f8   :  { %7180 = vmatpush1.bf16.msra.mxu0 %v7179_v24  ;;  %3362 = vmatprep.mubr.f32.mxu0 %v15453_v6  ;;  %v15462_v24 = vld [vmem:[#allocation16_spill] sm:$0xff] }
 0x2f9   :  { %7564 = vmatpush1.bf16.msra.mxu1 %v7563_v36  ;;  %4708 = vmatprep.mubr.f32.mxu1 %v15453_v6  ;;  %v7187_v21 = vpack.c.bf16 %v15463_v40, %v15462_v24  ;;  %v15464_v36 = vld [vmem:[#allocation18_spill] sm:$0xff]  ;;  %v15466_v15 = vld [vmem:[#allocation172_spill] sm:$0xff] }
 0x2fa   :  { %7182 = vmatprep.subr.bf16.mxu0 %v7181_v55  ;;  %7566 = vmatprep.subr.bf16.mxu1 %v7565_v3  ;;  %v7571_v6 = vpack.c.bf16 %v15465_v47, %v15464_v36  ;;  %v7189_v1 = vpack.c.bf16 %v15467_v37, %v15466_v15  ;;  %v7573_v55 = vpack.c.bf16 %v15469_v60, %v15468_v20  ;;  %v15470_v3 = vld [vmem:[#allocation175_spill] sm:$0xff]  ;;  %v15473_v40 = vld [vmem:[#allocation32_spill] sm:$0xff]  ;;  %v15475_v24 = vld [vmem:[#allocation38_spill] sm:$0xff] }
 0x2fb   :  { %v7191_v13 = vpack.c.bf16 %v15471_v19, %v15470_v3  ;;  %v15476_v47 = vld [vmem:[#allocation40_spill] sm:$0xff]  ;;  %v15477_v36 = vld [vmem:[#allocation41_spill] sm:$0xff]  ;;  %v15481_v19 = vld [vmem:[#allocation43_spill] sm:$0xff] }
 0x2fc   :  { %7184 = vmatpush1.bf16.msra.mxu0 %v7183_v22  ;;  %v15472_v22 = vld [vmem:[#allocation29_spill] sm:$0xff]  ;;  %v7577_v37 = vpack.c.bf16 %v15477_v36, %v15476_v47  ;;  %v15479_v15 = vld [vmem:[#allocation180_spill] sm:$0xff]  ;;  %v15483_v3 = vld [vmem:[#allocation46_spill] sm:$0xff] }
 0x2fd   :  { %7568 = vmatpush1.bf16.msra.mxu1 %v7567_v17  ;;  %7186 = vmatprep.subr.bf16.mxu0 %v7185_v16  ;;  %v7575_v17 = vpack.c.bf16 %v15473_v40, %v15472_v22  ;;  %v15474_v16 = vld [vmem:[#allocation36_spill] sm:$0xff]  ;;  %v15484_v40 = vld [vmem:[#allocation50_spill] sm:$0xff] }
 0x2fe   :  { %7570 = vmatprep.subr.bf16.mxu1 %v7569_v33  ;;  %v7193_v0 = vpack.c.bf16 %v15475_v24, %v15474_v16  ;;  %v15478_v33 = vld [vmem:[#allocation179_spill] sm:$0xff]  ;;  %v15485_v22 = vld [vmem:[#allocation122_spill] sm:$0xff] }
 0x2ff   :  { %v7195_v60 = vpack.c.bf16 %v15479_v15, %v15478_v33  ;;  %v7581_v24 = vpack.c.bf16 %v15485_v22, %v15484_v40  ;;  %v15487_v16 = vld [vmem:[#allocation154_spill] sm:$0xff]  ;;  %v15489_v15 = vld [vmem:[#allocation189_spill] sm:$0xff] }
 0x300   :  { %7188 = vmatpush1.bf16.msra.mxu0 %v7187_v21  ;;  %v15480_v21 = vld [vmem:[#allocation153_spill] sm:$0xff] }
 0x301   :  { %7572 = vmatpush1.bf16.msra.mxu1 %v7571_v6  ;;  %7190 = vmatprep.subr.bf16.mxu0 %v7189_v1  ;;  %v7579_v6 = vpack.c.bf16 %v15481_v19, %v15480_v21  ;;  %v15482_v1 = vld [vmem:[#allocation44_spill] sm:$0xff]  ;;  %v15490_v19 = vld [vmem:[#allocation61_spill] sm:$0xff]  ;;  %v15491_v21 = vld [vmem:[#allocation62_spill] sm:$0xff] }
 0x302   :  { %7574 = vmatprep.subr.bf16.mxu1 %v7573_v55  ;;  %v7197_v20 = vpack.c.bf16 %v15483_v3, %v15482_v1  ;;  %v15486_v55 = vld [vmem:[#allocation183_spill] sm:$0xff]  ;;  %v7585_v3 = vpack.c.bf16 %v15491_v21, %v15490_v19  ;;  %v15493_v1 = vld [vmem:[#allocation64_spill] sm:$0xff] }
 0x303   :  { %v7199_v36 = vpack.c.bf16 %v15487_v16, %v15486_v55 }
 0x304   :  { %7192 = vmatpush1.bf16.msra.mxu0 %v7191_v13  ;;  %v15488_v13 = vld [vmem:[#allocation187_spill] sm:$0xff] }
 0x305   :  { %7576 = vmatpush1.bf16.msra.mxu1 %v7575_v17  ;;  %7194 = vmatprep.subr.bf16.mxu0 %v7193_v0  ;;  %v7583_v17 = vpack.c.bf16 %v15489_v15, %v15488_v13  ;;  %v7201_v0 = vpack.c.bf16 %v15317_v29, %v15314_v57 }
 0x306   :  { %7578 = vmatprep.subr.bf16.mxu1 %v7577_v37  ;;  %v15492_v37 = vld [vmem:[#allocation145_spill] sm:$0xff] }
 0x307   :  { %v7203_v22 = vpack.c.bf16 %v15493_v1, %v15492_v37 }
 0x308   :  { %7196 = vmatpush1.bf16.msra.mxu0 %v7195_v60  ;;  %v7587_v60 = vpack.c.bf16 %v15332_v51, %v15331_v9 }
 0x309   :  { %7580 = vmatpush1.bf16.msra.mxu1 %v7579_v6  ;;  %7198 = vmatprep.subr.bf16.mxu0 %v7197_v20  ;;  %v7205_v20 = vpack.c.bf16 %v15339_v48, %v15333_v10  ;;  %v7589_v6 = vpack.c.bf16 %v15350_v30, %v15349_v34 }
 0x30a   :  { %7582 = vmatprep.subr.bf16.mxu1 %v7581_v24  ;;  %v7207_v24 = vpack.c.bf16 %v15378_v38, %v15377_v46 }
 0x30c   :  { %7200 = vmatpush1.bf16.msra.mxu0 %v7199_v36  ;;  %v7591_v36 = vpack.c.bf16 %v15380_v31, %v15379_v56 }
 0x30d   :  { %7584 = vmatpush1.bf16.msra.mxu1 %v7583_v17  ;;  %7202 = vmatprep.subr.bf16.mxu0 %v7201_v0  ;;  %v7209_v17 = vpack.c.bf16 %v15384_v50, %v15381_v14  ;;  %v7593_v0 = vpack.c.bf16 %v15388_v35, %v15387_v8 }
 0x30e   :  { %7586 = vmatprep.subr.bf16.mxu1 %v7585_v3  ;;  %v7211_v3 = vpack.c.bf16 %v15395_v26, %v15394_v5 }
 0x310   :  { %7204 = vmatpush1.bf16.msra.mxu0 %v7203_v22  ;;  %v7595_v22 = vpack.c.bf16 %v15397_v44, %v15396_v45 }
 0x311   :  { %7588 = vmatpush1.bf16.msra.mxu1 %v7587_v60  ;;  %7206 = vmatprep.subr.bf16.mxu0 %v7205_v20  ;;  %v7213_v60 = vpack.c.bf16 %v15401_v25, %v15400_v11  ;;  %v15494_v20 = vpack.c.bf16 %v15241_v53, %v15240_v32 }
 0x312   :  { %7590 = vmatprep.subr.bf16.mxu1 %v7589_v6  ;;  %v15495_v6 = vpack.c.bf16 %v15245_v52, %v15244_v54  ;;  %v15505_v52 = vld [vmem:[#allocation34_spill] sm:$0xff] }
 0x314   :  { %7208 = vmatpush1.bf16.msra.mxu0 %v7207_v24  ;;  %v15496_v24 = vpack.c.bf16 %v15247_v62, %v15246_v28  ;;  %v15508_v28 = vld [vmem:[#allocation151_spill] sm:$0xff] }
 0x315   :  { %7592 = vmatpush1.bf16.msra.mxu1 %v7591_v36  ;;  %7210 = vmatprep.subr.bf16.mxu0 %v7209_v17  ;;  %v15497_v36 = vpack.c.bf16 %v15251_v4, %v15249_v49  ;;  %v15498_v17 = vpack.c.bf16 %v15253_v42, %v15252_v58  ;;  %v15511_v49 = vld [vmem:[#allocation54_spill] sm:$0xff]  ;;  %v15514_v58 = vld [vmem:[#allocation63_spill] sm:$0xff] }
 0x316   :  { %7594 = vmatprep.subr.bf16.mxu1 %v7593_v0  ;;  %v15499_v0 = vld [vmem:[#allocation220_spill] sm:$0xff] }
 0x318   :  { %7212 = vmatpush1.bf16.msra.mxu0 %v7211_v3  ;;  %v15500_v3 = vpack.c.bf16 %v15257_v18, %v15499_v0  ;;  %v15517_v0 = vld [vmem:[#allocation158_spill] sm:$0xff] }
 0x319   :  { %7596 = vmatpush1.bf16.msra.mxu1 %v7595_v22  ;;  %7214 = vmatprep.subr.bf16.mxu0 %v7213_v60  ;;  %v15501_v22 = vld [vmem:[#allocation95_spill] sm:$0xff]  ;;  %v15502_v60 = vld [vmem:[#allocation94_spill] sm:$0xff] }
 0x31a   :  { %7598 = vmatprep.subr.bf16.mxu1 %v15494_v20  ;;  %v15503_v20 = vpack.c.bf16 %v15501_v22, %v15502_v60  ;;  %v15520_v60 = vld [vmem:[#allocation162_spill] sm:$0xff] }
 0x31c   :  { %7216 = vmatpush1.bf16.msra.mxu0 %v15495_v6  ;;  %v15504_v6 = vld [vmem:[#allocation37_spill] sm:$0xff] }
 0x31d   :  { %7600 = vmatpush1.bf16.msra.mxu1 %v15496_v24  ;;  %7218 = vmatprep.subr.bf16.mxu0 %v15497_v36  ;;  %v15506_v62 = vpack.c.bf16 %v15504_v6, %v15505_v52  ;;  %v15507_v24 = vld [vmem:[#allocation45_spill] sm:$0xff]  ;;  %v15510_v36 = vld [vmem:[#allocation58_spill] sm:$0xff]  ;;  %v15523_v52 = vld [vmem:[#allocation167_spill] sm:$0xff] }
 0x31e   :  { %7602 = vmatprep.subr.bf16.mxu1 %v15498_v17  ;;  %v15509_v4 = vpack.c.bf16 %v15507_v24, %v15508_v28  ;;  %v15512_v42 = vpack.c.bf16 %v15510_v36, %v15511_v49  ;;  %v15513_v17 = vld [vmem:[#allocation69_spill] sm:$0xff]  ;;  %v15529_v49 = vld [vmem:[#allocation171_spill] sm:$0xff] }
 0x31f   :  { %v15515_v18 = vpack.c.bf16 %v15513_v17, %v15514_v58  ;;  %v15526_v28 = vld [vmem:[#allocation169_spill] sm:$0xff]  ;;  %v15532_v58 = vld [vmem:[#allocation23_spill] sm:$0xff] }
 0x320   :  { %7220 = vmatpush1.bf16.msra.mxu0 %v15500_v3  ;;  %v15516_v3 = vld [vmem:[#allocation159_spill] sm:$0xff] }
 0x321   :  { %7604 = vmatpush1.bf16.msra.mxu1 %v15503_v20  ;;  %7222 = vmatprep.subr.bf16.mxu0 %v15506_v62  ;;  %v15518_v22 = vpack.c.bf16 %v15516_v3, %v15517_v0  ;;  %v15519_v20 = vld [vmem:[#allocation165_spill] sm:$0xff]  ;;  %v15522_v62 = vld [vmem:[#allocation168_spill] sm:$0xff] }
 0x322   :  { %7606 = vmatprep.subr.bf16.mxu1 %v15509_v4  ;;  %v15521_v6 = vpack.c.bf16 %v15519_v20, %v15520_v60  ;;  %v15524_v24 = vpack.c.bf16 %v15522_v62, %v15523_v52  ;;  %v15525_v4 = vld [vmem:[#allocation170_spill] sm:$0xff]  ;;  %v15535_v0 = vld [vmem:[#allocation176_spill] sm:$0xff]  ;;  %v15541_v52 = vld [vmem:[#allocation33_spill] sm:$0xff] }
 0x323   :  { %v15527_v36 = vpack.c.bf16 %v15525_v4, %v15526_v28  ;;  %v15538_v60 = vld [vmem:[#allocation178_spill] sm:$0xff] }
 0x324   :  { %7224 = vmatpush1.bf16.msra.mxu0 %v15512_v42  ;;  %v15528_v42 = vld [vmem:[#allocation173_spill] sm:$0xff]  ;;  %v15544_v28 = vld [vmem:[#allocation182_spill] sm:$0xff] }
 0x325   :  { %7608 = vmatpush1.bf16.msra.mxu1 %v15515_v18  ;;  %7226 = vmatprep.subr.bf16.mxu0 %v15518_v22  ;;  %v15530_v17 = vpack.c.bf16 %v15528_v42, %v15529_v49  ;;  %v15531_v18 = vld [vmem:[#allocation174_spill] sm:$0xff]  ;;  %v15534_v22 = vld [vmem:[#allocation177_spill] sm:$0xff]  ;;  %v15547_v49 = vld [vmem:[#allocation184_spill] sm:$0xff] }
 0x326   :  { %7610 = vmatprep.subr.bf16.mxu1 %v15521_v6  ;;  %v15533_v3 = vpack.c.bf16 %v15531_v18, %v15532_v58  ;;  %v15536_v20 = vpack.c.bf16 %v15534_v22, %v15535_v0  ;;  %v15537_v6 = vld [vmem:[#allocation31_spill] sm:$0xff]  ;;  %v15550_v58 = vld [vmem:[#allocation188_spill] sm:$0xff] }
 0x327   :  { %v15539_v62 = vpack.c.bf16 %v15537_v6, %v15538_v60  ;;  %v15553_v6 = vld [vmem:[#allocation98_spill] sm:$0xff] }
 0x328   :  { %7228 = vmatpush1.bf16.msra.mxu0 %v15524_v24  ;;  %v15540_v24 = vld [vmem:[#allocation35_spill] sm:$0xff] }
 0x329   :  { %7612 = vmatpush1.bf16.msra.mxu1 %v15527_v36  ;;  %7230 = vmatprep.subr.bf16.mxu0 %v15530_v17  ;;  %v15542_v4 = vpack.c.bf16 %v15540_v24, %v15541_v52  ;;  %v15543_v36 = vld [vmem:[#allocation47_spill] sm:$0xff]  ;;  %v15546_v17 = vld [vmem:[#allocation185_spill] sm:$0xff] }
 0x32a   :  { %7614 = vmatprep.subr.bf16.mxu1 %v15533_v3  ;;  %v15545_v42 = vpack.c.bf16 %v15543_v36, %v15544_v28  ;;  %v15548_v18 = vpack.c.bf16 %v15546_v17, %v15547_v49  ;;  %v15549_v3 = vld [vmem:[#allocation191_spill] sm:$0xff]  ;;  %v15556_v36 = vld [vmem:[#allocation100_spill] sm:$0xff]  ;;  %v15622_v49 = vld [vmem:[#allocation49_spill] sm:$0xff] }
 0x32b   :  { %v15551_v22 = vpack.c.bf16 %v15549_v3, %v15550_v58  ;;  %v15559_v3 = vld [vmem:[#allocation253_spill] sm:$0xff]  ;;  %v15568_v58 = vld [vmem:[#allocation79_spill] sm:$0xff] }
 0x32c   :  { %7232 = vmatpush1.bf16.msra.mxu0 %v15536_v20  ;;  %v15552_v20 = vld [vmem:[#allocation97_spill] sm:$0xff]  ;;  %v15571_v17 = vld [vmem:[#allocation87_spill] sm:$0xff] }
 0x32d   :  { %7616 = vmatpush1.bf16.msra.mxu1 %v15539_v62  ;;  %7234 = vmatprep.subr.bf16.mxu0 %v15542_v4  ;;  %v15554_v62 = vld [vmem:[#allocation247_spill] sm:$0xff]  ;;  %v15555_v4 = vld [vmem:[#allocation254_spill] sm:$0xff] }
 0x32e   :  { %7618 = vmatprep.subr.bf16.mxu1 %v15545_v42  ;;  %v15557_v42 = vld [vmem:[#allocation101_spill] sm:$0xff] }
 0x330   :  { %7236 = vmatpush1.bf16.msra.mxu0 %v15548_v18  ;;  %v15558_v18 = vld [vmem:[#allocation102_spill] sm:$0xff] }
 0x331   :  { %7620 = vmatpush1.bf16.msra.mxu1 %v15551_v22  ;;  %7238 = vmatprep.subr.bf16.mxu0 %v15552_v20  ;;  %v15560_v22 = vld [vmem:[#allocation104_spill] sm:$0xff]  ;;  %v15562_v20 = vld [vmem:[#allocation106_spill] sm:$0xff] }
 0x332   :  { %7622 = vmatprep.subr.bf16.mxu1 %v15553_v6  ;;  %v15561_v6 = vld [vmem:[#allocation252_spill] sm:$0xff] }
 0x333   :  { %3365 = vmatmul.mubr.f32.vlgmr.msra.gmra.mrb[4].mxu0 %v15554_v62 }
 0x334   :  { %4711 = vmatmul.mubr.f32.vlgmr.msra.gmra.mrb[4].mxu1 %v15554_v62  ;;  %3372 = vmatprep.mubr.f32.mxu0 %v15555_v4  ;;  %v15563_v62 = vld [vmem:[#allocation150_spill] sm:$0xff] }
 0x335   :  { %7240 = vmatpush1.bf16.msra.mxu0 %v15556_v36  ;;  %4718 = vmatprep.mubr.f32.mxu1 %v15555_v4  ;;  %v15564_v36 = vld [vmem:[#allocation146_spill] sm:$0xff] }
 0x336   :  { %7624 = vmatpush1.bf16.msra.mxu1 %v15557_v42  ;;  %7242 = vmatprep.subr.bf16.mxu0 %v15558_v18  ;;  %v15565_v4 = vld [vmem:[#allocation118_spill] sm:$0xff]  ;;  %v15566_v42 = vld [vmem:[#allocation72_spill] sm:$0xff]  ;;  %v15567_v18 = vld [vmem:[#allocation75_spill] sm:$0xff] }
 0x337   :  { %3375 = vmatmul.mubr.f32.gmra.mrb[6].mxu0 %v15559_v3  ;;  %7626 = vmatprep.subr.bf16.mxu1 %v15560_v22  ;;  %v15569_v22 = vld [vmem:[#allocation81_spill] sm:$0xff] }
 0x338   :  { %4721 = vmatmul.mubr.f32.gmra.mrb[6].mxu1 %v15559_v3  ;;  %3512 = vmatprep.mubr.f32.mxu0 %v15561_v6  ;;  %v15570_v3 = vld [vmem:[#allocation84_spill] sm:$0xff] }
 0x339   :  { %7244 = vmatpush1.bf16.msra.mxu0 %v15562_v20  ;;  %4858 = vmatprep.mubr.f32.mxu1 %v15561_v6  ;;  %v15572_v20 = vld [vmem:[#allocation91_spill] sm:$0xff]  ;;  %v15573_v6 = vld [vmem:[#allocation93_spill] sm:$0xff] }
 0x33a   :  { %7628 = vmatpush1.bf16.msra.mxu1 %v15563_v62  ;;  %7246 = vmatprep.subr.bf16.mxu0 %v15564_v36  ;;  %v15574_v62 = vld [vmem:[#allocation96_spill] sm:$0xff]  ;;  %v15575_v36 = vld [vmem:[#allocation99_spill] sm:$0xff] }
 0x33b   :  { %7630 = vmatprep.subr.bf16.mxu1 %v15565_v4  ;;  %v15576_v4 = vld [vmem:[#allocation103_spill] sm:$0xff] }
 0x33d   :  { %7248 = vmatpush1.bf16.msra.mxu0 %v15566_v42  ;;  %v15577_v42 = vld [vmem:[#allocation105_spill] sm:$0xff] }
 0x33e   :  { %7632 = vmatpush1.bf16.msra.mxu1 %v15567_v18  ;;  %7250 = vmatprep.subr.bf16.mxu0 %v15568_v58  ;;  %v15578_v18 = vld [vmem:[#allocation108_spill] sm:$0xff]  ;;  %v15579_v58 = vld [vmem:[#allocation111_spill] sm:$0xff] }
 0x33f   :  { %7634 = vmatprep.subr.bf16.mxu1 %v15569_v22  ;;  %v15580_v22 = vld [vmem:[#allocation115_spill] sm:$0xff] }
 0x341   :  { %7252 = vmatpush1.bf16.msra.mxu0 %v15570_v3  ;;  %v15581_v3 = vld [vmem:[#allocation117_spill] sm:$0xff] }
 0x342   :  { %7636 = vmatpush1.bf16.msra.mxu1 %v15571_v17  ;;  %7254 = vmatprep.subr.bf16.mxu0 %v15572_v20  ;;  %v15582_v17 = vld [vmem:[#allocation120_spill] sm:$0xff]  ;;  %v15583_v20 = vld [vmem:[#allocation123_spill] sm:$0xff] }
 0x343   :  { %7638 = vmatprep.subr.bf16.mxu1 %v15573_v6  ;;  %v15584_v6 = vld [vmem:[#allocation127_spill] sm:$0xff] }
 0x345   :  { %7256 = vmatpush1.bf16.msra.mxu0 %v15574_v62  ;;  %v15585_v62 = vld [vmem:[#allocation129_spill] sm:$0xff] }
 0x346   :  { %7640 = vmatpush1.bf16.msra.mxu1 %v15575_v36  ;;  %7258 = vmatprep.subr.bf16.mxu0 %v15576_v4  ;;  %v15586_v36 = vld [vmem:[#allocation130_spill] sm:$0xff]  ;;  %v15587_v4 = vld [vmem:[#allocation133_spill] sm:$0xff] }
 0x347   :  { %7642 = vmatprep.subr.bf16.mxu1 %v15577_v42  ;;  %v15588_v42 = vld [vmem:[#allocation138_spill] sm:$0xff] }
 0x349   :  { %7260 = vmatpush1.bf16.msra.mxu0 %v15578_v18  ;;  %v15589_v18 = vld [vmem:[#allocation139_spill] sm:$0xff] }
 0x34a   :  { %7644 = vmatpush1.bf16.msra.mxu1 %v15579_v58  ;;  %7262 = vmatprep.subr.bf16.mxu0 %v15580_v22  ;;  %v15590_v58 = vld [vmem:[#allocation140_spill] sm:$0xff]  ;;  %v15591_v22 = vld [vmem:[#allocation141_spill] sm:$0xff] }
 0x34b   :  { %7646 = vmatprep.subr.bf16.mxu1 %v15581_v3  ;;  %v15592_v3 = vld [vmem:[#allocation142_spill] sm:$0xff] }
 0x34d   :  { %7264 = vmatpush1.bf16.msra.mxu0 %v15582_v17  ;;  %v15593_v17 = vld [vmem:[#allocation107_spill] sm:$0xff] }
 0x34e   :  { %7648 = vmatpush1.bf16.msra.mxu1 %v15583_v20  ;;  %7266 = vmatprep.subr.bf16.mxu0 %v15584_v6  ;;  %v15594_v20 = vld [vmem:[#allocation109_spill] sm:$0xff]  ;;  %v15595_v6 = vld [vmem:[#allocation110_spill] sm:$0xff] }
 0x34f   :  { %7650 = vmatprep.subr.bf16.mxu1 %v15585_v62  ;;  %v15596_v62 = vld [vmem:[#allocation112_spill] sm:$0xff] }
 0x351   :  { %7268 = vmatpush1.bf16.msra.mxu0 %v15586_v36  ;;  %v15597_v36 = vld [vmem:[#allocation143_spill] sm:$0xff] }
 0x352   :  { %7652 = vmatpush1.bf16.msra.mxu1 %v15587_v4  ;;  %7270 = vmatprep.subr.bf16.mxu0 %v15588_v42  ;;  %v15598_v4 = vld [vmem:[#allocation144_spill] sm:$0xff]  ;;  %v15599_v42 = vld [vmem:[#allocation113_spill] sm:$0xff] }
 0x353   :  { %7654 = vmatprep.subr.bf16.mxu1 %v15589_v18  ;;  %v15600_v18 = vld [vmem:[#allocation114_spill] sm:$0xff] }
 0x355   :  { %7272 = vmatpush1.bf16.msra.mxu0 %v15590_v58  ;;  %v15601_v58 = vld [vmem:[#allocation119_spill] sm:$0xff] }
 0x356   :  { %7656 = vmatpush1.bf16.msra.mxu1 %v15591_v22  ;;  %7274 = vmatprep.subr.bf16.mxu0 %v15592_v3  ;;  %v15602_v22 = vld [vmem:[#allocation124_spill] sm:$0xff]  ;;  %v15603_v3 = vld [vmem:[#allocation125_spill] sm:$0xff] }
 0x357   :  { %7658 = vmatprep.subr.bf16.mxu1 %v15593_v17  ;;  %v15604_v17 = vld [vmem:[#allocation52_spill] sm:$0xff] }
 0x359   :  { %7276 = vmatpush1.bf16.msra.mxu0 %v15594_v20  ;;  %v15605_v20 = vld [vmem:[#allocation53_spill] sm:$0xff] }
 0x35a   :  { %7660 = vmatpush1.bf16.msra.mxu1 %v15595_v6  ;;  %7278 = vmatprep.subr.bf16.mxu0 %v15596_v62  ;;  %v15606_v6 = vld [vmem:[#allocation55_spill] sm:$0xff]  ;;  %v15607_v62 = vld [vmem:[#allocation57_spill] sm:$0xff] }
 0x35b   :  { %7662 = vmatprep.subr.bf16.mxu1 %v15597_v36  ;;  %v15608_v36 = vld [vmem:[#allocation132_spill] sm:$0xff] }
 0x35d   :  { %7280 = vmatpush1.bf16.msra.mxu0 %v15598_v4  ;;  %v15609_v4 = vld [vmem:[#allocation77_spill] sm:$0xff] }
 0x35e   :  { %7664 = vmatpush1.bf16.msra.mxu1 %v15599_v42  ;;  %7282 = vmatprep.subr.bf16.mxu0 %v15600_v18  ;;  %v15610_v42 = vld [vmem:[#allocation134_spill] sm:$0xff]  ;;  %v15611_v18 = vld [vmem:[#allocation147_spill] sm:$0xff] }
 0x35f   :  { %7666 = vmatprep.subr.bf16.mxu1 %v15601_v58  ;;  %v15612_v58 = vld [vmem:[#allocation19_spill] sm:$0xff] }
 0x361   :  { %7284 = vmatpush1.bf16.msra.mxu0 %v15602_v22  ;;  %v15613_v22 = vld [vmem:[#allocation152_spill] sm:$0xff] }
 0x362   :  { %7668 = vmatpush1.bf16.msra.mxu1 %v15603_v3  ;;  %7286 = vmatprep.subr.bf16.mxu0 %v15604_v17  ;;  %v15614_v3 = vld [vmem:[#allocation28_spill] sm:$0xff]  ;;  %v15615_v17 = vld [vmem:[#allocation30_spill] sm:$0xff] }
 0x363   :  { %7670 = vmatprep.subr.bf16.mxu1 %v15605_v20  ;;  %v15616_v20 = vld [vmem:[#allocation155_spill] sm:$0xff] }
 0x365   :  { %7288 = vmatpush1.bf16.msra.mxu0 %v15606_v6 }
 0x366   :  { %7672 = vmatpush1.bf16.msra.mxu1 %v15607_v62  ;;  %7290 = vmatprep.subr.bf16.mxu0 %v15608_v36  ;;  %v15617_v62 = vand.u32 4294901760, %v15428_v7  ;;  %v15618_v36 = vand.u32 4294901760, %v15429_v41  ;;  %v15626_v41 = vand.u32 4294901760, %v15436_v61 }
 0x367   :  { %7674 = vmatprep.subr.bf16.mxu1 %v15609_v4  ;;  %v15619_v4 = vld [vmem:[#allocation181_spill] sm:$0xff] }
 0x368   :  { %v7301_v6 = vpack.c.bf16 %v15618_v36, %v15617_v62  ;;  %v15627_v36 = vand.u32 4294901760, %v15437_v63  ;;  %v15637_v63 = vld [vmem:[#allocation116_spill] sm:$0xff] }
 0x369   :  { %7292 = vmatpush1.bf16.msra.mxu0 %v15610_v42  ;;  %v15620_v42 = vand.u32 4294901760, %v15430_v59  ;;  %v15628_v59 = vand.u32 4294901760, %v15438_v12  ;;  %v15638_v12 = vand.u32 4294901760, %v15637_v63 }
 0x36a   :  { %7676 = vmatpush1.bf16.msra.mxu1 %v15611_v18  ;;  %7294 = vmatprep.subr.bf16.mxu0 %v15612_v58  ;;  %v15621_v18 = vand.u32 4294901760, %v15431_v43  ;;  %v7687_v62 = vpack.c.bf16 %v15627_v36, %v15626_v41  ;;  %v15629_v43 = vand.u32 4294901760, %v15439_v23  ;;  %v15643_v36 = vld [vmem:[#allocation42_spill] sm:$0xff] }
 0x36b   :  { %7678 = vmatprep.subr.bf16.mxu1 %v15613_v22  ;;  %v15623_v22 = vld [vmem:[#allocation186_spill] sm:$0xff] }
 0x36c   :  { %v7685_v58 = vpack.c.bf16 %v15621_v18, %v15620_v42  ;;  %v7305_v42 = vpack.c.bf16 %v15629_v43, %v15628_v59  ;;  %v15630_v18 = vld [vmem:[#allocation249_spill] sm:$0xff]  ;;  %v15644_v59 = vand.u32 4294901760, %v15643_v36  ;;  %v15645_v43 = vld [vmem:[#allocation48_spill] sm:$0xff] }
 0x36d   :  { %7296 = vmatpush1.bf16.msra.mxu0 %v15614_v3  ;;  %v15659_v36 = vld [vmem:[#allocation160_spill] sm:$0xff] }
 0x36e   :  { %7680 = vmatpush1.bf16.msra.mxu1 %v15615_v17  ;;  %7298 = vmatprep.subr.bf16.mxu0 %v15616_v20  ;;  %v15624_v17 = vand.u32 4294901760, %v15434_v2  ;;  %v15625_v20 = vand.u32 4294901760, %v15435_v27  ;;  %v15635_v27 = vld [vmem:[#allocation24_spill] sm:$0xff] }
 0x36f   :  { %7682 = vmatprep.subr.bf16.mxu1 %v15619_v4  ;;  %v15636_v61 = vand.u32 4294901760, %v15635_v27  ;;  %v15650_v27 = vld [vmem:[#allocation60_spill] sm:$0xff]  ;;  %v15667_v4 = vld [vmem:[#allocation166_spill] sm:$0xff] }
 0x370   :  { %v7303_v7 = vpack.c.bf16 %v15625_v20, %v15624_v17  ;;  %v15639_v17 = vld [vmem:[#allocation137_spill] sm:$0xff]  ;;  %v15651_v63 = vand.u32 4294901760, %v15650_v27 }
 0x371   :  { %7300 = vmatpush1.bf16.msra.mxu0 %v15622_v49  ;;  %v7307_v23 = vpack.c.bf16 %v15638_v12, %v15636_v61  ;;  %v15640_v20 = vand.u32 4294901760, %v15639_v17  ;;  %v15655_v17 = vld [vmem:[#allocation156_spill] sm:$0xff] }
 0x372   :  { %7684 = vmatpush1.bf16.msra.mxu1 %v15623_v22  ;;  %7302 = vmatprep.subr.bf16.mxu0 %v7301_v6  ;;  %v15631_v6 = vand.u32 4294901760, %v15440_v39  ;;  %v15632_v22 = vld [vmem:[#allocation21_spill] sm:$0xff]  ;;  %v15641_v39 = vld [vmem:[#allocation39_spill] sm:$0xff] }
 0x373   :  { %7686 = vmatprep.subr.bf16.mxu1 %v7685_v58  ;;  %v15633_v2 = vand.u32 4294901760, %v15632_v22  ;;  %v15634_v58 = vld [vmem:[#allocation256_spill] sm:$0xff]  ;;  %v15642_v41 = vand.u32 4294901760, %v15641_v39 }
 0x374   :  { %3516 = vmatmul.mubr.f32.vlgmr.msra.gmra.mrb[4].mxu0 %v15630_v18 }
 0x375   :  { %v7689_v49 = vpack.c.bf16 %v15633_v2, %v15631_v6  ;;  %4862 = vmatmul.mubr.f32.vlgmr.msra.gmra.mrb[4].mxu1 %v15630_v18  ;;  %3524 = vmatprep.mubr.f32.mxu0 %v15634_v58  ;;  %v7691_v22 = vpack.c.bf16 %v15642_v41, %v15640_v20  ;;  %v15646_v18 = vand.u32 4294901760, %v15645_v43  ;;  %v15648_v2 = vld [vmem:[#allocation51_spill] sm:$0xff]  ;;  %v15656_v20 = vand.u32 4294901760, %v15655_v17 }
 0x376   :  { %7304 = vmatpush1.bf16.msra.mxu0 %v7303_v7  ;;  %4870 = vmatprep.mubr.f32.mxu1 %v15634_v58  ;;  %v15647_v7 = vld [vmem:[#allocation255_spill] sm:$0xff]  ;;  %v15649_v58 = vand.u32 4294901760, %v15648_v2 }
 0x377   :  { %7688 = vmatpush1.bf16.msra.mxu1 %v7687_v62  ;;  %7306 = vmatprep.subr.bf16.mxu0 %v7305_v42  ;;  %v7309_v6 = vpack.c.bf16 %v15646_v18, %v15644_v59  ;;  %v15652_v62 = vld [vmem:[#allocation246_spill] sm:$0xff]  ;;  %v15653_v42 = vld [vmem:[#allocation67_spill] sm:$0xff]  ;;  %v15660_v59 = vand.u32 4294901760, %v15659_v36  ;;  %v15661_v18 = vld [vmem:[#allocation161_spill] sm:$0xff] }
 0x378   :  { %3528 = vmatmul.mubr.f32.gmra.mrb[6].mxu0 %v15647_v7  ;;  %7690 = vmatprep.subr.bf16.mxu1 %v7689_v49  ;;  %v7693_v61 = vpack.c.bf16 %v15651_v63, %v15649_v58  ;;  %v15654_v12 = vand.u32 4294901760, %v15653_v42  ;;  %v15657_v49 = vld [vmem:[#allocation157_spill] sm:$0xff]  ;;  %v15662_v2 = vand.u32 4294901760, %v15661_v18  ;;  %v15668_v42 = vand.u32 4294901760, %v15667_v4  ;;  %v15675_v36 = vld [vmem:[#allocation20_spill] sm:$0xff] }
 0x379   :  { %4874 = vmatmul.mubr.f32.gmra.mrb[6].mxu1 %v15647_v7  ;;  %3791 = vmatprep.mubr.f32.mxu0 %v15652_v62  ;;  %v15658_v41 = vand.u32 4294901760, %v15657_v49  ;;  %v15663_v7 = vld [vmem:[#allocation163_spill] sm:$0xff]  ;;  %v15673_v49 = vld [vmem:[#allocation18_spill] sm:$0xff]  ;;  %v15681_v4 = vld [vmem:[#allocation25_spill] sm:$0xff] }
 0x37a   :  { %7308 = vmatpush1.bf16.msra.mxu0 %v7307_v23  ;;  %5137 = vmatprep.mubr.f32.mxu1 %v15652_v62  ;;  %v7311_v39 = vpack.c.bf16 %v15656_v20, %v15654_v12  ;;  %v15664_v58 = vand.u32 4294901760, %v15663_v7  ;;  %v15665_v23 = vld [vmem:[#allocation164_spill] sm:$0xff]  ;;  %v15679_v7 = vld [vmem:[#allocation22_spill] sm:$0xff] }
 0x37b   :  { %7692 = vmatpush1.bf16.msra.mxu1 %v7691_v22  ;;  %7310 = vmatprep.subr.bf16.mxu0 %v7309_v6  ;;  %v7695_v43 = vpack.c.bf16 %v15660_v59, %v15658_v41  ;;  %v15666_v63 = vand.u32 4294901760, %v15665_v23  ;;  %v15669_v12 = vld [vmem:[#allocation16_spill] sm:$0xff]  ;;  %v15671_v6 = vld [vmem:[#allocation17_spill] sm:$0xff]  ;;  %v15674_v41 = vand.u32 4294901760, %v15673_v49  ;;  %v15676_v59 = vand.u32 4294901760, %v15675_v36 }
 0x37c   :  { %v7313_v27 = vpack.c.bf16 %v15664_v58, %v15662_v2  ;;  %7694 = vmatprep.subr.bf16.mxu1 %v7693_v61  ;;  %v15670_v22 = vand.u32 4294901760, %v15669_v12  ;;  %v15672_v17 = vand.u32 4294901760, %v15671_v6  ;;  %v15677_v2 = vld [vmem:[#allocation172_spill] sm:$0xff]  ;;  %v15680_v58 = vand.u32 4294901760, %v15679_v7  ;;  %v15689_v49 = vld [vmem:[#allocation29_spill] sm:$0xff]  ;;  %v15695_v7 = vld [vmem:[#allocation38_spill] sm:$0xff] }
 0x37d   :  { %v7697_v3 = vpack.c.bf16 %v15668_v42, %v15666_v63  ;;  %v7699_v18 = vpack.c.bf16 %v15676_v59, %v15674_v41  ;;  %v15678_v61 = vand.u32 4294901760, %v15677_v2  ;;  %v15683_v63 = vld [vmem:[#allocation26_spill] sm:$0xff]  ;;  %v15690_v41 = vand.u32 4294901760, %v15689_v49  ;;  %v15691_v36 = vld [vmem:[#allocation32_spill] sm:$0xff]  ;;  %v15705_v49 = vld [vmem:[#allocation43_spill] sm:$0xff] }
 0x37e   :  { %7312 = vmatpush1.bf16.msra.mxu0 %v7311_v39  ;;  %v7315_v20 = vpack.c.bf16 %v15672_v17, %v15670_v22  ;;  %v15682_v39 = vand.u32 4294901760, %v15681_v4  ;;  %v15684_v42 = vand.u32 4294901760, %v15683_v63  ;;  %v15685_v22 = vld [vmem:[#allocation175_spill] sm:$0xff]  ;;  %v15692_v59 = vand.u32 4294901760, %v15691_v36 }
 0x37f   :  { %7696 = vmatpush1.bf16.msra.mxu1 %v7695_v43  ;;  %7314 = vmatprep.subr.bf16.mxu0 %v7313_v27  ;;  %v7317_v23 = vpack.c.bf16 %v15680_v58, %v15678_v61  ;;  %v15686_v43 = vand.u32 4294901760, %v15685_v22  ;;  %v15687_v27 = vld [vmem:[#allocation27_spill] sm:$0xff]  ;;  %v15693_v61 = vld [vmem:[#allocation36_spill] sm:$0xff]  ;;  %v15696_v58 = vand.u32 4294901760, %v15695_v7  ;;  %v15712_v7 = vld [vmem:[#allocation122_spill] sm:$0xff] }
 0x380   :  { %7698 = vmatprep.subr.bf16.mxu1 %v7697_v3  ;;  %v7701_v12 = vpack.c.bf16 %v15684_v42, %v15682_v39  ;;  %v15688_v6 = vand.u32 4294901760, %v15687_v27  ;;  %v7703_v2 = vpack.c.bf16 %v15692_v59, %v15690_v41  ;;  %v15694_v3 = vand.u32 4294901760, %v15693_v61  ;;  %v15698_v39 = vld [vmem:[#allocation41_spill] sm:$0xff]  ;;  %v15707_v59 = vld [vmem:[#allocation44_spill] sm:$0xff]  ;;  %v15709_v61 = vld [vmem:[#allocation46_spill] sm:$0xff] }
 0x381   :  { %v15699_v63 = vand.u32 4294901760, %v15698_v39  ;;  %v15703_v27 = vld [vmem:[#allocation153_spill] sm:$0xff]  ;;  %v15706_v41 = vand.u32 4294901760, %v15705_v49  ;;  %v15716_v39 = vand.u32 4294901760, %v15488_v13 }
 0x382   :  { %7316 = vmatpush1.bf16.msra.mxu0 %v7315_v20  ;;  %v7319_v17 = vpack.c.bf16 %v15688_v6, %v15686_v43  ;;  %v7321_v4 = vpack.c.bf16 %v15696_v58, %v15694_v3  ;;  %v15697_v20 = vand.u32 4294901760, %v15476_v47  ;;  %v15704_v6 = vand.u32 4294901760, %v15703_v27 }
 0x383   :  { %7700 = vmatpush1.bf16.msra.mxu1 %v7699_v18  ;;  %7318 = vmatprep.subr.bf16.mxu0 %v7317_v23  ;;  %v15700_v18 = vand.u32 4294901760, %v15478_v33  ;;  %v15701_v23 = vld [vmem:[#allocation180_spill] sm:$0xff]  ;;  %v15710_v47 = vand.u32 4294901760, %v15709_v61  ;;  %v15713_v33 = vand.u32 4294901760, %v15712_v7  ;;  %v15723_v27 = vand.u32 4294901760, %v15493_v1 }
 0x384   :  { %7702 = vmatprep.subr.bf16.mxu1 %v7701_v12  ;;  %v7705_v42 = vpack.c.bf16 %v15699_v63, %v15697_v20  ;;  %v15702_v22 = vand.u32 4294901760, %v15701_v23  ;;  %v7707_v36 = vpack.c.bf16 %v15706_v41, %v15704_v6  ;;  %v15708_v12 = vand.u32 4294901760, %v15707_v59 }
 0x385   :  { %v15717_v63 = vand.u32 4294901760, %v15489_v15  ;;  %v15724_v15 = vand.u32 4294901760, %v15331_v9  ;;  %v15726_v6 = vand.u32 4294901760, %v15333_v10  ;;  %v15730_v1 = vand.u32 4294901760, %v15377_v46 }
 0x386   :  { %7320 = vmatpush1.bf16.msra.mxu0 %v7319_v17  ;;  %v7323_v43 = vpack.c.bf16 %v15702_v22, %v15700_v18  ;;  %v7325_v3 = vpack.c.bf16 %v15710_v47, %v15708_v12  ;;  %v15711_v17 = vand.u32 4294901760, %v15484_v40  ;;  %v15719_v40 = vand.u32 4294901760, %v15317_v29 }
 0x387   :  { %7704 = vmatpush1.bf16.msra.mxu1 %v7703_v2  ;;  %7322 = vmatprep.subr.bf16.mxu0 %v7321_v4  ;;  %v15714_v2 = vand.u32 4294901760, %v15486_v55  ;;  %v15715_v4 = vand.u32 4294901760, %v15487_v16  ;;  %v7711_v18 = vpack.c.bf16 %v15717_v63, %v15716_v39  ;;  %v15720_v22 = vand.u32 4294901760, %v15490_v19  ;;  %v15755_v63 = vld [vmem:[#allocation90_spill] sm:$0xff] }
 0x388   :  { %7706 = vmatprep.subr.bf16.mxu1 %v7705_v42  ;;  %v7709_v58 = vpack.c.bf16 %v15713_v33, %v15711_v17  ;;  %v15718_v42 = vand.u32 4294901760, %v15314_v57  ;;  %v15721_v55 = vand.u32 4294901760, %v15491_v21  ;;  %v15722_v16 = vand.u32 4294901760, %v15492_v37  ;;  %v15747_v33 = vld [vmem:[#allocation216_spill] sm:$0xff] }
 0x389   :  { %v7327_v20 = vpack.c.bf16 %v15715_v4, %v15714_v2  ;;  %v15725_v57 = vand.u32 4294901760, %v15332_v51  ;;  %v15727_v19 = vand.u32 4294901760, %v15339_v48  ;;  %v15728_v21 = vand.u32 4294901760, %v15349_v34 }
 0x38a   :  { %7324 = vmatpush1.bf16.msra.mxu0 %v7323_v43  ;;  %v7329_v23 = vpack.c.bf16 %v15719_v40, %v15718_v42  ;;  %v7713_v43 = vpack.c.bf16 %v15721_v55, %v15720_v22  ;;  %v7331_v13 = vpack.c.bf16 %v15723_v27, %v15722_v16  ;;  %v15729_v37 = vand.u32 4294901760, %v15350_v30  ;;  %v15759_v40 = vld [vmem:[#allocation219_spill] sm:$0xff]  ;;  %v15761_v22 = vld [vmem:[#allocation220_spill] sm:$0xff] }
 0x38b   :  { %7708 = vmatpush1.bf16.msra.mxu1 %v7707_v36  ;;  %7326 = vmatprep.subr.bf16.mxu0 %v7325_v3  ;;  %v7715_v29 = vpack.c.bf16 %v15725_v57, %v15724_v15  ;;  %v7333_v49 = vpack.c.bf16 %v15727_v19, %v15726_v6  ;;  %v15731_v36 = vand.u32 4294901760, %v15378_v38  ;;  %v15732_v51 = vand.u32 4294901760, %v15379_v56  ;;  %v15767_v57 = vld [vmem:[#allocation95_spill] sm:$0xff]  ;;  %v15769_v19 = vld [vmem:[#allocation34_spill] sm:$0xff] }
 0x38c   :  { %7710 = vmatprep.subr.bf16.mxu1 %v7709_v58  ;;  %v7717_v41 = vpack.c.bf16 %v15729_v37, %v15728_v21  ;;  %v15733_v10 = vand.u32 4294901760, %v15380_v31  ;;  %v15734_v59 = vand.u32 4294901760, %v15381_v14  ;;  %v15735_v34 = vand.u32 4294901760, %v15384_v50  ;;  %v15771_v21 = vld [vmem:[#allocation37_spill] sm:$0xff] }
 0x38d   :  { %v7335_v9 = vpack.c.bf16 %v15731_v36, %v15730_v1  ;;  %v15736_v30 = vand.u32 4294901760, %v15387_v8  ;;  %v15737_v46 = vand.u32 4294901760, %v15388_v35  ;;  %v15738_v38 = vand.u32 4294901760, %v15394_v5  ;;  %v15773_v1 = vld [vmem:[#allocation151_spill] sm:$0xff] }
 0x38e   :  { %7328 = vmatpush1.bf16.msra.mxu0 %v7327_v20  ;;  %v7719_v48 = vpack.c.bf16 %v15733_v10, %v15732_v51  ;;  %v7337_v12 = vpack.c.bf16 %v15735_v34, %v15734_v59  ;;  %v15739_v47 = vand.u32 4294901760, %v15395_v26  ;;  %v15740_v31 = vand.u32 4294901760, %v15396_v45  ;;  %v15753_v20 = vld [vmem:[#allocation89_spill] sm:$0xff]  ;;  %v15779_v34 = vld [vmem:[#allocation58_spill] sm:$0xff] }
 0x38f   :  { %7712 = vmatpush1.bf16.msra.mxu1 %v7711_v18  ;;  %7330 = vmatprep.subr.bf16.mxu0 %v7329_v23  ;;  %v7721_v61 = vpack.c.bf16 %v15737_v46, %v15736_v30  ;;  %v15741_v14 = vand.u32 4294901760, %v15397_v44  ;;  %v15742_v3 = vand.u32 4294901760, %v15400_v11  ;;  %v15743_v8 = vand.u32 4294901760, %v15401_v25  ;;  %v15749_v44 = vld [vmem:[#allocation86_spill] sm:$0xff]  ;;  %v15751_v11 = vld [vmem:[#allocation88_spill] sm:$0xff]  ;;  %v15781_v46 = vld [vmem:[#allocation63_spill] sm:$0xff] }
 0x390   :  { %7714 = vmatprep.subr.bf16.mxu1 %v7713_v43  ;;  %v7339_v56 = vpack.c.bf16 %v15739_v47, %v15738_v38  ;;  %v15744_v35 = vand.u32 4294901760, %v15240_v32  ;;  %v15745_v5 = vand.u32 4294901760, %v15241_v53  ;;  %v15746_v26 = vand.u32 4294901760, %v15244_v54  ;;  %v15757_v53 = vld [vmem:[#allocation218_spill] sm:$0xff]  ;;  %v15763_v43 = vld [vmem:[#allocation92_spill] sm:$0xff]  ;;  %v15783_v38 = vld [vmem:[#allocation69_spill] sm:$0xff] }
 0x391   :  { %v7723_v50 = vpack.c.bf16 %v15741_v14, %v15740_v31  ;;  %v7341_v17 = vpack.c.bf16 %v15743_v8, %v15742_v3  ;;  %v15748_v58 = vand.u32 4294901760, %v15747_v33  ;;  %v15750_v2 = vand.u32 4294901760, %v15749_v44  ;;  %v15785_v31 = vld [vmem:[#allocation158_spill] sm:$0xff]  ;;  %v15793_v33 = vld [vmem:[#allocation167_spill] sm:$0xff] }
 0x392   :  { %7332 = vmatpush1.bf16.msra.mxu0 %v7331_v13  ;;  %v7725_v7 = vpack.c.bf16 %v15745_v5, %v15744_v35  ;;  %v15752_v4 = vand.u32 4294901760, %v15751_v11  ;;  %v15754_v39 = vand.u32 4294901760, %v15753_v20  ;;  %v15756_v32 = vand.u32 4294901760, %v15755_v63  ;;  %v15765_v13 = vld [vmem:[#allocation94_spill] sm:$0xff]  ;;  %v15791_v5 = vld [vmem:[#allocation165_spill] sm:$0xff]  ;;  %v15801_v63 = vld [vmem:[#allocation171_spill] sm:$0xff] }
 0x393   :  { %7716 = vmatpush1.bf16.msra.mxu1 %v7715_v29  ;;  %7334 = vmatprep.subr.bf16.mxu0 %v7333_v49  ;;  %v7343_v45 = vpack.c.bf16 %v15748_v58, %v15746_v26  ;;  %v15758_v42 = vand.u32 4294901760, %v15757_v53  ;;  %v15760_v54 = vand.u32 4294901760, %v15759_v40  ;;  %v15762_v55 = vand.u32 4294901760, %v15761_v22  ;;  %v15797_v11 = vld [vmem:[#allocation169_spill] sm:$0xff]  ;;  %v15805_v40 = vld [vmem:[#allocation23_spill] sm:$0xff] }
 0x394   :  { %7718 = vmatprep.subr.bf16.mxu1 %v7717_v41  ;;  %v7727_v25 = vpack.c.bf16 %v15752_v4, %v15750_v2  ;;  %v7345_v18 = vpack.c.bf16 %v15756_v32, %v15754_v39  ;;  %v15764_v16 = vand.u32 4294901760, %v15763_v43  ;;  %v15766_v15 = vand.u32 4294901760, %v15765_v13 }
 0x395   :  { %v7729_v23 = vpack.c.bf16 %v15760_v54, %v15758_v42  ;;  %v15768_v29 = vand.u32 4294901760, %v15767_v57  ;;  %v15770_v49 = vand.u32 4294901760, %v15769_v19  ;;  %v15772_v37 = vand.u32 4294901760, %v15771_v21  ;;  %v15813_v57 = vld [vmem:[#allocation31_spill] sm:$0xff] }
 0x396   :  { %7336 = vmatpush1.bf16.msra.mxu0 %v7335_v9  ;;  %v7347_v27 = vpack.c.bf16 %v15764_v16, %v15762_v55  ;;  %v15774_v36 = vand.u32 4294901760, %v15773_v1  ;;  %v15775_v9 = vld [vmem:[#allocation45_spill] sm:$0xff]  ;;  %v15784_v47 = vand.u32 4294901760, %v15783_v38  ;;  %v15786_v14 = vand.u32 4294901760, %v15785_v31  ;;  %v15836_v31 = vld [vmem:[#allocation104_spill] sm:$0xff] }
 0x397   :  { %7720 = vmatpush1.bf16.msra.mxu1 %v7719_v48  ;;  %7338 = vmatprep.subr.bf16.mxu0 %v7337_v12  ;;  %v7731_v6 = vpack.c.bf16 %v15768_v29, %v15766_v15  ;;  %v7349_v41 = vpack.c.bf16 %v15772_v37, %v15770_v49  ;;  %v15776_v51 = vand.u32 4294901760, %v15775_v9  ;;  %v15777_v48 = vld [vmem:[#allocation54_spill] sm:$0xff]  ;;  %v15780_v12 = vand.u32 4294901760, %v15779_v34  ;;  %v15810_v16 = vld [vmem:[#allocation177_spill] sm:$0xff] }
 0x398   :  { %7722 = vmatprep.subr.bf16.mxu1 %v7721_v61  ;;  %v15778_v59 = vand.u32 4294901760, %v15777_v48  ;;  %v15782_v61 = vand.u32 4294901760, %v15781_v46  ;;  %v15794_v58 = vand.u32 4294901760, %v15793_v33  ;;  %v15798_v4 = vand.u32 4294901760, %v15797_v11  ;;  %v15824_v48 = vld [vmem:[#allocation188_spill] sm:$0xff]  ;;  %v15831_v46 = vld [vmem:[#allocation251_spill] sm:$0xff] }
 0x399   :  { %v7733_v10 = vpack.c.bf16 %v15776_v51, %v15774_v36  ;;  %v15802_v32 = vand.u32 4294901760, %v15801_v63  ;;  %v15806_v54 = vand.u32 4294901760, %v15805_v40  ;;  %v15809_v43 = vand.u32 4294901760, %v15535_v0  ;;  %v15820_v36 = vld [vmem:[#allocation184_spill] sm:$0xff]  ;;  %v15822_v51 = vld [vmem:[#allocation185_spill] sm:$0xff]  ;;  %v15846_v33 = vld [vmem:[#allocation87_spill] sm:$0xff] }
 0x39a   :  { %7340 = vmatpush1.bf16.msra.mxu0 %v7339_v56  ;;  %v7351_v30 = vpack.c.bf16 %v15780_v12, %v15778_v59  ;;  %v7735_v56 = vpack.c.bf16 %v15784_v47, %v15782_v61  ;;  %v15812_v15 = vand.u32 4294901760, %v15538_v60  ;;  %v15814_v29 = vand.u32 4294901760, %v15813_v57  ;;  %v15829_v12 = vld [vmem:[#allocation98_spill] sm:$0xff]  ;;  %v15832_v61 = vld [vmem:[#allocation100_spill] sm:$0xff]  ;;  %v15833_v38 = vld [vmem:[#allocation101_spill] sm:$0xff] }
 0x39b   :  { %7724 = vmatpush1.bf16.msra.mxu1 %v7723_v50  ;;  %7342 = vmatprep.subr.bf16.mxu0 %v7341_v17  ;;  %v15787_v50 = vld [vmem:[#allocation159_spill] sm:$0xff]  ;;  %v15789_v17 = vld [vmem:[#allocation162_spill] sm:$0xff]  ;;  %v15815_v19 = vand.u32 4294901760, %v15541_v52  ;;  %v15816_v49 = vand.u32 4294901760, %v15540_v24  ;;  %v15817_v37 = vand.u32 4294901760, %v15544_v28  ;;  %v15821_v9 = vand.u32 4294901760, %v15820_v36 }
 0x39c   :  { %7726 = vmatprep.subr.bf16.mxu1 %v7725_v7  ;;  %v15788_v3 = vand.u32 4294901760, %v15787_v50  ;;  %v15790_v35 = vand.u32 4294901760, %v15789_v17  ;;  %v15792_v7 = vand.u32 4294901760, %v15791_v5  ;;  %v15825_v59 = vand.u32 4294901760, %v15824_v48  ;;  %v15826_v52 = vld [vmem:[#allocation191_spill] sm:$0xff]  ;;  %v15828_v28 = vld [vmem:[#allocation97_spill] sm:$0xff] }
 0x39d   :  { %v7361_v21 = vpack.c.bf16 %v15816_v49, %v15815_v19  ;;  %v15827_v34 = vand.u32 4294901760, %v15826_v52  ;;  %v15834_v47 = vld [vmem:[#allocation102_spill] sm:$0xff]  ;;  %v15841_v17 = vld [vmem:[#allocation72_spill] sm:$0xff]  ;;  %v15843_v5 = vld [vmem:[#allocation79_spill] sm:$0xff] }
 0x39e   :  { %7344 = vmatpush1.bf16.msra.mxu0 %v7343_v45  ;;  %v7353_v8 = vpack.c.bf16 %v15788_v3, %v15786_v14  ;;  %v7737_v26 = vpack.c.bf16 %v15792_v7, %v15790_v35  ;;  %v15795_v45 = vld [vmem:[#allocation168_spill] sm:$0xff]  ;;  %v15837_v14 = vld [vmem:[#allocation106_spill] sm:$0xff]  ;;  %v15842_v35 = vld [vmem:[#allocation75_spill] sm:$0xff] }
 0x39f   :  { %7728 = vmatpush1.bf16.msra.mxu1 %v7727_v25  ;;  %7346 = vmatprep.subr.bf16.mxu0 %v7345_v18  ;;  %v15796_v44 = vand.u32 4294901760, %v15795_v45  ;;  %v15799_v25 = vld [vmem:[#allocation170_spill] sm:$0xff]  ;;  %v15803_v18 = vld [vmem:[#allocation173_spill] sm:$0xff]  ;;  %v7747_v24 = vpack.c.bf16 %v15827_v34, %v15825_v59  ;;  %v15849_v45 = vld [vmem:[#allocation96_spill] sm:$0xff] }
 0x3a0   :  { %7730 = vmatprep.subr.bf16.mxu1 %v7729_v23  ;;  %v15800_v20 = vand.u32 4294901760, %v15799_v25  ;;  %v15804_v53 = vand.u32 4294901760, %v15803_v18  ;;  %v15807_v23 = vld [vmem:[#allocation174_spill] sm:$0xff]  ;;  %v15844_v7 = vld [vmem:[#allocation81_spill] sm:$0xff]  ;;  %v15854_v25 = vld [vmem:[#allocation111_spill] sm:$0xff] }
 0x3a1   :  { %v7355_v2 = vpack.c.bf16 %v15796_v44, %v15794_v58  ;;  %v15808_v22 = vand.u32 4294901760, %v15807_v23  ;;  %v15838_v50 = vld [vmem:[#allocation150_spill] sm:$0xff]  ;;  %v15847_v58 = vld [vmem:[#allocation91_spill] sm:$0xff]  ;;  %v15852_v11 = vld [vmem:[#allocation105_spill] sm:$0xff] }
 0x3a2   :  { %7348 = vmatpush1.bf16.msra.mxu0 %v7347_v27  ;;  %v7739_v39 = vpack.c.bf16 %v15800_v20, %v15798_v4  ;;  %v7357_v42 = vpack.c.bf16 %v15804_v53, %v15802_v32  ;;  %v15811_v27 = vand.u32 4294901760, %v15810_v16  ;;  %v15839_v3 = vld [vmem:[#allocation146_spill] sm:$0xff]  ;;  %v15850_v44 = vld [vmem:[#allocation99_spill] sm:$0xff]  ;;  %v15853_v4 = vld [vmem:[#allocation108_spill] sm:$0xff] }
 0x3a3   :  { %7732 = vmatpush1.bf16.msra.mxu1 %v7731_v6  ;;  %7350 = vmatprep.subr.bf16.mxu0 %v7349_v41  ;;  %v7741_v55 = vpack.c.bf16 %v15808_v22, %v15806_v54  ;;  %v7743_v6 = vpack.c.bf16 %v15814_v29, %v15812_v15  ;;  %v15818_v41 = vld [vmem:[#allocation47_spill] sm:$0xff]  ;;  %v15857_v63 = vld [vmem:[#allocation120_spill] sm:$0xff]  ;;  %v15860_v53 = vld [vmem:[#allocation129_spill] sm:$0xff] }
 0x3a4   :  { %7734 = vmatprep.subr.bf16.mxu1 %v7733_v10  ;;  %v7359_v13 = vpack.c.bf16 %v15811_v27, %v15809_v43  ;;  %v15819_v0 = vand.u32 4294901760, %v15818_v41  ;;  %v15823_v10 = vand.u32 4294901760, %v15822_v51  ;;  %v15855_v20 = vld [vmem:[#allocation115_spill] sm:$0xff]  ;;  %v12383_v40 = vld [vmem:[#allocation8 + $0x88] sm:$0xff]  ;;  %v15862_v23 = vld [vmem:[#allocation133_spill] sm:$0xff] }
 0x3a5   :  { %v15858_v32 = vld [vmem:[#allocation123_spill] sm:$0xff]  ;;  %v15861_v54 = vld [vmem:[#allocation130_spill] sm:$0xff]  ;;  %v5401_v16 = vand.u32 4294901760, %v12383_v40  ;;  %v12391_v27 = vld [vmem:[#allocation8] sm:$0xff] }
 0x3a6   :  { %7352 = vmatpush1.bf16.msra.mxu0 %v7351_v30  ;;  %v7745_v1 = vpack.c.bf16 %v15819_v0, %v15817_v37  ;;  %v7363_v60 = vpack.c.bf16 %v15823_v10, %v15821_v9  ;;  %v15830_v30 = vld [vmem:[#allocation196_spill] sm:$0xff]  ;;  %v15859_v18 = vld [vmem:[#allocation127_spill] sm:$0xff]  ;;  %v15863_v22 = vld [vmem:[#allocation138_spill] sm:$0xff]  ;;  %v5350_v49 = vand.u32 4294901760, %v12391_v27 }
 0x3a7   :  { %7736 = vmatpush1.bf16.msra.mxu1 %v7735_v56  ;;  %7354 = vmatprep.subr.bf16.mxu0 %v7353_v8  ;;  %v15835_v56 = vld [vmem:[#allocation250_spill] sm:$0xff]  ;;  %v12395_v15 = vld [vmem:[#allocation8 + $0x90] sm:$0xff]  ;;  %v12397_v57 = vld [vmem:[#allocation8 + $0x98] sm:$0xff]  ;;  %v12413_v0 = vsub.f32 %v12383_v40, %v5401_v16 }
 0x3a8   :  { %7738 = vmatprep.subr.bf16.mxu1 %v7737_v26  ;;  %v15840_v8 = vld [vmem:[#allocation118_spill] sm:$0xff]  ;;  %v15845_v26 = vld [vmem:[#allocation84_spill] sm:$0xff]  ;;  %v15868_v37 = vld [vmem:[#allocation107_spill] sm:$0xff]  ;;  %v5407_v36 = vand.u32 4294901760, %v12397_v57  ;;  %v12427_v59 = vsub.f32 %v12391_v27, %v5350_v49 }
 0x3a9   :  { %v15865_v29 = vld [vmem:[#allocation140_spill] sm:$0xff]  ;;  %v15867_v19 = vld [vmem:[#allocation142_spill] sm:$0xff]  ;;  %v12417_v9 = vld [vmem:[#allocation8 + $0x10] sm:$0xff] }
 0x3aa   :  { %7356 = vmatpush1.bf16.msra.mxu0 %v7355_v2  ;;  %v15851_v2 = vld [vmem:[#allocation103_spill] sm:$0xff]  ;;  %v12419_v51 = vld [vmem:[#allocation8 + $0x18] sm:$0xff]  ;;  %v15869_v10 = vld [vmem:[#allocation109_spill] sm:$0xff]  ;;  %v14032_v34 = vand.u32 4294901760, %v12417_v9 }
 0x3ab   :  { %7740 = vmatpush1.bf16.msra.mxu1 %v7739_v39  ;;  %7358 = vmatprep.subr.bf16.mxu0 %v7357_v42  ;;  %v15856_v39 = vld [vmem:[#allocation117_spill] sm:$0xff]  ;;  %v15871_v48 = vld [vmem:[#allocation112_spill] sm:$0xff] }
 0x3ac   :  { %7742 = vmatprep.subr.bf16.mxu1 %v7741_v55  ;;  %v12381_v42 = vld [vmem:[#allocation8 + $0x80] sm:$0xff]  ;;  %v15864_v55 = vld [vmem:[#allocation139_spill] sm:$0xff] }
 0x3ad   :  { %v5398_v43 = vand.u32 4294901760, %v12381_v42 }
 0x3ae   :  { %7360 = vmatpush1.bf16.msra.mxu0 %v7359_v13  ;;  %v12393_v13 = vld [vmem:[#allocation8 + $0x8] sm:$0xff] }
 0x3af   :  { %7744 = vmatpush1.bf16.msra.mxu1 %v7743_v6  ;;  %7362 = vmatprep.subr.bf16.mxu0 %v7361_v21  ;;  %v15866_v6 = vld [vmem:[#allocation141_spill] sm:$0xff]  ;;  %v5353_v21 = vand.u32 4294901760, %v12393_v13  ;;  %v12408_v41 = vsub.f32 %v12381_v42, %v5398_v43  ;;  %v12587_v42 = vld [vmem:[#allocation8 + $0x48] sm:$0xff] }
 0x3b0   :  { %7746 = vmatprep.subr.bf16.mxu1 %v7745_v1  ;;  %v5404_v1 = vand.u32 4294901760, %v12395_v15 }
 0x3b1   :  { %v12432_v52 = vsub.f32 %v12393_v13, %v5353_v21  ;;  %v12597_v13 = vld [vmem:[#allocation8 + $0xd0] sm:$0xff] }
 0x3b2   :  { %7364 = vmatpush1.bf16.msra.mxu0 %v7363_v60  ;;  %v15870_v60 = vld [vmem:[#allocation110_spill] sm:$0xff] }
 0x3b3   :  { %7748 = vmatpush1.bf16.msra.mxu1 %v7747_v24  ;;  %7366 = vmatprep.subr.bf16.mxu0 %v15828_v28  ;;  %v14031_v24 = vand.u32 4294901760, %v12419_v51  ;;  %v15872_v28 = vld [vmem:[#allocation143_spill] sm:$0xff] }
 0x3b4   :  { %7750 = vmatprep.subr.bf16.mxu1 %v15829_v12  ;;  %v14018_v12 = vand.u32 4294901760, %v12408_v41 }
 0x3b5   :  { %3793 = vmatmul.mubr.f32.vlgmr.msra.gmra.mrb[4].mxu0 %v15830_v30 }
 0x3b6   :  { %5139 = vmatmul.mubr.f32.vlgmr.msra.gmra.mrb[4].mxu1 %v15830_v30  ;;  %3799 = vmatprep.mubr.f32.mxu0 %v15831_v46 }
 0x3b7   :  { %7368 = vmatpush1.bf16.msra.mxu0 %v15832_v61  ;;  %5145 = vmatprep.mubr.f32.mxu1 %v15831_v46  ;;  %v14017_v61 = vand.u32 4294901760, %v12413_v0 }
 0x3b8   :  { %7752 = vmatpush1.bf16.msra.mxu1 %v15833_v38  ;;  %7370 = vmatprep.subr.bf16.mxu0 %v15834_v47  ;;  %v12442_v38 = vsub.f32 %v12395_v15, %v5404_v1  ;;  %v12447_v47 = vsub.f32 %v12397_v57, %v5407_v36  ;;  %v14039_v15 = vand.u32 4294901760, %v12597_v13 }
 0x3b9   :  { %3801 = vmatmul.mubr.f32.gmra.mrb[6].mxu0 %v15835_v56  ;;  %7754 = vmatprep.subr.bf16.mxu1 %v15836_v31  ;;  %v15873_v31 = vld [vmem:[#allocation144_spill] sm:$0xff] }
 0x3ba   :  { %5147 = vmatmul.mubr.f32.gmra.mrb[6].mxu1 %v15835_v56  ;;  %3936 = vmatprep.mubr.f32.mxu0 %v15652_v62 }
 0x3bb   :  { %7372 = vmatpush1.bf16.msra.mxu0 %v15837_v14  ;;  %5282 = vmatprep.mubr.f32.mxu1 %v15652_v62  ;;  %v15848_v62 = vld [vmem:[#allocation93_spill] sm:$0xff] }
 0x3bc   :  { %7756 = vmatpush1.bf16.msra.mxu1 %v15838_v50  ;;  %7374 = vmatprep.subr.bf16.mxu0 %v15839_v3  ;;  %v12450_v14 = vld [vmem:[#allocation8 + $0xa0] sm:$0xff]  ;;  %v12452_v50 = vld [vmem:[#allocation8 + $0xa8] sm:$0xff] }
 0x3bd   :  { %7758 = vmatprep.subr.bf16.mxu1 %v15840_v8  ;;  %v15874_v3 = vld [vmem:[#allocation113_spill] sm:$0xff]  ;;  %v15875_v8 = vld [vmem:[#allocation114_spill] sm:$0xff] }
 0x3bf   :  { %7376 = vmatpush1.bf16.msra.mxu0 %v15841_v17  ;;  %v14016_v17 = vand.u32 4294901760, %v12427_v59 }
 0x3c0   :  { %7760 = vmatpush1.bf16.msra.mxu1 %v15842_v35  ;;  %7378 = vmatprep.subr.bf16.mxu0 %v15843_v5  ;;  %v14015_v35 = vand.u32 4294901760, %v12432_v52  ;;  %v12461_v5 = vsub.f32 %v12417_v9, %v14032_v34  ;;  %v15897_v34 = vld [vmem:[#allocation186_spill] sm:$0xff] }
 0x3c1   :  { %7762 = vmatprep.subr.bf16.mxu1 %v15844_v7  ;;  %v12466_v7 = vsub.f32 %v12419_v51, %v14031_v24 }
 0x3c3   :  { %7380 = vmatpush1.bf16.msra.mxu0 %v15845_v26  ;;  %v15876_v26 = vld [vmem:[#allocation119_spill] sm:$0xff] }
 0x3c4   :  { %7764 = vmatpush1.bf16.msra.mxu1 %v15846_v33  ;;  %7382 = vmatprep.subr.bf16.mxu0 %v15847_v58  ;;  %v5592_v33 = vsub.f32 %v12408_v41, %v14018_v12  ;;  %v5599_v58 = vsub.f32 %v12413_v0, %v14017_v61  ;;  %v15888_v61 = vld [vmem:[#allocation19_spill] sm:$0xff] }
 0x3c5   :  { %7766 = vmatprep.subr.bf16.mxu1 %v15848_v62  ;;  %v14014_v62 = vand.u32 4294901760, %v12442_v38 }
 0x3c7   :  { %7384 = vmatpush1.bf16.msra.mxu0 %v15849_v45  ;;  %v14011_v45 = vand.u32 4294901760, %v12447_v47 }
 0x3c8   :  { %7768 = vmatpush1.bf16.msra.mxu1 %v15850_v44  ;;  %7386 = vmatprep.subr.bf16.mxu0 %v15851_v2  ;;  %v14027_v44 = vand.u32 4294901760, %v12450_v14  ;;  %v14026_v2 = vand.u32 4294901760, %v12452_v50 }
 0x3c9   :  { %7770 = vmatprep.subr.bf16.mxu1 %v15852_v11  ;;  %v15877_v11 = vld [vmem:[#allocation124_spill] sm:$0xff] }
 0x3cb   :  { %7388 = vmatpush1.bf16.msra.mxu0 %v15853_v4  ;;  %v12480_v4 = vld [vmem:[#allocation8 + $0x20] sm:$0xff] }
 0x3cc   :  { %7772 = vmatpush1.bf16.msra.mxu1 %v15854_v25  ;;  %7390 = vmatprep.subr.bf16.mxu0 %v15855_v20  ;;  %v12482_v25 = vld [vmem:[#allocation8 + $0x28] sm:$0xff]  ;;  %v15878_v20 = vld [vmem:[#allocation125_spill] sm:$0xff] }
 0x3cd   :  { %7774 = vmatprep.subr.bf16.mxu1 %v15856_v39  ;;  %v15879_v39 = vld [vmem:[#allocation52_spill] sm:$0xff] }
 0x3cf   :  { %7392 = vmatpush1.bf16.msra.mxu0 %v15857_v63  ;;  %v5480_v63 = vsub.f32 %v12427_v59, %v14016_v17  ;;  %v15887_v17 = vld [vmem:[#allocation147_spill] sm:$0xff] }
 0x3d0   :  { %7776 = vmatpush1.bf16.msra.mxu1 %v15858_v32  ;;  %7394 = vmatprep.subr.bf16.mxu0 %v15859_v18  ;;  %v5487_v32 = vsub.f32 %v12432_v52, %v14015_v35  ;;  %v14012_v18 = vand.u32 4294901760, %v12461_v5 }
 0x3d1   :  { %7778 = vmatprep.subr.bf16.mxu1 %v15860_v53  ;;  %v14013_v53 = vand.u32 4294901760, %v12466_v7 }
 0x3d3   :  { %7396 = vmatpush1.bf16.msra.mxu0 %v15861_v54  ;;  %v12494_v54 = vld [vmem:[#allocation8 + $0xb0] sm:$0xff] }
 0x3d4   :  { %7780 = vmatpush1.bf16.msra.mxu1 %v15862_v23  ;;  %7398 = vmatprep.subr.bf16.mxu0 %v15863_v22  ;;  %v12496_v23 = vld [vmem:[#allocation8 + $0xb8] sm:$0xff]  ;;  %v15880_v22 = vld [vmem:[#allocation53_spill] sm:$0xff] }
 0x3d5   :  { %7782 = vmatprep.subr.bf16.mxu1 %v15864_v55  ;;  %v5593_v55 = vand.u32 4294901760, %v5592_v33  ;;  %v5481_v33 = vand.u32 4294901760, %v5480_v63 }
 0x3d7   :  { %7400 = vmatpush1.bf16.msra.mxu0 %v15865_v29  ;;  %v5600_v29 = vand.u32 4294901760, %v5599_v58  ;;  %v5488_v58 = vand.u32 4294901760, %v5487_v32 }
 0x3d8   :  { %7784 = vmatpush1.bf16.msra.mxu1 %v15866_v6  ;;  %7402 = vmatprep.subr.bf16.mxu0 %v15867_v19  ;;  %v5606_v6 = vsub.f32 %v12442_v38, %v14014_v62  ;;  %v5613_v19 = vsub.f32 %v12447_v47, %v14011_v45  ;;  %v12547_v62 = vld [vmem:[#allocation8 + $0xc0] sm:$0xff] }
 0x3d9   :  { %7786 = vmatprep.subr.bf16.mxu1 %v15868_v37  ;;  %v12508_v37 = vsub.f32 %v12450_v14, %v14027_v44  ;;  %v12533_v45 = vpack.c.bf16 %v5600_v29, %v5593_v55  ;;  %v12549_v55 = vld [vmem:[#allocation8 + $0xc8] sm:$0xff]  ;;  %v12566_v12 = vpack.c.bf16 %v5488_v58, %v5481_v33  ;;  %v12585_v58 = vld [vmem:[#allocation8 + $0x40] sm:$0xff] }
 0x3da   :  { %v15885_v29 = vld [vmem:[#allocation134_spill] sm:$0xff]  ;;  %v14029_v33 = vand.u32 4294901760, %v12549_v55  ;;  %v15893_v44 = vld [vmem:[#allocation181_spill] sm:$0xff] }
 0x3db   :  { %7404 = vmatpush1.bf16.msra.mxu0 %v15869_v10  ;;  %v12513_v10 = vsub.f32 %v12452_v50, %v14026_v2  ;;  %v14024_v63 = vand.u32 4294901760, %v12508_v37  ;;  %v14038_v2 = vand.u32 4294901760, %v12587_v42 }
 0x3dc   :  { %7788 = vmatpush1.bf16.msra.mxu1 %v15870_v60  ;;  %7406 = vmatprep.subr.bf16.mxu0 %v15871_v48  ;;  %v14022_v60 = vand.u32 4294901760, %v12480_v4  ;;  %v14019_v48 = vand.u32 4294901760, %v12482_v25 }
 0x3dd   :  { %7790 = vmatprep.subr.bf16.mxu1 %v15872_v28  ;;  %v15881_v28 = vld [vmem:[#allocation55_spill] sm:$0xff]  ;;  %v14023_v32 = vand.u32 4294901760, %v12513_v10  ;;  %v5620_v40 = vsub.f32 %v12508_v37, %v14024_v63 }
 0x3df   :  { %7408 = vmatpush1.bf16.msra.mxu0 %v15873_v31  ;;  %v14020_v31 = vand.u32 4294901760, %v12494_v54 }
 0x3e0   :  { %7792 = vmatpush1.bf16.msra.mxu1 %v15874_v3  ;;  %7410 = vmatprep.subr.bf16.mxu0 %v15875_v8  ;;  %v14021_v3 = vand.u32 4294901760, %v12496_v23  ;;  %v15882_v8 = vld [vmem:[#allocation57_spill] sm:$0xff] }
 0x3e1   :  { %7794 = vmatprep.subr.bf16.mxu1 %v15876_v26  ;;  %v15883_v26 = vld [vmem:[#allocation132_spill] sm:$0xff] }
 0x3e3   :  { %7412 = vmatpush1.bf16.msra.mxu0 %v15877_v11  ;;  %v5494_v11 = vsub.f32 %v12461_v5, %v14012_v18  ;;  %v12540_v18 = vsub.f32 %v12480_v4, %v14022_v60 }
 0x3e4   :  { %7796 = vmatpush1.bf16.msra.mxu1 %v15878_v20  ;;  %7414 = vmatprep.subr.bf16.mxu0 %v15879_v39  ;;  %v5501_v20 = vsub.f32 %v12466_v7, %v14013_v53  ;;  %v12528_v39 = vld [vmem:[#allocation8 + $0x30] sm:$0xff]  ;;  %v12545_v53 = vsub.f32 %v12482_v25, %v14019_v48 }
 0x3e5   :  { %7798 = vmatprep.subr.bf16.mxu1 %v15880_v22  ;;  %v12530_v22 = vld [vmem:[#allocation8 + $0x38] sm:$0xff] }
 0x3e6   :  { %v14030_v35 = vand.u32 4294901760, %v12530_v22  ;;  %v5502_v48 = vand.u32 4294901760, %v5501_v20  ;;  %v14035_v27 = vand.u32 4294901760, %v12545_v53 }
 0x3e7   :  { %7416 = vmatpush1.bf16.msra.mxu0 %v15881_v28  ;;  %v15884_v28 = vld [vmem:[#allocation77_spill] sm:$0xff] }
 0x3e8   :  { %7800 = vmatpush1.bf16.msra.mxu1 %v15882_v8  ;;  %7418 = vmatprep.subr.bf16.mxu0 %v15883_v26  ;;  %v5607_v8 = vand.u32 4294901760, %v5606_v6  ;;  %v5614_v26 = vand.u32 4294901760, %v5613_v19  ;;  %v12555_v6 = vsub.f32 %v12494_v54, %v14020_v31  ;;  %v12560_v19 = vsub.f32 %v12496_v23, %v14021_v3  ;;  %v15889_v3 = vld [vmem:[#allocation152_spill] sm:$0xff] }
 0x3e9   :  { %7802 = vmatprep.subr.bf16.mxu1 %v15884_v28  ;;  %v14025_v28 = vand.u32 4294901760, %v12528_v39  ;;  %v12572_v31 = vpack.c.bf16 %v5401_v16, %v5398_v43  ;;  %v5627_v43 = vsub.f32 %v12513_v10, %v14023_v32  ;;  %v14036_v16 = vand.u32 4294901760, %v12540_v18  ;;  %v15892_v32 = vld [vmem:[#allocation155_spill] sm:$0xff] }
 0x3ea   :  { %15886 = vst [vmem:[#allocation59_spill] sm:$0xff] %v12560_v19  ;;  %v12575_v60 = vpack.c.bf16 %v5614_v26, %v5607_v8  ;;  %v12612_v8 = vsub.f32 %v12530_v22, %v14030_v35  ;;  %v15891_v26 = vld [vmem:[#allocation30_spill] sm:$0xff] }
 0x3eb   :  { %7420 = vmatpush1.bf16.msra.mxu0 %v15885_v29  ;;  %v5495_v29 = vand.u32 4294901760, %v5494_v11  ;;  %v14034_v11 = vand.u32 4294901760, %v12560_v19  ;;  %v12607_v20 = vsub.f32 %v12528_v39, %v14025_v28  ;;  %v14037_v28 = vand.u32 4294901760, %v12585_v58 }
 0x3ec   :  { %7804 = vmatpush1.bf16.msra.mxu1 %v15887_v17  ;;  %7422 = vmatprep.subr.bf16.mxu0 %v15888_v61  ;;  %v12581_v17 = vpack.c.bf16 %v5353_v21, %v5350_v49  ;;  %v14028_v61 = vand.u32 4294901760, %v12547_v62  ;;  %v12599_v49 = vld [vmem:[#allocation8 + $0xd8] sm:$0xff] }
 0x3ed   :  { %7806 = vmatprep.subr.bf16.mxu1 %v15889_v3  ;;  %v15890_v21 = vld [vmem:[#allocation28_spill] sm:$0xff]  ;;  %v14033_v3 = vand.u32 4294901760, %v12555_v6  ;;  %v12616_v63 = vpack.c.bf16 %v5502_v48, %v5495_v29  ;;  %v12635_v48 = vsub.f32 %v12549_v55, %v14029_v33  ;;  %v14040_v57 = vand.u32 4294901760, %v12599_v49  ;;  %v15896_v33 = vld [vmem:[#allocation49_spill] sm:$0xff] }
 0x3ee   :  { %v5508_v29 = vsub.f32 %v12540_v18, %v14036_v16  ;;  %v5641_v24 = vsub.f32 %v12560_v19, %v14034_v11 }
 0x3ef   :  { %7424 = vmatpush1.bf16.msra.mxu0 %v15890_v21  ;;  %v12622_v21 = vpack.c.bf16 %v5407_v36, %v5404_v1  ;;  %15895 = vst [vmem:[#allocation201_spill] sm:$0xff] %v12635_v48  ;;  %v12639_v1 = vld [vmem:[#allocation8 + $0x50] sm:$0xff]  ;;  %v12641_v36 = vld [vmem:[#allocation8 + $0x58] sm:$0xff]  ;;  %v5634_v35 = vsub.f32 %v12555_v6, %v14033_v3  ;;  %v12668_v3 = vsub.f32 %v12587_v42, %v14038_v2 }
 0x3f0   :  { %7808 = vmatpush1.bf16.msra.mxu1 %v15891_v26  ;;  %7426 = vmatprep.subr.bf16.mxu0 %v15892_v32  ;;  %v12630_v26 = vsub.f32 %v12547_v62, %v14028_v61  ;;  %v5621_v32 = vand.u32 4294901760, %v5620_v40  ;;  %v5515_v61 = vsub.f32 %v12545_v53, %v14035_v27  ;;  %v12683_v2 = vsub.f32 %v12599_v49, %v14040_v57 }
 0x3f1   :  { %7810 = vmatprep.subr.bf16.mxu1 %v15893_v44  ;;  %v5628_v44 = vand.u32 4294901760, %v5627_v43  ;;  %15899 = vst [vmem:[#allocation205_spill] sm:$0xff] %v12668_v3  ;;  %v5509_v27 = vand.u32 4294901760, %v5508_v29  ;;  %v5642_v40 = vand.u32 4294901760, %v5641_v24  ;;  %v15904_v57 = vand.u32 4294901760, %v12607_v20 }
 0x3f2   :  { %15894 = vst [vmem:[#allocation200_spill] sm:$0xff] %v12630_v26  ;;  %15901 = vst [vmem:[#allocation66_spill] sm:$0xff] %v12683_v2  ;;  %v5516_v43 = vand.u32 4294901760, %v5515_v61 }
 0x3f3   :  { %7428 = vmatpush1.bf16.msra.mxu0 %v15896_v33  ;;  %v12663_v33 = vsub.f32 %v12585_v58, %v14037_v28  ;;  %v12678_v28 = vsub.f32 %v12597_v13, %v14039_v15  ;;  %v7853_v11 = vpack.c.bf16 %v5628_v44, %v5621_v32  ;;  %v5635_v15 = vand.u32 4294901760, %v5634_v35 }
 0x3f4   :  { %7812 = vmatpush1.bf16.msra.mxu1 %v15897_v34  ;;  %7814 = vmatprep.subr.bf16.mxu0 %v12572_v31  ;;  %v15903_v34 = vand.u32 4294901760, %v12419_v51  ;;  %v5522_v19 = vsub.f32 %v12607_v20, %v15904_v57  ;;  %v15905_v32 = vand.u32 4294901760, %v12612_v8  ;;  %v15906_v51 = vand.u32 4294901760, %v12639_v1 }
 0x3f5   :  { %15898 = vst [vmem:[#allocation204_spill] sm:$0xff] %v12663_v33  ;;  %7846 = vmatprep.subr.bf16.mxu1 %v12533_v45  ;;  %15900 = vst [vmem:[#allocation65_spill] sm:$0xff] %v12678_v28  ;;  %v15902_v45 = vand.u32 4294901760, %v12417_v9  ;;  %v15908_v35 = vand.u32 4294901760, %v12641_v36  ;;  %v15911_v44 = vand.u32 4294901760, %v12635_v48 }
 0x3f6   :  { %3938 = vmatmul.mubr.f32.vlgmr.msra.gmra.mrb[4].mxu0 %v15830_v30  ;;  %v5529_v61 = vsub.f32 %v12612_v8, %v15905_v32  ;;  %v12707_v24 = vsub.f32 %v12639_v1, %v15906_v51  ;;  %v7855_v32 = vpack.c.bf16 %v5516_v43, %v5509_v27  ;;  %v15913_v51 = vand.u32 4294901760, %v12452_v50 }
 0x3f7   :  { %v12690_v16 = vpack.c.bf16 %v15903_v34, %v15902_v45  ;;  %5284 = vmatmul.mubr.f32.vlgmr.msra.gmra.mrb[4].mxu1 %v15830_v30  ;;  %3944 = vmatprep.mubr.f32.mxu0 %v15831_v46  ;;  %v12712_v57 = vsub.f32 %v12641_v36, %v15908_v35  ;;  %v5655_v29 = vsub.f32 %v12635_v48, %v15911_v44  ;;  %v5523_v30 = vand.u32 4294901760, %v5522_v19 }
 0x3f8   :  { %5290 = vmatprep.mubr.f32.mxu1 %v15831_v46  ;;  %7848 = vmatpush3.bf16.msra.mxu1 %v12566_v12  ;;  %15907 = vst [vmem:[#allocation68_spill] sm:$0xff] %v12707_v24  ;;  %v15910_v46 = vand.u32 4294901760, %v12630_v26  ;;  %v5530_v44 = vand.u32 4294901760, %v5529_v61  ;;  %v15914_v34 = vand.u32 4294901760, %v12480_v4  ;;  %v15915_v45 = vand.u32 4294901760, %v12482_v25 }
 0x3f9   :  { %15909 = vst [vmem:[#allocation71_spill] sm:$0xff] %v12712_v57  ;;  %7850 = vmatprep.subr.bf16.mxu1 %v12575_v60  ;;  %7816 = vmatpush3.bf16.msra.mxu0 %v12581_v17  ;;  %v15912_v60 = vand.u32 4294901760, %v12450_v14  ;;  %v15916_v27 = vand.u32 4294901760, %v12663_v33  ;;  %v15917_v50 = vand.u32 4294901760, %v12668_v3  ;;  %v14043_v19 = vand.u32 4294901760, %v12712_v57 }
 0x3fa   :  { %v5648_v12 = vsub.f32 %v12630_v26, %v15910_v46  ;;  %3946 = vmatmul.mubr.f32.gmra.mrb[6].mxu0 %v15835_v56  ;;  %7818 = vmatprep.subr.bf16.mxu0 %v12622_v21  ;;  %v7857_v46 = vpack.c.bf16 %v5642_v40, %v5635_v15  ;;  %v12737_v9 = vpack.c.bf16 %v15915_v45, %v15914_v34  ;;  %v5656_v25 = vand.u32 4294901760, %v5655_v29 }
 0x3fb   :  { %v12730_v35 = vpack.c.bf16 %v15913_v51, %v15912_v60  ;;  %5292 = vmatmul.mubr.f32.gmra.mrb[6].mxu1 %v15835_v56  ;;  %v5536_v14 = vsub.f32 %v12663_v33, %v15916_v27  ;;  %v5543_v43 = vsub.f32 %v12668_v3, %v15917_v50  ;;  %v14044_v56 = vand.u32 4294901760, %v12707_v24 }
 0x3fc   :  { %7852 = vmatpush3.bf16.msra.mxu1 %v12616_v63  ;;  %v5649_v4 = vand.u32 4294901760, %v5648_v12  ;;  %v15918_v15 = vand.u32 4294901760, %v12678_v28  ;;  %v15919_v40 = vand.u32 4294901760, %v12683_v2  ;;  %v15920_v34 = vand.u32 4294901760, %v12494_v54 }
 0x3fd   :  { %7854 = vmatprep.subr.bf16.mxu1 %v7853_v11  ;;  %7820 = vmatpush3.bf16.msra.mxu0 %v12690_v16  ;;  %v15921_v45 = vand.u32 4294901760, %v12496_v23  ;;  %v7859_v11 = vpack.c.bf16 %v5530_v44, %v5523_v30  ;;  %v5537_v12 = vand.u32 4294901760, %v5536_v14  ;;  %v5544_v29 = vand.u32 4294901760, %v5543_v43 }
 0x3fe   :  { %v5662_v63 = vsub.f32 %v12678_v28, %v15918_v15  ;;  %v5669_v61 = vsub.f32 %v12683_v2, %v15919_v40  ;;  %7822 = vmatprep.subr.bf16.mxu0 %v12730_v35  ;;  %v5550_v51 = vsub.f32 %v12707_v24, %v14044_v56  ;;  %v5557_v27 = vsub.f32 %v12712_v57, %v14043_v19 }
 0x3ff   :  { %v12760_v60 = vpack.c.bf16 %v15921_v45, %v15920_v34  ;;  %v7861_v50 = vpack.c.bf16 %v5656_v25, %v5649_v4  ;;  %v15922_v15 = vand.u32 4294901760, %v12528_v39  ;;  %v15923_v30 = vand.u32 4294901760, %v12530_v22  ;;  %v12777_v4 = vld [vmem:[#allocation8 + $0xe0] sm:$0xff]  ;;  %v12779_v39 = vld [vmem:[#allocation8 + $0xe8] sm:$0xff] }
 0x400   :  { %7856 = vmatpush3.bf16.msra.mxu1 %v7855_v32  ;;  %v5663_v54 = vand.u32 4294901760, %v5662_v63  ;;  %v5670_v23 = vand.u32 4294901760, %v5669_v61  ;;  %v7863_v44 = vpack.c.bf16 %v5544_v29, %v5537_v12  ;;  %v5551_v14 = vand.u32 4294901760, %v5550_v51  ;;  %v5322_v63 = vld [vmem:[#allocation8 + $0x60] sm:$0xff]  ;;  %v5323_v61 = vld [vmem:[#allocation8 + $0x68] sm:$0xff] }
 0x401   :  { %7858 = vmatprep.subr.bf16.mxu1 %v7857_v46  ;;  %7824 = vmatpush3.bf16.msra.mxu0 %v12737_v9  ;;  %v12773_v32 = vpack.c.bf16 %v15923_v30, %v15922_v15  ;;  %v5558_v43 = vand.u32 4294901760, %v5557_v27  ;;  %v5434_v22 = vand.u32 4294901760, %v12777_v4  ;;  %v5437_v25 = vand.u32 4294901760, %v12779_v39  ;;  %v5340_v27 = vld [vmem:[#allocation8 + $0xf0] sm:$0xff] }
 0x402   :  { %7826 = vmatprep.subr.bf16.mxu0 %v12760_v60  ;;  %v7865_v40 = vpack.c.bf16 %v5670_v23, %v5663_v54  ;;  %v5386_v34 = vand.u32 4294901760, %v5322_v63  ;;  %v5389_v45 = vand.u32 4294901760, %v5323_v61  ;;  %v5440_v15 = vand.u32 4294901760, %v5340_v27 }
 0x403   :  { %v7867_v46 = vpack.c.bf16 %v5558_v43, %v5551_v14  ;;  %v12787_v12 = vsub.f32 %v12779_v39, %v5437_v25  ;;  %v5325_v14 = vld [vmem:[#allocation8 + $0x78] sm:$0xff]  ;;  %v15927_v48 = vand.u32 4294901760, %v12549_v55 }
 0x404   :  { %7860 = vmatpush3.bf16.msra.mxu1 %v7859_v11  ;;  %v12784_v11 = vsub.f32 %v12777_v4, %v5434_v22  ;;  %v12789_v29 = vsub.f32 %v5322_v63, %v5386_v34  ;;  %v12791_v51 = vsub.f32 %v5323_v61, %v5389_v45  ;;  %v5395_v4 = vand.u32 4294901760, %v5325_v14 }
 0x405   :  { %7862 = vmatprep.subr.bf16.mxu1 %v7861_v50  ;;  %7828 = vmatpush3.bf16.msra.mxu0 %v12773_v32  ;;  %v5341_v50 = vld [vmem:[#allocation8 + $0xf8] sm:$0xff]  ;;  %v14054_v23 = vand.u32 4294901760, %v12787_v12  ;;  %v12803_v61 = vsub.f32 %v5340_v27, %v5440_v15 }
 0x406   :  { %v14051_v54 = vand.u32 4294901760, %v12784_v11  ;;  %v5443_v30 = vand.u32 4294901760, %v5341_v50  ;;  %v14059_v43 = vand.u32 4294901760, %v12789_v29  ;;  %v12815_v2 = vsub.f32 %v5325_v14, %v5395_v4 }
 0x407   :  { %v5683_v63 = vsub.f32 %v12787_v12, %v14054_v23  ;;  %v14068_v23 = vand.u32 4294901760, %v12803_v61  ;;  %v15928_v14 = vand.u32 4294901760, %v12585_v58 }
 0x408   :  { %7864 = vmatpush3.bf16.msra.mxu1 %v7863_v44  ;;  %v5324_v44 = vld [vmem:[#allocation8 + $0x70] sm:$0xff]  ;;  %v5676_v39 = vsub.f32 %v12784_v11, %v14051_v54  ;;  %v12805_v19 = vsub.f32 %v5341_v50, %v5443_v30  ;;  %v5564_v56 = vsub.f32 %v12789_v29, %v14059_v43  ;;  %15925 = vst [vmem:[#allocation209_spill] sm:$0xff] %v12815_v2  ;;  %v15926_v43 = vand.u32 4294901760, %v12547_v62 }
 0x409   :  { %7866 = vmatprep.subr.bf16.mxu1 %v7865_v40  ;;  %v14064_v40 = vand.u32 4294901760, %v12791_v51  ;;  %v5684_v28 = vand.u32 4294901760, %v5683_v63 }
 0x40a   :  { %v5677_v54 = vand.u32 4294901760, %v5676_v39  ;;  %v14067_v27 = vand.u32 4294901760, %v12805_v19  ;;  %v5565_v50 = vand.u32 4294901760, %v5564_v56  ;;  %v12824_v26 = vpack.c.bf16 %v15927_v48, %v15926_v43 }
 0x40b   :  { %v5571_v57 = vsub.f32 %v12791_v51, %v14064_v40  ;;  %v15929_v39 = vand.u32 4294901760, %v12587_v42  ;;  %v15931_v48 = vand.u32 4294901760, %v12599_v49  ;;  %v12861_v49 = vpack.c.bf16 %v5437_v25, %v5434_v22 }
 0x40c   :  { %7868 = vmatpush3.bf16.msra.mxu1 %v7867_v46  ;;  %v5392_v46 = vand.u32 4294901760, %v5324_v44  ;;  %v5697_v62 = vsub.f32 %v12805_v19, %v14067_v27  ;;  %7830 = vmatprep.subr.bf16.mxu0 %v12824_v26  ;;  %v7877_v22 = vpack.c.bf16 %v12413_v0, %v12408_v41 }
 0x40d   :  { %v5572_v3 = vand.u32 4294901760, %v5571_v57  ;;  %v12830_v63 = vpack.c.bf16 %v15929_v39, %v15928_v14  ;;  %v5690_v57 = vsub.f32 %v12803_v61, %v14068_v23  ;;  %v15933_v14 = vand.u32 4294901760, %v12641_v36 }
 0x40e   :  { %v12813_v24 = vsub.f32 %v5324_v44, %v5392_v46  ;;  %v7869_v44 = vpack.c.bf16 %v5684_v28, %v5677_v54  ;;  %v14065_v28 = vand.u32 4294901760, %v12815_v2  ;;  %v5698_v42 = vand.u32 4294901760, %v5697_v62 }
 0x40f   :  { %v7871_v40 = vpack.c.bf16 %v5572_v3, %v5565_v50  ;;  %7832 = vmatpush3.bf16.msra.mxu0 %v12830_v63  ;;  %v5691_v58 = vand.u32 4294901760, %v5690_v57  ;;  %v15930_v3 = vand.u32 4294901760, %v12597_v13  ;;  %v12863_v57 = vpack.c.bf16 %v5389_v45, %v5386_v34 }
 0x410   :  { %15924 = vst [vmem:[#allocation207_spill] sm:$0xff] %v12813_v24  ;;  %v14066_v33 = vand.u32 4294901760, %v12813_v24  ;;  %7870 = vmatprep.subr.bf16.mxu1 %v7869_v44  ;;  %v5585_v43 = vsub.f32 %v12815_v2, %v14065_v28  ;;  %v15932_v44 = vand.u32 4294901760, %v12639_v1  ;;  %v12868_v1 = vpack.c.bf16 %v5443_v30, %v5440_v15  ;;  %v2584_v30 = vld [vmem:[%s13089_s4] sm:$0xf] }
 0x411   :  { %7872 = vmatpush3.bf16.msra.mxu1 %v7871_v40  ;;  %v12848_v56 = vpack.c.bf16 %v15931_v48, %v15930_v3  ;;  %v7873_v50 = vpack.c.bf16 %v5698_v42, %v5691_v58  ;;  %v12870_v36 = vpack.c.bf16 %v5395_v4, %v5392_v46  ;;  %v15934_v46 = vld [vmem:[#allocation192_spill] sm:$0xff] }
 0x412   :  { %v5578_v55 = vsub.f32 %v12813_v24, %v14066_v33  ;;  %v12857_v39 = vpack.c.bf16 %v15933_v14, %v15932_v44  ;;  %v5586_v40 = vand.u32 4294901760, %v5585_v43  ;;  %v15935_v4 = vsub.s32 0, %v15934_v46 }
 0x413   :  { %7834 = vmatprep.subr.bf16.mxu0 %v12848_v56  ;;  %7874 = vmatprep.subr.bf16.mxu1 %v7873_v50  ;;  %v15937_v42 = vsub.s32 1, %v15934_v46  ;;  %v15938_v48 = vsub.s32 3, %v15934_v46 }
 0x414   :  { %v5579_v54 = vand.u32 4294901760, %v5578_v55  ;;  %7836 = vmatpush3.bf16.msra.mxu0 %v12857_v39  ;;  %v2589_v62 = vrot.slane %v2584_v30, %v15935_v4  ;;  %v15936_v55 = vsub.s32 2, %v15934_v46 }
 0x415   :  { %7838 = vmatprep.subr.bf16.mxu0 %v12861_v49  ;;  %v2593_v3 = vrot.slane %v2584_v30, %v15937_v42 }
 0x416   :  { %v7875_v13 = vpack.c.bf16 %v5586_v40, %v5579_v54  ;;  %v2597_v58 = vrot.slane %v2584_v30, %v15936_v55  ;;  %v2601_v54 = vrot.slane %v2584_v30, %v15938_v48 }
 0x418   :  { %7876 = vmatpush3.bf16.msra.mxu1 %v7875_v13  ;;  %7840 = vmatpush3.bf16.msra.mxu0 %v12863_v57 }
 0x419   :  { %7910 = vmatprep.subr.bf16.mxu1 %v12572_v31  ;;  %7842 = vmatprep.subr.bf16.mxu0 %v12868_v1 }
 0x41c   :  { %7844 = vmatpush3.bf16.msra.mxu0 %v12870_v36 }
 0x41d   :  { %7878 = vmatprep.subr.bf16.mxu0 %v7877_v22 }
 0x4c9   :  { %v3939_v43 = vpop.f32.mrb[4].mxu0 }
 0x4ca   :  { %v8013_v50 = vadd.f32 %v3939_v43, %v2589_v62  ;;  %v5285_v44 = vpop.f32.mrb[4].mxu1  ;;  %v3941_v14 = vpop.f32.mrb[5].mxu0 }
 0x4cb   :  { %v8017_v40 = vadd.f32 %v5285_v44, %v2597_v58  ;;  %v8014_v13 = vadd.f32 %v3941_v14, %v2593_v3  ;;  %v5287_v22 = vpop.f32.mrb[5].mxu1 }
 0x4cc   :  { %v5298_v28 = vmax.f32 %v8013_v50, 0.0  ;;  %v8018_v33 = vadd.f32 %v5287_v22, %v2601_v54  ;;  %v7879_v22 = vpack.c.bf16 %v12432_v52, %v12427_v59 }
 0x4cd   :  { %v5300_v27 = vmax.f32 %v8017_v40, 0.0  ;;  %v5299_v4 = vmax.f32 %v8014_v13, 0.0  ;;  %v3947_v23 = vpop.f32.mrb[6].mxu0 }
 0x4ce   :  { %v5301_v15 = vmax.f32 %v8018_v33, 0.0  ;;  %v8015_v55 = vadd.f32 %v3947_v23, %v2589_v62  ;;  %v5293_v45 = vpop.f32.mrb[6].mxu1  ;;  %v3949_v34 = vpop.f32.mrb[7].mxu0 }
 0x4cf   :  { %v5306_v42 = vmax.f32 %v5298_v28, %v5300_v27  ;;  %v8019_v25 = vadd.f32 %v5293_v45, %v2597_v58  ;;  %v8016_v46 = vadd.f32 %v3949_v34, %v2593_v3  ;;  %v5295_v30 = vpop.f32.mrb[7].mxu1 }
 0x4d0   :  { %v5307_v48 = vmax.f32 %v5299_v4, %v5301_v15  ;;  %v5302_v43 = vmax.f32 %v8015_v55, 0.0  ;;  %v8020_v24 = vadd.f32 %v5295_v30, %v2601_v54 }
 0x4d1   :  { %v12895_v2 = vand.u32 4294901760, %v5306_v42  ;;  %v5304_v44 = vmax.f32 %v8019_v25, 0.0  ;;  %v5303_v14 = vmax.f32 %v8016_v46, 0.0 }
 0x4d2   :  { %v12897_v50 = vand.u32 4294901760, %v5307_v48  ;;  %v5305_v40 = vmax.f32 %v8020_v24, 0.0 }
 0x4d3   :  { %v12900_v13 = vsub.f32 %v5306_v42, %v12895_v2  ;;  %v5308_v33 = vmax.f32 %v5302_v43, %v5304_v44  ;;  %v7881_v42 = vpack.c.bf16 %v12447_v47, %v12442_v38  ;;  %v7883_v43 = vpack.c.bf16 %v12466_v7, %v12461_v5 }
 0x4d4   :  { %v5446_v23 = vsub.f32 %v5307_v48, %v12897_v50  ;;  %v5309_v27 = vmax.f32 %v5303_v14, %v5305_v40  ;;  %5701 = vmatprep.mubr.f32.mxu1 %v12897_v50  ;;  %v7885_v14 = vpack.c.bf16 %v12513_v10, %v12508_v37  ;;  %v7887_v40 = vpack.c.bf16 %v12545_v53, %v12540_v18 }
 0x4d5   :  { %v5453_v28 = vand.u32 4294901760, %v12900_v13  ;;  %v12905_v34 = vand.u32 4294901760, %v5308_v33  ;;  %5703 = vmatmul.mubr.f32.vlgmr.msra.gmra.mrb[8].mxu1 %v12895_v2 }
 0x4d6   :  { %v12908_v25 = vand.u32 4294901760, %v5309_v27  ;;  %7912 = vmatpush3.bf16.msra.mxu1 %v12581_v17  ;;  %v5447_v24 = vand.u32 4294901760, %v5446_v23 }
 0x4d7   :  { %v5454_v45 = vsub.f32 %v12900_v13, %v5453_v28  ;;  %v12915_v15 = vsub.f32 %v5308_v33, %v12905_v34  ;;  %7914 = vmatprep.subr.bf16.mxu1 %v12622_v21  ;;  %v15939_v33 = vld [vmem:[#allocation59_spill] sm:$0xff] }
 0x4d8   :  { %v12919_v62 = vsub.f32 %v5309_v27, %v12908_v25  ;;  %5708 = vmatprep.mubr.f32.mxu1 %v12908_v25  ;;  %v5448_v58 = vsub.f32 %v5446_v23, %v5447_v24  ;;  %v7889_v27 = vpack.c.bf16 %v15939_v33, %v12555_v6 }
 0x4d9   :  { %5710 = vmatmul.mubr.f32.gmra.mrb[10].mxu1 %v12905_v34  ;;  %v5468_v3 = vand.u32 4294901760, %v12915_v15  ;;  %v5455_v55 = vand.u32 4294901760, %v5454_v45  ;;  %v15940_v45 = vld [vmem:[#allocation200_spill] sm:$0xff] }
 0x4da   :  { %7916 = vmatpush3.bf16.msra.mxu1 %v12690_v16  ;;  %5961 = vmatprep.mubr.f32.mxu1 %v5447_v24  ;;  %v5449_v54 = vand.u32 4294901760, %v5448_v58  ;;  %v5462_v4 = vand.u32 4294901760, %v12919_v62  ;;  %v7891_v24 = vpack.c.bf16 %v12612_v8, %v12607_v20  ;;  %v15941_v58 = vld [vmem:[#allocation201_spill] sm:$0xff] }
 0x4db   :  { %7918 = vmatprep.subr.bf16.mxu1 %v12730_v35  ;;  %v5469_v46 = vsub.f32 %v12915_v15, %v5468_v3 }
 0x4dc   :  { %5450 = vmatprep.mubr.f32.mxu0 %v5449_v54  ;;  %v5463_v30 = vsub.f32 %v12919_v62, %v5462_v4  ;;  %v7893_v54 = vpack.c.bf16 %v15941_v58, %v15940_v45 }
 0x4dd   :  { %5456 = vmatmul.mubr.f32.vlgmr.msra.gmra.mrb[8].mxu0 %v5455_v55  ;;  %v5470_v44 = vand.u32 4294901760, %v5469_v46  ;;  %v15945_v46 = vld [vmem:[#allocation66_spill] sm:$0xff] }
 0x4de   :  { %7880 = vmatpush3.bf16.msra.mxu0 %v7879_v22  ;;  %7920 = vmatpush3.bf16.msra.mxu1 %v12737_v9  ;;  %v5464_v48 = vand.u32 4294901760, %v5463_v30  ;;  %v15943_v22 = vld [vmem:[#allocation205_spill] sm:$0xff] }
 0x4df   :  { %7882 = vmatprep.subr.bf16.mxu0 %v7881_v42  ;;  %7922 = vmatprep.subr.bf16.mxu1 %v12760_v60  ;;  %v15944_v42 = vld [vmem:[#allocation65_spill] sm:$0xff] }
 0x4e0   :  { %5465 = vmatprep.mubr.f32.mxu0 %v5464_v48  ;;  %v7897_v30 = vpack.c.bf16 %v15945_v46, %v15944_v42  ;;  %v15946_v48 = vld [vmem:[#allocation68_spill] sm:$0xff] }
 0x4e1   :  { %5471 = vmatmul.mubr.f32.gmra.mrb[10].mxu0 %v5470_v44 }
 0x4e2   :  { %7884 = vmatpush3.bf16.msra.mxu0 %v7883_v43  ;;  %7924 = vmatpush3.bf16.msra.mxu1 %v12773_v32  ;;  %v15947_v43 = vld [vmem:[#allocation71_spill] sm:$0xff] }
 0x4e3   :  { %5845 = vmatprep.mubr.f32.mxu0 %v5446_v23  ;;  %7886 = vmatprep.subr.bf16.mxu0 %v7885_v14  ;;  %v15942_v23 = vld [vmem:[#allocation204_spill] sm:$0xff]  ;;  %v7899_v44 = vpack.c.bf16 %v15947_v43, %v15946_v48  ;;  %v15948_v14 = vpack.c.bf16 %v12787_v12, %v12784_v11 }
 0x4e4   :  { %7926 = vmatprep.subr.bf16.mxu1 %v12824_v26  ;;  %v7895_v55 = vpack.c.bf16 %v15943_v22, %v15942_v23 }
 0x4e6   :  { %7888 = vmatpush3.bf16.msra.mxu0 %v7887_v40  ;;  %7928 = vmatpush3.bf16.msra.mxu1 %v12830_v63  ;;  %v15949_v40 = vpack.c.bf16 %v12791_v51, %v12789_v29 }
 0x4e7   :  { %7890 = vmatprep.subr.bf16.mxu0 %v7889_v27  ;;  %7930 = vmatprep.subr.bf16.mxu1 %v12848_v56  ;;  %v15950_v27 = vpack.c.bf16 %v12805_v19, %v12803_v61 }
 0x4ea   :  { %7892 = vmatpush3.bf16.msra.mxu0 %v7891_v24  ;;  %7932 = vmatpush3.bf16.msra.mxu1 %v12857_v39  ;;  %v15951_v24 = vand.u32 4294901760, %v12408_v41  ;;  %v15958_v41 = vand.u32 4294901760, %v12442_v38  ;;  %v15962_v38 = vand.u32 4294901760, %v12508_v37  ;;  %v15966_v37 = vand.u32 4294901760, %v12555_v6 }
 0x4eb   :  { %7894 = vmatprep.subr.bf16.mxu0 %v7893_v54  ;;  %7934 = vmatprep.subr.bf16.mxu1 %v12861_v49  ;;  %v15952_v54 = vand.u32 4294901760, %v12413_v0  ;;  %v15959_v0 = vand.u32 4294901760, %v12447_v47  ;;  %v15963_v47 = vand.u32 4294901760, %v12513_v10  ;;  %v15967_v10 = vand.u32 4294901760, %v15939_v33 }
 0x4ec   :  { %v15972_v6 = vand.u32 4294901760, %v15942_v23  ;;  %v15980_v23 = vand.u32 4294901760, %v12789_v29 }
 0x4ee   :  { %7896 = vmatpush3.bf16.msra.mxu0 %v7895_v55  ;;  %7936 = vmatpush3.bf16.msra.mxu1 %v12863_v57  ;;  %v7941_v55 = vpack.c.bf16 %v15952_v54, %v15951_v24 }
 0x4ef   :  { %7898 = vmatprep.subr.bf16.mxu0 %v7897_v30  ;;  %7938 = vmatprep.subr.bf16.mxu1 %v12868_v1 }
 0x4f2   :  { %7900 = vmatpush3.bf16.msra.mxu0 %v7899_v44  ;;  %7940 = vmatpush3.bf16.msra.mxu1 %v12870_v36 }
 0x4f3   :  { %7902 = vmatprep.subr.bf16.mxu0 %v15948_v14  ;;  %7974 = vmatprep.subr.bf16.mxu1 %v12572_v31  ;;  %v15953_v31 = vld [vmem:[#allocation209_spill] sm:$0xff] }
 0x4f4   :  { %v6288_v14 = vld [vmem:[%s13091_s6] ss:$0 sm:$0xff]  ;;  %s8240_s6 = smov [#allocation10]  }
 0x4f5   :  { %5965 = vmatmul.mubr.f32.vlgmr.msra.gmra.mrb[12].mxu1 %v5453_v28  ;;  %v15954_v28 = vld [vmem:[#allocation207_spill] sm:$0xff]  ;;  %s6274_s8 = sshll.u32 %s8240_s6, 4  ;;  %s6275_s8 = int_to_ptr.vmem [resolvable:$true] %s6274_s8 }
 0x4f6   :  { %7904 = vmatpush3.bf16.msra.mxu0 %v15949_v40  ;;  %5972 = vmatprep.mubr.f32.mxu1 %v5462_v4  ;;  %v15955_v30 = vpack.c.bf16 %v15953_v31, %v15954_v28  ;;  %v15957_v4 = vand.u32 4294901760, %v12432_v52  ;;  %v15961_v52 = vand.u32 4294901760, %v12466_v7  ;;  %v15965_v7 = vand.u32 4294901760, %v12545_v53  ;;  %s8200_s9 = scalar_lea.vmem %s6275_s8, 256  ;;  %p8205_p5 = scmp.lt.s32.totalorder %s6275_s8, %s6275_s8 }
 0x4f7   :  { %7976 = vmatpush3.bf16.msra.mxu1 %v12581_v17  ;;  %7906 = vmatprep.subr.bf16.mxu0 %v15950_v27  ;;  %v15956_v17 = vand.u32 4294901760, %v12427_v59  ;;  %v15960_v59 = vand.u32 4294901760, %v12461_v5  ;;  %v15964_v5 = vand.u32 4294901760, %v12540_v18  ;;  %v15970_v18 = vand.u32 4294901760, %v15940_v45  ;;  %p8201_p4 = scmp.ne.s32.totalorder %s6275_s8, %s8200_s9  ;;  %p8206_p6 = scmp.lt.s32.totalorder %s8200_s9, %s8200_s9 }
 0x4f8   :  { %7978 = vmatprep.subr.bf16.mxu1 %v12622_v21  ;;  %v7945_v21 = vpack.c.bf16 %v15959_v0, %v15958_v41  ;;  %v15971_v53 = vand.u32 4294901760, %v15941_v58  ;;  %v15978_v45 = vand.u32 4294901760, %v12784_v11  ;;  %v15984_v11 = vand.u32 4294901760, %v15954_v28 }
 0x4f9   :  { %5976 = vmatmul.mubr.f32.gmra.mrb[14].mxu1 %v5468_v3  ;;  %v7943_v44 = vpack.c.bf16 %v15957_v4, %v15956_v17  ;;  %v7947_v3 = vpack.c.bf16 %v15961_v52, %v15960_v59  ;;  %p8207_p7 = por %p8206_p6, %p8205_p5 }
 0x4fa   :  { %7908 = vmatpush3.bf16.msra.mxu0 %v15955_v30  ;;  %6253 = vmatprep.mubr.f32.mxu1 %v12897_v50 }
 0x4fb   :  { %7980 = vmatpush3.bf16.msra.mxu1 %v12690_v16  ;;  %7942 = vmatprep.subr.bf16.mxu0 %v7941_v55  ;;  %v7949_v16 = vpack.c.bf16 %v15963_v47, %v15962_v38  ;;  %p8208_p8 = pnand %p8207_p7, %p8201_p4 }
 0x4fc   :  { %7982 = vmatprep.subr.bf16.mxu1 %v12730_v35  ;;  %v7951_v35 = vpack.c.bf16 %v15965_v7, %v15964_v5 }
 0x4fd   :  { %5848 = vmatmul.mubr.f32.vlgmr.msra.gmra.mrb[12].mxu0 %v12900_v13 }
 0x4fe   :  { %5854 = vmatprep.mubr.f32.mxu0 %v12919_v62  ;;  %7944 = vmatpush3.bf16.msra.mxu0 %v7943_v44  ;;  %v15976_v62 = vand.u32 4294901760, %v15946_v48 }
 0x4ff   :  { %7984 = vmatpush3.bf16.msra.mxu1 %v12737_v9  ;;  %7946 = vmatprep.subr.bf16.mxu0 %v7945_v21  ;;  %v7953_v9 = vpack.c.bf16 %v15967_v10, %v15966_v37 }
 0x500   :  { %7986 = vmatprep.subr.bf16.mxu1 %v12760_v60  ;;  %v15968_v60 = vand.u32 4294901760, %v12607_v20  ;;  %v15974_v20 = vand.u32 4294901760, %v15944_v42  ;;  %v15982_v42 = vand.u32 4294901760, %v12803_v61 }
 0x501   :  { %5857 = vmatmul.mubr.f32.gmra.mrb[14].mxu0 %v12915_v15 }
 0x502   :  { %7948 = vmatpush3.bf16.msra.mxu0 %v7947_v3  ;;  %6142 = vmatprep.mubr.f32.mxu0 %v12897_v50  ;;  %v15969_v50 = vand.u32 4294901760, %v12612_v8  ;;  %v15975_v8 = vand.u32 4294901760, %v15945_v46 }
 0x503   :  { %7988 = vmatpush3.bf16.msra.mxu1 %v12773_v32  ;;  %7950 = vmatprep.subr.bf16.mxu0 %v7949_v16  ;;  %v7957_v32 = vpack.c.bf16 %v15971_v53, %v15970_v18 }
 0x504   :  { %7990 = vmatprep.subr.bf16.mxu1 %v12824_v26  ;;  %v7955_v13 = vpack.c.bf16 %v15969_v50, %v15968_v60  ;;  %v15973_v26 = vand.u32 4294901760, %v15943_v22 }
 0x506   :  { %7952 = vmatpush3.bf16.msra.mxu0 %v7951_v35  ;;  %v7959_v15 = vpack.c.bf16 %v15973_v26, %v15972_v6 }
 0x507   :  { %7992 = vmatpush3.bf16.msra.mxu1 %v12830_v63  ;;  %7954 = vmatprep.subr.bf16.mxu0 %v7953_v9  ;;  %v7961_v63 = vpack.c.bf16 %v15975_v8, %v15974_v20 }
 0x508   :  { %7994 = vmatprep.subr.bf16.mxu1 %v12848_v56  ;;  %v15977_v56 = vand.u32 4294901760, %v15947_v43 }
 0x50a   :  { %7956 = vmatpush3.bf16.msra.mxu0 %v7955_v13  ;;  %v7963_v33 = vpack.c.bf16 %v15977_v56, %v15976_v62 }
 0x50b   :  { %7996 = vmatpush3.bf16.msra.mxu1 %v12857_v39  ;;  %7958 = vmatprep.subr.bf16.mxu0 %v7957_v32  ;;  %v15979_v39 = vand.u32 4294901760, %v12787_v12  ;;  %v15985_v12 = vand.u32 4294901760, %v15953_v31 }
 0x50c   :  { %7998 = vmatprep.subr.bf16.mxu1 %v12861_v49  ;;  %v15981_v49 = vand.u32 4294901760, %v12791_v51 }
 0x50d   :  { %v7965_v58 = vpack.c.bf16 %v15979_v39, %v15978_v45 }
 0x50e   :  { %7960 = vmatpush3.bf16.msra.mxu0 %v7959_v15  ;;  %v7967_v22 = vpack.c.bf16 %v15981_v49, %v15980_v23 }
 0x50f   :  { %8000 = vmatpush3.bf16.msra.mxu1 %v12863_v57  ;;  %7962 = vmatprep.subr.bf16.mxu0 %v7961_v63  ;;  %v15983_v57 = vand.u32 4294901760, %v12805_v19 }
 0x510   :  { %8002 = vmatprep.subr.bf16.mxu1 %v12868_v1  ;;  %v7971_v1 = vpack.c.bf16 %v15985_v12, %v15984_v11 }
 0x511   :  { %v7969_v46 = vpack.c.bf16 %v15983_v57, %v15982_v42 }
 0x512   :  { %7964 = vmatpush3.bf16.msra.mxu0 %v7963_v33 }
 0x513   :  { %8004 = vmatpush3.bf16.msra.mxu1 %v12870_v36  ;;  %7966 = vmatprep.subr.bf16.mxu0 %v7965_v58 }
 0x516   :  { %6255 = vmatmul.mubr.f32.vlgmr.msra.gmra.mrb[16].mxu1 %v12895_v2  ;;  %7968 = vmatpush3.bf16.msra.mxu0 %v7967_v22 }
 0x517   :  { %6260 = vmatprep.mubr.f32.mxu1 %v12908_v25  ;;  %7970 = vmatprep.subr.bf16.mxu0 %v7969_v46 }
 0x51a   :  { %6262 = vmatmul.mubr.f32.gmra.mrb[18].mxu1 %v12905_v34  ;;  %7972 = vmatpush3.bf16.msra.mxu0 %v7971_v1 }
 0x51d   :  { %6144 = vmatmul.mubr.f32.vlgmr.msra.gmra.mrb[16].mxu0 %v12895_v2 }
 0x51e   :  { %6149 = vmatprep.mubr.f32.mxu0 %v12908_v25 }
 0x521   :  { %6151 = vmatmul.mubr.f32.gmra.mrb[18].mxu0 %v12905_v34 }
 0x5a8   :  { %v6359_v19 = vpop.f32.mrb[8].mxu1 }
 0x5a9   :  { %v6360_v29 = vpop.f32.mrb[9].mxu1 }
 0x5aa   :  { %v6361_v51 = vadd.f32 %v6360_v29, %v6359_v19 }
 0x5ac   :  { %v6362_v61 = vpop.f32.mrb[10].mxu1 }
 0x5ad   :  { %v6363_v36 = vpop.f32.mrb[11].mxu1 }
 0x5ae   :  { %v6364_v48 = vadd.f32 %v6363_v36, %v6362_v61 }
 0x5b0   :  { %v6321_v43 = vpop.f32.mrb[8].mxu0 }
 0x5b1   :  { %v6322_v40 = vpop.f32.mrb[9].mxu0 }
 0x5b2   :  { %v6323_v27 = vadd.f32 %v6322_v40, %v6321_v43 }
 0x5b4   :  { %v5458_v24 = vadd.f32 %v6323_v27, %v6288_v14  ;;  %v6324_v54 = vpop.f32.mrb[10].mxu0 }
 0x5b5   :  { %v6325_v2 = vpop.f32.mrb[11].mxu0 }
 0x5b6   :  { %v6326_v55 = vadd.f32 %v6325_v2, %v6324_v54  ;;  %v5705_v25 = vadd.f32 %v6361_v51, %v5458_v24 }
 0x5b8   :  { %v5473_v31 = vadd.f32 %v6326_v55, %v6288_v14 }
 0x5ba   :  { %v5712_v34 = vadd.f32 %v6364_v48, %v5473_v31 }
 0x5c8   :  { %v6435_v28 = vpop.f32.mrb[12].mxu1 }
 0x5c9   :  { %v6436_v30 = vpop.f32.mrb[13].mxu1 }
 0x5ca   :  { %v6437_v17 = vadd.f32 %v6436_v30, %v6435_v28 }
 0x5cc   :  { %v6438_v4 = vpop.f32.mrb[14].mxu1 }
 0x5cd   :  { %v6439_v44 = vpop.f32.mrb[15].mxu1 }
 0x5ce   :  { %v6440_v41 = vadd.f32 %v6439_v44, %v6438_v4 }
 0x5d0   :  { %v6397_v0 = vpop.f32.mrb[12].mxu0 }
 0x5d1   :  { %v6398_v21 = vpop.f32.mrb[13].mxu0 }
 0x5d2   :  { %v6399_v59 = vadd.f32 %v6398_v21, %v6397_v0 }
 0x5d4   :  { %v5850_v52 = vadd.f32 %v6399_v59, %v5705_v25  ;;  %v6400_v3 = vpop.f32.mrb[14].mxu0 }
 0x5d5   :  { %v6401_v38 = vpop.f32.mrb[15].mxu0 }
 0x5d6   :  { %v6402_v47 = vadd.f32 %v6401_v38, %v6400_v3  ;;  %v5967_v16 = vadd.f32 %v6437_v17, %v5850_v52 }
 0x5d8   :  { %v5859_v5 = vadd.f32 %v6402_v47, %v5712_v34 }
 0x5da   :  { %v5978_v7 = vadd.f32 %v6440_v41, %v5859_v5 }
 0x5e9   :  { %v6511_v35 = vpop.f32.mrb[16].mxu1 }
 0x5ea   :  { %v6512_v37 = vpop.f32.mrb[17].mxu1 }
 0x5eb   :  { %v6513_v10 = vadd.f32 %v6512_v37, %v6511_v35 }
 0x5ed   :  { %v6514_v9 = vpop.f32.mrb[18].mxu1 }
 0x5ee   :  { %v6515_v60 = vpop.f32.mrb[19].mxu1 }
 0x5ef   :  { %v6516_v50 = vadd.f32 %v6515_v60, %v6514_v9 }
 0x5f0   :  { %v6473_v13 = vpop.f32.mrb[16].mxu0 }
 0x5f1   :  { %v6474_v18 = vpop.f32.mrb[17].mxu0 }
 0x5f2   :  { %v6475_v53 = vadd.f32 %v6474_v18, %v6473_v13 }
 0x5f4   :  { %v6146_v32 = vadd.f32 %v6475_v53, %v5967_v16  ;;  %v6476_v6 = vpop.f32.mrb[18].mxu0 }
 0x5f5   :  { %v6477_v26 = vpop.f32.mrb[19].mxu0 }
 0x5f6   :  { %v6257_v15 = vadd.f32 %v6513_v10, %v6146_v32  ;;  %v6478_v20 = vadd.f32 %v6477_v26, %v6476_v6 }
 0x5f8   :  { %6267 = vst [vmem:[#allocation10] sm:$0xff] %v6257_v15  ;;  %v6153_v8 = vadd.f32 %v6478_v20, %v5978_v7 }
 0x5fa   :  { %v6264_v63 = vadd.f32 %v6516_v50, %v6153_v8 }
 0x5fc   :  { %6268 = vst [vmem:[#allocation10 + $0x8] sm:$0xff] %v6264_v63 }
 0x5fd   :  { %8211 = shalt.err (!%p8208_p8)
}
 0x5fe   :  { %s8212_s14 = scalar_lea.hbm %s13092_s7, 256 }
 0x5ff   :  { %p8213_p9 = scmp.ne.s32.totalorder %s13092_s7, %s8212_s14  ;;  %p8216_p10 = scmp.lt.u32.totalorder %s8212_s14, %s13092_s7 }
 0x601   :  { %p8218_p11 = pnand %p8216_p10, %p8213_p9 }
 0x603   :  { %8221 = shalt.err (!%p8218_p11)
}
 0x604   :  { %6280 = dma.vmem_to_hbm [thread:$0]  %s6275_s8, 256, %s13092_s7, [#allocation4], %s8238_s3, %s8238_s3, %s8239_s11  }
 0x605   :  { %8228 = dma.done.wait [#allocation4], 256  }
 0x606   :  { %8229 = vsyncadd [#allocation4], 4294967040 }
 0x607   :  { %6284 = vsyncpa [#allocation3], 1 }
 0x608   :  { %6285 = vsyncpa [#allocation6], 1 }
 0x609   :  { %6286 = vsyncpa [#allocation9], 1 }
 0x60a   :  { %6287 = vsyncpa [#allocation4], 1 }

</bundles_post_ra>
